<compile_context>
chip_gen: v5e
topology: v5e:2x2
jax: 0.10.0
libtpu: 0.0.40
codegen_flags: <defaults>
</compile_context>

<pallas_src>
import functools
import math

import jax
import jax.numpy as jnp
from jax.experimental import pallas as pl
from jax.experimental.pallas import tpu as pltpu


# ----------------------------- pallas plumbing ------------------------------

def _full_spec(shape):
    nd = len(shape)
    return pl.BlockSpec(shape, lambda i, _nd=nd: (0,) * _nd)


def _fused_call(kernel, out_shape, *arrays):
    """One pallas_call, grid=(1,), every operand as a single whole-array VMEM block."""
    return pl.pallas_call(
        kernel,
        out_shape=out_shape,
        grid=(1,),
        in_specs=[_full_spec(a.shape) for a in arrays],
        out_specs=_full_spec(out_shape.shape),
    )(*arrays)


# --------------------------- in-kernel math helpers --------------------------

def _ln_rows(x, g, b, eps=1e-5):
    mean = jnp.mean(x, axis=-1, keepdims=True)
    var = jnp.mean((x - mean) ** 2, axis=-1, keepdims=True)
    return (x - mean) * jax.lax.rsqrt(var + eps) * g + b


def _softmax_rows(s):
    s = s - jnp.max(s, axis=-1, keepdims=True)
    p = jnp.exp(s)
    return p * pl.reciprocal(jnp.sum(p, axis=-1, keepdims=True), approx=True)


def _heads_attn_and_out(q, k, v, wo, n_heads, causal):
    """Per-head scaled-dot-product attention + head-wise output projection.

    q: (B, Lq, d_inner), k/v: (B, Lk, d_inner), wo: (d_inner, D_out).
    Returns (B*Lq, D_out). Output projection is accumulated per head
    (mathematically identical to concat-heads @ wo, no lane concat needed).
    """
    B, Lq, d_inner = q.shape
    Lk = k.shape[1]
    Dh = d_inner // n_heads
    scale = 1.0 / math.sqrt(Dh)
    d_out = wo.shape[1]

    mask = None
    if causal:
        qi = jax.lax.broadcasted_iota(jnp.int32, (Lq, Lk), 0)
        kj = jax.lax.broadcasted_iota(jnp.int32, (Lq, Lk), 1)
        mask = (kj > qi)[None, :, :]          # built once, reused across heads

    out = jnp.zeros((B * Lq, d_out), jnp.float32)
    for h in range(n_heads):                  # static unroll; heads are lane slices
        sl = slice(h * Dh, (h + 1) * Dh)
        qh = q[:, :, sl] * scale              # scale folded into q
        kh = k[:, :, sl]
        vh = v[:, :, sl]
        s = jax.lax.dot_general(qh, kh, (((2,), (2,)), ((0,), (0,))),
                                preferred_element_type=jnp.float32)  # (B,Lq,Lk)
        if mask is not None:
            s = jnp.where(mask, -1e9, s)      # large finite (robust vs. -inf)
        p = _softmax_rows(s)
        oh = jax.lax.dot_general(p, vh, (((2,), (1,)), ((0,), (0,))),
                                 preferred_element_type=jnp.float32)  # (B,Lq,Dh)
        out = out + jnp.dot(oh.reshape(B * Lq, Dh), wo[sl, :],
                            preferred_element_type=jnp.float32)
    return out


def _mha_self(x3, wqkv, bqkv, wo, bo, n_heads, causal):
    B, L, D = x3.shape
    d3 = wqkv.shape[1]
    d_inner = d3 // 3
    qkv = (jnp.dot(x3.reshape(B * L, D), wqkv,
                   preferred_element_type=jnp.float32) + bqkv).reshape(B, L, d3)
    q = qkv[:, :, :d_inner]
    k = qkv[:, :, d_inner:2 * d_inner]
    v = qkv[:, :, 2 * d_inner:]
    return _heads_attn_and_out(q, k, v, wo, n_heads, causal) + bo   # (B*L, D)


def _mha_cross(x3, enc3, wq, bq, wkv, bkv, wo, bo, n_heads):
    B, Lq, D = x3.shape
    Lk, De = enc3.shape[1], enc3.shape[2]
    d_inner = wq.shape[1]
    q = (jnp.dot(x3.reshape(B * Lq, D), wq,
                 preferred_element_type=jnp.float32) + bq).reshape(B, Lq, d_inner)
    kv = (jnp.dot(enc3.reshape(B * Lk, De), wkv,
                  preferred_element_type=jnp.float32) + bkv).reshape(B, Lk, 2 * d_inner)
    k = kv[:, :, :d_inner]
    v = kv[:, :, d_inner:]
    return _heads_attn_and_out(q, k, v, wo, n_heads, causal=False) + bo  # (B*Lq, D)


def _ffn(x2, w1, b1, w2, b2):
    # TODO(synk): PyTorch F.gelu defaults to exact-erf; tanh approximation used here.
    y = jax.nn.gelu(jnp.dot(x2, w1, preferred_element_type=jnp.float32) + b1,
                    approximate=True)
    return jnp.dot(y, w2, preferred_element_type=jnp.float32) + b2


# --------------------------------- kernels -----------------------------------

def _embedding_kernel(x_ref, xm_ref, wv_ref, bv_ref, wt_ref, pos_ref, o_ref):
    B, L, C = x_ref.shape
    Cm = xm_ref.shape[2]
    D = wv_ref.shape[1]
    x2 = x_ref[...].reshape(B * L, C)
    xm2 = xm_ref[...].reshape(B * L, Cm)
    out = jnp.dot(x2, wv_ref[...], preferred_element_type=jnp.float32) + bv_ref[...]
    out = out + jnp.dot(xm2, wt_ref[...], preferred_element_type=jnp.float32)  # no bias
    o_ref[...] = out.reshape(B, L, D) + pos_ref[...][None, :, :]


def _encoder_layer_kernel(x_ref, wqkv_ref, bqkv_ref, wo_ref, bo_ref,
                          ln1g_ref, ln1b_ref, ff1w_ref, ff1b_ref,
                          ff2w_ref, ff2b_ref, ln2g_ref, ln2b_ref,
                          o_ref, *, n_heads):
    x3 = x_ref[...]
    B, L, D = x3.shape
    x2 = x3.reshape(B * L, D)
    a = _mha_self(x3, wqkv_ref[...], bqkv_ref[...], wo_ref[...], bo_ref[...],
                  n_heads, causal=False)
    h1 = _ln_rows(x2 + a, ln1g_ref[...], ln1b_ref[...])
    y = _ffn(h1, ff1w_ref[...], ff1b_ref[...], ff2w_ref[...], ff2b_ref[...])
    o_ref[...] = _ln_rows(h1 + y, ln2g_ref[...], ln2b_ref[...]).reshape(B, L, D)


def _decoder_layer_kernel(x_ref, enc_ref,
                          s_wqkv_ref, s_bqkv_ref, s_wo_ref, s_bo_ref,
                          c_wq_ref, c_bq_ref, c_wkv_ref, c_bkv_ref, c_wo_ref, c_bo_ref,
                          ln1g_ref, ln1b_ref, ln2g_ref, ln2b_ref, ln3g_ref, ln3b_ref,
                          ff1w_ref, ff1b_ref, ff2w_ref, ff2b_ref,
                          o_ref, *, n_heads):
    x3 = x_ref[...]
    enc3 = enc_ref[...]
    B, L, D = x3.shape
    x2 = x3.reshape(B * L, D)
    a = _mha_self(x3, s_wqkv_ref[...], s_bqkv_ref[...], s_wo_ref[...], s_bo_ref[...],
                  n_heads, causal=True)
    h1 = _ln_rows(x2 + a, ln1g_ref[...], ln1b_ref[...])
    c = _mha_cross(h1.reshape(B, L, D), enc3,
                   c_wq_ref[...], c_bq_ref[...], c_wkv_ref[...], c_bkv_ref[...],
                   c_wo_ref[...], c_bo_ref[...], n_heads)
    h2 = _ln_rows(h1 + c, ln2g_ref[...], ln2b_ref[...])
    y = _ffn(h2, ff1w_ref[...], ff1b_ref[...], ff2w_ref[...], ff2b_ref[...])
    o_ref[...] = _ln_rows(h2 + y, ln3g_ref[...], ln3b_ref[...]).reshape(B, L, D)


def _layernorm_kernel(x_ref, g_ref, b_ref, o_ref):
    x3 = x_ref[...]
    B, L, D = x3.shape
    o_ref[...] = _ln_rows(x3.reshape(B * L, D), g_ref[...], b_ref[...]).reshape(B, L, D)


def _norm_project_kernel(x_ref, g_ref, b_ref, wp_ref, bp_ref, o_ref):
    x3 = x_ref[...]
    B, L, D = x3.shape
    C = wp_ref.shape[1]
    xn = _ln_rows(x3.reshape(B * L, D), g_ref[...], b_ref[...])
    o = jnp.dot(xn, wp_ref[...], preferred_element_type=jnp.float32) + bp_ref[...]
    o_ref[...] = o.reshape(B, L, C)


# ------------------------------ python wrappers -------------------------------

def data_embedding(x, x_mark, p_emb):
    B, L, _ = x.shape
    D = p_emb["wv"].shape[1]
    pos = p_emb["pos"][:L]
    return _fused_call(_embedding_kernel,
                       jax.ShapeDtypeStruct((B, L, D), jnp.float32),
                       x, x_mark, p_emb["wv"], p_emb["bv"], p_emb["wt"], pos)


def encoder_layer(x, lp, n_heads):
    B, L, D = x.shape
    sa = lp["self_attn"]
    return _fused_call(
        functools.partial(_encoder_layer_kernel, n_heads=n_heads),
        jax.ShapeDtypeStruct((B, L, D), jnp.float32),
        x,
        sa["wqkv"], sa["bqkv"], sa["wo"], sa["bo"],
        lp["ln1_g"], lp["ln1_b"],
        lp["ff1_w"], lp["ff1_b"], lp["ff2_w"], lp["ff2_b"],
        lp["ln2_g"], lp["ln2_b"])


def decoder_layer(x, enc, lp, n_heads):
    B, L, D = x.shape
    sa, ca = lp["self_attn"], lp["cross_attn"]
    return _fused_call(
        functools.partial(_decoder_layer_kernel, n_heads=n_heads),
        jax.ShapeDtypeStruct((B, L, D), jnp.float32),
        x, enc,
        sa["wqkv"], sa["bqkv"], sa["wo"], sa["bo"],
        ca["wq"], ca["bq"], ca["wkv"], ca["bkv"], ca["wo"], ca["bo"],
        lp["ln1_g"], lp["ln1_b"], lp["ln2_g"], lp["ln2_b"], lp["ln3_g"], lp["ln3_b"],
        lp["ff1_w"], lp["ff1_b"], lp["ff2_w"], lp["ff2_b"])


def layer_norm(x, g, b):
    return _fused_call(_layernorm_kernel,
                       jax.ShapeDtypeStruct(x.shape, jnp.float32), x, g, b)


def norm_project(x, g, b, wp, bp):
    B, L, _ = x.shape
    C = wp.shape[1]
    return _fused_call(_norm_project_kernel,
                       jax.ShapeDtypeStruct((B, L, C), jnp.float32),
                       x, g, b, wp, bp)


# ------------------------------- model params ---------------------------------

def sinusoidal_pe(max_len, d_model):
    position = jnp.arange(max_len, dtype=jnp.float32)[:, None]
    div = jnp.exp(jnp.arange(0, d_model, 2, dtype=jnp.float32)
                  * (-math.log(10000.0) / d_model))
    pe = jnp.zeros((max_len, d_model), jnp.float32)
    pe = pe.at[:, 0::2].set(jnp.sin(position * div))
    pe = pe.at[:, 1::2].set(jnp.cos(position * div))
    return pe


def init_params(key, cfg):
    keys = iter(jax.random.split(key, 512))

    def w(shape, scale=0.02):
        return scale * jax.random.normal(next(keys), shape, dtype=jnp.float32)

    def zrow(n):
        return jnp.zeros((1, n), jnp.float32)

    def orow(n):
        return jnp.ones((1, n), jnp.float32)

    d_model, d_ff = cfg["d_model"], cfg["d_ff"]

    def self_attn_params(d_in, d_inner):      # fused QKV weights/biases
        return dict(wqkv=w((d_in, 3 * d_inner)), bqkv=zrow(3 * d_inner),
                    wo=w((d_inner, d_in)), bo=zrow(d_in))

    def cross_attn_params(d_in, d_inner):     # fused KV weights/biases
        return dict(wq=w((d_in, d_inner)), bq=zrow(d_inner),
                    wkv=w((d_in, 2 * d_inner)), bkv=zrow(2 * d_inner),
                    wo=w((d_inner, d_in)), bo=zrow(d_in))

    def ffn_ln_params(n_ln):
        p = dict(ff1_w=w((d_model, d_ff)), ff1_b=zrow(d_ff),
                 ff2_w=w((d_ff, d_model)), ff2_b=zrow(d_model))
        for i in range(1, n_ln + 1):
            p[f"ln{i}_g"] = orow(d_model)
            p[f"ln{i}_b"] = zrow(d_model)
        return p

    max_len = cfg["seq_len"] + cfg["pred_len"]
    params = dict(
        enc_emb=dict(wv=w((cfg["enc_in"], d_model)), bv=zrow(d_model),
                     wt=w((cfg["mark_in"], d_model)), pos=sinusoidal_pe(max_len, d_model)),
        dec_emb=dict(wv=w((cfg["dec_in"], d_model)), bv=zrow(d_model),
                     wt=w((cfg["mark_in"], d_model)), pos=sinusoidal_pe(max_len, d_model)),
        enc_layers=[], dec_layers=[],
        enc_norm_g=orow(d_model), enc_norm_b=zrow(d_model),
        dec_norm_g=orow(d_model), dec_norm_b=zrow(d_model),
        proj_w=w((d_model, cfg["c_out"])), proj_b=zrow(cfg["c_out"]),
    )

    for _ in range(cfg["e_layers"]):
        lp = ffn_ln_params(2)
        lp["self_attn"] = self_attn_params(d_model, d_model // 2)   # as instantiated
        params["enc_layers"].append(lp)

    for _ in range(cfg["d_layers"]):
        lp = ffn_ln_params(3)
        lp["self_attn"] = self_attn_params(d_model, d_model // 2)   # causal self-attn
        lp["cross_attn"] = cross_attn_params(d_model, d_model)       # cross-attn
        params["dec_layers"].append(lp)

    return params


# --------------------------------- forward ------------------------------------

def transformer_forward(params, x_enc, x_mark_enc, x_dec, x_mark_dec, cfg):
    n_heads = cfg["n_heads"]

    # -------- encoder --------
    enc = data_embedding(x_enc, x_mark_enc, params["enc_emb"])
    for lp in params["enc_layers"]:
        enc = encoder_layer(enc, lp, n_heads)                       # 1 kernel / layer
    enc = layer_norm(enc, params["enc_norm_g"], params["enc_norm_b"])

    # -------- decoder --------
    dec = data_embedding(x_dec, x_mark_dec, params["dec_emb"])
    for lp in params["dec_layers"]:
        dec = decoder_layer(dec, enc, lp, n_heads)                  # 1 kernel / layer
    dec = norm_project(dec, params["dec_norm_g"], params["dec_norm_b"],
                       params["proj_w"], params["proj_b"])

    # Model.forward returns dec_out[:, -pred_len:, :]
    return dec[:, -cfg["pred_len"]:, :]


# ----------------------------------- main --------------------------------------

if __name__ == "__main__":
    cfg = dict(
        seq_len=8, pred_len=4,
        enc_in=4, dec_in=4, c_out=4, mark_in=4,
        d_model=32, n_heads=4, d_ff=64,
        e_layers=2, d_layers=1,
    )
    B = 2
    dec_len = cfg["seq_len"] + cfg["pred_len"]   # label_len == seq_len

    key = jax.random.PRNGKey(0)
    k_p, k1, k2, k3, k4 = jax.random.split(key, 5)
    params = init_params(k_p, cfg)

    x_enc = jax.random.normal(k1, (B, cfg["seq_len"], cfg["enc_in"]), jnp.float32)
    x_mark_enc = jax.random.normal(k2, (B, cfg["seq_len"], cfg["mark_in"]), jnp.float32)
    x_dec = jax.random.normal(k3, (B, dec_len, cfg["dec_in"]), jnp.float32)
    x_mark_dec = jax.random.normal(k4, (B, dec_len, cfg["mark_in"]), jnp.float32)

    fwd = jax.jit(functools.partial(transformer_forward, cfg=cfg))
    out = fwd(params, x_enc, x_mark_enc, x_dec, x_mark_dec)
    out = jax.block_until_ready(out)

    assert out.shape == (B, cfg["pred_len"], cfg["c_out"]), out.shape
    assert bool(jnp.all(jnp.isfinite(out)))
    print("KERNEL_OK")
</pallas_src>

<mosaic_0001>
module attributes {stable_mosaic.version = 11 : i64} {
  func.func @_embedding_kernel(%arg0: i32, %arg1: memref<2x8x4xf32, #tpu.memory_space<vmem>>, %arg2: memref<2x8x4xf32, #tpu.memory_space<vmem>>, %arg3: memref<4x32xf32, #tpu.memory_space<vmem>>, %arg4: memref<1x32xf32, #tpu.memory_space<vmem>>, %arg5: memref<4x32xf32, #tpu.memory_space<vmem>>, %arg6: memref<8x32xf32, #tpu.memory_space<vmem>>, %arg7: memref<2x8x32xf32, #tpu.memory_space<vmem>>) attributes {dimension_semantics = [#tpu.dimension_semantics<arbitrary>], iteration_bounds = array<i64: 1>, scalar_prefetch = 0 : i64, scratch_operands = 0 : i64, tpu.core_type = #tpu.core_type<tc>, window_params = [{pipeline_mode = #tpu.pipeline_mode<synchronous>, transform_indices = @transform_0, window_bounds = array<i64: 2, 8, 4>}, {pipeline_mode = #tpu.pipeline_mode<synchronous>, transform_indices = @transform_1, window_bounds = array<i64: 2, 8, 4>}, {pipeline_mode = #tpu.pipeline_mode<synchronous>, transform_indices = @transform_2, window_bounds = array<i64: 4, 32>}, {pipeline_mode = #tpu.pipeline_mode<synchronous>, transform_indices = @transform_3, window_bounds = array<i64: 1, 32>}, {pipeline_mode = #tpu.pipeline_mode<synchronous>, transform_indices = @transform_4, window_bounds = array<i64: 4, 32>}, {pipeline_mode = #tpu.pipeline_mode<synchronous>, transform_indices = @transform_5, window_bounds = array<i64: 8, 32>}, {pipeline_mode = #tpu.pipeline_mode<synchronous>, transform_indices = @transform_6, window_bounds = array<i64: 2, 8, 32>}]} {
    %c0 = arith.constant 0 : index
    %c0_0 = arith.constant 0 : index
    %c0_1 = arith.constant 0 : index
    %0 = vector.load %arg1[%c0, %c0_0, %c0_1] : memref<2x8x4xf32, #tpu.memory_space<vmem>>, vector<2x8x4xf32>
    %1 = vector.shape_cast %0 : vector<2x8x4xf32> to vector<16x4xf32>
    %c0_2 = arith.constant 0 : index
    %c0_3 = arith.constant 0 : index
    %c0_4 = arith.constant 0 : index
    %2 = vector.load %arg2[%c0_2, %c0_3, %c0_4] : memref<2x8x4xf32, #tpu.memory_space<vmem>>, vector<2x8x4xf32>
    %3 = vector.shape_cast %2 : vector<2x8x4xf32> to vector<16x4xf32>
    %c0_5 = arith.constant 0 : index
    %c0_6 = arith.constant 0 : index
    %4 = vector.load %arg3[%c0_5, %c0_6] : memref<4x32xf32, #tpu.memory_space<vmem>>, vector<4x32xf32>
    %cst = arith.constant dense<0.000000e+00> : vector<16x32xf32>
    %5 = tpu.matmul %1, %4, %cst {dimension_numbers = #tpu.dot_dimension_numbers<[1], [0], [0], [1], [0, 0, 1, 1], [], []>} : vector<16x4xf32>, vector<4x32xf32>, vector<16x32xf32> -> vector<16x32xf32>
    %c0_7 = arith.constant 0 : index
    %c0_8 = arith.constant 0 : index
    %6 = vector.load %arg4[%c0_7, %c0_8] : memref<1x32xf32, #tpu.memory_space<vmem>>, vector<1x32xf32>
    %7 = vector.broadcast %6 : vector<1x32xf32> to vector<16x32xf32>
    %8 = arith.addf %5, %7 : vector<16x32xf32>
    %c0_9 = arith.constant 0 : index
    %c0_10 = arith.constant 0 : index
    %9 = vector.load %arg5[%c0_9, %c0_10] : memref<4x32xf32, #tpu.memory_space<vmem>>, vector<4x32xf32>
    %cst_11 = arith.constant dense<0.000000e+00> : vector<16x32xf32>
    %10 = tpu.matmul %3, %9, %cst_11 {dimension_numbers = #tpu.dot_dimension_numbers<[1], [0], [0], [1], [0, 0, 1, 1], [], []>} : vector<16x4xf32>, vector<4x32xf32>, vector<16x32xf32> -> vector<16x32xf32>
    %11 = arith.addf %8, %10 : vector<16x32xf32>
    %12 = vector.shape_cast %11 : vector<16x32xf32> to vector<2x8x32xf32>
    %c0_12 = arith.constant 0 : index
    %c0_13 = arith.constant 0 : index
    %13 = vector.load %arg6[%c0_12, %c0_13] : memref<8x32xf32, #tpu.memory_space<vmem>>, vector<8x32xf32>
    %14 = vector.shape_cast %13 : vector<8x32xf32> to vector<1x8x32xf32>
    %15 = vector.broadcast %14 : vector<1x8x32xf32> to vector<2x8x32xf32>
    %16 = arith.addf %12, %15 : vector<2x8x32xf32>
    %c0_14 = arith.constant 0 : index
    %c0_15 = arith.constant 0 : index
    %c0_16 = arith.constant 0 : index
    %17 = vector.load %arg7[%c0_14, %c0_15, %c0_16] : memref<2x8x32xf32, #tpu.memory_space<vmem>>, vector<2x8x32xf32>
    tpu.vector_store %arg7[%c0_14, %c0_15, %c0_16], %16 {strides = array<i32>} : memref<2x8x32xf32, #tpu.memory_space<vmem>>, vector<2x8x32xf32>,
    return
  }
  func.func @transform_0(%arg0: i32) -> (i32, i32, i32) {
    %c0_i32 = arith.constant 0 : i32
    %c0_i32_0 = arith.constant 0 : i32
    %c0_i32_1 = arith.constant 0 : i32
    %c0_i32_2 = arith.constant 0 : i32
    return %c0_i32, %c0_i32_0, %c0_i32_1 : i32, i32, i32
  }
  func.func @transform_1(%arg0: i32) -> (i32, i32, i32) {
    %c0_i32 = arith.constant 0 : i32
    %c0_i32_0 = arith.constant 0 : i32
    %c0_i32_1 = arith.constant 0 : i32
    %c0_i32_2 = arith.constant 0 : i32
    return %c0_i32, %c0_i32_0, %c0_i32_1 : i32, i32, i32
  }
  func.func @transform_2(%arg0: i32) -> (i32, i32) {
    %c0_i32 = arith.constant 0 : i32
    %c0_i32_0 = arith.constant 0 : i32
    %c0_i32_1 = arith.constant 0 : i32
    return %c0_i32, %c0_i32_0 : i32, i32
  }
  func.func @transform_3(%arg0: i32) -> (i32, i32) {
    %c0_i32 = arith.constant 0 : i32
    %c0_i32_0 = arith.constant 0 : i32
    %c0_i32_1 = arith.constant 0 : i32
    return %c0_i32, %c0_i32_0 : i32, i32
  }
  func.func @transform_4(%arg0: i32) -> (i32, i32) {
    %c0_i32 = arith.constant 0 : i32
    %c0_i32_0 = arith.constant 0 : i32
    %c0_i32_1 = arith.constant 0 : i32
    return %c0_i32, %c0_i32_0 : i32, i32
  }
  func.func @transform_5(%arg0: i32) -> (i32, i32) {
    %c0_i32 = arith.constant 0 : i32
    %c0_i32_0 = arith.constant 0 : i32
    %c0_i32_1 = arith.constant 0 : i32
    return %c0_i32, %c0_i32_0 : i32, i32
  }
  func.func @transform_6(%arg0: i32) -> (i32, i32, i32) {
    %c0_i32 = arith.constant 0 : i32
    %c0_i32_0 = arith.constant 0 : i32
    %c0_i32_1 = arith.constant 0 : i32
    %c0_i32_2 = arith.constant 0 : i32
    return %c0_i32, %c0_i32_0, %c0_i32_1 : i32, i32, i32
  }
}

module attributes {stable_mosaic.version = 11 : i64} {
  func.func @_encoder_layer_kernel(%arg0: i32, %arg1: memref<2x8x32xf32, #tpu.memory_space<vmem>>, %arg2: memref<32x48xf32, #tpu.memory_space<vmem>>, %arg3: memref<1x48xf32, #tpu.memory_space<vmem>>, %arg4: memref<16x32xf32, #tpu.memory_space<vmem>>, %arg5: memref<1x32xf32, #tpu.memory_space<vmem>>, %arg6: memref<1x32xf32, #tpu.memory_space<vmem>>, %arg7: memref<1x32xf32, #tpu.memory_space<vmem>>, %arg8: memref<32x64xf32, #tpu.memory_space<vmem>>, %arg9: memref<1x64xf32, #tpu.memory_space<vmem>>, %arg10: memref<64x32xf32, #tpu.memory_space<vmem>>, %arg11: memref<1x32xf32, #tpu.memory_space<vmem>>, %arg12: memref<1x32xf32, #tpu.memory_space<vmem>>, %arg13: memref<1x32xf32, #tpu.memory_space<vmem>>, %arg14: memref<2x8x32xf32, #tpu.memory_space<vmem>>) attributes {dimension_semantics = [#tpu.dimension_semantics<arbitrary>], iteration_bounds = array<i64: 1>, scalar_prefetch = 0 : i64, scratch_operands = 0 : i64, tpu.core_type = #tpu.core_type<tc>, window_params = [{pipeline_mode = #tpu.pipeline_mode<synchronous>, transform_indices = @transform_0, window_bounds = array<i64: 2, 8, 32>}, {pipeline_mode = #tpu.pipeline_mode<synchronous>, transform_indices = @transform_1, window_bounds = array<i64: 32, 48>}, {pipeline_mode = #tpu.pipeline_mode<synchronous>, transform_indices = @transform_2, window_bounds = array<i64: 1, 48>}, {pipeline_mode = #tpu.pipeline_mode<synchronous>, transform_indices = @transform_3, window_bounds = array<i64: 16, 32>}, {pipeline_mode = #tpu.pipeline_mode<synchronous>, transform_indices = @transform_4, window_bounds = array<i64: 1, 32>}, {pipeline_mode = #tpu.pipeline_mode<synchronous>, transform_indices = @transform_5, window_bounds = array<i64: 1, 32>}, {pipeline_mode = #tpu.pipeline_mode<synchronous>, transform_indices = @transform_6, window_bounds = array<i64: 1, 32>}, {pipeline_mode = #tpu.pipeline_mode<synchronous>, transform_indices = @transform_7, window_bounds = array<i64: 32, 64>}, {pipeline_mode = #tpu.pipeline_mode<synchronous>, transform_indices = @transform_8, window_bounds = array<i64: 1, 64>}, {pipeline_mode = #tpu.pipeline_mode<synchronous>, transform_indices = @transform_9, window_bounds = array<i64: 64, 32>}, {pipeline_mode = #tpu.pipeline_mode<synchronous>, transform_indices = @transform_10, window_bounds = array<i64: 1, 32>}, {pipeline_mode = #tpu.pipeline_mode<synchronous>, transform_indices = @transform_11, window_bounds = array<i64: 1, 32>}, {pipeline_mode = #tpu.pipeline_mode<synchronous>, transform_indices = @transform_12, window_bounds = array<i64: 1, 32>}, {pipeline_mode = #tpu.pipeline_mode<synchronous>, transform_indices = @transform_13, window_bounds = array<i64: 2, 8, 32>}]} {
    %c0 = arith.constant 0 : index
    %c0_0 = arith.constant 0 : index
    %c0_1 = arith.constant 0 : index
    %0 = vector.load %arg1[%c0, %c0_0, %c0_1] : memref<2x8x32xf32, #tpu.memory_space<vmem>>, vector<2x8x32xf32>
    %1 = vector.shape_cast %0 : vector<2x8x32xf32> to vector<16x32xf32>
    %c0_2 = arith.constant 0 : index
    %c0_3 = arith.constant 0 : index
    %2 = vector.load %arg2[%c0_2, %c0_3] : memref<32x48xf32, #tpu.memory_space<vmem>>, vector<32x48xf32>
    %c0_4 = arith.constant 0 : index
    %c0_5 = arith.constant 0 : index
    %3 = vector.load %arg3[%c0_4, %c0_5] : memref<1x48xf32, #tpu.memory_space<vmem>>, vector<1x48xf32>
    %c0_6 = arith.constant 0 : index
    %c0_7 = arith.constant 0 : index
    %4 = vector.load %arg4[%c0_6, %c0_7] : memref<16x32xf32, #tpu.memory_space<vmem>>, vector<16x32xf32>
    %c0_8 = arith.constant 0 : index
    %c0_9 = arith.constant 0 : index
    %5 = vector.load %arg5[%c0_8, %c0_9] : memref<1x32xf32, #tpu.memory_space<vmem>>, vector<1x32xf32>
    %6 = vector.shape_cast %0 : vector<2x8x32xf32> to vector<16x32xf32>
    %cst = arith.constant dense<0.000000e+00> : vector<16x48xf32>
    %7 = tpu.matmul %6, %2, %cst {dimension_numbers = #tpu.dot_dimension_numbers<[1], [0], [0], [1], [0, 0, 1, 1], [], []>} : vector<16x32xf32>, vector<32x48xf32>, vector<16x48xf32> -> vector<16x48xf32>
    %8 = vector.broadcast %3 : vector<1x48xf32> to vector<16x48xf32>
    %9 = arith.addf %7, %8 : vector<16x48xf32>
    %10 = vector.shape_cast %9 : vector<16x48xf32> to vector<2x8x48xf32>
    %11 = vector.extract_strided_slice %10 {offsets = [0, 0, 0], sizes = [2, 8, 16], strides = [1, 1, 1]} : vector<2x8x48xf32> to vector<2x8x16xf32>
    %12 = vector.extract_strided_slice %10 {offsets = [0, 0, 16], sizes = [2, 8, 16], strides = [1, 1, 1]} : vector<2x8x48xf32> to vector<2x8x16xf32>
    %13 = vector.extract_strided_slice %10 {offsets = [0, 0, 32], sizes = [2, 8, 16], strides = [1, 1, 1]} : vector<2x8x48xf32> to vector<2x8x16xf32>
    %cst_10 = arith.constant 0.000000e+00 : f32
    %14 = vector.broadcast %cst_10 : f32 to vector<16x32xf32>
    %15 = vector.extract_strided_slice %11 {offsets = [0, 0, 0], sizes = [2, 8, 4], strides = [1, 1, 1]} : vector<2x8x16xf32> to vector<2x8x4xf32>
    %cst_11 = arith.constant 5.000000e-01 : f32
    %16 = vector.broadcast %cst_11 : f32 to vector<2x8x4xf32>
    %17 = arith.mulf %15, %16 : vector<2x8x4xf32>
    %18 = vector.extract_strided_slice %12 {offsets = [0, 0, 0], sizes = [2, 8, 4], strides = [1, 1, 1]} : vector<2x8x16xf32> to vector<2x8x4xf32>
    %19 = vector.extract_strided_slice %13 {offsets = [0, 0, 0], sizes = [2, 8, 4], strides = [1, 1, 1]} : vector<2x8x16xf32> to vector<2x8x4xf32>
    %cst_12 = arith.constant dense<0.000000e+00> : vector<2x8x8xf32>
    %20 = tpu.matmul %17, %18, %cst_12 {dimension_numbers = #tpu.dot_dimension_numbers<[2], [2], [1], [1], [0, 0, 0, 1, 1, 1], [0], [0]>} : vector<2x8x4xf32>, vector<2x8x4xf32>, vector<2x8x8xf32> -> vector<2x8x8xf32>
    %cst_13 = arith.constant dense<0xFF800000> : vector<2x8xf32>
    %21 = vector.multi_reduction <maximumf>, %20, %cst_13 [2] : vector<2x8x8xf32> to vector<2x8xf32>
    %22 = vector.shape_cast %21 : vector<2x8xf32> to vector<2x8x1xf32>
    %23 = vector.broadcast %22 : vector<2x8x1xf32> to vector<2x8x8xf32>
    %24 = arith.subf %20, %23 : vector<2x8x8xf32>
    %25 = math.exp %24 : vector<2x8x8xf32>
    %cst_14 = arith.constant dense<0.000000e+00> : vector<2x8xf32>
    %26 = vector.multi_reduction <add>, %25, %cst_14 [2] : vector<2x8x8xf32> to vector<2x8xf32>
    %27 = vector.shape_cast %26 : vector<2x8xf32> to vector<2x8x1xf32>
    %28 = tpu.reciprocal %27 {approx = true} : vector<2x8x1xf32> -> vector<2x8x1xf32>
    %29 = vector.broadcast %28 : vector<2x8x1xf32> to vector<2x8x8xf32>
    %30 = arith.mulf %25, %29 : vector<2x8x8xf32>
    %cst_15 = arith.constant dense<0.000000e+00> : vector<2x8x4xf32>
    %31 = tpu.matmul %30, %19, %cst_15 {dimension_numbers = #tpu.dot_dimension_numbers<[2], [1], [1], [2], [0, 0, 0, 1, 1, 2], [0], [0]>} : vector<2x8x8xf32>, vector<2x8x4xf32>, vector<2x8x4xf32> -> vector<2x8x4xf32>
    %32 = vector.shape_cast %31 : vector<2x8x4xf32> to vector<16x4xf32>
    %33 = vector.extract_strided_slice %4 {offsets = [0, 0], sizes = [4, 32], strides = [1, 1]} : vector<16x32xf32> to vector<4x32xf32>
    %cst_16 = arith.constant dense<0.000000e+00> : vector<16x32xf32>
    %34 = tpu.matmul %32, %33, %cst_16 {dimension_numbers = #tpu.dot_dimension_numbers<[1], [0], [0], [1], [0, 0, 1, 1], [], []>} : vector<16x4xf32>, vector<4x32xf32>, vector<16x32xf32> -> vector<16x32xf32>
    %35 = arith.addf %14, %34 : vector<16x32xf32>
    %36 = vector.extract_strided_slice %11 {offsets = [0, 0, 4], sizes = [2, 8, 4], strides = [1, 1, 1]} : vector<2x8x16xf32> to vector<2x8x4xf32>
    %cst_17 = arith.constant 5.000000e-01 : f32
    %37 = vector.broadcast %cst_17 : f32 to vector<2x8x4xf32>
    %38 = arith.mulf %36, %37 : vector<2x8x4xf32>
    %39 = vector.extract_strided_slice %12 {offsets = [0, 0, 4], sizes = [2, 8, 4], strides = [1, 1, 1]} : vector<2x8x16xf32> to vector<2x8x4xf32>
    %40 = vector.extract_strided_slice %13 {offsets = [0, 0, 4], sizes = [2, 8, 4], strides = [1, 1, 1]} : vector<2x8x16xf32> to vector<2x8x4xf32>
    %cst_18 = arith.constant dense<0.000000e+00> : vector<2x8x8xf32>
    %41 = tpu.matmul %38, %39, %cst_18 {dimension_numbers = #tpu.dot_dimension_numbers<[2], [2], [1], [1], [0, 0, 0, 1, 1, 1], [0], [0]>} : vector<2x8x4xf32>, vector<2x8x4xf32>, vector<2x8x8xf32> -> vector<2x8x8xf32>
    %cst_19 = arith.constant dense<0xFF800000> : vector<2x8xf32>
    %42 = vector.multi_reduction <maximumf>, %41, %cst_19 [2] : vector<2x8x8xf32> to vector<2x8xf32>
    %43 = vector.shape_cast %42 : vector<2x8xf32> to vector<2x8x1xf32>
    %44 = vector.broadcast %43 : vector<2x8x1xf32> to vector<2x8x8xf32>
    %45 = arith.subf %41, %44 : vector<2x8x8xf32>
    %46 = math.exp %45 : vector<2x8x8xf32>
    %cst_20 = arith.constant dense<0.000000e+00> : vector<2x8xf32>
    %47 = vector.multi_reduction <add>, %46, %cst_20 [2] : vector<2x8x8xf32> to vector<2x8xf32>
    %48 = vector.shape_cast %47 : vector<2x8xf32> to vector<2x8x1xf32>
    %49 = tpu.reciprocal %48 {approx = true} : vector<2x8x1xf32> -> vector<2x8x1xf32>
    %50 = vector.broadcast %49 : vector<2x8x1xf32> to vector<2x8x8xf32>
    %51 = arith.mulf %46, %50 : vector<2x8x8xf32>
    %cst_21 = arith.constant dense<0.000000e+00> : vector<2x8x4xf32>
    %52 = tpu.matmul %51, %40, %cst_21 {dimension_numbers = #tpu.dot_dimension_numbers<[2], [1], [1], [2], [0, 0, 0, 1, 1, 2], [0], [0]>} : vector<2x8x8xf32>, vector<2x8x4xf32>, vector<2x8x4xf32> -> vector<2x8x4xf32>
    %53 = vector.shape_cast %52 : vector<2x8x4xf32> to vector<16x4xf32>
    %54 = vector.extract_strided_slice %4 {offsets = [4, 0], sizes = [4, 32], strides = [1, 1]} : vector<16x32xf32> to vector<4x32xf32>
    %cst_22 = arith.constant dense<0.000000e+00> : vector<16x32xf32>
    %55 = tpu.matmul %53, %54, %cst_22 {dimension_numbers = #tpu.dot_dimension_numbers<[1], [0], [0], [1], [0, 0, 1, 1], [], []>} : vector<16x4xf32>, vector<4x32xf32>, vector<16x32xf32> -> vector<16x32xf32>
    %56 = arith.addf %35, %55 : vector<16x32xf32>
    %57 = vector.extract_strided_slice %11 {offsets = [0, 0, 8], sizes = [2, 8, 4], strides = [1, 1, 1]} : vector<2x8x16xf32> to vector<2x8x4xf32>
    %cst_23 = arith.constant 5.000000e-01 : f32
    %58 = vector.broadcast %cst_23 : f32 to vector<2x8x4xf32>
    %59 = arith.mulf %57, %58 : vector<2x8x4xf32>
    %60 = vector.extract_strided_slice %12 {offsets = [0, 0, 8], sizes = [2, 8, 4], strides = [1, 1, 1]} : vector<2x8x16xf32> to vector<2x8x4xf32>
    %61 = vector.extract_strided_slice %13 {offsets = [0, 0, 8], sizes = [2, 8, 4], strides = [1, 1, 1]} : vector<2x8x16xf32> to vector<2x8x4xf32>
    %cst_24 = arith.constant dense<0.000000e+00> : vector<2x8x8xf32>
    %62 = tpu.matmul %59, %60, %cst_24 {dimension_numbers = #tpu.dot_dimension_numbers<[2], [2], [1], [1], [0, 0, 0, 1, 1, 1], [0], [0]>} : vector<2x8x4xf32>, vector<2x8x4xf32>, vector<2x8x8xf32> -> vector<2x8x8xf32>
    %cst_25 = arith.constant dense<0xFF800000> : vector<2x8xf32>
    %63 = vector.multi_reduction <maximumf>, %62, %cst_25 [2] : vector<2x8x8xf32> to vector<2x8xf32>
    %64 = vector.shape_cast %63 : vector<2x8xf32> to vector<2x8x1xf32>
    %65 = vector.broadcast %64 : vector<2x8x1xf32> to vector<2x8x8xf32>
    %66 = arith.subf %62, %65 : vector<2x8x8xf32>
    %67 = math.exp %66 : vector<2x8x8xf32>
    %cst_26 = arith.constant dense<0.000000e+00> : vector<2x8xf32>
    %68 = vector.multi_reduction <add>, %67, %cst_26 [2] : vector<2x8x8xf32> to vector<2x8xf32>
    %69 = vector.shape_cast %68 : vector<2x8xf32> to vector<2x8x1xf32>
    %70 = tpu.reciprocal %69 {approx = true} : vector<2x8x1xf32> -> vector<2x8x1xf32>
    %71 = vector.broadcast %70 : vector<2x8x1xf32> to vector<2x8x8xf32>
    %72 = arith.mulf %67, %71 : vector<2x8x8xf32>
    %cst_27 = arith.constant dense<0.000000e+00> : vector<2x8x4xf32>
    %73 = tpu.matmul %72, %61, %cst_27 {dimension_numbers = #tpu.dot_dimension_numbers<[2], [1], [1], [2], [0, 0, 0, 1, 1, 2], [0], [0]>} : vector<2x8x8xf32>, vector<2x8x4xf32>, vector<2x8x4xf32> -> vector<2x8x4xf32>
    %74 = vector.shape_cast %73 : vector<2x8x4xf32> to vector<16x4xf32>
    %75 = vector.extract_strided_slice %4 {offsets = [8, 0], sizes = [4, 32], strides = [1, 1]} : vector<16x32xf32> to vector<4x32xf32>
    %cst_28 = arith.constant dense<0.000000e+00> : vector<16x32xf32>
    %76 = tpu.matmul %74, %75, %cst_28 {dimension_numbers = #tpu.dot_dimension_numbers<[1], [0], [0], [1], [0, 0, 1, 1], [], []>} : vector<16x4xf32>, vector<4x32xf32>, vector<16x32xf32> -> vector<16x32xf32>
    %77 = arith.addf %56, %76 : vector<16x32xf32>
    %78 = vector.extract_strided_slice %11 {offsets = [0, 0, 12], sizes = [2, 8, 4], strides = [1, 1, 1]} : vector<2x8x16xf32> to vector<2x8x4xf32>
    %cst_29 = arith.constant 5.000000e-01 : f32
    %79 = vector.broadcast %cst_29 : f32 to vector<2x8x4xf32>
    %80 = arith.mulf %78, %79 : vector<2x8x4xf32>
    %81 = vector.extract_strided_slice %12 {offsets = [0, 0, 12], sizes = [2, 8, 4], strides = [1, 1, 1]} : vector<2x8x16xf32> to vector<2x8x4xf32>
    %82 = vector.extract_strided_slice %13 {offsets = [0, 0, 12], sizes = [2, 8, 4], strides = [1, 1, 1]} : vector<2x8x16xf32> to vector<2x8x4xf32>
    %cst_30 = arith.constant dense<0.000000e+00> : vector<2x8x8xf32>
    %83 = tpu.matmul %80, %81, %cst_30 {dimension_numbers = #tpu.dot_dimension_numbers<[2], [2], [1], [1], [0, 0, 0, 1, 1, 1], [0], [0]>} : vector<2x8x4xf32>, vector<2x8x4xf32>, vector<2x8x8xf32> -> vector<2x8x8xf32>
    %cst_31 = arith.constant dense<0xFF800000> : vector<2x8xf32>
    %84 = vector.multi_reduction <maximumf>, %83, %cst_31 [2] : vector<2x8x8xf32> to vector<2x8xf32>
    %85 = vector.shape_cast %84 : vector<2x8xf32> to vector<2x8x1xf32>
    %86 = vector.broadcast %85 : vector<2x8x1xf32> to vector<2x8x8xf32>
    %87 = arith.subf %83, %86 : vector<2x8x8xf32>
    %88 = math.exp %87 : vector<2x8x8xf32>
    %cst_32 = arith.constant dense<0.000000e+00> : vector<2x8xf32>
    %89 = vector.multi_reduction <add>, %88, %cst_32 [2] : vector<2x8x8xf32> to vector<2x8xf32>
    %90 = vector.shape_cast %89 : vector<2x8xf32> to vector<2x8x1xf32>
    %91 = tpu.reciprocal %90 {approx = true} : vector<2x8x1xf32> -> vector<2x8x1xf32>
    %92 = vector.broadcast %91 : vector<2x8x1xf32> to vector<2x8x8xf32>
    %93 = arith.mulf %88, %92 : vector<2x8x8xf32>
    %cst_33 = arith.constant dense<0.000000e+00> : vector<2x8x4xf32>
    %94 = tpu.matmul %93, %82, %cst_33 {dimension_numbers = #tpu.dot_dimension_numbers<[2], [1], [1], [2], [0, 0, 0, 1, 1, 2], [0], [0]>} : vector<2x8x8xf32>, vector<2x8x4xf32>, vector<2x8x4xf32> -> vector<2x8x4xf32>
    %95 = vector.shape_cast %94 : vector<2x8x4xf32> to vector<16x4xf32>
    %96 = vector.extract_strided_slice %4 {offsets = [12, 0], sizes = [4, 32], strides = [1, 1]} : vector<16x32xf32> to vector<4x32xf32>
    %cst_34 = arith.constant dense<0.000000e+00> : vector<16x32xf32>
    %97 = tpu.matmul %95, %96, %cst_34 {dimension_numbers = #tpu.dot_dimension_numbers<[1], [0], [0], [1], [0, 0, 1, 1], [], []>} : vector<16x4xf32>, vector<4x32xf32>, vector<16x32xf32> -> vector<16x32xf32>
    %98 = arith.addf %77, %97 : vector<16x32xf32>
    %99 = vector.broadcast %5 : vector<1x32xf32> to vector<16x32xf32>
    %100 = arith.addf %98, %99 : vector<16x32xf32>
    %101 = arith.addf %1, %100 : vector<16x32xf32>
    %c0_35 = arith.constant 0 : index
    %c0_36 = arith.constant 0 : index
    %102 = vector.load %arg6[%c0_35, %c0_36] : memref<1x32xf32, #tpu.memory_space<vmem>>, vector<1x32xf32>
    %c0_37 = arith.constant 0 : index
    %c0_38 = arith.constant 0 : index
    %103 = vector.load %arg7[%c0_37, %c0_38] : memref<1x32xf32, #tpu.memory_space<vmem>>, vector<1x32xf32>
    %cst_39 = arith.constant dense<0.000000e+00> : vector<16xf32>
    %104 = vector.multi_reduction <add>, %101, %cst_39 [1] : vector<16x32xf32> to vector<16xf32>
    %105 = vector.shape_cast %104 : vector<16xf32> to vector<16x1xf32>
    %cst_40 = arith.constant 3.200000e+01 : f32
    %106 = vector.broadcast %cst_40 : f32 to vector<16x1xf32>
    %107 = arith.divf %105, %106 : vector<16x1xf32>
    %108 = vector.broadcast %107 : vector<16x1xf32> to vector<16x32xf32>
    %109 = arith.subf %101, %108 : vector<16x32xf32>
    %110 = arith.mulf %109, %109 : vector<16x32xf32>
    %cst_41 = arith.constant dense<0.000000e+00> : vector<16xf32>
    %111 = vector.multi_reduction <add>, %110, %cst_41 [1] : vector<16x32xf32> to vector<16xf32>
    %112 = vector.shape_cast %111 : vector<16xf32> to vector<16x1xf32>
    %cst_42 = arith.constant 3.200000e+01 : f32
    %113 = vector.broadcast %cst_42 : f32 to vector<16x1xf32>
    %114 = arith.divf %112, %113 : vector<16x1xf32>
    %115 = vector.broadcast %107 : vector<16x1xf32> to vector<16x32xf32>
    %116 = arith.subf %101, %115 : vector<16x32xf32>
    %cst_43 = arith.constant 9.99999974E-6 : f32
    %117 = vector.broadcast %cst_43 : f32 to vector<16x1xf32>
    %118 = arith.addf %114, %117 : vector<16x1xf32>
    %119 = math.rsqrt %118 : vector<16x1xf32>
    %120 = vector.broadcast %119 : vector<16x1xf32> to vector<16x32xf32>
    %121 = arith.mulf %116, %120 : vector<16x32xf32>
    %122 = vector.broadcast %102 : vector<1x32xf32> to vector<16x32xf32>
    %123 = arith.mulf %121, %122 : vector<16x32xf32>
    %124 = vector.broadcast %103 : vector<1x32xf32> to vector<16x32xf32>
    %125 = arith.addf %123, %124 : vector<16x32xf32>
    %c0_44 = arith.constant 0 : index
    %c0_45 = arith.constant 0 : index
    %126 = vector.load %arg8[%c0_44, %c0_45] : memref<32x64xf32, #tpu.memory_space<vmem>>, vector<32x64xf32>
    %c0_46 = arith.constant 0 : index
    %c0_47 = arith.constant 0 : index
    %127 = vector.load %arg9[%c0_46, %c0_47] : memref<1x64xf32, #tpu.memory_space<vmem>>, vector<1x64xf32>
    %c0_48 = arith.constant 0 : index
    %c0_49 = arith.constant 0 : index
    %128 = vector.load %arg10[%c0_48, %c0_49] : memref<64x32xf32, #tpu.memory_space<vmem>>, vector<64x32xf32>
    %c0_50 = arith.constant 0 : index
    %c0_51 = arith.constant 0 : index
    %129 = vector.load %arg11[%c0_50, %c0_51] : memref<1x32xf32, #tpu.memory_space<vmem>>, vector<1x32xf32>
    %cst_52 = arith.constant dense<0.000000e+00> : vector<16x64xf32>
    %130 = tpu.matmul %125, %126, %cst_52 {dimension_numbers = #tpu.dot_dimension_numbers<[1], [0], [0], [1], [0, 0, 1, 1], [], []>} : vector<16x32xf32>, vector<32x64xf32>, vector<16x64xf32> -> vector<16x64xf32>
    %131 = vector.broadcast %127 : vector<1x64xf32> to vector<16x64xf32>
    %132 = arith.addf %130, %131 : vector<16x64xf32>
    %133 = arith.mulf %132, %132 : vector<16x64xf32>
    %134 = arith.mulf %132, %133 : vector<16x64xf32>
    %cst_53 = arith.constant 4.471500e-02 : f32
    %135 = vector.broadcast %cst_53 : f32 to vector<16x64xf32>
    %136 = arith.mulf %135, %134 : vector<16x64xf32>
    %137 = arith.addf %132, %136 : vector<16x64xf32>
    %cst_54 = arith.constant 0.797884583 : f32
    %138 = vector.broadcast %cst_54 : f32 to vector<16x64xf32>
    %139 = arith.mulf %138, %137 : vector<16x64xf32>
    %140 = math.tanh %139 : vector<16x64xf32>
    %cst_55 = arith.constant 1.000000e+00 : f32
    %141 = vector.broadcast %cst_55 : f32 to vector<16x64xf32>
    %142 = arith.addf %141, %140 : vector<16x64xf32>
    %cst_56 = arith.constant 5.000000e-01 : f32
    %143 = vector.broadcast %cst_56 : f32 to vector<16x64xf32>
    %144 = arith.mulf %143, %142 : vector<16x64xf32>
    %145 = arith.mulf %132, %144 : vector<16x64xf32>
    %cst_57 = arith.constant dense<0.000000e+00> : vector<16x32xf32>
    %146 = tpu.matmul %145, %128, %cst_57 {dimension_numbers = #tpu.dot_dimension_numbers<[1], [0], [0], [1], [0, 0, 1, 1], [], []>} : vector<16x64xf32>, vector<64x32xf32>, vector<16x32xf32> -> vector<16x32xf32>
    %147 = vector.broadcast %129 : vector<1x32xf32> to vector<16x32xf32>
    %148 = arith.addf %146, %147 : vector<16x32xf32>
    %149 = arith.addf %125, %148 : vector<16x32xf32>
    %c0_58 = arith.constant 0 : index
    %c0_59 = arith.constant 0 : index
    %150 = vector.load %arg12[%c0_58, %c0_59] : memref<1x32xf32, #tpu.memory_space<vmem>>, vector<1x32xf32>
    %c0_60 = arith.constant 0 : index
    %c0_61 = arith.constant 0 : index
    %151 = vector.load %arg13[%c0_60, %c0_61] : memref<1x32xf32, #tpu.memory_space<vmem>>, vector<1x32xf32>
    %cst_62 = arith.constant dense<0.000000e+00> : vector<16xf32>
    %152 = vector.multi_reduction <add>, %149, %cst_62 [1] : vector<16x32xf32> to vector<16xf32>
    %153 = vector.shape_cast %152 : vector<16xf32> to vector<16x1xf32>
    %cst_63 = arith.constant 3.200000e+01 : f32
    %154 = vector.broadcast %cst_63 : f32 to vector<16x1xf32>
    %155 = arith.divf %153, %154 : vector<16x1xf32>
    %156 = vector.broadcast %155 : vector<16x1xf32> to vector<16x32xf32>
    %157 = arith.subf %149, %156 : vector<16x32xf32>
    %158 = arith.mulf %157, %157 : vector<16x32xf32>
    %cst_64 = arith.constant dense<0.000000e+00> : vector<16xf32>
    %159 = vector.multi_reduction <add>, %158, %cst_64 [1] : vector<16x32xf32> to vector<16xf32>
    %160 = vector.shape_cast %159 : vector<16xf32> to vector<16x1xf32>
    %cst_65 = arith.constant 3.200000e+01 : f32
    %161 = vector.broadcast %cst_65 : f32 to vector<16x1xf32>
    %162 = arith.divf %160, %161 : vector<16x1xf32>
    %163 = vector.broadcast %155 : vector<16x1xf32> to vector<16x32xf32>
    %164 = arith.subf %149, %163 : vector<16x32xf32>
    %cst_66 = arith.constant 9.99999974E-6 : f32
    %165 = vector.broadcast %cst_66 : f32 to vector<16x1xf32>
    %166 = arith.addf %162, %165 : vector<16x1xf32>
    %167 = math.rsqrt %166 : vector<16x1xf32>
    %168 = vector.broadcast %167 : vector<16x1xf32> to vector<16x32xf32>
    %169 = arith.mulf %164, %168 : vector<16x32xf32>
    %170 = vector.broadcast %150 : vector<1x32xf32> to vector<16x32xf32>
    %171 = arith.mulf %169, %170 : vector<16x32xf32>
    %172 = vector.broadcast %151 : vector<1x32xf32> to vector<16x32xf32>
    %173 = arith.addf %171, %172 : vector<16x32xf32>
    %174 = vector.shape_cast %173 : vector<16x32xf32> to vector<2x8x32xf32>
    %c0_67 = arith.constant 0 : index
    %c0_68 = arith.constant 0 : index
    %c0_69 = arith.constant 0 : index
    %175 = vector.load %arg14[%c0_67, %c0_68, %c0_69] : memref<2x8x32xf32, #tpu.memory_space<vmem>>, vector<2x8x32xf32>
    tpu.vector_store %arg14[%c0_67, %c0_68, %c0_69], %174 {strides = array<i32>} : memref<2x8x32xf32, #tpu.memory_space<vmem>>, vector<2x8x32xf32>,
    return
  }
  func.func @transform_0(%arg0: i32) -> (i32, i32, i32) {
    %c0_i32 = arith.constant 0 : i32
    %c0_i32_0 = arith.constant 0 : i32
    %c0_i32_1 = arith.constant 0 : i32
    %c0_i32_2 = arith.constant 0 : i32
    return %c0_i32, %c0_i32_0, %c0_i32_1 : i32, i32, i32
  }
  func.func @transform_1(%arg0: i32) -> (i32, i32) {
    %c0_i32 = arith.constant 0 : i32
    %c0_i32_0 = arith.constant 0 : i32
    %c0_i32_1 = arith.constant 0 : i32
    return %c0_i32, %c0_i32_0 : i32, i32
  }
  func.func @transform_2(%arg0: i32) -> (i32, i32) {
    %c0_i32 = arith.constant 0 : i32
    %c0_i32_0 = arith.constant 0 : i32
    %c0_i32_1 = arith.constant 0 : i32
    return %c0_i32, %c0_i32_0 : i32, i32
  }
  func.func @transform_3(%arg0: i32) -> (i32, i32) {
    %c0_i32 = arith.constant 0 : i32
    %c0_i32_0 = arith.constant 0 : i32
    %c0_i32_1 = arith.constant 0 : i32
    return %c0_i32, %c0_i32_0 : i32, i32
  }
  func.func @transform_4(%arg0: i32) -> (i32, i32) {
    %c0_i32 = arith.constant 0 : i32
    %c0_i32_0 = arith.constant 0 : i32
    %c0_i32_1 = arith.constant 0 : i32
    return %c0_i32, %c0_i32_0 : i32, i32
  }
  func.func @transform_5(%arg0: i32) -> (i32, i32) {
    %c0_i32 = arith.constant 0 : i32
    %c0_i32_0 = arith.constant 0 : i32
    %c0_i32_1 = arith.constant 0 : i32
    return %c0_i32, %c0_i32_0 : i32, i32
  }
  func.func @transform_6(%arg0: i32) -> (i32, i32) {
    %c0_i32 = arith.constant 0 : i32
    %c0_i32_0 = arith.constant 0 : i32
    %c0_i32_1 = arith.constant 0 : i32
    return %c0_i32, %c0_i32_0 : i32, i32
  }
  func.func @transform_7(%arg0: i32) -> (i32, i32) {
    %c0_i32 = arith.constant 0 : i32
    %c0_i32_0 = arith.constant 0 : i32
    %c0_i32_1 = arith.constant 0 : i32
    return %c0_i32, %c0_i32_0 : i32, i32
  }
  func.func @transform_8(%arg0: i32) -> (i32, i32) {
    %c0_i32 = arith.constant 0 : i32
    %c0_i32_0 = arith.constant 0 : i32
    %c0_i32_1 = arith.constant 0 : i32
    return %c0_i32, %c0_i32_0 : i32, i32
  }
  func.func @transform_9(%arg0: i32) -> (i32, i32) {
    %c0_i32 = arith.constant 0 : i32
    %c0_i32_0 = arith.constant 0 : i32
    %c0_i32_1 = arith.constant 0 : i32
    return %c0_i32, %c0_i32_0 : i32, i32
  }
  func.func @transform_10(%arg0: i32) -> (i32, i32) {
    %c0_i32 = arith.constant 0 : i32
    %c0_i32_0 = arith.constant 0 : i32
    %c0_i32_1 = arith.constant 0 : i32
    return %c0_i32, %c0_i32_0 : i32, i32
  }
  func.func @transform_11(%arg0: i32) -> (i32, i32) {
    %c0_i32 = arith.constant 0 : i32
    %c0_i32_0 = arith.constant 0 : i32
    %c0_i32_1 = arith.constant 0 : i32
    return %c0_i32, %c0_i32_0 : i32, i32
  }
  func.func @transform_12(%arg0: i32) -> (i32, i32) {
    %c0_i32 = arith.constant 0 : i32
    %c0_i32_0 = arith.constant 0 : i32
    %c0_i32_1 = arith.constant 0 : i32
    return %c0_i32, %c0_i32_0 : i32, i32
  }
  func.func @transform_13(%arg0: i32) -> (i32, i32, i32) {
    %c0_i32 = arith.constant 0 : i32
    %c0_i32_0 = arith.constant 0 : i32
    %c0_i32_1 = arith.constant 0 : i32
    %c0_i32_2 = arith.constant 0 : i32
    return %c0_i32, %c0_i32_0, %c0_i32_1 : i32, i32, i32
  }
}

module attributes {stable_mosaic.version = 11 : i64} {
  func.func @_encoder_layer_kernel(%arg0: i32, %arg1: memref<2x8x32xf32, #tpu.memory_space<vmem>>, %arg2: memref<32x48xf32, #tpu.memory_space<vmem>>, %arg3: memref<1x48xf32, #tpu.memory_space<vmem>>, %arg4: memref<16x32xf32, #tpu.memory_space<vmem>>, %arg5: memref<1x32xf32, #tpu.memory_space<vmem>>, %arg6: memref<1x32xf32, #tpu.memory_space<vmem>>, %arg7: memref<1x32xf32, #tpu.memory_space<vmem>>, %arg8: memref<32x64xf32, #tpu.memory_space<vmem>>, %arg9: memref<1x64xf32, #tpu.memory_space<vmem>>, %arg10: memref<64x32xf32, #tpu.memory_space<vmem>>, %arg11: memref<1x32xf32, #tpu.memory_space<vmem>>, %arg12: memref<1x32xf32, #tpu.memory_space<vmem>>, %arg13: memref<1x32xf32, #tpu.memory_space<vmem>>, %arg14: memref<2x8x32xf32, #tpu.memory_space<vmem>>) attributes {dimension_semantics = [#tpu.dimension_semantics<arbitrary>], iteration_bounds = array<i64: 1>, scalar_prefetch = 0 : i64, scratch_operands = 0 : i64, tpu.core_type = #tpu.core_type<tc>, window_params = [{pipeline_mode = #tpu.pipeline_mode<synchronous>, transform_indices = @transform_0, window_bounds = array<i64: 2, 8, 32>}, {pipeline_mode = #tpu.pipeline_mode<synchronous>, transform_indices = @transform_1, window_bounds = array<i64: 32, 48>}, {pipeline_mode = #tpu.pipeline_mode<synchronous>, transform_indices = @transform_2, window_bounds = array<i64: 1, 48>}, {pipeline_mode = #tpu.pipeline_mode<synchronous>, transform_indices = @transform_3, window_bounds = array<i64: 16, 32>}, {pipeline_mode = #tpu.pipeline_mode<synchronous>, transform_indices = @transform_4, window_bounds = array<i64: 1, 32>}, {pipeline_mode = #tpu.pipeline_mode<synchronous>, transform_indices = @transform_5, window_bounds = array<i64: 1, 32>}, {pipeline_mode = #tpu.pipeline_mode<synchronous>, transform_indices = @transform_6, window_bounds = array<i64: 1, 32>}, {pipeline_mode = #tpu.pipeline_mode<synchronous>, transform_indices = @transform_7, window_bounds = array<i64: 32, 64>}, {pipeline_mode = #tpu.pipeline_mode<synchronous>, transform_indices = @transform_8, window_bounds = array<i64: 1, 64>}, {pipeline_mode = #tpu.pipeline_mode<synchronous>, transform_indices = @transform_9, window_bounds = array<i64: 64, 32>}, {pipeline_mode = #tpu.pipeline_mode<synchronous>, transform_indices = @transform_10, window_bounds = array<i64: 1, 32>}, {pipeline_mode = #tpu.pipeline_mode<synchronous>, transform_indices = @transform_11, window_bounds = array<i64: 1, 32>}, {pipeline_mode = #tpu.pipeline_mode<synchronous>, transform_indices = @transform_12, window_bounds = array<i64: 1, 32>}, {pipeline_mode = #tpu.pipeline_mode<synchronous>, transform_indices = @transform_13, window_bounds = array<i64: 2, 8, 32>}]} {
    %c0 = arith.constant 0 : index
    %c0_0 = arith.constant 0 : index
    %c0_1 = arith.constant 0 : index
    %0 = vector.load %arg1[%c0, %c0_0, %c0_1] : memref<2x8x32xf32, #tpu.memory_space<vmem>>, vector<2x8x32xf32>
    %1 = vector.shape_cast %0 : vector<2x8x32xf32> to vector<16x32xf32>
    %c0_2 = arith.constant 0 : index
    %c0_3 = arith.constant 0 : index
    %2 = vector.load %arg2[%c0_2, %c0_3] : memref<32x48xf32, #tpu.memory_space<vmem>>, vector<32x48xf32>
    %c0_4 = arith.constant 0 : index
    %c0_5 = arith.constant 0 : index
    %3 = vector.load %arg3[%c0_4, %c0_5] : memref<1x48xf32, #tpu.memory_space<vmem>>, vector<1x48xf32>
    %c0_6 = arith.constant 0 : index
    %c0_7 = arith.constant 0 : index
    %4 = vector.load %arg4[%c0_6, %c0_7] : memref<16x32xf32, #tpu.memory_space<vmem>>, vector<16x32xf32>
    %c0_8 = arith.constant 0 : index
    %c0_9 = arith.constant 0 : index
    %5 = vector.load %arg5[%c0_8, %c0_9] : memref<1x32xf32, #tpu.memory_space<vmem>>, vector<1x32xf32>
    %6 = vector.shape_cast %0 : vector<2x8x32xf32> to vector<16x32xf32>
    %cst = arith.constant dense<0.000000e+00> : vector<16x48xf32>
    %7 = tpu.matmul %6, %2, %cst {dimension_numbers = #tpu.dot_dimension_numbers<[1], [0], [0], [1], [0, 0, 1, 1], [], []>} : vector<16x32xf32>, vector<32x48xf32>, vector<16x48xf32> -> vector<16x48xf32>
    %8 = vector.broadcast %3 : vector<1x48xf32> to vector<16x48xf32>
    %9 = arith.addf %7, %8 : vector<16x48xf32>
    %10 = vector.shape_cast %9 : vector<16x48xf32> to vector<2x8x48xf32>
    %11 = vector.extract_strided_slice %10 {offsets = [0, 0, 0], sizes = [2, 8, 16], strides = [1, 1, 1]} : vector<2x8x48xf32> to vector<2x8x16xf32>
    %12 = vector.extract_strided_slice %10 {offsets = [0, 0, 16], sizes = [2, 8, 16], strides = [1, 1, 1]} : vector<2x8x48xf32> to vector<2x8x16xf32>
    %13 = vector.extract_strided_slice %10 {offsets = [0, 0, 32], sizes = [2, 8, 16], strides = [1, 1, 1]} : vector<2x8x48xf32> to vector<2x8x16xf32>
    %cst_10 = arith.constant 0.000000e+00 : f32
    %14 = vector.broadcast %cst_10 : f32 to vector<16x32xf32>
    %15 = vector.extract_strided_slice %11 {offsets = [0, 0, 0], sizes = [2, 8, 4], strides = [1, 1, 1]} : vector<2x8x16xf32> to vector<2x8x4xf32>
    %cst_11 = arith.constant 5.000000e-01 : f32
    %16 = vector.broadcast %cst_11 : f32 to vector<2x8x4xf32>
    %17 = arith.mulf %15, %16 : vector<2x8x4xf32>
    %18 = vector.extract_strided_slice %12 {offsets = [0, 0, 0], sizes = [2, 8, 4], strides = [1, 1, 1]} : vector<2x8x16xf32> to vector<2x8x4xf32>
    %19 = vector.extract_strided_slice %13 {offsets = [0, 0, 0], sizes = [2, 8, 4], strides = [1, 1, 1]} : vector<2x8x16xf32> to vector<2x8x4xf32>
    %cst_12 = arith.constant dense<0.000000e+00> : vector<2x8x8xf32>
    %20 = tpu.matmul %17, %18, %cst_12 {dimension_numbers = #tpu.dot_dimension_numbers<[2], [2], [1], [1], [0, 0, 0, 1, 1, 1], [0], [0]>} : vector<2x8x4xf32>, vector<2x8x4xf32>, vector<2x8x8xf32> -> vector<2x8x8xf32>
    %cst_13 = arith.constant dense<0xFF800000> : vector<2x8xf32>
    %21 = vector.multi_reduction <maximumf>, %20, %cst_13 [2] : vector<2x8x8xf32> to vector<2x8xf32>
    %22 = vector.shape_cast %21 : vector<2x8xf32> to vector<2x8x1xf32>
    %23 = vector.broadcast %22 : vector<2x8x1xf32> to vector<2x8x8xf32>
    %24 = arith.subf %20, %23 : vector<2x8x8xf32>
    %25 = math.exp %24 : vector<2x8x8xf32>
    %cst_14 = arith.constant dense<0.000000e+00> : vector<2x8xf32>
    %26 = vector.multi_reduction <add>, %25, %cst_14 [2] : vector<2x8x8xf32> to vector<2x8xf32>
    %27 = vector.shape_cast %26 : vector<2x8xf32> to vector<2x8x1xf32>
    %28 = tpu.reciprocal %27 {approx = true} : vector<2x8x1xf32> -> vector<2x8x1xf32>
    %29 = vector.broadcast %28 : vector<2x8x1xf32> to vector<2x8x8xf32>
    %30 = arith.mulf %25, %29 : vector<2x8x8xf32>
    %cst_15 = arith.constant dense<0.000000e+00> : vector<2x8x4xf32>
    %31 = tpu.matmul %30, %19, %cst_15 {dimension_numbers = #tpu.dot_dimension_numbers<[2], [1], [1], [2], [0, 0, 0, 1, 1, 2], [0], [0]>} : vector<2x8x8xf32>, vector<2x8x4xf32>, vector<2x8x4xf32> -> vector<2x8x4xf32>
    %32 = vector.shape_cast %31 : vector<2x8x4xf32> to vector<16x4xf32>
    %33 = vector.extract_strided_slice %4 {offsets = [0, 0], sizes = [4, 32], strides = [1, 1]} : vector<16x32xf32> to vector<4x32xf32>
    %cst_16 = arith.constant dense<0.000000e+00> : vector<16x32xf32>
    %34 = tpu.matmul %32, %33, %cst_16 {dimension_numbers = #tpu.dot_dimension_numbers<[1], [0], [0], [1], [0, 0, 1, 1], [], []>} : vector<16x4xf32>, vector<4x32xf32>, vector<16x32xf32> -> vector<16x32xf32>
    %35 = arith.addf %14, %34 : vector<16x32xf32>
    %36 = vector.extract_strided_slice %11 {offsets = [0, 0, 4], sizes = [2, 8, 4], strides = [1, 1, 1]} : vector<2x8x16xf32> to vector<2x8x4xf32>
    %cst_17 = arith.constant 5.000000e-01 : f32
    %37 = vector.broadcast %cst_17 : f32 to vector<2x8x4xf32>
    %38 = arith.mulf %36, %37 : vector<2x8x4xf32>
    %39 = vector.extract_strided_slice %12 {offsets = [0, 0, 4], sizes = [2, 8, 4], strides = [1, 1, 1]} : vector<2x8x16xf32> to vector<2x8x4xf32>
    %40 = vector.extract_strided_slice %13 {offsets = [0, 0, 4], sizes = [2, 8, 4], strides = [1, 1, 1]} : vector<2x8x16xf32> to vector<2x8x4xf32>
    %cst_18 = arith.constant dense<0.000000e+00> : vector<2x8x8xf32>
    %41 = tpu.matmul %38, %39, %cst_18 {dimension_numbers = #tpu.dot_dimension_numbers<[2], [2], [1], [1], [0, 0, 0, 1, 1, 1], [0], [0]>} : vector<2x8x4xf32>, vector<2x8x4xf32>, vector<2x8x8xf32> -> vector<2x8x8xf32>
    %cst_19 = arith.constant dense<0xFF800000> : vector<2x8xf32>
    %42 = vector.multi_reduction <maximumf>, %41, %cst_19 [2] : vector<2x8x8xf32> to vector<2x8xf32>
    %43 = vector.shape_cast %42 : vector<2x8xf32> to vector<2x8x1xf32>
    %44 = vector.broadcast %43 : vector<2x8x1xf32> to vector<2x8x8xf32>
    %45 = arith.subf %41, %44 : vector<2x8x8xf32>
    %46 = math.exp %45 : vector<2x8x8xf32>
    %cst_20 = arith.constant dense<0.000000e+00> : vector<2x8xf32>
    %47 = vector.multi_reduction <add>, %46, %cst_20 [2] : vector<2x8x8xf32> to vector<2x8xf32>
    %48 = vector.shape_cast %47 : vector<2x8xf32> to vector<2x8x1xf32>
    %49 = tpu.reciprocal %48 {approx = true} : vector<2x8x1xf32> -> vector<2x8x1xf32>
    %50 = vector.broadcast %49 : vector<2x8x1xf32> to vector<2x8x8xf32>
    %51 = arith.mulf %46, %50 : vector<2x8x8xf32>
    %cst_21 = arith.constant dense<0.000000e+00> : vector<2x8x4xf32>
    %52 = tpu.matmul %51, %40, %cst_21 {dimension_numbers = #tpu.dot_dimension_numbers<[2], [1], [1], [2], [0, 0, 0, 1, 1, 2], [0], [0]>} : vector<2x8x8xf32>, vector<2x8x4xf32>, vector<2x8x4xf32> -> vector<2x8x4xf32>
    %53 = vector.shape_cast %52 : vector<2x8x4xf32> to vector<16x4xf32>
    %54 = vector.extract_strided_slice %4 {offsets = [4, 0], sizes = [4, 32], strides = [1, 1]} : vector<16x32xf32> to vector<4x32xf32>
    %cst_22 = arith.constant dense<0.000000e+00> : vector<16x32xf32>
    %55 = tpu.matmul %53, %54, %cst_22 {dimension_numbers = #tpu.dot_dimension_numbers<[1], [0], [0], [1], [0, 0, 1, 1], [], []>} : vector<16x4xf32>, vector<4x32xf32>, vector<16x32xf32> -> vector<16x32xf32>
    %56 = arith.addf %35, %55 : vector<16x32xf32>
    %57 = vector.extract_strided_slice %11 {offsets = [0, 0, 8], sizes = [2, 8, 4], strides = [1, 1, 1]} : vector<2x8x16xf32> to vector<2x8x4xf32>
    %cst_23 = arith.constant 5.000000e-01 : f32
    %58 = vector.broadcast %cst_23 : f32 to vector<2x8x4xf32>
    %59 = arith.mulf %57, %58 : vector<2x8x4xf32>
    %60 = vector.extract_strided_slice %12 {offsets = [0, 0, 8], sizes = [2, 8, 4], strides = [1, 1, 1]} : vector<2x8x16xf32> to vector<2x8x4xf32>
    %61 = vector.extract_strided_slice %13 {offsets = [0, 0, 8], sizes = [2, 8, 4], strides = [1, 1, 1]} : vector<2x8x16xf32> to vector<2x8x4xf32>
    %cst_24 = arith.constant dense<0.000000e+00> : vector<2x8x8xf32>
    %62 = tpu.matmul %59, %60, %cst_24 {dimension_numbers = #tpu.dot_dimension_numbers<[2], [2], [1], [1], [0, 0, 0, 1, 1, 1], [0], [0]>} : vector<2x8x4xf32>, vector<2x8x4xf32>, vector<2x8x8xf32> -> vector<2x8x8xf32>
    %cst_25 = arith.constant dense<0xFF800000> : vector<2x8xf32>
    %63 = vector.multi_reduction <maximumf>, %62, %cst_25 [2] : vector<2x8x8xf32> to vector<2x8xf32>
    %64 = vector.shape_cast %63 : vector<2x8xf32> to vector<2x8x1xf32>
    %65 = vector.broadcast %64 : vector<2x8x1xf32> to vector<2x8x8xf32>
    %66 = arith.subf %62, %65 : vector<2x8x8xf32>
    %67 = math.exp %66 : vector<2x8x8xf32>
    %cst_26 = arith.constant dense<0.000000e+00> : vector<2x8xf32>
    %68 = vector.multi_reduction <add>, %67, %cst_26 [2] : vector<2x8x8xf32> to vector<2x8xf32>
    %69 = vector.shape_cast %68 : vector<2x8xf32> to vector<2x8x1xf32>
    %70 = tpu.reciprocal %69 {approx = true} : vector<2x8x1xf32> -> vector<2x8x1xf32>
    %71 = vector.broadcast %70 : vector<2x8x1xf32> to vector<2x8x8xf32>
    %72 = arith.mulf %67, %71 : vector<2x8x8xf32>
    %cst_27 = arith.constant dense<0.000000e+00> : vector<2x8x4xf32>
    %73 = tpu.matmul %72, %61, %cst_27 {dimension_numbers = #tpu.dot_dimension_numbers<[2], [1], [1], [2], [0, 0, 0, 1, 1, 2], [0], [0]>} : vector<2x8x8xf32>, vector<2x8x4xf32>, vector<2x8x4xf32> -> vector<2x8x4xf32>
    %74 = vector.shape_cast %73 : vector<2x8x4xf32> to vector<16x4xf32>
    %75 = vector.extract_strided_slice %4 {offsets = [8, 0], sizes = [4, 32], strides = [1, 1]} : vector<16x32xf32> to vector<4x32xf32>
    %cst_28 = arith.constant dense<0.000000e+00> : vector<16x32xf32>
    %76 = tpu.matmul %74, %75, %cst_28 {dimension_numbers = #tpu.dot_dimension_numbers<[1], [0], [0], [1], [0, 0, 1, 1], [], []>} : vector<16x4xf32>, vector<4x32xf32>, vector<16x32xf32> -> vector<16x32xf32>
    %77 = arith.addf %56, %76 : vector<16x32xf32>
    %78 = vector.extract_strided_slice %11 {offsets = [0, 0, 12], sizes = [2, 8, 4], strides = [1, 1, 1]} : vector<2x8x16xf32> to vector<2x8x4xf32>
    %cst_29 = arith.constant 5.000000e-01 : f32
    %79 = vector.broadcast %cst_29 : f32 to vector<2x8x4xf32>
    %80 = arith.mulf %78, %79 : vector<2x8x4xf32>
    %81 = vector.extract_strided_slice %12 {offsets = [0, 0, 12], sizes = [2, 8, 4], strides = [1, 1, 1]} : vector<2x8x16xf32> to vector<2x8x4xf32>
    %82 = vector.extract_strided_slice %13 {offsets = [0, 0, 12], sizes = [2, 8, 4], strides = [1, 1, 1]} : vector<2x8x16xf32> to vector<2x8x4xf32>
    %cst_30 = arith.constant dense<0.000000e+00> : vector<2x8x8xf32>
    %83 = tpu.matmul %80, %81, %cst_30 {dimension_numbers = #tpu.dot_dimension_numbers<[2], [2], [1], [1], [0, 0, 0, 1, 1, 1], [0], [0]>} : vector<2x8x4xf32>, vector<2x8x4xf32>, vector<2x8x8xf32> -> vector<2x8x8xf32>
    %cst_31 = arith.constant dense<0xFF800000> : vector<2x8xf32>
    %84 = vector.multi_reduction <maximumf>, %83, %cst_31 [2] : vector<2x8x8xf32> to vector<2x8xf32>
    %85 = vector.shape_cast %84 : vector<2x8xf32> to vector<2x8x1xf32>
    %86 = vector.broadcast %85 : vector<2x8x1xf32> to vector<2x8x8xf32>
    %87 = arith.subf %83, %86 : vector<2x8x8xf32>
    %88 = math.exp %87 : vector<2x8x8xf32>
    %cst_32 = arith.constant dense<0.000000e+00> : vector<2x8xf32>
    %89 = vector.multi_reduction <add>, %88, %cst_32 [2] : vector<2x8x8xf32> to vector<2x8xf32>
    %90 = vector.shape_cast %89 : vector<2x8xf32> to vector<2x8x1xf32>
    %91 = tpu.reciprocal %90 {approx = true} : vector<2x8x1xf32> -> vector<2x8x1xf32>
    %92 = vector.broadcast %91 : vector<2x8x1xf32> to vector<2x8x8xf32>
    %93 = arith.mulf %88, %92 : vector<2x8x8xf32>
    %cst_33 = arith.constant dense<0.000000e+00> : vector<2x8x4xf32>
    %94 = tpu.matmul %93, %82, %cst_33 {dimension_numbers = #tpu.dot_dimension_numbers<[2], [1], [1], [2], [0, 0, 0, 1, 1, 2], [0], [0]>} : vector<2x8x8xf32>, vector<2x8x4xf32>, vector<2x8x4xf32> -> vector<2x8x4xf32>
    %95 = vector.shape_cast %94 : vector<2x8x4xf32> to vector<16x4xf32>
    %96 = vector.extract_strided_slice %4 {offsets = [12, 0], sizes = [4, 32], strides = [1, 1]} : vector<16x32xf32> to vector<4x32xf32>
    %cst_34 = arith.constant dense<0.000000e+00> : vector<16x32xf32>
    %97 = tpu.matmul %95, %96, %cst_34 {dimension_numbers = #tpu.dot_dimension_numbers<[1], [0], [0], [1], [0, 0, 1, 1], [], []>} : vector<16x4xf32>, vector<4x32xf32>, vector<16x32xf32> -> vector<16x32xf32>
    %98 = arith.addf %77, %97 : vector<16x32xf32>
    %99 = vector.broadcast %5 : vector<1x32xf32> to vector<16x32xf32>
    %100 = arith.addf %98, %99 : vector<16x32xf32>
    %101 = arith.addf %1, %100 : vector<16x32xf32>
    %c0_35 = arith.constant 0 : index
    %c0_36 = arith.constant 0 : index
    %102 = vector.load %arg6[%c0_35, %c0_36] : memref<1x32xf32, #tpu.memory_space<vmem>>, vector<1x32xf32>
    %c0_37 = arith.constant 0 : index
    %c0_38 = arith.constant 0 : index
    %103 = vector.load %arg7[%c0_37, %c0_38] : memref<1x32xf32, #tpu.memory_space<vmem>>, vector<1x32xf32>
    %cst_39 = arith.constant dense<0.000000e+00> : vector<16xf32>
    %104 = vector.multi_reduction <add>, %101, %cst_39 [1] : vector<16x32xf32> to vector<16xf32>
    %105 = vector.shape_cast %104 : vector<16xf32> to vector<16x1xf32>
    %cst_40 = arith.constant 3.200000e+01 : f32
    %106 = vector.broadcast %cst_40 : f32 to vector<16x1xf32>
    %107 = arith.divf %105, %106 : vector<16x1xf32>
    %108 = vector.broadcast %107 : vector<16x1xf32> to vector<16x32xf32>
    %109 = arith.subf %101, %108 : vector<16x32xf32>
    %110 = arith.mulf %109, %109 : vector<16x32xf32>
    %cst_41 = arith.constant dense<0.000000e+00> : vector<16xf32>
    %111 = vector.multi_reduction <add>, %110, %cst_41 [1] : vector<16x32xf32> to vector<16xf32>
    %112 = vector.shape_cast %111 : vector<16xf32> to vector<16x1xf32>
    %cst_42 = arith.constant 3.200000e+01 : f32
    %113 = vector.broadcast %cst_42 : f32 to vector<16x1xf32>
    %114 = arith.divf %112, %113 : vector<16x1xf32>
    %115 = vector.broadcast %107 : vector<16x1xf32> to vector<16x32xf32>
    %116 = arith.subf %101, %115 : vector<16x32xf32>
    %cst_43 = arith.constant 9.99999974E-6 : f32
    %117 = vector.broadcast %cst_43 : f32 to vector<16x1xf32>
    %118 = arith.addf %114, %117 : vector<16x1xf32>
    %119 = math.rsqrt %118 : vector<16x1xf32>
    %120 = vector.broadcast %119 : vector<16x1xf32> to vector<16x32xf32>
    %121 = arith.mulf %116, %120 : vector<16x32xf32>
    %122 = vector.broadcast %102 : vector<1x32xf32> to vector<16x32xf32>
    %123 = arith.mulf %121, %122 : vector<16x32xf32>
    %124 = vector.broadcast %103 : vector<1x32xf32> to vector<16x32xf32>
    %125 = arith.addf %123, %124 : vector<16x32xf32>
    %c0_44 = arith.constant 0 : index
    %c0_45 = arith.constant 0 : index
    %126 = vector.load %arg8[%c0_44, %c0_45] : memref<32x64xf32, #tpu.memory_space<vmem>>, vector<32x64xf32>
    %c0_46 = arith.constant 0 : index
    %c0_47 = arith.constant 0 : index
    %127 = vector.load %arg9[%c0_46, %c0_47] : memref<1x64xf32, #tpu.memory_space<vmem>>, vector<1x64xf32>
    %c0_48 = arith.constant 0 : index
    %c0_49 = arith.constant 0 : index
    %128 = vector.load %arg10[%c0_48, %c0_49] : memref<64x32xf32, #tpu.memory_space<vmem>>, vector<64x32xf32>
    %c0_50 = arith.constant 0 : index
    %c0_51 = arith.constant 0 : index
    %129 = vector.load %arg11[%c0_50, %c0_51] : memref<1x32xf32, #tpu.memory_space<vmem>>, vector<1x32xf32>
    %cst_52 = arith.constant dense<0.000000e+00> : vector<16x64xf32>
    %130 = tpu.matmul %125, %126, %cst_52 {dimension_numbers = #tpu.dot_dimension_numbers<[1], [0], [0], [1], [0, 0, 1, 1], [], []>} : vector<16x32xf32>, vector<32x64xf32>, vector<16x64xf32> -> vector<16x64xf32>
    %131 = vector.broadcast %127 : vector<1x64xf32> to vector<16x64xf32>
    %132 = arith.addf %130, %131 : vector<16x64xf32>
    %133 = arith.mulf %132, %132 : vector<16x64xf32>
    %134 = arith.mulf %132, %133 : vector<16x64xf32>
    %cst_53 = arith.constant 4.471500e-02 : f32
    %135 = vector.broadcast %cst_53 : f32 to vector<16x64xf32>
    %136 = arith.mulf %135, %134 : vector<16x64xf32>
    %137 = arith.addf %132, %136 : vector<16x64xf32>
    %cst_54 = arith.constant 0.797884583 : f32
    %138 = vector.broadcast %cst_54 : f32 to vector<16x64xf32>
    %139 = arith.mulf %138, %137 : vector<16x64xf32>
    %140 = math.tanh %139 : vector<16x64xf32>
    %cst_55 = arith.constant 1.000000e+00 : f32
    %141 = vector.broadcast %cst_55 : f32 to vector<16x64xf32>
    %142 = arith.addf %141, %140 : vector<16x64xf32>
    %cst_56 = arith.constant 5.000000e-01 : f32
    %143 = vector.broadcast %cst_56 : f32 to vector<16x64xf32>
    %144 = arith.mulf %143, %142 : vector<16x64xf32>
    %145 = arith.mulf %132, %144 : vector<16x64xf32>
    %cst_57 = arith.constant dense<0.000000e+00> : vector<16x32xf32>
    %146 = tpu.matmul %145, %128, %cst_57 {dimension_numbers = #tpu.dot_dimension_numbers<[1], [0], [0], [1], [0, 0, 1, 1], [], []>} : vector<16x64xf32>, vector<64x32xf32>, vector<16x32xf32> -> vector<16x32xf32>
    %147 = vector.broadcast %129 : vector<1x32xf32> to vector<16x32xf32>
    %148 = arith.addf %146, %147 : vector<16x32xf32>
    %149 = arith.addf %125, %148 : vector<16x32xf32>
    %c0_58 = arith.constant 0 : index
    %c0_59 = arith.constant 0 : index
    %150 = vector.load %arg12[%c0_58, %c0_59] : memref<1x32xf32, #tpu.memory_space<vmem>>, vector<1x32xf32>
    %c0_60 = arith.constant 0 : index
    %c0_61 = arith.constant 0 : index
    %151 = vector.load %arg13[%c0_60, %c0_61] : memref<1x32xf32, #tpu.memory_space<vmem>>, vector<1x32xf32>
    %cst_62 = arith.constant dense<0.000000e+00> : vector<16xf32>
    %152 = vector.multi_reduction <add>, %149, %cst_62 [1] : vector<16x32xf32> to vector<16xf32>
    %153 = vector.shape_cast %152 : vector<16xf32> to vector<16x1xf32>
    %cst_63 = arith.constant 3.200000e+01 : f32
    %154 = vector.broadcast %cst_63 : f32 to vector<16x1xf32>
    %155 = arith.divf %153, %154 : vector<16x1xf32>
    %156 = vector.broadcast %155 : vector<16x1xf32> to vector<16x32xf32>
    %157 = arith.subf %149, %156 : vector<16x32xf32>
    %158 = arith.mulf %157, %157 : vector<16x32xf32>
    %cst_64 = arith.constant dense<0.000000e+00> : vector<16xf32>
    %159 = vector.multi_reduction <add>, %158, %cst_64 [1] : vector<16x32xf32> to vector<16xf32>
    %160 = vector.shape_cast %159 : vector<16xf32> to vector<16x1xf32>
    %cst_65 = arith.constant 3.200000e+01 : f32
    %161 = vector.broadcast %cst_65 : f32 to vector<16x1xf32>
    %162 = arith.divf %160, %161 : vector<16x1xf32>
    %163 = vector.broadcast %155 : vector<16x1xf32> to vector<16x32xf32>
    %164 = arith.subf %149, %163 : vector<16x32xf32>
    %cst_66 = arith.constant 9.99999974E-6 : f32
    %165 = vector.broadcast %cst_66 : f32 to vector<16x1xf32>
    %166 = arith.addf %162, %165 : vector<16x1xf32>
    %167 = math.rsqrt %166 : vector<16x1xf32>
    %168 = vector.broadcast %167 : vector<16x1xf32> to vector<16x32xf32>
    %169 = arith.mulf %164, %168 : vector<16x32xf32>
    %170 = vector.broadcast %150 : vector<1x32xf32> to vector<16x32xf32>
    %171 = arith.mulf %169, %170 : vector<16x32xf32>
    %172 = vector.broadcast %151 : vector<1x32xf32> to vector<16x32xf32>
    %173 = arith.addf %171, %172 : vector<16x32xf32>
    %174 = vector.shape_cast %173 : vector<16x32xf32> to vector<2x8x32xf32>
    %c0_67 = arith.constant 0 : index
    %c0_68 = arith.constant 0 : index
    %c0_69 = arith.constant 0 : index
    %175 = vector.load %arg14[%c0_67, %c0_68, %c0_69] : memref<2x8x32xf32, #tpu.memory_space<vmem>>, vector<2x8x32xf32>
    tpu.vector_store %arg14[%c0_67, %c0_68, %c0_69], %174 {strides = array<i32>} : memref<2x8x32xf32, #tpu.memory_space<vmem>>, vector<2x8x32xf32>,
    return
  }
  func.func @transform_0(%arg0: i32) -> (i32, i32, i32) {
    %c0_i32 = arith.constant 0 : i32
    %c0_i32_0 = arith.constant 0 : i32
    %c0_i32_1 = arith.constant 0 : i32
    %c0_i32_2 = arith.constant 0 : i32
    return %c0_i32, %c0_i32_0, %c0_i32_1 : i32, i32, i32
  }
  func.func @transform_1(%arg0: i32) -> (i32, i32) {
    %c0_i32 = arith.constant 0 : i32
    %c0_i32_0 = arith.constant 0 : i32
    %c0_i32_1 = arith.constant 0 : i32
    return %c0_i32, %c0_i32_0 : i32, i32
  }
  func.func @transform_2(%arg0: i32) -> (i32, i32) {
    %c0_i32 = arith.constant 0 : i32
    %c0_i32_0 = arith.constant 0 : i32
    %c0_i32_1 = arith.constant 0 : i32
    return %c0_i32, %c0_i32_0 : i32, i32
  }
  func.func @transform_3(%arg0: i32) -> (i32, i32) {
    %c0_i32 = arith.constant 0 : i32
    %c0_i32_0 = arith.constant 0 : i32
    %c0_i32_1 = arith.constant 0 : i32
    return %c0_i32, %c0_i32_0 : i32, i32
  }
  func.func @transform_4(%arg0: i32) -> (i32, i32) {
    %c0_i32 = arith.constant 0 : i32
    %c0_i32_0 = arith.constant 0 : i32
    %c0_i32_1 = arith.constant 0 : i32
    return %c0_i32, %c0_i32_0 : i32, i32
  }
  func.func @transform_5(%arg0: i32) -> (i32, i32) {
    %c0_i32 = arith.constant 0 : i32
    %c0_i32_0 = arith.constant 0 : i32
    %c0_i32_1 = arith.constant 0 : i32
    return %c0_i32, %c0_i32_0 : i32, i32
  }
  func.func @transform_6(%arg0: i32) -> (i32, i32) {
    %c0_i32 = arith.constant 0 : i32
    %c0_i32_0 = arith.constant 0 : i32
    %c0_i32_1 = arith.constant 0 : i32
    return %c0_i32, %c0_i32_0 : i32, i32
  }
  func.func @transform_7(%arg0: i32) -> (i32, i32) {
    %c0_i32 = arith.constant 0 : i32
    %c0_i32_0 = arith.constant 0 : i32
    %c0_i32_1 = arith.constant 0 : i32
    return %c0_i32, %c0_i32_0 : i32, i32
  }
  func.func @transform_8(%arg0: i32) -> (i32, i32) {
    %c0_i32 = arith.constant 0 : i32
    %c0_i32_0 = arith.constant 0 : i32
    %c0_i32_1 = arith.constant 0 : i32
    return %c0_i32, %c0_i32_0 : i32, i32
  }
  func.func @transform_9(%arg0: i32) -> (i32, i32) {
    %c0_i32 = arith.constant 0 : i32
    %c0_i32_0 = arith.constant 0 : i32
    %c0_i32_1 = arith.constant 0 : i32
    return %c0_i32, %c0_i32_0 : i32, i32
  }
  func.func @transform_10(%arg0: i32) -> (i32, i32) {
    %c0_i32 = arith.constant 0 : i32
    %c0_i32_0 = arith.constant 0 : i32
    %c0_i32_1 = arith.constant 0 : i32
    return %c0_i32, %c0_i32_0 : i32, i32
  }
  func.func @transform_11(%arg0: i32) -> (i32, i32) {
    %c0_i32 = arith.constant 0 : i32
    %c0_i32_0 = arith.constant 0 : i32
    %c0_i32_1 = arith.constant 0 : i32
    return %c0_i32, %c0_i32_0 : i32, i32
  }
  func.func @transform_12(%arg0: i32) -> (i32, i32) {
    %c0_i32 = arith.constant 0 : i32
    %c0_i32_0 = arith.constant 0 : i32
    %c0_i32_1 = arith.constant 0 : i32
    return %c0_i32, %c0_i32_0 : i32, i32
  }
  func.func @transform_13(%arg0: i32) -> (i32, i32, i32) {
    %c0_i32 = arith.constant 0 : i32
    %c0_i32_0 = arith.constant 0 : i32
    %c0_i32_1 = arith.constant 0 : i32
    %c0_i32_2 = arith.constant 0 : i32
    return %c0_i32, %c0_i32_0, %c0_i32_1 : i32, i32, i32
  }
}

module attributes {stable_mosaic.version = 11 : i64} {
  func.func @_layernorm_kernel(%arg0: i32, %arg1: memref<2x8x32xf32, #tpu.memory_space<vmem>>, %arg2: memref<1x32xf32, #tpu.memory_space<vmem>>, %arg3: memref<1x32xf32, #tpu.memory_space<vmem>>, %arg4: memref<2x8x32xf32, #tpu.memory_space<vmem>>) attributes {dimension_semantics = [#tpu.dimension_semantics<arbitrary>], iteration_bounds = array<i64: 1>, scalar_prefetch = 0 : i64, scratch_operands = 0 : i64, tpu.core_type = #tpu.core_type<tc>, window_params = [{pipeline_mode = #tpu.pipeline_mode<synchronous>, transform_indices = @transform_0, window_bounds = array<i64: 2, 8, 32>}, {pipeline_mode = #tpu.pipeline_mode<synchronous>, transform_indices = @transform_1, window_bounds = array<i64: 1, 32>}, {pipeline_mode = #tpu.pipeline_mode<synchronous>, transform_indices = @transform_2, window_bounds = array<i64: 1, 32>}, {pipeline_mode = #tpu.pipeline_mode<synchronous>, transform_indices = @transform_3, window_bounds = array<i64: 2, 8, 32>}]} {
    %c0 = arith.constant 0 : index
    %c0_0 = arith.constant 0 : index
    %c0_1 = arith.constant 0 : index
    %0 = vector.load %arg1[%c0, %c0_0, %c0_1] : memref<2x8x32xf32, #tpu.memory_space<vmem>>, vector<2x8x32xf32>
    %1 = vector.shape_cast %0 : vector<2x8x32xf32> to vector<16x32xf32>
    %c0_2 = arith.constant 0 : index
    %c0_3 = arith.constant 0 : index
    %2 = vector.load %arg2[%c0_2, %c0_3] : memref<1x32xf32, #tpu.memory_space<vmem>>, vector<1x32xf32>
    %c0_4 = arith.constant 0 : index
    %c0_5 = arith.constant 0 : index
    %3 = vector.load %arg3[%c0_4, %c0_5] : memref<1x32xf32, #tpu.memory_space<vmem>>, vector<1x32xf32>
    %cst = arith.constant dense<0.000000e+00> : vector<16xf32>
    %4 = vector.multi_reduction <add>, %1, %cst [1] : vector<16x32xf32> to vector<16xf32>
    %5 = vector.shape_cast %4 : vector<16xf32> to vector<16x1xf32>
    %cst_6 = arith.constant 3.200000e+01 : f32
    %6 = vector.broadcast %cst_6 : f32 to vector<16x1xf32>
    %7 = arith.divf %5, %6 : vector<16x1xf32>
    %8 = vector.broadcast %7 : vector<16x1xf32> to vector<16x32xf32>
    %9 = arith.subf %1, %8 : vector<16x32xf32>
    %10 = arith.mulf %9, %9 : vector<16x32xf32>
    %cst_7 = arith.constant dense<0.000000e+00> : vector<16xf32>
    %11 = vector.multi_reduction <add>, %10, %cst_7 [1] : vector<16x32xf32> to vector<16xf32>
    %12 = vector.shape_cast %11 : vector<16xf32> to vector<16x1xf32>
    %cst_8 = arith.constant 3.200000e+01 : f32
    %13 = vector.broadcast %cst_8 : f32 to vector<16x1xf32>
    %14 = arith.divf %12, %13 : vector<16x1xf32>
    %15 = vector.broadcast %7 : vector<16x1xf32> to vector<16x32xf32>
    %16 = arith.subf %1, %15 : vector<16x32xf32>
    %cst_9 = arith.constant 9.99999974E-6 : f32
    %17 = vector.broadcast %cst_9 : f32 to vector<16x1xf32>
    %18 = arith.addf %14, %17 : vector<16x1xf32>
    %19 = math.rsqrt %18 : vector<16x1xf32>
    %20 = vector.broadcast %19 : vector<16x1xf32> to vector<16x32xf32>
    %21 = arith.mulf %16, %20 : vector<16x32xf32>
    %22 = vector.broadcast %2 : vector<1x32xf32> to vector<16x32xf32>
    %23 = arith.mulf %21, %22 : vector<16x32xf32>
    %24 = vector.broadcast %3 : vector<1x32xf32> to vector<16x32xf32>
    %25 = arith.addf %23, %24 : vector<16x32xf32>
    %26 = vector.shape_cast %25 : vector<16x32xf32> to vector<2x8x32xf32>
    %c0_10 = arith.constant 0 : index
    %c0_11 = arith.constant 0 : index
    %c0_12 = arith.constant 0 : index
    %27 = vector.load %arg4[%c0_10, %c0_11, %c0_12] : memref<2x8x32xf32, #tpu.memory_space<vmem>>, vector<2x8x32xf32>
    tpu.vector_store %arg4[%c0_10, %c0_11, %c0_12], %26 {strides = array<i32>} : memref<2x8x32xf32, #tpu.memory_space<vmem>>, vector<2x8x32xf32>,
    return
  }
  func.func @transform_0(%arg0: i32) -> (i32, i32, i32) {
    %c0_i32 = arith.constant 0 : i32
    %c0_i32_0 = arith.constant 0 : i32
    %c0_i32_1 = arith.constant 0 : i32
    %c0_i32_2 = arith.constant 0 : i32
    return %c0_i32, %c0_i32_0, %c0_i32_1 : i32, i32, i32
  }
  func.func @transform_1(%arg0: i32) -> (i32, i32) {
    %c0_i32 = arith.constant 0 : i32
    %c0_i32_0 = arith.constant 0 : i32
    %c0_i32_1 = arith.constant 0 : i32
    return %c0_i32, %c0_i32_0 : i32, i32
  }
  func.func @transform_2(%arg0: i32) -> (i32, i32) {
    %c0_i32 = arith.constant 0 : i32
    %c0_i32_0 = arith.constant 0 : i32
    %c0_i32_1 = arith.constant 0 : i32
    return %c0_i32, %c0_i32_0 : i32, i32
  }
  func.func @transform_3(%arg0: i32) -> (i32, i32, i32) {
    %c0_i32 = arith.constant 0 : i32
    %c0_i32_0 = arith.constant 0 : i32
    %c0_i32_1 = arith.constant 0 : i32
    %c0_i32_2 = arith.constant 0 : i32
    return %c0_i32, %c0_i32_0, %c0_i32_1 : i32, i32, i32
  }
}

module attributes {stable_mosaic.version = 11 : i64} {
  func.func @_embedding_kernel(%arg0: i32, %arg1: memref<2x12x4xf32, #tpu.memory_space<vmem>>, %arg2: memref<2x12x4xf32, #tpu.memory_space<vmem>>, %arg3: memref<4x32xf32, #tpu.memory_space<vmem>>, %arg4: memref<1x32xf32, #tpu.memory_space<vmem>>, %arg5: memref<4x32xf32, #tpu.memory_space<vmem>>, %arg6: memref<12x32xf32, #tpu.memory_space<vmem>>, %arg7: memref<2x12x32xf32, #tpu.memory_space<vmem>>) attributes {dimension_semantics = [#tpu.dimension_semantics<arbitrary>], iteration_bounds = array<i64: 1>, scalar_prefetch = 0 : i64, scratch_operands = 0 : i64, tpu.core_type = #tpu.core_type<tc>, window_params = [{pipeline_mode = #tpu.pipeline_mode<synchronous>, transform_indices = @transform_0, window_bounds = array<i64: 2, 12, 4>}, {pipeline_mode = #tpu.pipeline_mode<synchronous>, transform_indices = @transform_1, window_bounds = array<i64: 2, 12, 4>}, {pipeline_mode = #tpu.pipeline_mode<synchronous>, transform_indices = @transform_2, window_bounds = array<i64: 4, 32>}, {pipeline_mode = #tpu.pipeline_mode<synchronous>, transform_indices = @transform_3, window_bounds = array<i64: 1, 32>}, {pipeline_mode = #tpu.pipeline_mode<synchronous>, transform_indices = @transform_4, window_bounds = array<i64: 4, 32>}, {pipeline_mode = #tpu.pipeline_mode<synchronous>, transform_indices = @transform_5, window_bounds = array<i64: 12, 32>}, {pipeline_mode = #tpu.pipeline_mode<synchronous>, transform_indices = @transform_6, window_bounds = array<i64: 2, 12, 32>}]} {
    %c0 = arith.constant 0 : index
    %c0_0 = arith.constant 0 : index
    %c0_1 = arith.constant 0 : index
    %0 = vector.load %arg1[%c0, %c0_0, %c0_1] : memref<2x12x4xf32, #tpu.memory_space<vmem>>, vector<2x12x4xf32>
    %1 = vector.shape_cast %0 : vector<2x12x4xf32> to vector<24x4xf32>
    %c0_2 = arith.constant 0 : index
    %c0_3 = arith.constant 0 : index
    %c0_4 = arith.constant 0 : index
    %2 = vector.load %arg2[%c0_2, %c0_3, %c0_4] : memref<2x12x4xf32, #tpu.memory_space<vmem>>, vector<2x12x4xf32>
    %3 = vector.shape_cast %2 : vector<2x12x4xf32> to vector<24x4xf32>
    %c0_5 = arith.constant 0 : index
    %c0_6 = arith.constant 0 : index
    %4 = vector.load %arg3[%c0_5, %c0_6] : memref<4x32xf32, #tpu.memory_space<vmem>>, vector<4x32xf32>
    %cst = arith.constant dense<0.000000e+00> : vector<24x32xf32>
    %5 = tpu.matmul %1, %4, %cst {dimension_numbers = #tpu.dot_dimension_numbers<[1], [0], [0], [1], [0, 0, 1, 1], [], []>} : vector<24x4xf32>, vector<4x32xf32>, vector<24x32xf32> -> vector<24x32xf32>
    %c0_7 = arith.constant 0 : index
    %c0_8 = arith.constant 0 : index
    %6 = vector.load %arg4[%c0_7, %c0_8] : memref<1x32xf32, #tpu.memory_space<vmem>>, vector<1x32xf32>
    %7 = vector.broadcast %6 : vector<1x32xf32> to vector<24x32xf32>
    %8 = arith.addf %5, %7 : vector<24x32xf32>
    %c0_9 = arith.constant 0 : index
    %c0_10 = arith.constant 0 : index
    %9 = vector.load %arg5[%c0_9, %c0_10] : memref<4x32xf32, #tpu.memory_space<vmem>>, vector<4x32xf32>
    %cst_11 = arith.constant dense<0.000000e+00> : vector<24x32xf32>
    %10 = tpu.matmul %3, %9, %cst_11 {dimension_numbers = #tpu.dot_dimension_numbers<[1], [0], [0], [1], [0, 0, 1, 1], [], []>} : vector<24x4xf32>, vector<4x32xf32>, vector<24x32xf32> -> vector<24x32xf32>
    %11 = arith.addf %8, %10 : vector<24x32xf32>
    %12 = vector.shape_cast %11 : vector<24x32xf32> to vector<2x12x32xf32>
    %c0_12 = arith.constant 0 : index
    %c0_13 = arith.constant 0 : index
    %13 = vector.load %arg6[%c0_12, %c0_13] : memref<12x32xf32, #tpu.memory_space<vmem>>, vector<12x32xf32>
    %14 = vector.shape_cast %13 : vector<12x32xf32> to vector<1x12x32xf32>
    %15 = vector.broadcast %14 : vector<1x12x32xf32> to vector<2x12x32xf32>
    %16 = arith.addf %12, %15 : vector<2x12x32xf32>
    %c0_14 = arith.constant 0 : index
    %c0_15 = arith.constant 0 : index
    %c0_16 = arith.constant 0 : index
    %17 = vector.load %arg7[%c0_14, %c0_15, %c0_16] : memref<2x12x32xf32, #tpu.memory_space<vmem>>, vector<2x12x32xf32>
    tpu.vector_store %arg7[%c0_14, %c0_15, %c0_16], %16 {strides = array<i32>} : memref<2x12x32xf32, #tpu.memory_space<vmem>>, vector<2x12x32xf32>,
    return
  }
  func.func @transform_0(%arg0: i32) -> (i32, i32, i32) {
    %c0_i32 = arith.constant 0 : i32
    %c0_i32_0 = arith.constant 0 : i32
    %c0_i32_1 = arith.constant 0 : i32
    %c0_i32_2 = arith.constant 0 : i32
    return %c0_i32, %c0_i32_0, %c0_i32_1 : i32, i32, i32
  }
  func.func @transform_1(%arg0: i32) -> (i32, i32, i32) {
    %c0_i32 = arith.constant 0 : i32
    %c0_i32_0 = arith.constant 0 : i32
    %c0_i32_1 = arith.constant 0 : i32
    %c0_i32_2 = arith.constant 0 : i32
    return %c0_i32, %c0_i32_0, %c0_i32_1 : i32, i32, i32
  }
  func.func @transform_2(%arg0: i32) -> (i32, i32) {
    %c0_i32 = arith.constant 0 : i32
    %c0_i32_0 = arith.constant 0 : i32
    %c0_i32_1 = arith.constant 0 : i32
    return %c0_i32, %c0_i32_0 : i32, i32
  }
  func.func @transform_3(%arg0: i32) -> (i32, i32) {
    %c0_i32 = arith.constant 0 : i32
    %c0_i32_0 = arith.constant 0 : i32
    %c0_i32_1 = arith.constant 0 : i32
    return %c0_i32, %c0_i32_0 : i32, i32
  }
  func.func @transform_4(%arg0: i32) -> (i32, i32) {
    %c0_i32 = arith.constant 0 : i32
    %c0_i32_0 = arith.constant 0 : i32
    %c0_i32_1 = arith.constant 0 : i32
    return %c0_i32, %c0_i32_0 : i32, i32
  }
  func.func @transform_5(%arg0: i32) -> (i32, i32) {
    %c0_i32 = arith.constant 0 : i32
    %c0_i32_0 = arith.constant 0 : i32
    %c0_i32_1 = arith.constant 0 : i32
    return %c0_i32, %c0_i32_0 : i32, i32
  }
  func.func @transform_6(%arg0: i32) -> (i32, i32, i32) {
    %c0_i32 = arith.constant 0 : i32
    %c0_i32_0 = arith.constant 0 : i32
    %c0_i32_1 = arith.constant 0 : i32
    %c0_i32_2 = arith.constant 0 : i32
    return %c0_i32, %c0_i32_0, %c0_i32_1 : i32, i32, i32
  }
}

module attributes {stable_mosaic.version = 11 : i64} {
  func.func @_decoder_layer_kernel(%arg0: i32, %arg1: memref<2x12x32xf32, #tpu.memory_space<vmem>>, %arg2: memref<2x8x32xf32, #tpu.memory_space<vmem>>, %arg3: memref<32x48xf32, #tpu.memory_space<vmem>>, %arg4: memref<1x48xf32, #tpu.memory_space<vmem>>, %arg5: memref<16x32xf32, #tpu.memory_space<vmem>>, %arg6: memref<1x32xf32, #tpu.memory_space<vmem>>, %arg7: memref<32x32xf32, #tpu.memory_space<vmem>>, %arg8: memref<1x32xf32, #tpu.memory_space<vmem>>, %arg9: memref<32x64xf32, #tpu.memory_space<vmem>>, %arg10: memref<1x64xf32, #tpu.memory_space<vmem>>, %arg11: memref<32x32xf32, #tpu.memory_space<vmem>>, %arg12: memref<1x32xf32, #tpu.memory_space<vmem>>, %arg13: memref<1x32xf32, #tpu.memory_space<vmem>>, %arg14: memref<1x32xf32, #tpu.memory_space<vmem>>, %arg15: memref<1x32xf32, #tpu.memory_space<vmem>>, %arg16: memref<1x32xf32, #tpu.memory_space<vmem>>, %arg17: memref<1x32xf32, #tpu.memory_space<vmem>>, %arg18: memref<1x32xf32, #tpu.memory_space<vmem>>, %arg19: memref<32x64xf32, #tpu.memory_space<vmem>>, %arg20: memref<1x64xf32, #tpu.memory_space<vmem>>, %arg21: memref<64x32xf32, #tpu.memory_space<vmem>>, %arg22: memref<1x32xf32, #tpu.memory_space<vmem>>, %arg23: memref<2x12x32xf32, #tpu.memory_space<vmem>>) attributes {dimension_semantics = [#tpu.dimension_semantics<arbitrary>], iteration_bounds = array<i64: 1>, scalar_prefetch = 0 : i64, scratch_operands = 0 : i64, tpu.core_type = #tpu.core_type<tc>, window_params = [{pipeline_mode = #tpu.pipeline_mode<synchronous>, transform_indices = @transform_0, window_bounds = array<i64: 2, 12, 32>}, {pipeline_mode = #tpu.pipeline_mode<synchronous>, transform_indices = @transform_1, window_bounds = array<i64: 2, 8, 32>}, {pipeline_mode = #tpu.pipeline_mode<synchronous>, transform_indices = @transform_2, window_bounds = array<i64: 32, 48>}, {pipeline_mode = #tpu.pipeline_mode<synchronous>, transform_indices = @transform_3, window_bounds = array<i64: 1, 48>}, {pipeline_mode = #tpu.pipeline_mode<synchronous>, transform_indices = @transform_4, window_bounds = array<i64: 16, 32>}, {pipeline_mode = #tpu.pipeline_mode<synchronous>, transform_indices = @transform_5, window_bounds = array<i64: 1, 32>}, {pipeline_mode = #tpu.pipeline_mode<synchronous>, transform_indices = @transform_6, window_bounds = array<i64: 32, 32>}, {pipeline_mode = #tpu.pipeline_mode<synchronous>, transform_indices = @transform_7, window_bounds = array<i64: 1, 32>}, {pipeline_mode = #tpu.pipeline_mode<synchronous>, transform_indices = @transform_8, window_bounds = array<i64: 32, 64>}, {pipeline_mode = #tpu.pipeline_mode<synchronous>, transform_indices = @transform_9, window_bounds = array<i64: 1, 64>}, {pipeline_mode = #tpu.pipeline_mode<synchronous>, transform_indices = @transform_10, window_bounds = array<i64: 32, 32>}, {pipeline_mode = #tpu.pipeline_mode<synchronous>, transform_indices = @transform_11, window_bounds = array<i64: 1, 32>}, {pipeline_mode = #tpu.pipeline_mode<synchronous>, transform_indices = @transform_12, window_bounds = array<i64: 1, 32>}, {pipeline_mode = #tpu.pipeline_mode<synchronous>, transform_indices = @transform_13, window_bounds = array<i64: 1, 32>}, {pipeline_mode = #tpu.pipeline_mode<synchronous>, transform_indices = @transform_14, window_bounds = array<i64: 1, 32>}, {pipeline_mode = #tpu.pipeline_mode<synchronous>, transform_indices = @transform_15, window_bounds = array<i64: 1, 32>}, {pipeline_mode = #tpu.pipeline_mode<synchronous>, transform_indices = @transform_16, window_bounds = array<i64: 1, 32>}, {pipeline_mode = #tpu.pipeline_mode<synchronous>, transform_indices = @transform_17, window_bounds = array<i64: 1, 32>}, {pipeline_mode = #tpu.pipeline_mode<synchronous>, transform_indices = @transform_18, window_bounds = array<i64: 32, 64>}, {pipeline_mode = #tpu.pipeline_mode<synchronous>, transform_indices = @transform_19, window_bounds = array<i64: 1, 64>}, {pipeline_mode = #tpu.pipeline_mode<synchronous>, transform_indices = @transform_20, window_bounds = array<i64: 64, 32>}, {pipeline_mode = #tpu.pipeline_mode<synchronous>, transform_indices = @transform_21, window_bounds = array<i64: 1, 32>}, {pipeline_mode = #tpu.pipeline_mode<synchronous>, transform_indices = @transform_22, window_bounds = array<i64: 2, 12, 32>}]} {
    %c0 = arith.constant 0 : index
    %c0_0 = arith.constant 0 : index
    %c0_1 = arith.constant 0 : index
    %0 = vector.load %arg1[%c0, %c0_0, %c0_1] : memref<2x12x32xf32, #tpu.memory_space<vmem>>, vector<2x12x32xf32>
    %c0_2 = arith.constant 0 : index
    %c0_3 = arith.constant 0 : index
    %c0_4 = arith.constant 0 : index
    %1 = vector.load %arg2[%c0_2, %c0_3, %c0_4] : memref<2x8x32xf32, #tpu.memory_space<vmem>>, vector<2x8x32xf32>
    %2 = vector.shape_cast %0 : vector<2x12x32xf32> to vector<24x32xf32>
    %c0_5 = arith.constant 0 : index
    %c0_6 = arith.constant 0 : index
    %3 = vector.load %arg3[%c0_5, %c0_6] : memref<32x48xf32, #tpu.memory_space<vmem>>, vector<32x48xf32>
    %c0_7 = arith.constant 0 : index
    %c0_8 = arith.constant 0 : index
    %4 = vector.load %arg4[%c0_7, %c0_8] : memref<1x48xf32, #tpu.memory_space<vmem>>, vector<1x48xf32>
    %c0_9 = arith.constant 0 : index
    %c0_10 = arith.constant 0 : index
    %5 = vector.load %arg5[%c0_9, %c0_10] : memref<16x32xf32, #tpu.memory_space<vmem>>, vector<16x32xf32>
    %c0_11 = arith.constant 0 : index
    %c0_12 = arith.constant 0 : index
    %6 = vector.load %arg6[%c0_11, %c0_12] : memref<1x32xf32, #tpu.memory_space<vmem>>, vector<1x32xf32>
    %7 = vector.shape_cast %0 : vector<2x12x32xf32> to vector<24x32xf32>
    %cst = arith.constant dense<0.000000e+00> : vector<24x48xf32>
    %8 = tpu.matmul %7, %3, %cst {dimension_numbers = #tpu.dot_dimension_numbers<[1], [0], [0], [1], [0, 0, 1, 1], [], []>} : vector<24x32xf32>, vector<32x48xf32>, vector<24x48xf32> -> vector<24x48xf32>
    %9 = vector.broadcast %4 : vector<1x48xf32> to vector<24x48xf32>
    %10 = arith.addf %8, %9 : vector<24x48xf32>
    %11 = vector.shape_cast %10 : vector<24x48xf32> to vector<2x12x48xf32>
    %12 = vector.extract_strided_slice %11 {offsets = [0, 0, 0], sizes = [2, 12, 16], strides = [1, 1, 1]} : vector<2x12x48xf32> to vector<2x12x16xf32>
    %13 = vector.extract_strided_slice %11 {offsets = [0, 0, 16], sizes = [2, 12, 16], strides = [1, 1, 1]} : vector<2x12x48xf32> to vector<2x12x16xf32>
    %14 = vector.extract_strided_slice %11 {offsets = [0, 0, 32], sizes = [2, 12, 16], strides = [1, 1, 1]} : vector<2x12x48xf32> to vector<2x12x16xf32>
    %15 = tpu.iota {dimensions = array<i32: 0>} : vector<12x12xi32>
    %16 = tpu.iota {dimensions = array<i32: 1>} : vector<12x12xi32>
    %17 = arith.cmpi sgt, %16, %15 : vector<12x12xi32>
    %18 = vector.shape_cast %17 : vector<12x12xi1> to vector<1x12x12xi1>
    %cst_13 = arith.constant 0.000000e+00 : f32
    %19 = vector.broadcast %cst_13 : f32 to vector<24x32xf32>
    %20 = vector.extract_strided_slice %12 {offsets = [0, 0, 0], sizes = [2, 12, 4], strides = [1, 1, 1]} : vector<2x12x16xf32> to vector<2x12x4xf32>
    %cst_14 = arith.constant 5.000000e-01 : f32
    %21 = vector.broadcast %cst_14 : f32 to vector<2x12x4xf32>
    %22 = arith.mulf %20, %21 : vector<2x12x4xf32>
    %23 = vector.extract_strided_slice %13 {offsets = [0, 0, 0], sizes = [2, 12, 4], strides = [1, 1, 1]} : vector<2x12x16xf32> to vector<2x12x4xf32>
    %24 = vector.extract_strided_slice %14 {offsets = [0, 0, 0], sizes = [2, 12, 4], strides = [1, 1, 1]} : vector<2x12x16xf32> to vector<2x12x4xf32>
    %cst_15 = arith.constant dense<0.000000e+00> : vector<2x12x12xf32>
    %25 = tpu.matmul %22, %23, %cst_15 {dimension_numbers = #tpu.dot_dimension_numbers<[2], [2], [1], [1], [0, 0, 0, 1, 1, 1], [0], [0]>} : vector<2x12x4xf32>, vector<2x12x4xf32>, vector<2x12x12xf32> -> vector<2x12x12xf32>
    %cst_16 = arith.constant -1.000000e+09 : f32
    %26 = vector.shape_cast %18 : vector<1x12x12xi1> to vector<1x12x12xi1>
    %27 = vector.broadcast %26 : vector<1x12x12xi1> to vector<2x12x12xi1>
    %28 = vector.broadcast %cst_16 : f32 to vector<2x12x12xf32>
    %29 = arith.select %27, %28, %25 : vector<2x12x12xi1>, vector<2x12x12xf32>
    %cst_17 = arith.constant dense<0xFF800000> : vector<2x12xf32>
    %30 = vector.multi_reduction <maximumf>, %29, %cst_17 [2] : vector<2x12x12xf32> to vector<2x12xf32>
    %31 = vector.shape_cast %30 : vector<2x12xf32> to vector<2x12x1xf32>
    %32 = vector.broadcast %31 : vector<2x12x1xf32> to vector<2x12x12xf32>
    %33 = arith.subf %29, %32 : vector<2x12x12xf32>
    %34 = math.exp %33 : vector<2x12x12xf32>
    %cst_18 = arith.constant dense<0.000000e+00> : vector<2x12xf32>
    %35 = vector.multi_reduction <add>, %34, %cst_18 [2] : vector<2x12x12xf32> to vector<2x12xf32>
    %36 = vector.shape_cast %35 : vector<2x12xf32> to vector<2x12x1xf32>
    %37 = tpu.reciprocal %36 {approx = true} : vector<2x12x1xf32> -> vector<2x12x1xf32>
    %38 = vector.broadcast %37 : vector<2x12x1xf32> to vector<2x12x12xf32>
    %39 = arith.mulf %34, %38 : vector<2x12x12xf32>
    %cst_19 = arith.constant dense<0.000000e+00> : vector<2x12x4xf32>
    %40 = tpu.matmul %39, %24, %cst_19 {dimension_numbers = #tpu.dot_dimension_numbers<[2], [1], [1], [2], [0, 0, 0, 1, 1, 2], [0], [0]>} : vector<2x12x12xf32>, vector<2x12x4xf32>, vector<2x12x4xf32> -> vector<2x12x4xf32>
    %41 = vector.shape_cast %40 : vector<2x12x4xf32> to vector<24x4xf32>
    %42 = vector.extract_strided_slice %5 {offsets = [0, 0], sizes = [4, 32], strides = [1, 1]} : vector<16x32xf32> to vector<4x32xf32>
    %cst_20 = arith.constant dense<0.000000e+00> : vector<24x32xf32>
    %43 = tpu.matmul %41, %42, %cst_20 {dimension_numbers = #tpu.dot_dimension_numbers<[1], [0], [0], [1], [0, 0, 1, 1], [], []>} : vector<24x4xf32>, vector<4x32xf32>, vector<24x32xf32> -> vector<24x32xf32>
    %44 = arith.addf %19, %43 : vector<24x32xf32>
    %45 = vector.extract_strided_slice %12 {offsets = [0, 0, 4], sizes = [2, 12, 4], strides = [1, 1, 1]} : vector<2x12x16xf32> to vector<2x12x4xf32>
    %cst_21 = arith.constant 5.000000e-01 : f32
    %46 = vector.broadcast %cst_21 : f32 to vector<2x12x4xf32>
    %47 = arith.mulf %45, %46 : vector<2x12x4xf32>
    %48 = vector.extract_strided_slice %13 {offsets = [0, 0, 4], sizes = [2, 12, 4], strides = [1, 1, 1]} : vector<2x12x16xf32> to vector<2x12x4xf32>
    %49 = vector.extract_strided_slice %14 {offsets = [0, 0, 4], sizes = [2, 12, 4], strides = [1, 1, 1]} : vector<2x12x16xf32> to vector<2x12x4xf32>
    %cst_22 = arith.constant dense<0.000000e+00> : vector<2x12x12xf32>
    %50 = tpu.matmul %47, %48, %cst_22 {dimension_numbers = #tpu.dot_dimension_numbers<[2], [2], [1], [1], [0, 0, 0, 1, 1, 1], [0], [0]>} : vector<2x12x4xf32>, vector<2x12x4xf32>, vector<2x12x12xf32> -> vector<2x12x12xf32>
    %cst_23 = arith.constant -1.000000e+09 : f32
    %51 = vector.shape_cast %18 : vector<1x12x12xi1> to vector<1x12x12xi1>
    %52 = vector.broadcast %51 : vector<1x12x12xi1> to vector<2x12x12xi1>
    %53 = vector.broadcast %cst_23 : f32 to vector<2x12x12xf32>
    %54 = arith.select %52, %53, %50 : vector<2x12x12xi1>, vector<2x12x12xf32>
    %cst_24 = arith.constant dense<0xFF800000> : vector<2x12xf32>
    %55 = vector.multi_reduction <maximumf>, %54, %cst_24 [2] : vector<2x12x12xf32> to vector<2x12xf32>
    %56 = vector.shape_cast %55 : vector<2x12xf32> to vector<2x12x1xf32>
    %57 = vector.broadcast %56 : vector<2x12x1xf32> to vector<2x12x12xf32>
    %58 = arith.subf %54, %57 : vector<2x12x12xf32>
    %59 = math.exp %58 : vector<2x12x12xf32>
    %cst_25 = arith.constant dense<0.000000e+00> : vector<2x12xf32>
    %60 = vector.multi_reduction <add>, %59, %cst_25 [2] : vector<2x12x12xf32> to vector<2x12xf32>
    %61 = vector.shape_cast %60 : vector<2x12xf32> to vector<2x12x1xf32>
    %62 = tpu.reciprocal %61 {approx = true} : vector<2x12x1xf32> -> vector<2x12x1xf32>
    %63 = vector.broadcast %62 : vector<2x12x1xf32> to vector<2x12x12xf32>
    %64 = arith.mulf %59, %63 : vector<2x12x12xf32>
    %cst_26 = arith.constant dense<0.000000e+00> : vector<2x12x4xf32>
    %65 = tpu.matmul %64, %49, %cst_26 {dimension_numbers = #tpu.dot_dimension_numbers<[2], [1], [1], [2], [0, 0, 0, 1, 1, 2], [0], [0]>} : vector<2x12x12xf32>, vector<2x12x4xf32>, vector<2x12x4xf32> -> vector<2x12x4xf32>
    %66 = vector.shape_cast %65 : vector<2x12x4xf32> to vector<24x4xf32>
    %67 = vector.extract_strided_slice %5 {offsets = [4, 0], sizes = [4, 32], strides = [1, 1]} : vector<16x32xf32> to vector<4x32xf32>
    %cst_27 = arith.constant dense<0.000000e+00> : vector<24x32xf32>
    %68 = tpu.matmul %66, %67, %cst_27 {dimension_numbers = #tpu.dot_dimension_numbers<[1], [0], [0], [1], [0, 0, 1, 1], [], []>} : vector<24x4xf32>, vector<4x32xf32>, vector<24x32xf32> -> vector<24x32xf32>
    %69 = arith.addf %44, %68 : vector<24x32xf32>
    %70 = vector.extract_strided_slice %12 {offsets = [0, 0, 8], sizes = [2, 12, 4], strides = [1, 1, 1]} : vector<2x12x16xf32> to vector<2x12x4xf32>
    %cst_28 = arith.constant 5.000000e-01 : f32
    %71 = vector.broadcast %cst_28 : f32 to vector<2x12x4xf32>
    %72 = arith.mulf %70, %71 : vector<2x12x4xf32>
    %73 = vector.extract_strided_slice %13 {offsets = [0, 0, 8], sizes = [2, 12, 4], strides = [1, 1, 1]} : vector<2x12x16xf32> to vector<2x12x4xf32>
    %74 = vector.extract_strided_slice %14 {offsets = [0, 0, 8], sizes = [2, 12, 4], strides = [1, 1, 1]} : vector<2x12x16xf32> to vector<2x12x4xf32>
    %cst_29 = arith.constant dense<0.000000e+00> : vector<2x12x12xf32>
    %75 = tpu.matmul %72, %73, %cst_29 {dimension_numbers = #tpu.dot_dimension_numbers<[2], [2], [1], [1], [0, 0, 0, 1, 1, 1], [0], [0]>} : vector<2x12x4xf32>, vector<2x12x4xf32>, vector<2x12x12xf32> -> vector<2x12x12xf32>
    %cst_30 = arith.constant -1.000000e+09 : f32
    %76 = vector.shape_cast %18 : vector<1x12x12xi1> to vector<1x12x12xi1>
    %77 = vector.broadcast %76 : vector<1x12x12xi1> to vector<2x12x12xi1>
    %78 = vector.broadcast %cst_30 : f32 to vector<2x12x12xf32>
    %79 = arith.select %77, %78, %75 : vector<2x12x12xi1>, vector<2x12x12xf32>
    %cst_31 = arith.constant dense<0xFF800000> : vector<2x12xf32>
    %80 = vector.multi_reduction <maximumf>, %79, %cst_31 [2] : vector<2x12x12xf32> to vector<2x12xf32>
    %81 = vector.shape_cast %80 : vector<2x12xf32> to vector<2x12x1xf32>
    %82 = vector.broadcast %81 : vector<2x12x1xf32> to vector<2x12x12xf32>
    %83 = arith.subf %79, %82 : vector<2x12x12xf32>
    %84 = math.exp %83 : vector<2x12x12xf32>
    %cst_32 = arith.constant dense<0.000000e+00> : vector<2x12xf32>
    %85 = vector.multi_reduction <add>, %84, %cst_32 [2] : vector<2x12x12xf32> to vector<2x12xf32>
    %86 = vector.shape_cast %85 : vector<2x12xf32> to vector<2x12x1xf32>
    %87 = tpu.reciprocal %86 {approx = true} : vector<2x12x1xf32> -> vector<2x12x1xf32>
    %88 = vector.broadcast %87 : vector<2x12x1xf32> to vector<2x12x12xf32>
    %89 = arith.mulf %84, %88 : vector<2x12x12xf32>
    %cst_33 = arith.constant dense<0.000000e+00> : vector<2x12x4xf32>
    %90 = tpu.matmul %89, %74, %cst_33 {dimension_numbers = #tpu.dot_dimension_numbers<[2], [1], [1], [2], [0, 0, 0, 1, 1, 2], [0], [0]>} : vector<2x12x12xf32>, vector<2x12x4xf32>, vector<2x12x4xf32> -> vector<2x12x4xf32>
    %91 = vector.shape_cast %90 : vector<2x12x4xf32> to vector<24x4xf32>
    %92 = vector.extract_strided_slice %5 {offsets = [8, 0], sizes = [4, 32], strides = [1, 1]} : vector<16x32xf32> to vector<4x32xf32>
    %cst_34 = arith.constant dense<0.000000e+00> : vector<24x32xf32>
    %93 = tpu.matmul %91, %92, %cst_34 {dimension_numbers = #tpu.dot_dimension_numbers<[1], [0], [0], [1], [0, 0, 1, 1], [], []>} : vector<24x4xf32>, vector<4x32xf32>, vector<24x32xf32> -> vector<24x32xf32>
    %94 = arith.addf %69, %93 : vector<24x32xf32>
    %95 = vector.extract_strided_slice %12 {offsets = [0, 0, 12], sizes = [2, 12, 4], strides = [1, 1, 1]} : vector<2x12x16xf32> to vector<2x12x4xf32>
    %cst_35 = arith.constant 5.000000e-01 : f32
    %96 = vector.broadcast %cst_35 : f32 to vector<2x12x4xf32>
    %97 = arith.mulf %95, %96 : vector<2x12x4xf32>
    %98 = vector.extract_strided_slice %13 {offsets = [0, 0, 12], sizes = [2, 12, 4], strides = [1, 1, 1]} : vector<2x12x16xf32> to vector<2x12x4xf32>
    %99 = vector.extract_strided_slice %14 {offsets = [0, 0, 12], sizes = [2, 12, 4], strides = [1, 1, 1]} : vector<2x12x16xf32> to vector<2x12x4xf32>
    %cst_36 = arith.constant dense<0.000000e+00> : vector<2x12x12xf32>
    %100 = tpu.matmul %97, %98, %cst_36 {dimension_numbers = #tpu.dot_dimension_numbers<[2], [2], [1], [1], [0, 0, 0, 1, 1, 1], [0], [0]>} : vector<2x12x4xf32>, vector<2x12x4xf32>, vector<2x12x12xf32> -> vector<2x12x12xf32>
    %cst_37 = arith.constant -1.000000e+09 : f32
    %101 = vector.shape_cast %18 : vector<1x12x12xi1> to vector<1x12x12xi1>
    %102 = vector.broadcast %101 : vector<1x12x12xi1> to vector<2x12x12xi1>
    %103 = vector.broadcast %cst_37 : f32 to vector<2x12x12xf32>
    %104 = arith.select %102, %103, %100 : vector<2x12x12xi1>, vector<2x12x12xf32>
    %cst_38 = arith.constant dense<0xFF800000> : vector<2x12xf32>
    %105 = vector.multi_reduction <maximumf>, %104, %cst_38 [2] : vector<2x12x12xf32> to vector<2x12xf32>
    %106 = vector.shape_cast %105 : vector<2x12xf32> to vector<2x12x1xf32>
    %107 = vector.broadcast %106 : vector<2x12x1xf32> to vector<2x12x12xf32>
    %108 = arith.subf %104, %107 : vector<2x12x12xf32>
    %109 = math.exp %108 : vector<2x12x12xf32>
    %cst_39 = arith.constant dense<0.000000e+00> : vector<2x12xf32>
    %110 = vector.multi_reduction <add>, %109, %cst_39 [2] : vector<2x12x12xf32> to vector<2x12xf32>
    %111 = vector.shape_cast %110 : vector<2x12xf32> to vector<2x12x1xf32>
    %112 = tpu.reciprocal %111 {approx = true} : vector<2x12x1xf32> -> vector<2x12x1xf32>
    %113 = vector.broadcast %112 : vector<2x12x1xf32> to vector<2x12x12xf32>
    %114 = arith.mulf %109, %113 : vector<2x12x12xf32>
    %cst_40 = arith.constant dense<0.000000e+00> : vector<2x12x4xf32>
    %115 = tpu.matmul %114, %99, %cst_40 {dimension_numbers = #tpu.dot_dimension_numbers<[2], [1], [1], [2], [0, 0, 0, 1, 1, 2], [0], [0]>} : vector<2x12x12xf32>, vector<2x12x4xf32>, vector<2x12x4xf32> -> vector<2x12x4xf32>
    %116 = vector.shape_cast %115 : vector<2x12x4xf32> to vector<24x4xf32>
    %117 = vector.extract_strided_slice %5 {offsets = [12, 0], sizes = [4, 32], strides = [1, 1]} : vector<16x32xf32> to vector<4x32xf32>
    %cst_41 = arith.constant dense<0.000000e+00> : vector<24x32xf32>
    %118 = tpu.matmul %116, %117, %cst_41 {dimension_numbers = #tpu.dot_dimension_numbers<[1], [0], [0], [1], [0, 0, 1, 1], [], []>} : vector<24x4xf32>, vector<4x32xf32>, vector<24x32xf32> -> vector<24x32xf32>
    %119 = arith.addf %94, %118 : vector<24x32xf32>
    %120 = vector.broadcast %6 : vector<1x32xf32> to vector<24x32xf32>
    %121 = arith.addf %119, %120 : vector<24x32xf32>
    %122 = arith.addf %2, %121 : vector<24x32xf32>
    %c0_42 = arith.constant 0 : index
    %c0_43 = arith.constant 0 : index
    %123 = vector.load %arg13[%c0_42, %c0_43] : memref<1x32xf32, #tpu.memory_space<vmem>>, vector<1x32xf32>
    %c0_44 = arith.constant 0 : index
    %c0_45 = arith.constant 0 : index
    %124 = vector.load %arg14[%c0_44, %c0_45] : memref<1x32xf32, #tpu.memory_space<vmem>>, vector<1x32xf32>
    %cst_46 = arith.constant dense<0.000000e+00> : vector<24xf32>
    %125 = vector.multi_reduction <add>, %122, %cst_46 [1] : vector<24x32xf32> to vector<24xf32>
    %126 = vector.shape_cast %125 : vector<24xf32> to vector<24x1xf32>
    %cst_47 = arith.constant 3.200000e+01 : f32
    %127 = vector.broadcast %cst_47 : f32 to vector<24x1xf32>
    %128 = arith.divf %126, %127 : vector<24x1xf32>
    %129 = vector.broadcast %128 : vector<24x1xf32> to vector<24x32xf32>
    %130 = arith.subf %122, %129 : vector<24x32xf32>
    %131 = arith.mulf %130, %130 : vector<24x32xf32>
    %cst_48 = arith.constant dense<0.000000e+00> : vector<24xf32>
    %132 = vector.multi_reduction <add>, %131, %cst_48 [1] : vector<24x32xf32> to vector<24xf32>
    %133 = vector.shape_cast %132 : vector<24xf32> to vector<24x1xf32>
    %cst_49 = arith.constant 3.200000e+01 : f32
    %134 = vector.broadcast %cst_49 : f32 to vector<24x1xf32>
    %135 = arith.divf %133, %134 : vector<24x1xf32>
    %136 = vector.broadcast %128 : vector<24x1xf32> to vector<24x32xf32>
    %137 = arith.subf %122, %136 : vector<24x32xf32>
    %cst_50 = arith.constant 9.99999974E-6 : f32
    %138 = vector.broadcast %cst_50 : f32 to vector<24x1xf32>
    %139 = arith.addf %135, %138 : vector<24x1xf32>
    %140 = math.rsqrt %139 : vector<24x1xf32>
    %141 = vector.broadcast %140 : vector<24x1xf32> to vector<24x32xf32>
    %142 = arith.mulf %137, %141 : vector<24x32xf32>
    %143 = vector.broadcast %123 : vector<1x32xf32> to vector<24x32xf32>
    %144 = arith.mulf %142, %143 : vector<24x32xf32>
    %145 = vector.broadcast %124 : vector<1x32xf32> to vector<24x32xf32>
    %146 = arith.addf %144, %145 : vector<24x32xf32>
    %147 = vector.shape_cast %146 : vector<24x32xf32> to vector<2x12x32xf32>
    %c0_51 = arith.constant 0 : index
    %c0_52 = arith.constant 0 : index
    %148 = vector.load %arg7[%c0_51, %c0_52] : memref<32x32xf32, #tpu.memory_space<vmem>>, vector<32x32xf32>
    %c0_53 = arith.constant 0 : index
    %c0_54 = arith.constant 0 : index
    %149 = vector.load %arg8[%c0_53, %c0_54] : memref<1x32xf32, #tpu.memory_space<vmem>>, vector<1x32xf32>
    %c0_55 = arith.constant 0 : index
    %c0_56 = arith.constant 0 : index
    %150 = vector.load %arg9[%c0_55, %c0_56] : memref<32x64xf32, #tpu.memory_space<vmem>>, vector<32x64xf32>
    %c0_57 = arith.constant 0 : index
    %c0_58 = arith.constant 0 : index
    %151 = vector.load %arg10[%c0_57, %c0_58] : memref<1x64xf32, #tpu.memory_space<vmem>>, vector<1x64xf32>
    %c0_59 = arith.constant 0 : index
    %c0_60 = arith.constant 0 : index
    %152 = vector.load %arg11[%c0_59, %c0_60] : memref<32x32xf32, #tpu.memory_space<vmem>>, vector<32x32xf32>
    %c0_61 = arith.constant 0 : index
    %c0_62 = arith.constant 0 : index
    %153 = vector.load %arg12[%c0_61, %c0_62] : memref<1x32xf32, #tpu.memory_space<vmem>>, vector<1x32xf32>
    %154 = vector.shape_cast %147 : vector<2x12x32xf32> to vector<24x32xf32>
    %cst_63 = arith.constant dense<0.000000e+00> : vector<24x32xf32>
    %155 = tpu.matmul %154, %148, %cst_63 {dimension_numbers = #tpu.dot_dimension_numbers<[1], [0], [0], [1], [0, 0, 1, 1], [], []>} : vector<24x32xf32>, vector<32x32xf32>, vector<24x32xf32> -> vector<24x32xf32>
    %156 = vector.broadcast %149 : vector<1x32xf32> to vector<24x32xf32>
    %157 = arith.addf %155, %156 : vector<24x32xf32>
    %158 = vector.shape_cast %157 : vector<24x32xf32> to vector<2x12x32xf32>
    %159 = vector.shape_cast %1 : vector<2x8x32xf32> to vector<16x32xf32>
    %cst_64 = arith.constant dense<0.000000e+00> : vector<16x64xf32>
    %160 = tpu.matmul %159, %150, %cst_64 {dimension_numbers = #tpu.dot_dimension_numbers<[1], [0], [0], [1], [0, 0, 1, 1], [], []>} : vector<16x32xf32>, vector<32x64xf32>, vector<16x64xf32> -> vector<16x64xf32>
    %161 = vector.broadcast %151 : vector<1x64xf32> to vector<16x64xf32>
    %162 = arith.addf %160, %161 : vector<16x64xf32>
    %163 = vector.shape_cast %162 : vector<16x64xf32> to vector<2x8x64xf32>
    %164 = vector.extract_strided_slice %163 {offsets = [0, 0, 0], sizes = [2, 8, 32], strides = [1, 1, 1]} : vector<2x8x64xf32> to vector<2x8x32xf32>
    %165 = vector.extract_strided_slice %163 {offsets = [0, 0, 32], sizes = [2, 8, 32], strides = [1, 1, 1]} : vector<2x8x64xf32> to vector<2x8x32xf32>
    %cst_65 = arith.constant 0.000000e+00 : f32
    %166 = vector.broadcast %cst_65 : f32 to vector<24x32xf32>
    %167 = vector.extract_strided_slice %158 {offsets = [0, 0, 0], sizes = [2, 12, 8], strides = [1, 1, 1]} : vector<2x12x32xf32> to vector<2x12x8xf32>
    %cst_66 = arith.constant 0.353553385 : f32
    %168 = vector.broadcast %cst_66 : f32 to vector<2x12x8xf32>
    %169 = arith.mulf %167, %168 : vector<2x12x8xf32>
    %170 = vector.extract_strided_slice %164 {offsets = [0, 0, 0], sizes = [2, 8, 8], strides = [1, 1, 1]} : vector<2x8x32xf32> to vector<2x8x8xf32>
    %171 = vector.extract_strided_slice %165 {offsets = [0, 0, 0], sizes = [2, 8, 8], strides = [1, 1, 1]} : vector<2x8x32xf32> to vector<2x8x8xf32>
    %cst_67 = arith.constant dense<0.000000e+00> : vector<2x12x8xf32>
    %172 = tpu.matmul %169, %170, %cst_67 {dimension_numbers = #tpu.dot_dimension_numbers<[2], [2], [1], [1], [0, 0, 0, 1, 1, 1], [0], [0]>} : vector<2x12x8xf32>, vector<2x8x8xf32>, vector<2x12x8xf32> -> vector<2x12x8xf32>
    %cst_68 = arith.constant dense<0xFF800000> : vector<2x12xf32>
    %173 = vector.multi_reduction <maximumf>, %172, %cst_68 [2] : vector<2x12x8xf32> to vector<2x12xf32>
    %174 = vector.shape_cast %173 : vector<2x12xf32> to vector<2x12x1xf32>
    %175 = vector.broadcast %174 : vector<2x12x1xf32> to vector<2x12x8xf32>
    %176 = arith.subf %172, %175 : vector<2x12x8xf32>
    %177 = math.exp %176 : vector<2x12x8xf32>
    %cst_69 = arith.constant dense<0.000000e+00> : vector<2x12xf32>
    %178 = vector.multi_reduction <add>, %177, %cst_69 [2] : vector<2x12x8xf32> to vector<2x12xf32>
    %179 = vector.shape_cast %178 : vector<2x12xf32> to vector<2x12x1xf32>
    %180 = tpu.reciprocal %179 {approx = true} : vector<2x12x1xf32> -> vector<2x12x1xf32>
    %181 = vector.broadcast %180 : vector<2x12x1xf32> to vector<2x12x8xf32>
    %182 = arith.mulf %177, %181 : vector<2x12x8xf32>
    %cst_70 = arith.constant dense<0.000000e+00> : vector<2x12x8xf32>
    %183 = tpu.matmul %182, %171, %cst_70 {dimension_numbers = #tpu.dot_dimension_numbers<[2], [1], [1], [2], [0, 0, 0, 1, 1, 2], [0], [0]>} : vector<2x12x8xf32>, vector<2x8x8xf32>, vector<2x12x8xf32> -> vector<2x12x8xf32>
    %184 = vector.shape_cast %183 : vector<2x12x8xf32> to vector<24x8xf32>
    %185 = vector.extract_strided_slice %152 {offsets = [0, 0], sizes = [8, 32], strides = [1, 1]} : vector<32x32xf32> to vector<8x32xf32>
    %cst_71 = arith.constant dense<0.000000e+00> : vector<24x32xf32>
    %186 = tpu.matmul %184, %185, %cst_71 {dimension_numbers = #tpu.dot_dimension_numbers<[1], [0], [0], [1], [0, 0, 1, 1], [], []>} : vector<24x8xf32>, vector<8x32xf32>, vector<24x32xf32> -> vector<24x32xf32>
    %187 = arith.addf %166, %186 : vector<24x32xf32>
    %188 = vector.extract_strided_slice %158 {offsets = [0, 0, 8], sizes = [2, 12, 8], strides = [1, 1, 1]} : vector<2x12x32xf32> to vector<2x12x8xf32>
    %cst_72 = arith.constant 0.353553385 : f32
    %189 = vector.broadcast %cst_72 : f32 to vector<2x12x8xf32>
    %190 = arith.mulf %188, %189 : vector<2x12x8xf32>
    %191 = vector.extract_strided_slice %164 {offsets = [0, 0, 8], sizes = [2, 8, 8], strides = [1, 1, 1]} : vector<2x8x32xf32> to vector<2x8x8xf32>
    %192 = vector.extract_strided_slice %165 {offsets = [0, 0, 8], sizes = [2, 8, 8], strides = [1, 1, 1]} : vector<2x8x32xf32> to vector<2x8x8xf32>
    %cst_73 = arith.constant dense<0.000000e+00> : vector<2x12x8xf32>
    %193 = tpu.matmul %190, %191, %cst_73 {dimension_numbers = #tpu.dot_dimension_numbers<[2], [2], [1], [1], [0, 0, 0, 1, 1, 1], [0], [0]>} : vector<2x12x8xf32>, vector<2x8x8xf32>, vector<2x12x8xf32> -> vector<2x12x8xf32>
    %cst_74 = arith.constant dense<0xFF800000> : vector<2x12xf32>
    %194 = vector.multi_reduction <maximumf>, %193, %cst_74 [2] : vector<2x12x8xf32> to vector<2x12xf32>
    %195 = vector.shape_cast %194 : vector<2x12xf32> to vector<2x12x1xf32>
    %196 = vector.broadcast %195 : vector<2x12x1xf32> to vector<2x12x8xf32>
    %197 = arith.subf %193, %196 : vector<2x12x8xf32>
    %198 = math.exp %197 : vector<2x12x8xf32>
    %cst_75 = arith.constant dense<0.000000e+00> : vector<2x12xf32>
    %199 = vector.multi_reduction <add>, %198, %cst_75 [2] : vector<2x12x8xf32> to vector<2x12xf32>
    %200 = vector.shape_cast %199 : vector<2x12xf32> to vector<2x12x1xf32>
    %201 = tpu.reciprocal %200 {approx = true} : vector<2x12x1xf32> -> vector<2x12x1xf32>
    %202 = vector.broadcast %201 : vector<2x12x1xf32> to vector<2x12x8xf32>
    %203 = arith.mulf %198, %202 : vector<2x12x8xf32>
    %cst_76 = arith.constant dense<0.000000e+00> : vector<2x12x8xf32>
    %204 = tpu.matmul %203, %192, %cst_76 {dimension_numbers = #tpu.dot_dimension_numbers<[2], [1], [1], [2], [0, 0, 0, 1, 1, 2], [0], [0]>} : vector<2x12x8xf32>, vector<2x8x8xf32>, vector<2x12x8xf32> -> vector<2x12x8xf32>
    %205 = vector.shape_cast %204 : vector<2x12x8xf32> to vector<24x8xf32>
    %206 = vector.extract_strided_slice %152 {offsets = [8, 0], sizes = [8, 32], strides = [1, 1]} : vector<32x32xf32> to vector<8x32xf32>
    %cst_77 = arith.constant dense<0.000000e+00> : vector<24x32xf32>
    %207 = tpu.matmul %205, %206, %cst_77 {dimension_numbers = #tpu.dot_dimension_numbers<[1], [0], [0], [1], [0, 0, 1, 1], [], []>} : vector<24x8xf32>, vector<8x32xf32>, vector<24x32xf32> -> vector<24x32xf32>
    %208 = arith.addf %187, %207 : vector<24x32xf32>
    %209 = vector.extract_strided_slice %158 {offsets = [0, 0, 16], sizes = [2, 12, 8], strides = [1, 1, 1]} : vector<2x12x32xf32> to vector<2x12x8xf32>
    %cst_78 = arith.constant 0.353553385 : f32
    %210 = vector.broadcast %cst_78 : f32 to vector<2x12x8xf32>
    %211 = arith.mulf %209, %210 : vector<2x12x8xf32>
    %212 = vector.extract_strided_slice %164 {offsets = [0, 0, 16], sizes = [2, 8, 8], strides = [1, 1, 1]} : vector<2x8x32xf32> to vector<2x8x8xf32>
    %213 = vector.extract_strided_slice %165 {offsets = [0, 0, 16], sizes = [2, 8, 8], strides = [1, 1, 1]} : vector<2x8x32xf32> to vector<2x8x8xf32>
    %cst_79 = arith.constant dense<0.000000e+00> : vector<2x12x8xf32>
    %214 = tpu.matmul %211, %212, %cst_79 {dimension_numbers = #tpu.dot_dimension_numbers<[2], [2], [1], [1], [0, 0, 0, 1, 1, 1], [0], [0]>} : vector<2x12x8xf32>, vector<2x8x8xf32>, vector<2x12x8xf32> -> vector<2x12x8xf32>
    %cst_80 = arith.constant dense<0xFF800000> : vector<2x12xf32>
    %215 = vector.multi_reduction <maximumf>, %214, %cst_80 [2] : vector<2x12x8xf32> to vector<2x12xf32>
    %216 = vector.shape_cast %215 : vector<2x12xf32> to vector<2x12x1xf32>
    %217 = vector.broadcast %216 : vector<2x12x1xf32> to vector<2x12x8xf32>
    %218 = arith.subf %214, %217 : vector<2x12x8xf32>
    %219 = math.exp %218 : vector<2x12x8xf32>
    %cst_81 = arith.constant dense<0.000000e+00> : vector<2x12xf32>
    %220 = vector.multi_reduction <add>, %219, %cst_81 [2] : vector<2x12x8xf32> to vector<2x12xf32>
    %221 = vector.shape_cast %220 : vector<2x12xf32> to vector<2x12x1xf32>
    %222 = tpu.reciprocal %221 {approx = true} : vector<2x12x1xf32> -> vector<2x12x1xf32>
    %223 = vector.broadcast %222 : vector<2x12x1xf32> to vector<2x12x8xf32>
    %224 = arith.mulf %219, %223 : vector<2x12x8xf32>
    %cst_82 = arith.constant dense<0.000000e+00> : vector<2x12x8xf32>
    %225 = tpu.matmul %224, %213, %cst_82 {dimension_numbers = #tpu.dot_dimension_numbers<[2], [1], [1], [2], [0, 0, 0, 1, 1, 2], [0], [0]>} : vector<2x12x8xf32>, vector<2x8x8xf32>, vector<2x12x8xf32> -> vector<2x12x8xf32>
    %226 = vector.shape_cast %225 : vector<2x12x8xf32> to vector<24x8xf32>
    %227 = vector.extract_strided_slice %152 {offsets = [16, 0], sizes = [8, 32], strides = [1, 1]} : vector<32x32xf32> to vector<8x32xf32>
    %cst_83 = arith.constant dense<0.000000e+00> : vector<24x32xf32>
    %228 = tpu.matmul %226, %227, %cst_83 {dimension_numbers = #tpu.dot_dimension_numbers<[1], [0], [0], [1], [0, 0, 1, 1], [], []>} : vector<24x8xf32>, vector<8x32xf32>, vector<24x32xf32> -> vector<24x32xf32>
    %229 = arith.addf %208, %228 : vector<24x32xf32>
    %230 = vector.extract_strided_slice %158 {offsets = [0, 0, 24], sizes = [2, 12, 8], strides = [1, 1, 1]} : vector<2x12x32xf32> to vector<2x12x8xf32>
    %cst_84 = arith.constant 0.353553385 : f32
    %231 = vector.broadcast %cst_84 : f32 to vector<2x12x8xf32>
    %232 = arith.mulf %230, %231 : vector<2x12x8xf32>
    %233 = vector.extract_strided_slice %164 {offsets = [0, 0, 24], sizes = [2, 8, 8], strides = [1, 1, 1]} : vector<2x8x32xf32> to vector<2x8x8xf32>
    %234 = vector.extract_strided_slice %165 {offsets = [0, 0, 24], sizes = [2, 8, 8], strides = [1, 1, 1]} : vector<2x8x32xf32> to vector<2x8x8xf32>
    %cst_85 = arith.constant dense<0.000000e+00> : vector<2x12x8xf32>
    %235 = tpu.matmul %232, %233, %cst_85 {dimension_numbers = #tpu.dot_dimension_numbers<[2], [2], [1], [1], [0, 0, 0, 1, 1, 1], [0], [0]>} : vector<2x12x8xf32>, vector<2x8x8xf32>, vector<2x12x8xf32> -> vector<2x12x8xf32>
    %cst_86 = arith.constant dense<0xFF800000> : vector<2x12xf32>
    %236 = vector.multi_reduction <maximumf>, %235, %cst_86 [2] : vector<2x12x8xf32> to vector<2x12xf32>
    %237 = vector.shape_cast %236 : vector<2x12xf32> to vector<2x12x1xf32>
    %238 = vector.broadcast %237 : vector<2x12x1xf32> to vector<2x12x8xf32>
    %239 = arith.subf %235, %238 : vector<2x12x8xf32>
    %240 = math.exp %239 : vector<2x12x8xf32>
    %cst_87 = arith.constant dense<0.000000e+00> : vector<2x12xf32>
    %241 = vector.multi_reduction <add>, %240, %cst_87 [2] : vector<2x12x8xf32> to vector<2x12xf32>
    %242 = vector.shape_cast %241 : vector<2x12xf32> to vector<2x12x1xf32>
    %243 = tpu.reciprocal %242 {approx = true} : vector<2x12x1xf32> -> vector<2x12x1xf32>
    %244 = vector.broadcast %243 : vector<2x12x1xf32> to vector<2x12x8xf32>
    %245 = arith.mulf %240, %244 : vector<2x12x8xf32>
    %cst_88 = arith.constant dense<0.000000e+00> : vector<2x12x8xf32>
    %246 = tpu.matmul %245, %234, %cst_88 {dimension_numbers = #tpu.dot_dimension_numbers<[2], [1], [1], [2], [0, 0, 0, 1, 1, 2], [0], [0]>} : vector<2x12x8xf32>, vector<2x8x8xf32>, vector<2x12x8xf32> -> vector<2x12x8xf32>
    %247 = vector.shape_cast %246 : vector<2x12x8xf32> to vector<24x8xf32>
    %248 = vector.extract_strided_slice %152 {offsets = [24, 0], sizes = [8, 32], strides = [1, 1]} : vector<32x32xf32> to vector<8x32xf32>
    %cst_89 = arith.constant dense<0.000000e+00> : vector<24x32xf32>
    %249 = tpu.matmul %247, %248, %cst_89 {dimension_numbers = #tpu.dot_dimension_numbers<[1], [0], [0], [1], [0, 0, 1, 1], [], []>} : vector<24x8xf32>, vector<8x32xf32>, vector<24x32xf32> -> vector<24x32xf32>
    %250 = arith.addf %229, %249 : vector<24x32xf32>
    %251 = vector.broadcast %153 : vector<1x32xf32> to vector<24x32xf32>
    %252 = arith.addf %250, %251 : vector<24x32xf32>
    %253 = arith.addf %146, %252 : vector<24x32xf32>
    %c0_90 = arith.constant 0 : index
    %c0_91 = arith.constant 0 : index
    %254 = vector.load %arg15[%c0_90, %c0_91] : memref<1x32xf32, #tpu.memory_space<vmem>>, vector<1x32xf32>
    %c0_92 = arith.constant 0 : index
    %c0_93 = arith.constant 0 : index
    %255 = vector.load %arg16[%c0_92, %c0_93] : memref<1x32xf32, #tpu.memory_space<vmem>>, vector<1x32xf32>
    %cst_94 = arith.constant dense<0.000000e+00> : vector<24xf32>
    %256 = vector.multi_reduction <add>, %253, %cst_94 [1] : vector<24x32xf32> to vector<24xf32>
    %257 = vector.shape_cast %256 : vector<24xf32> to vector<24x1xf32>
    %cst_95 = arith.constant 3.200000e+01 : f32
    %258 = vector.broadcast %cst_95 : f32 to vector<24x1xf32>
    %259 = arith.divf %257, %258 : vector<24x1xf32>
    %260 = vector.broadcast %259 : vector<24x1xf32> to vector<24x32xf32>
    %261 = arith.subf %253, %260 : vector<24x32xf32>
    %262 = arith.mulf %261, %261 : vector<24x32xf32>
    %cst_96 = arith.constant dense<0.000000e+00> : vector<24xf32>
    %263 = vector.multi_reduction <add>, %262, %cst_96 [1] : vector<24x32xf32> to vector<24xf32>
    %264 = vector.shape_cast %263 : vector<24xf32> to vector<24x1xf32>
    %cst_97 = arith.constant 3.200000e+01 : f32
    %265 = vector.broadcast %cst_97 : f32 to vector<24x1xf32>
    %266 = arith.divf %264, %265 : vector<24x1xf32>
    %267 = vector.broadcast %259 : vector<24x1xf32> to vector<24x32xf32>
    %268 = arith.subf %253, %267 : vector<24x32xf32>
    %cst_98 = arith.constant 9.99999974E-6 : f32
    %269 = vector.broadcast %cst_98 : f32 to vector<24x1xf32>
    %270 = arith.addf %266, %269 : vector<24x1xf32>
    %271 = math.rsqrt %270 : vector<24x1xf32>
    %272 = vector.broadcast %271 : vector<24x1xf32> to vector<24x32xf32>
    %273 = arith.mulf %268, %272 : vector<24x32xf32>
    %274 = vector.broadcast %254 : vector<1x32xf32> to vector<24x32xf32>
    %275 = arith.mulf %273, %274 : vector<24x32xf32>
    %276 = vector.broadcast %255 : vector<1x32xf32> to vector<24x32xf32>
    %277 = arith.addf %275, %276 : vector<24x32xf32>
    %c0_99 = arith.constant 0 : index
    %c0_100 = arith.constant 0 : index
    %278 = vector.load %arg19[%c0_99, %c0_100] : memref<32x64xf32, #tpu.memory_space<vmem>>, vector<32x64xf32>
    %c0_101 = arith.constant 0 : index
    %c0_102 = arith.constant 0 : index
    %279 = vector.load %arg20[%c0_101, %c0_102] : memref<1x64xf32, #tpu.memory_space<vmem>>, vector<1x64xf32>
    %c0_103 = arith.constant 0 : index
    %c0_104 = arith.constant 0 : index
    %280 = vector.load %arg21[%c0_103, %c0_104] : memref<64x32xf32, #tpu.memory_space<vmem>>, vector<64x32xf32>
    %c0_105 = arith.constant 0 : index
    %c0_106 = arith.constant 0 : index
    %281 = vector.load %arg22[%c0_105, %c0_106] : memref<1x32xf32, #tpu.memory_space<vmem>>, vector<1x32xf32>
    %cst_107 = arith.constant dense<0.000000e+00> : vector<24x64xf32>
    %282 = tpu.matmul %277, %278, %cst_107 {dimension_numbers = #tpu.dot_dimension_numbers<[1], [0], [0], [1], [0, 0, 1, 1], [], []>} : vector<24x32xf32>, vector<32x64xf32>, vector<24x64xf32> -> vector<24x64xf32>
    %283 = vector.broadcast %279 : vector<1x64xf32> to vector<24x64xf32>
    %284 = arith.addf %282, %283 : vector<24x64xf32>
    %285 = arith.mulf %284, %284 : vector<24x64xf32>
    %286 = arith.mulf %284, %285 : vector<24x64xf32>
    %cst_108 = arith.constant 4.471500e-02 : f32
    %287 = vector.broadcast %cst_108 : f32 to vector<24x64xf32>
    %288 = arith.mulf %287, %286 : vector<24x64xf32>
    %289 = arith.addf %284, %288 : vector<24x64xf32>
    %cst_109 = arith.constant 0.797884583 : f32
    %290 = vector.broadcast %cst_109 : f32 to vector<24x64xf32>
    %291 = arith.mulf %290, %289 : vector<24x64xf32>
    %292 = math.tanh %291 : vector<24x64xf32>
    %cst_110 = arith.constant 1.000000e+00 : f32
    %293 = vector.broadcast %cst_110 : f32 to vector<24x64xf32>
    %294 = arith.addf %293, %292 : vector<24x64xf32>
    %cst_111 = arith.constant 5.000000e-01 : f32
    %295 = vector.broadcast %cst_111 : f32 to vector<24x64xf32>
    %296 = arith.mulf %295, %294 : vector<24x64xf32>
    %297 = arith.mulf %284, %296 : vector<24x64xf32>
    %cst_112 = arith.constant dense<0.000000e+00> : vector<24x32xf32>
    %298 = tpu.matmul %297, %280, %cst_112 {dimension_numbers = #tpu.dot_dimension_numbers<[1], [0], [0], [1], [0, 0, 1, 1], [], []>} : vector<24x64xf32>, vector<64x32xf32>, vector<24x32xf32> -> vector<24x32xf32>
    %299 = vector.broadcast %281 : vector<1x32xf32> to vector<24x32xf32>
    %300 = arith.addf %298, %299 : vector<24x32xf32>
    %301 = arith.addf %277, %300 : vector<24x32xf32>
    %c0_113 = arith.constant 0 : index
    %c0_114 = arith.constant 0 : index
    %302 = vector.load %arg17[%c0_113, %c0_114] : memref<1x32xf32, #tpu.memory_space<vmem>>, vector<1x32xf32>
    %c0_115 = arith.constant 0 : index
    %c0_116 = arith.constant 0 : index
    %303 = vector.load %arg18[%c0_115, %c0_116] : memref<1x32xf32, #tpu.memory_space<vmem>>, vector<1x32xf32>
    %cst_117 = arith.constant dense<0.000000e+00> : vector<24xf32>
    %304 = vector.multi_reduction <add>, %301, %cst_117 [1] : vector<24x32xf32> to vector<24xf32>
    %305 = vector.shape_cast %304 : vector<24xf32> to vector<24x1xf32>
    %cst_118 = arith.constant 3.200000e+01 : f32
    %306 = vector.broadcast %cst_118 : f32 to vector<24x1xf32>
    %307 = arith.divf %305, %306 : vector<24x1xf32>
    %308 = vector.broadcast %307 : vector<24x1xf32> to vector<24x32xf32>
    %309 = arith.subf %301, %308 : vector<24x32xf32>
    %310 = arith.mulf %309, %309 : vector<24x32xf32>
    %cst_119 = arith.constant dense<0.000000e+00> : vector<24xf32>
    %311 = vector.multi_reduction <add>, %310, %cst_119 [1] : vector<24x32xf32> to vector<24xf32>
    %312 = vector.shape_cast %311 : vector<24xf32> to vector<24x1xf32>
    %cst_120 = arith.constant 3.200000e+01 : f32
    %313 = vector.broadcast %cst_120 : f32 to vector<24x1xf32>
    %314 = arith.divf %312, %313 : vector<24x1xf32>
    %315 = vector.broadcast %307 : vector<24x1xf32> to vector<24x32xf32>
    %316 = arith.subf %301, %315 : vector<24x32xf32>
    %cst_121 = arith.constant 9.99999974E-6 : f32
    %317 = vector.broadcast %cst_121 : f32 to vector<24x1xf32>
    %318 = arith.addf %314, %317 : vector<24x1xf32>
    %319 = math.rsqrt %318 : vector<24x1xf32>
    %320 = vector.broadcast %319 : vector<24x1xf32> to vector<24x32xf32>
    %321 = arith.mulf %316, %320 : vector<24x32xf32>
    %322 = vector.broadcast %302 : vector<1x32xf32> to vector<24x32xf32>
    %323 = arith.mulf %321, %322 : vector<24x32xf32>
    %324 = vector.broadcast %303 : vector<1x32xf32> to vector<24x32xf32>
    %325 = arith.addf %323, %324 : vector<24x32xf32>
    %326 = vector.shape_cast %325 : vector<24x32xf32> to vector<2x12x32xf32>
    %c0_122 = arith.constant 0 : index
    %c0_123 = arith.constant 0 : index
    %c0_124 = arith.constant 0 : index
    %327 = vector.load %arg23[%c0_122, %c0_123, %c0_124] : memref<2x12x32xf32, #tpu.memory_space<vmem>>, vector<2x12x32xf32>
    tpu.vector_store %arg23[%c0_122, %c0_123, %c0_124], %326 {strides = array<i32>} : memref<2x12x32xf32, #tpu.memory_space<vmem>>, vector<2x12x32xf32>,
    return
  }
  func.func @transform_0(%arg0: i32) -> (i32, i32, i32) {
    %c0_i32 = arith.constant 0 : i32
    %c0_i32_0 = arith.constant 0 : i32
    %c0_i32_1 = arith.constant 0 : i32
    %c0_i32_2 = arith.constant 0 : i32
    return %c0_i32, %c0_i32_0, %c0_i32_1 : i32, i32, i32
  }
  func.func @transform_1(%arg0: i32) -> (i32, i32, i32) {
    %c0_i32 = arith.constant 0 : i32
    %c0_i32_0 = arith.constant 0 : i32
    %c0_i32_1 = arith.constant 0 : i32
    %c0_i32_2 = arith.constant 0 : i32
    return %c0_i32, %c0_i32_0, %c0_i32_1 : i32, i32, i32
  }
  func.func @transform_2(%arg0: i32) -> (i32, i32) {
    %c0_i32 = arith.constant 0 : i32
    %c0_i32_0 = arith.constant 0 : i32
    %c0_i32_1 = arith.constant 0 : i32
    return %c0_i32, %c0_i32_0 : i32, i32
  }
  func.func @transform_3(%arg0: i32) -> (i32, i32) {
    %c0_i32 = arith.constant 0 : i32
    %c0_i32_0 = arith.constant 0 : i32
    %c0_i32_1 = arith.constant 0 : i32
    return %c0_i32, %c0_i32_0 : i32, i32
  }
  func.func @transform_4(%arg0: i32) -> (i32, i32) {
    %c0_i32 = arith.constant 0 : i32
    %c0_i32_0 = arith.constant 0 : i32
    %c0_i32_1 = arith.constant 0 : i32
    return %c0_i32, %c0_i32_0 : i32, i32
  }
  func.func @transform_5(%arg0: i32) -> (i32, i32) {
    %c0_i32 = arith.constant 0 : i32
    %c0_i32_0 = arith.constant 0 : i32
    %c0_i32_1 = arith.constant 0 : i32
    return %c0_i32, %c0_i32_0 : i32, i32
  }
  func.func @transform_6(%arg0: i32) -> (i32, i32) {
    %c0_i32 = arith.constant 0 : i32
    %c0_i32_0 = arith.constant 0 : i32
    %c0_i32_1 = arith.constant 0 : i32
    return %c0_i32, %c0_i32_0 : i32, i32
  }
  func.func @transform_7(%arg0: i32) -> (i32, i32) {
    %c0_i32 = arith.constant 0 : i32
    %c0_i32_0 = arith.constant 0 : i32
    %c0_i32_1 = arith.constant 0 : i32
    return %c0_i32, %c0_i32_0 : i32, i32
  }
  func.func @transform_8(%arg0: i32) -> (i32, i32) {
    %c0_i32 = arith.constant 0 : i32
    %c0_i32_0 = arith.constant 0 : i32
    %c0_i32_1 = arith.constant 0 : i32
    return %c0_i32, %c0_i32_0 : i32, i32
  }
  func.func @transform_9(%arg0: i32) -> (i32, i32) {
    %c0_i32 = arith.constant 0 : i32
    %c0_i32_0 = arith.constant 0 : i32
    %c0_i32_1 = arith.constant 0 : i32
    return %c0_i32, %c0_i32_0 : i32, i32
  }
  func.func @transform_10(%arg0: i32) -> (i32, i32) {
    %c0_i32 = arith.constant 0 : i32
    %c0_i32_0 = arith.constant 0 : i32
    %c0_i32_1 = arith.constant 0 : i32
    return %c0_i32, %c0_i32_0 : i32, i32
  }
  func.func @transform_11(%arg0: i32) -> (i32, i32) {
    %c0_i32 = arith.constant 0 : i32
    %c0_i32_0 = arith.constant 0 : i32
    %c0_i32_1 = arith.constant 0 : i32
    return %c0_i32, %c0_i32_0 : i32, i32
  }
  func.func @transform_12(%arg0: i32) -> (i32, i32) {
    %c0_i32 = arith.constant 0 : i32
    %c0_i32_0 = arith.constant 0 : i32
    %c0_i32_1 = arith.constant 0 : i32
    return %c0_i32, %c0_i32_0 : i32, i32
  }
  func.func @transform_13(%arg0: i32) -> (i32, i32) {
    %c0_i32 = arith.constant 0 : i32
    %c0_i32_0 = arith.constant 0 : i32
    %c0_i32_1 = arith.constant 0 : i32
    return %c0_i32, %c0_i32_0 : i32, i32
  }
  func.func @transform_14(%arg0: i32) -> (i32, i32) {
    %c0_i32 = arith.constant 0 : i32
    %c0_i32_0 = arith.constant 0 : i32
    %c0_i32_1 = arith.constant 0 : i32
    return %c0_i32, %c0_i32_0 : i32, i32
  }
  func.func @transform_15(%arg0: i32) -> (i32, i32) {
    %c0_i32 = arith.constant 0 : i32
    %c0_i32_0 = arith.constant 0 : i32
    %c0_i32_1 = arith.constant 0 : i32
    return %c0_i32, %c0_i32_0 : i32, i32
  }
  func.func @transform_16(%arg0: i32) -> (i32, i32) {
    %c0_i32 = arith.constant 0 : i32
    %c0_i32_0 = arith.constant 0 : i32
    %c0_i32_1 = arith.constant 0 : i32
    return %c0_i32, %c0_i32_0 : i32, i32
  }
  func.func @transform_17(%arg0: i32) -> (i32, i32) {
    %c0_i32 = arith.constant 0 : i32
    %c0_i32_0 = arith.constant 0 : i32
    %c0_i32_1 = arith.constant 0 : i32
    return %c0_i32, %c0_i32_0 : i32, i32
  }
  func.func @transform_18(%arg0: i32) -> (i32, i32) {
    %c0_i32 = arith.constant 0 : i32
    %c0_i32_0 = arith.constant 0 : i32
    %c0_i32_1 = arith.constant 0 : i32
    return %c0_i32, %c0_i32_0 : i32, i32
  }
  func.func @transform_19(%arg0: i32) -> (i32, i32) {
    %c0_i32 = arith.constant 0 : i32
    %c0_i32_0 = arith.constant 0 : i32
    %c0_i32_1 = arith.constant 0 : i32
    return %c0_i32, %c0_i32_0 : i32, i32
  }
  func.func @transform_20(%arg0: i32) -> (i32, i32) {
    %c0_i32 = arith.constant 0 : i32
    %c0_i32_0 = arith.constant 0 : i32
    %c0_i32_1 = arith.constant 0 : i32
    return %c0_i32, %c0_i32_0 : i32, i32
  }
  func.func @transform_21(%arg0: i32) -> (i32, i32) {
    %c0_i32 = arith.constant 0 : i32
    %c0_i32_0 = arith.constant 0 : i32
    %c0_i32_1 = arith.constant 0 : i32
    return %c0_i32, %c0_i32_0 : i32, i32
  }
  func.func @transform_22(%arg0: i32) -> (i32, i32, i32) {
    %c0_i32 = arith.constant 0 : i32
    %c0_i32_0 = arith.constant 0 : i32
    %c0_i32_1 = arith.constant 0 : i32
    %c0_i32_2 = arith.constant 0 : i32
    return %c0_i32, %c0_i32_0, %c0_i32_1 : i32, i32, i32
  }
}

module attributes {stable_mosaic.version = 11 : i64} {
  func.func @_norm_project_kernel(%arg0: i32, %arg1: memref<2x12x32xf32, #tpu.memory_space<vmem>>, %arg2: memref<1x32xf32, #tpu.memory_space<vmem>>, %arg3: memref<1x32xf32, #tpu.memory_space<vmem>>, %arg4: memref<32x4xf32, #tpu.memory_space<vmem>>, %arg5: memref<1x4xf32, #tpu.memory_space<vmem>>, %arg6: memref<2x12x4xf32, #tpu.memory_space<vmem>>) attributes {dimension_semantics = [#tpu.dimension_semantics<arbitrary>], iteration_bounds = array<i64: 1>, scalar_prefetch = 0 : i64, scratch_operands = 0 : i64, tpu.core_type = #tpu.core_type<tc>, window_params = [{pipeline_mode = #tpu.pipeline_mode<synchronous>, transform_indices = @transform_0, window_bounds = array<i64: 2, 12, 32>}, {pipeline_mode = #tpu.pipeline_mode<synchronous>, transform_indices = @transform_1, window_bounds = array<i64: 1, 32>}, {pipeline_mode = #tpu.pipeline_mode<synchronous>, transform_indices = @transform_2, window_bounds = array<i64: 1, 32>}, {pipeline_mode = #tpu.pipeline_mode<synchronous>, transform_indices = @transform_3, window_bounds = array<i64: 32, 4>}, {pipeline_mode = #tpu.pipeline_mode<synchronous>, transform_indices = @transform_4, window_bounds = array<i64: 1, 4>}, {pipeline_mode = #tpu.pipeline_mode<synchronous>, transform_indices = @transform_5, window_bounds = array<i64: 2, 12, 4>}]} {
    %c0 = arith.constant 0 : index
    %c0_0 = arith.constant 0 : index
    %c0_1 = arith.constant 0 : index
    %0 = vector.load %arg1[%c0, %c0_0, %c0_1] : memref<2x12x32xf32, #tpu.memory_space<vmem>>, vector<2x12x32xf32>
    %1 = vector.shape_cast %0 : vector<2x12x32xf32> to vector<24x32xf32>
    %c0_2 = arith.constant 0 : index
    %c0_3 = arith.constant 0 : index
    %2 = vector.load %arg2[%c0_2, %c0_3] : memref<1x32xf32, #tpu.memory_space<vmem>>, vector<1x32xf32>
    %c0_4 = arith.constant 0 : index
    %c0_5 = arith.constant 0 : index
    %3 = vector.load %arg3[%c0_4, %c0_5] : memref<1x32xf32, #tpu.memory_space<vmem>>, vector<1x32xf32>
    %cst = arith.constant dense<0.000000e+00> : vector<24xf32>
    %4 = vector.multi_reduction <add>, %1, %cst [1] : vector<24x32xf32> to vector<24xf32>
    %5 = vector.shape_cast %4 : vector<24xf32> to vector<24x1xf32>
    %cst_6 = arith.constant 3.200000e+01 : f32
    %6 = vector.broadcast %cst_6 : f32 to vector<24x1xf32>
    %7 = arith.divf %5, %6 : vector<24x1xf32>
    %8 = vector.broadcast %7 : vector<24x1xf32> to vector<24x32xf32>
    %9 = arith.subf %1, %8 : vector<24x32xf32>
    %10 = arith.mulf %9, %9 : vector<24x32xf32>
    %cst_7 = arith.constant dense<0.000000e+00> : vector<24xf32>
    %11 = vector.multi_reduction <add>, %10, %cst_7 [1] : vector<24x32xf32> to vector<24xf32>
    %12 = vector.shape_cast %11 : vector<24xf32> to vector<24x1xf32>
    %cst_8 = arith.constant 3.200000e+01 : f32
    %13 = vector.broadcast %cst_8 : f32 to vector<24x1xf32>
    %14 = arith.divf %12, %13 : vector<24x1xf32>
    %15 = vector.broadcast %7 : vector<24x1xf32> to vector<24x32xf32>
    %16 = arith.subf %1, %15 : vector<24x32xf32>
    %cst_9 = arith.constant 9.99999974E-6 : f32
    %17 = vector.broadcast %cst_9 : f32 to vector<24x1xf32>
    %18 = arith.addf %14, %17 : vector<24x1xf32>
    %19 = math.rsqrt %18 : vector<24x1xf32>
    %20 = vector.broadcast %19 : vector<24x1xf32> to vector<24x32xf32>
    %21 = arith.mulf %16, %20 : vector<24x32xf32>
    %22 = vector.broadcast %2 : vector<1x32xf32> to vector<24x32xf32>
    %23 = arith.mulf %21, %22 : vector<24x32xf32>
    %24 = vector.broadcast %3 : vector<1x32xf32> to vector<24x32xf32>
    %25 = arith.addf %23, %24 : vector<24x32xf32>
    %c0_10 = arith.constant 0 : index
    %c0_11 = arith.constant 0 : index
    %26 = vector.load %arg4[%c0_10, %c0_11] : memref<32x4xf32, #tpu.memory_space<vmem>>, vector<32x4xf32>
    %cst_12 = arith.constant dense<0.000000e+00> : vector<24x4xf32>
    %27 = tpu.matmul %25, %26, %cst_12 {dimension_numbers = #tpu.dot_dimension_numbers<[1], [0], [0], [1], [0, 0, 1, 1], [], []>} : vector<24x32xf32>, vector<32x4xf32>, vector<24x4xf32> -> vector<24x4xf32>
    %c0_13 = arith.constant 0 : index
    %c0_14 = arith.constant 0 : index
    %28 = vector.load %arg5[%c0_13, %c0_14] : memref<1x4xf32, #tpu.memory_space<vmem>>, vector<1x4xf32>
    %29 = vector.broadcast %28 : vector<1x4xf32> to vector<24x4xf32>
    %30 = arith.addf %27, %29 : vector<24x4xf32>
    %31 = vector.shape_cast %30 : vector<24x4xf32> to vector<2x12x4xf32>
    %c0_15 = arith.constant 0 : index
    %c0_16 = arith.constant 0 : index
    %c0_17 = arith.constant 0 : index
    %32 = vector.load %arg6[%c0_15, %c0_16, %c0_17] : memref<2x12x4xf32, #tpu.memory_space<vmem>>, vector<2x12x4xf32>
    tpu.vector_store %arg6[%c0_15, %c0_16, %c0_17], %31 {strides = array<i32>} : memref<2x12x4xf32, #tpu.memory_space<vmem>>, vector<2x12x4xf32>,
    return
  }
  func.func @transform_0(%arg0: i32) -> (i32, i32, i32) {
    %c0_i32 = arith.constant 0 : i32
    %c0_i32_0 = arith.constant 0 : i32
    %c0_i32_1 = arith.constant 0 : i32
    %c0_i32_2 = arith.constant 0 : i32
    return %c0_i32, %c0_i32_0, %c0_i32_1 : i32, i32, i32
  }
  func.func @transform_1(%arg0: i32) -> (i32, i32) {
    %c0_i32 = arith.constant 0 : i32
    %c0_i32_0 = arith.constant 0 : i32
    %c0_i32_1 = arith.constant 0 : i32
    return %c0_i32, %c0_i32_0 : i32, i32
  }
  func.func @transform_2(%arg0: i32) -> (i32, i32) {
    %c0_i32 = arith.constant 0 : i32
    %c0_i32_0 = arith.constant 0 : i32
    %c0_i32_1 = arith.constant 0 : i32
    return %c0_i32, %c0_i32_0 : i32, i32
  }
  func.func @transform_3(%arg0: i32) -> (i32, i32) {
    %c0_i32 = arith.constant 0 : i32
    %c0_i32_0 = arith.constant 0 : i32
    %c0_i32_1 = arith.constant 0 : i32
    return %c0_i32, %c0_i32_0 : i32, i32
  }
  func.func @transform_4(%arg0: i32) -> (i32, i32) {
    %c0_i32 = arith.constant 0 : i32
    %c0_i32_0 = arith.constant 0 : i32
    %c0_i32_1 = arith.constant 0 : i32
    return %c0_i32, %c0_i32_0 : i32, i32
  }
  func.func @transform_5(%arg0: i32) -> (i32, i32, i32) {
    %c0_i32 = arith.constant 0 : i32
    %c0_i32_0 = arith.constant 0 : i32
    %c0_i32_1 = arith.constant 0 : i32
    %c0_i32_2 = arith.constant 0 : i32
    return %c0_i32, %c0_i32_0, %c0_i32_1 : i32, i32, i32
  }
}

</mosaic_0001>

<bundles_post_ra>
// kernel: transformer_forward.7
= control target key start
LH: loop header
LB: loop body
LE: loop exit
PB: predicated region body
PF: predicated region fallthrough
CT: control target
= control target key end

     0   :  { %vm39_vm0 = vcmask 1043456   ;;  %vm32_vm1 = vcmask 31744   ;;  %vm104_vm2 = vcmask 261120   ;;  %s193_s2 = inlined_call_operand.vmem [shape: f32[4,32], index: 2, kind: input, shape index: {}]   ;;  %s194_s0 = inlined_call_operand.vmem [shape: f32[2,8,4], index: 0, kind: input, shape index: {}]   ;;  %s195_s4 = inlined_call_operand.vmem [shape: f32[4,32], index: 4, kind: input, shape index: {}]   ;;  %s196_s1 = inlined_call_operand.vmem [shape: f32[2,8,4], index: 1, kind: input, shape index: {}]   ;;  %s197_s3 = inlined_call_operand.vmem [shape: f32[1,32], index: 3, kind: input, shape index: {}]   ;;  %s198_s5 = inlined_call_operand.vmem [shape: f32[8,32], index: 5, kind: input, shape index: {}]   ;;  %s199_s6 = inlined_call_operand.vmem [shape: f32[2,8,32], index: 6, kind: output, shape index: {}]  }
   0x1   :  { %v27_v0 = vld [vmem:[%s193_s2] sm:$0xf]  ;;  %v24_v1 = vld [vmem:[%s194_s0 + $0x8] sm:$0xff] }
   0x2   :  { %v66_v2 = vld [vmem:[%s195_s4] sm:$0xf]  ;;  %117 = vmatpush.msk.msra.mxu2 %vm39_vm0, %v27_v0  ;;  %v26_v3 = vld [vmem:[%s196_s1 + $0x8] sm:$0xff]  ;;  %111 = vmatpush.msk.msra.mxu0 %vm39_vm0, %v27_v0 }
   0x3   :  { %118 = vmatpush.msk.msra.mxu3 %vm39_vm0, %v66_v2  ;;  %v23_v4 = vld [vmem:[%s194_s0] sm:$0xff]  ;;  %113 = vmatmul.msk.f32.vlgmr.msra.gmra.mxu2 %vm32_vm1, %v24_v1 }
   0x4   :  { %v25_v5 = vld [vmem:[%s196_s1] sm:$0xff]  ;;  %116 = vmatmul.msk.f32.vlgmr.msra.gmra.mxu3 %vm32_vm1, %v26_v3  ;;  %114 = vmatpush.msk.msra.mxu1 %vm39_vm0, %v66_v2 }
   0x5   :  { %112 = vmatmul.msk.f32.vlgmr.msra.gmra.mxu0 %vm32_vm1, %v23_v4  ;;  %115 = vmatmul.msk.f32.vlgmr.msra.gmra.mxu1 %vm32_vm1, %v25_v5  ;;  %v119_v6 = vld [vmem:[%s197_s3] ss:$0 sm:$0xff] }
   0x6   :  { %v101_v10 = vld [vmem:[%s198_s5] sm:$0xff] }
  0x82   :  { %v60_v7 = vpop.f32.mrf.mxu0  ;;  %v93_v8 = vpop.f32.mrf.mxu1 }
  0x83   :  { %v61_v9 = vadd.f32 %v119_v6, %v60_v7 }
  0x85   :  { %v99_v11 = vadd.f32 %v93_v8, %v61_v9 }
  0x86   :  { %v63_v12 = vpop.f32.mrf.mxu2 }
  0x87   :  { %v96_v13 = vpop.f32.mrf.mxu3  ;;  %v64_v14 = vadd.f32 %v119_v6, %v63_v12  ;;  %v102_v15 = vadd.f32 %v101_v10, %v99_v11 }
  0x89   :  { %105 = vst.msk [vmem:[%s199_s6] sm:$0xff] %vm104_vm2, %v102_v15  ;;  %v100_v16 = vadd.f32 %v96_v13, %v64_v14 }
  0x8b   :  { %v103_v17 = vadd.f32 %v101_v10, %v100_v16 }
  0x8d   :  { %106 = vst.msk [vmem:[%s199_s6 + $0x8] sm:$0xff] %vm104_vm2, %v103_v17 }

// kernel: transformer_forward.10
= control target key start
LH: loop header
LB: loop body
LE: loop exit
PB: predicated region body
PF: predicated region fallthrough
CT: control target
= control target key end

     0   :  { %8 = vsyncpa [#allocation3], 0  ;;  %s137_s15 = smov [#allocation2]   ;;  %s183_s0 = inlined_call_operand.vmem [shape: f32[2,8,32], index: 0, kind: input, shape index: {}]   ;;  %s184_s1 = inlined_call_operand.vmem [shape: f32[1,32], index: 1, kind: input, shape index: {}]   ;;  %s185_s2 = inlined_call_operand.hbm [shape: f32[1,32], index: 2, kind: input, shape index: {}]   ;;  %s186_s3 = inlined_call_operand.vmem [shape: f32[2,8,32], index: 3, kind: output, shape index: {}]  }
   0x1   :  { %s18_s14 = sshll.u32 %s185_s2, 4  ;;  %s20_s16 = sshll.u32 %s137_s15, 4  ;;  %s19_s14 = int_to_ptr.hbm [resolvable:$true] %s18_s14  ;;  %s21_s16 = int_to_ptr.vmem [resolvable:$true] %s20_s16 }
   0x2   :  { %23 = dma.hbm_to_vmem [thread:$0]  %s19_s14, 16, %s21_s16, [#allocation3]  }
   0x3   :  { %135 = dma.done.wait [#allocation3], 16  }
   0x4   :  { %136 = vsyncadd [#allocation3], 4294967280  ;;  %vm32_vm0 = vcmask 261120   ;;  %v28_v0 = vld [vmem:[%s183_s0] sm:$0xff]  ;;  %v29_v2 = vld [vmem:[%s183_s0 + $0x8] sm:$0xff]  ;;  %v138_v4 = vmov 32.0  }
   0x5   :  { %v33_v1 = vsel %vm32_vm0, %v28_v0, 0.0  ;;  %v36_v3 = vsel %vm32_vm0, %v29_v2, 0.0  ;;  %105 = vrcp.f32 %v138_v4  ;;  %v103_v35 = vld [vmem:[%s184_s1] ss:$0 sm:$0xff] }
   0x6   :  { %34 = vadd.xlane.f32.xlu0 %v33_v1  ;;  %v104_v38 = vld [vmem:[#allocation2] ss:$0 sm:$0xff] }
   0xb   :  { %v106_v5 = vpop.eup %105 }
   0xc   :  { %v40_v6 = vmul.f32 32.0, %v106_v5  ;;  %vm44_vm1 = vweird.f32 %v106_v5 }
   0xe   :  { %37 = vadd.xlane.f32.xlu0 %v36_v3  ;;  %v41_v7 = vsub.f32 1.0, %v40_v6 }
  0x10   :  { %v42_v8 = vmul.f32 %v106_v5, %v41_v7 }
  0x12   :  { %v43_v9 = vadd.f32 %v106_v5, %v42_v8 }
  0x14   :  { %v45_v10 = vsel %vm44_vm1, %v106_v5, %v43_v9 }
  0x79   :  { %v35_v11 = vpop.xlane.xlu0 %34 }
  0x7a   :  { %v46_v12 = vmul.f32 %v45_v10, %v35_v11 }
  0x7c   :  { %v48_v13 = vsub.f32 %v28_v0, %v46_v12 }
  0x7e   :  { %v50_v14 = vmul.f32 %v48_v13, %v48_v13 }
  0x80   :  { %v52_v15 = vsel %vm32_vm0, %v50_v14, 0.0 }
  0x81   :  { %53 = vadd.xlane.f32.xlu1 %v52_v15  ;;  %v38_v16 = vpop.xlane.xlu0 %37 }
  0x82   :  { %v47_v17 = vmul.f32 %v45_v10, %v38_v16 }
  0x84   :  { %v49_v18 = vsub.f32 %v29_v2, %v47_v17 }
  0x86   :  { %v51_v19 = vmul.f32 %v49_v18, %v49_v18 }
  0x88   :  { %v55_v20 = vsel %vm32_vm0, %v51_v19, 0.0 }
  0x89   :  { %56 = vadd.xlane.f32.xlu1 %v55_v20 }
  0xf4   :  { %v54_v21 = vpop.xlane.xlu1 %53 }
  0xf5   :  { %v58_v22 = vmul.f32 %v54_v21, %v45_v10 }
  0xf7   :  { %v60_v23 = vadd.f32 1e-05, %v58_v22 }
  0xf9   :  { %107 = vrsqrt.f32 %v60_v23  ;;  %vm68_vm3 = vweird.f32 %v60_v23 }
  0xfc   :  { %v57_v24 = vpop.xlane.xlu1 %56 }
  0xfd   :  { %v59_v25 = vmul.f32 %v57_v24, %v45_v10 }
  0xff   :  { %v108_v26 = vpop.eup %107  ;;  %v61_v27 = vadd.f32 1e-05, %v59_v25 }
 0x100   :  { %v63_v28 = vmul.f32 %v108_v26, %v60_v23  ;;  %vm69_vm2 = vweird.f32 %v108_v26 }
 0x101   :  { %109 = vrsqrt.f32 %v61_v27  ;;  %vm70_vm4 = vmor %vm68_vm3, %vm69_vm2  ;;  %vm78_vm6 = vweird.f32 %v61_v27 }
 0x102   :  { %v64_v29 = vmul.f32 %v108_v26, %v63_v28 }
 0x104   :  { %v65_v30 = vmul.f32 0.5, %v64_v29 }
 0x106   :  { %v66_v31 = vsub.f32 1.5, %v65_v30 }
 0x107   :  { %v110_v32 = vpop.eup %109 }
 0x108   :  { %v67_v33 = vmul.f32 %v108_v26, %v66_v31  ;;  %v73_v34 = vmul.f32 %v110_v32, %v61_v27  ;;  %vm79_vm5 = vweird.f32 %v110_v32 }
 0x109   :  { %vm80_vm7 = vmor %vm78_vm6, %vm79_vm5 }
 0x10a   :  { %v71_v36 = vsel %vm70_vm4, %v108_v26, %v67_v33  ;;  %v74_v37 = vmul.f32 %v110_v32, %v73_v34 }
 0x10b   :  { %v82_v39 = vmul.f32 %v71_v36, %v48_v13 }
 0x10c   :  { %v75_v40 = vmul.f32 0.5, %v74_v37 }
 0x10d   :  { %v87_v41 = vmul.f32 %v103_v35, %v82_v39 }
 0x10e   :  { %v76_v42 = vsub.f32 1.5, %v75_v40 }
 0x10f   :  { %v92_v43 = vadd.f32 %v104_v38, %v87_v41 }
 0x110   :  { %v77_v44 = vmul.f32 %v110_v32, %v76_v42 }
 0x111   :  { %94 = vst.msk [vmem:[%s186_s3] sm:$0xff] %vm32_vm0, %v92_v43 }
 0x112   :  { %v81_v45 = vsel %vm80_vm7, %v110_v32, %v77_v44 }
 0x113   :  { %v83_v46 = vmul.f32 %v81_v45, %v49_v18 }
 0x115   :  { %v88_v47 = vmul.f32 %v103_v35, %v83_v46 }
 0x117   :  { %v93_v48 = vadd.f32 %v104_v38, %v88_v47 }
 0x119   :  { %95 = vst.msk [vmem:[%s186_s3 + $0x8] sm:$0xff] %vm32_vm0, %v93_v48 }
 0x11a   :  { %100 = vsyncpa [#allocation3], 1 }

// kernel: transformer_forward.8
= control target key start
LH: loop header
LB: loop body
LE: loop exit
PB: predicated region body
PF: predicated region fallthrough
CT: control target
= control target key end

     0   :  { %18 = vsyncpa [#allocation3], 0  ;;  %s1591_s0 = inlined_call_operand.vmem [shape: f32[2,8,32], index: 0, kind: input, shape index: {}]   ;;  %s1592_s1 = inlined_call_operand.vmem [shape: f32[32,48], index: 1, kind: input, shape index: {}]   ;;  %s1593_s2 = inlined_call_operand.vmem [shape: f32[1,48], index: 2, kind: input, shape index: {}]   ;;  %s1594_s3 = inlined_call_operand.vmem [shape: f32[16,32], index: 3, kind: input, shape index: {}]   ;;  %s1595_s4 = inlined_call_operand.vmem [shape: f32[1,32], index: 4, kind: input, shape index: {}]   ;;  %s1596_s5 = inlined_call_operand.vmem [shape: f32[1,32], index: 5, kind: input, shape index: {}]   ;;  %s1597_s6 = inlined_call_operand.hbm [shape: f32[1,32], index: 6, kind: input, shape index: {}]   ;;  %s1598_s7 = inlined_call_operand.vmem [shape: f32[32,64], index: 7, kind: input, shape index: {}]   ;;  %s1599_s8 = inlined_call_operand.hbm [shape: f32[1,64], index: 8, kind: input, shape index: {}]   ;;  %s1600_s9 = inlined_call_operand.vmem [shape: f32[64,32], index: 9, kind: input, shape index: {}]   ;;  %s1601_s10 = inlined_call_operand.hbm [shape: f32[1,32], index: 10, kind: input, shape index: {}]   ;;  %s1602_s11 = inlined_call_operand.hbm [shape: f32[1,32], index: 11, kind: input, shape index: {}]   ;;  %s1603_s12 = inlined_call_operand.hbm [shape: f32[1,32], index: 12, kind: input, shape index: {}]   ;;  %s1604_s13 = inlined_call_operand.vmem [shape: f32[2,8,32], index: 13, kind: output, shape index: {}]  }
   0x1   :  { %19 = vsyncpa [#allocation5], 0  ;;  %s51_s27 = sshll.u32 %s1599_s8, 4  ;;  %s52_s27 = int_to_ptr.hbm [resolvable:$true] %s51_s27 }
   0x2   :  { %20 = vsyncpa [#allocation8], 0  ;;  %s1285_s28 = smov [#allocation4]   ;;  %s75_s15 = sshll.u32 %s1602_s11, 4  ;;  %s76_s15 = int_to_ptr.hbm [resolvable:$true] %s75_s15 }
   0x3   :  { %s53_s29 = sshll.u32 %s1285_s28, 4  ;;  %s1286_s16 = smov [#allocation7]   ;;  %s54_s29 = int_to_ptr.vmem [resolvable:$true] %s53_s29 }
   0x4   :  { %56 = dma.hbm_to_vmem [thread:$0]  %s52_s27, 16, %s54_s29, [#allocation5]  }
   0x5   :  { %s77_s17 = sshll.u32 %s1286_s16, 4  ;;  %s38_s20 = sshll.u32 %s1597_s6, 4  ;;  %s78_s17 = int_to_ptr.vmem [resolvable:$true] %s77_s17  ;;  %s39_s20 = int_to_ptr.hbm [resolvable:$true] %s38_s20 }
   0x6   :  { %80 = dma.hbm_to_vmem [thread:$0]  %s76_s15, 16, %s78_s17, [#allocation8]  }
   0x7   :  { %s64_s22 = sshll.u32 %s1601_s10, 4  ;;  %s1287_s23 = smov [#allocation2]   ;;  %s65_s22 = int_to_ptr.hbm [resolvable:$true] %s64_s22 }
   0x8   :  { %s40_s24 = sshll.u32 %s1287_s23, 4  ;;  %s1288_s11 = smov [#allocation6]   ;;  %s41_s24 = int_to_ptr.vmem [resolvable:$true] %s40_s24 }
   0x9   :  { %43 = dma.hbm_to_vmem [thread:$0]  %s39_s20, 16, %s41_s24, [#allocation3]  }
   0xa   :  { %s66_s25 = sshll.u32 %s1288_s11, 4  ;;  %s86_s28 = sshll.u32 %s1603_s12, 4  ;;  %s67_s25 = int_to_ptr.vmem [resolvable:$true] %s66_s25  ;;  %s87_s28 = int_to_ptr.hbm [resolvable:$true] %s86_s28 }
   0xb   :  { %69 = dma.hbm_to_vmem [thread:$0]  %s65_s22, 16, %s67_s25, [#allocation5]  }
   0xc   :  { %s1289_s6 = smov [#allocation9]  }
   0xd   :  { %s88_s29 = sshll.u32 %s1289_s6, 4  ;;  %s89_s29 = int_to_ptr.vmem [resolvable:$true] %s88_s29 }
   0xe   :  { %91 = dma.hbm_to_vmem [thread:$0]  %s87_s28, 16, %s89_s29, [#allocation8]  }
   0xf   :  { %1279 = dma.done.wait [#allocation3], 16  }
  0x10   :  { %1280 = vsyncadd [#allocation3], 4294967280 }
  0x11   :  { %1281 = dma.done.wait [#allocation5], 32  }
  0x12   :  { %1282 = vsyncadd [#allocation5], 4294967264 }
  0x13   :  { %1283 = dma.done.wait [#allocation8], 32  }
  0x14   :  { %1284 = vsyncadd [#allocation8], 4294967264  ;;  %v117_v0 = vld [vmem:[%s1592_s1 + $0x18] sm:$0xff]  ;;  %v116_v1 = vld [vmem:[%s1592_s1 + $0x10] sm:$0xff]  ;;  %vm125_vm0 = vcmask 261120   ;;  %s1290_s23 = smov 108  }
  0x15   :  { %144 = vmatpush.msra.mxu0 %v117_v0  ;;  %v115_v2 = vld [vmem:[%s1592_s1 + $0x8] sm:$0xff]  ;;  %v114_v3 = vld [vmem:[%s1592_s1] sm:$0xff]  ;;  %s1291_s24 = smov 112   ;;  %vm160_vm1 = vcmask 31744   ;;  %vm214_vm2 = vcmask 64512   ;;  %s1294_s11 = smov 104  }
  0x16   :  { %v1402_v4 = vld [vmem:[%s1591_s0] sm:$0xff]  ;;  %v1409_v5 = vld [vmem:[%s1591_s0 + $0x8] sm:$0xff]  ;;  %s1292_s0 = smov 124   ;;  %s1295_s25 = smov 92   ;;  %vm427_vm3 = vcmask 1043456   ;;  %vm949_vm11 = vcmask 523264  }
  0x17   :  { %145 = vmatpush.msra.mxu0 %v116_v1  ;;  %v1105_v6 = vld [vmem:[%s1593_s2] ss:$0 sm:$0xff]  ;;  %s1293_s2 = smov 96   ;;  %s1296_s26 = smov 120  }
  0x18   :  { %s1297_s27 = smov 88   ;;  %s1298_s28 = smov 100   ;;  %v119_v56 = vld [vmem:[%s1594_s3] sm:$0xff] }
  0x19   :  { %146 = vmatpush.msra.mxu0 %v115_v2  ;;  %s1299_s6 = smov 116   ;;  %v420_v57 = vrot.slane %v119_v56, 4 }
  0x1b   :  { %147 = vmatpush.msra.mxu0 %v114_v3 }
  0x1c   :  { %1046 = vmatmul.msk.f32.vlgmr.msra.gmra.mxu0 %vm125_vm0, %v1402_v4 }
  0x24   :  { %1047 = vmatmul.msk.f32.gmra.mxu0 %vm125_vm0, %v1409_v5 }
  0x99   :  { %v149_v7 = vpop.f32.mrf.mxu0 }
  0x9a   :  { %v1416_v8 = vadd.f32 %v1105_v6, %v149_v7 }
  0x9c   :  { %291 = vrot.lane.b32.xlu1 %v1416_v8, %s1290_s23  ;;  %158 = vrot.lane.b32.xlu0 %v1416_v8, %s1291_s24  ;;  %v1423_v11 = vmul.f32 0.5, %v1416_v8 }
  0xa1   :  { %v152_v9 = vpop.f32.mrf.mxu0 }
  0xa2   :  { %v1420_v10 = vadd.f32 %v1105_v6, %v152_v9 }
  0xa4   :  { %187 = vrot.lane.b32.xlu0 %v1420_v10, %s1291_s24  ;;  %289 = vrot.lane.b32.xlu1 %v1423_v11, %s1292_s0  ;;  %v1435_v16 = vmul.f32 0.5, %v1420_v10 }
  0xac   :  { %319 = vrot.lane.b32.xlu1 %v1420_v10, %s1290_s23 }
 0x10e   :  { %v292_v12 = vpop.permute.xlu1 %291  ;;  %v159_v13 = vpop.permute.xlu0 %158 }
 0x10f   :  { %1048 = vmatpush.xpose.msk.msrb.mxu0 %vm160_vm1, %v159_v13  ;;  %1054 = vmatpush.xpose.msk.msra.mxu1 %vm160_vm1, %v292_v12 }
 0x112   :  { %1049 = vmatmul.msk.f32.vlgmr.msrb.gmra.mxu0 %vm160_vm1, %v1423_v11 }
 0x113   :  { %1063 = vmatpush.msk.msra.mxu0 %vm427_vm3, %v119_v56 }
 0x116   :  { %v188_v14 = vpop.permute.xlu0 %187  ;;  %v290_v15 = vpop.permute.xlu1 %289 }
 0x117   :  { %1050 = vmatpush.xpose.msk.msra.mxu2 %vm160_vm1, %v188_v14  ;;  %1055 = vmatmul.msk.f32.vlgmr.msra.gmra.mxu1 %vm160_vm1, %v290_v15 }
 0x11a   :  { %1051 = vmatmul.msk.f32.vlgmr.msra.gmra.mxu2 %vm160_vm1, %v1435_v16 }
 0x11e   :  { %v320_v17 = vpop.permute.xlu1 %319 }
 0x11f   :  { %1056 = vmatpush.xpose.msk.msrb.mxu2 %vm160_vm1, %v320_v17 }
 0x123   :  { %1060 = vmatpush.msk.msra.mxu2 %vm427_vm3, %v420_v57 }
 0x18f   :  { %v183_v18 = vpop.f32.mrf.mxu0 }
 0x190   :  { %v215_v19 = vsel %vm214_vm2, %v183_v18, -inf }
 0x191   :  { %216 = vmax.xlane.f32.xlu2 %v215_v19 }
 0x194   :  { %v314_v20 = vpop.f32.mrf.mxu1 }
 0x195   :  { %v345_v21 = vsel %vm214_vm2, %v314_v20, -inf }
 0x196   :  { %346 = vmax.xlane.f32.xlu0 %v345_v21 }
 0x19d   :  { %v211_v22 = vpop.f32.mrf.mxu2 }
 0x19e   :  { %v218_v23 = vsel %vm214_vm2, %v211_v22, -inf }
 0x19f   :  { %219 = vmax.xlane.f32.xlu2 %v218_v23 }
 0x1aa   :  { %263 = vrot.lane.b32.xlu0 %v1420_v10, %s1293_s2 }
 0x1b2   :  { %317 = vrot.lane.b32.xlu0 %v1435_v16, %s1292_s0 }
 0x1b7   :  { %237 = vrot.lane.b32.xlu2 %v1416_v8, %s1293_s2 }
 0x1ba   :  { %486 = vrot.lane.b32.xlu0 %v1416_v8, %s1294_s11 }
 0x1c2   :  { %514 = vrot.lane.b32.xlu0 %v1420_v10, %s1294_s11 }
 0x204   :  { %v217_v24 = vpop.xlane.xlu2 %216 }
 0x205   :  { %v221_v25 = vsub.f32 %v183_v18, %v217_v24 }
 0x207   :  { %v223_v26 = vmul.f32 1.442695, %v221_v25 }
 0x209   :  { %1113 = vpow2.f32 %v223_v26  ;;  %v347_v27 = vpop.xlane.xlu0 %346 }
 0x20a   :  { %v351_v28 = vsub.f32 %v314_v20, %v347_v27 }
 0x20c   :  { %v353_v29 = vmul.f32 1.442695, %v351_v28 }
 0x20e   :  { %1115 = vpow2.f32 %v353_v29 }
 0x20f   :  { %v1114_v30 = vpop.eup %1113 }
 0x210   :  { %v227_v31 = vsel %vm214_vm2, %v1114_v30, 0.0 }
 0x211   :  { %228 = vadd.xlane.f32.xlu1 %v227_v31 }
 0x212   :  { %v220_v32 = vpop.xlane.xlu2 %219 }
 0x213   :  { %v222_v33 = vsub.f32 %v211_v22, %v220_v32 }
 0x214   :  { %v1116_v34 = vpop.eup %1115 }
 0x215   :  { %v225_v35 = vmul.f32 1.442695, %v222_v33  ;;  %v357_v36 = vsel %vm214_vm2, %v1116_v34, 0.0 }
 0x216   :  { %358 = vadd.xlane.f32.xlu2 %v357_v36 }
 0x217   :  { %1117 = vpow2.f32 %v225_v35 }
 0x21a   :  { %v238_v37 = vpop.permute.xlu2 %237 }
 0x21b   :  { %258 = vmatpush.msra.mxu3 %v238_v37 }
 0x21c   :  { %v264_v38 = vpop.permute.xlu0 %263 }
 0x21d   :  { %v1118_v39 = vpop.eup %1117  ;;  %284 = vmatpush.msrb.mxu3 %v264_v38 }
 0x21e   :  { %v230_v40 = vsel %vm214_vm2, %v1118_v39, 0.0 }
 0x21f   :  { %231 = vadd.xlane.f32.xlu2 %v230_v40 }
 0x224   :  { %v318_v41 = vpop.permute.xlu0 %317 }
 0x225   :  { %1057 = vmatmul.msk.f32.vlgmr.msrb.gmra.mxu2 %vm160_vm1, %v318_v41 }
 0x22a   :  { %367 = vrot.lane.b32.xlu1 %v1416_v8, %s1295_s25 }
 0x22c   :  { %v487_v50 = vpop.permute.xlu0 %486 }
 0x234   :  { %v515_v7 = vpop.permute.xlu0 %514 }
 0x237   :  { %484 = vrot.lane.b32.xlu2 %v1423_v11, %s1296_s26 }
 0x284   :  { %v229_v42 = vpop.xlane.xlu1 %228 }
 0x285   :  { %1119 = vrcp.f32 %v229_v42 }
 0x289   :  { %v359_v43 = vpop.xlane.xlu2 %358 }
 0x28b   :  { %v1120_v44 = vpop.eup %1119 }
 0x28c   :  { %v235_v45 = vmul.f32 %v1120_v44, %v1114_v30 }
 0x28e   :  { %1052 = vmatmul.msk.f32.vlgmr.msra.gmra.mxu3 %vm214_vm2, %v235_v45 }
 0x292   :  { %v232_v46 = vpop.xlane.xlu2 %231 }
 0x293   :  { %1121 = vrcp.f32 %v232_v46 }
 0x294   :  { %1123 = vrcp.f32 %v359_v43 }
 0x299   :  { %v1122_v47 = vpop.eup %1121 }
 0x29a   :  { %v236_v48 = vmul.f32 %v1122_v47, %v1118_v39  ;;  %v1124_v51 = vpop.eup %1123  ;;  %v485_v55 = vpop.permute.xlu2 %484 }
 0x29b   :  { %v365_v52 = vmul.f32 %v1124_v51, %v1116_v34 }
 0x29c   :  { %v368_v49 = vpop.permute.xlu1 %367  ;;  %1053 = vmatmul.msk.f32.vlgmr.msrb.gmra.mxu3 %vm214_vm2, %v236_v48 }
 0x29d   :  { %388 = vmatpush.msra.mxu3 %v368_v49 }
 0x29f   :  { %1066 = vmatpush.xpose.msk.msrb.mxu3 %vm160_vm1, %v487_v50 }
 0x2a4   :  { %1058 = vmatmul.msk.f32.vlgmr.msra.gmra.mxu3 %vm214_vm2, %v365_v52 }
 0x2a8   :  { %v342_v53 = vpop.f32.mrf.mxu2 }
 0x2a9   :  { %v348_v54 = vsel %vm214_vm2, %v342_v53, -inf }
 0x2aa   :  { %349 = vmax.xlane.f32.xlu1 %v348_v54 }
 0x2ac   :  { %1067 = vmatmul.msk.f32.vlgmr.msrb.gmra.mxu3 %vm160_vm1, %v485_v55 }
 0x2c3   :  { %393 = vrot.lane.b32.xlu1 %v1420_v10, %s1295_s25 }
 0x2cb   :  { %562 = vrot.lane.b32.xlu1 %v1416_v8, %s1297_s27 }
 0x2d3   :  { %678 = vrot.lane.b32.xlu1 %v1420_v10, %s1298_s28 }
 0x2db   :  { %676 = vrot.lane.b32.xlu1 %v1435_v16, %s1299_s6 }
 0x311   :  { %v260_v58 = vpop.f32.mrf.mxu3 }
 0x312   :  { %1064 = vmatmul.msk.f32.vlgmr.msra.gmra.mxu0 %vm160_vm1, %v260_v58 }
 0x31d   :  { %v350_v59 = vpop.xlane.xlu1 %349 }
 0x31e   :  { %v352_v60 = vsub.f32 %v342_v53, %v350_v59 }
 0x31f   :  { %v286_v61 = vpop.f32.mrf.mxu3 }
 0x320   :  { %v355_v62 = vmul.f32 1.442695, %v352_v60  ;;  %1065 = vmatmul.msk.f32.gmra.mxu0 %vm160_vm1, %v286_v61 }
 0x322   :  { %1125 = vpow2.f32 %v355_v62 }
 0x327   :  { %v390_v63 = vpop.f32.mrf.mxu3 }
 0x328   :  { %v1126_v0 = vpop.eup %1125  ;;  %1061 = vmatmul.msk.f32.vlgmr.msra.gmra.mxu2 %vm160_vm1, %v390_v63 }
 0x329   :  { %v360_v1 = vsel %vm214_vm2, %v1126_v0, 0.0 }
 0x32a   :  { %361 = vadd.xlane.f32.xlu2 %v360_v1 }
 0x32f   :  { %v509_v2 = vpop.f32.mrf.mxu3 }
 0x330   :  { %v540_v3 = vsel %vm214_vm2, %v509_v2, -inf }
 0x331   :  { %541 = vmax.xlane.f32.xlu0 %v540_v3 }
 0x335   :  { %v394_v6 = vpop.permute.xlu1 %393 }
 0x336   :  { %414 = vmatpush.msrb.mxu1 %v394_v6 }
 0x338   :  { %1068 = vmatpush.xpose.msk.msra.mxu1 %vm160_vm1, %v515_v7 }
 0x33d   :  { %v563_v9 = vpop.permute.xlu1 %562 }
 0x33e   :  { %583 = vmatpush.msra.mxu3 %v563_v9 }
 0x342   :  { %512 = vrot.lane.b32.xlu2 %v1435_v16, %s1296_s26 }
 0x345   :  { %v679_v12 = vpop.permute.xlu1 %678  ;;  %650 = vrot.lane.b32.xlu0 %v1416_v8, %s1298_s28 }
 0x346   :  { %1077 = vmatpush.xpose.msk.msrb.mxu3 %vm160_vm1, %v679_v12 }
 0x34d   :  { %v677_v29 = vpop.permute.xlu1 %676 }
 0x38f   :  { %v478_v35 = vpop.f32.mrf.mxu0 }
 0x39d   :  { %v362_v13 = vpop.xlane.xlu2 %361  ;;  %v1500_v37 = vpop.f32.mrf.mxu0 }
 0x39e   :  { %1127 = vrcp.f32 %v362_v13  ;;  %v1106_v13 = vld [vmem:[%s1595_s4] ss:$0 sm:$0xff] }
 0x3a4   :  { %v1128_v14 = vpop.eup %1127  ;;  %v542_v15 = vpop.xlane.xlu0 %541 }
 0x3a5   :  { %v546_v17 = vsub.f32 %v509_v2, %v542_v15  ;;  %v366_v18 = vmul.f32 %v1128_v14, %v1126_v0  ;;  %v513_v20 = vpop.permute.xlu2 %512 }
 0x3a7   :  { %v548_v19 = vmul.f32 1.442695, %v546_v17  ;;  %1059 = vmatmul.msk.f32.vlgmr.msrb.gmra.mxu1 %vm214_vm2, %v366_v18 }
 0x3a9   :  { %1129 = vpow2.f32 %v548_v19 }
 0x3ab   :  { %v447_v3 = vpop.f32.mrf.mxu2 }
 0x3ac   :  { %v479_v9 = vadd.f32 %v478_v35, %v447_v3 }
 0x3af   :  { %v1130_v21 = vpop.eup %1129  ;;  %1069 = vmatmul.msk.f32.vlgmr.msra.gmra.mxu1 %vm160_vm1, %v513_v20 }
 0x3b0   :  { %v552_v16 = vsel %vm214_vm2, %v1130_v21, 0.0 }
 0x3b1   :  { %553 = vadd.xlane.f32.xlu0 %v552_v16 }
 0x3b7   :  { %v651_v22 = vpop.permute.xlu0 %650 }
 0x3b8   :  { %1075 = vmatpush.xpose.msk.msrb.mxu0 %vm160_vm1, %v651_v22 }
 0x3c5   :  { %648 = vrot.lane.b32.xlu0 %v1423_v11, %s1299_s6  ;;  %v120_v11 = vld [vmem:[%s1594_s3 + $0x8] sm:$0xff]  ;;  %s1300_s3 = smov 84  }
 0x3c6   :  { %1072 = vmatpush.msk.msrb.mxu2 %vm427_vm3, %v120_v11  ;;  %v778_v31 = vrot.slane %v120_v11, 4 }
 0x424   :  { %v554_v23 = vpop.xlane.xlu0 %553  ;;  %v416_v24 = vpop.f32.mrf.mxu1 }
 0x425   :  { %1131 = vrcp.f32 %v554_v23  ;;  %1062 = vmatmul.msk.f32.gmra.mxu2 %vm160_vm1, %v416_v24 }
 0x42b   :  { %v1132_v25 = vpop.eup %1131 }
 0x42c   :  { %v560_v26 = vmul.f32 %v1132_v25, %v1130_v21  ;;  %v537_v27 = vpop.f32.mrf.mxu1 }
 0x42d   :  { %v543_v28 = vsel %vm214_vm2, %v537_v27, -inf }
 0x42e   :  { %1070 = vmatmul.msk.f32.vlgmr.msra.gmra.mxu3 %vm214_vm2, %v560_v26  ;;  %544 = vmax.xlane.f32.xlu2 %v543_v28 }
 0x42f   :  { %1081 = vmatpush.msk.msra.mxu3 %vm427_vm3, %v778_v31 }
 0x436   :  { %1078 = vmatmul.msk.f32.vlgmr.msrb.gmra.mxu3 %vm160_vm1, %v677_v29 }
 0x437   :  { %v649_v30 = vpop.permute.xlu0 %648 }
 0x438   :  { %1076 = vmatmul.msk.f32.vlgmr.msrb.gmra.mxu0 %vm160_vm1, %v649_v30 }
 0x4a1   :  { %v545_v32 = vpop.xlane.xlu2 %544 }
 0x4a2   :  { %v547_v33 = vsub.f32 %v537_v27, %v545_v32  ;;  %v1301_v27 = vmov 32.0  }
 0x4a4   :  { %v550_v34 = vmul.f32 1.442695, %v547_v33 }
 0x4a6   :  { %1133 = vpow2.f32 %v550_v34 }
 0x4a8   :  { %v450_v6 = vpop.f32.mrf.mxu2 }
 0x4a9   :  { %v482_v19 = vadd.f32 %v1500_v37, %v450_v6 }
 0x4ac   :  { %v1134_v36 = vpop.eup %1133 }
 0x4ad   :  { %v555_v38 = vsel %vm214_vm2, %v1134_v36, 0.0 }
 0x4ae   :  { %556 = vadd.xlane.f32.xlu2 %v555_v38 }
 0x4b1   :  { %v585_v39 = vpop.f32.mrf.mxu3 }
 0x4b2   :  { %1073 = vmatmul.msk.f32.vlgmr.msrb.gmra.mxu2 %vm160_vm1, %v585_v39 }
 0x4b5   :  { %v673_v40 = vpop.f32.mrf.mxu0 }
 0x4b6   :  { %v704_v41 = vsel %vm214_vm2, %v673_v40, -inf }
 0x4b7   :  { %705 = vmax.xlane.f32.xlu0 %v704_v41  ;;  %v885_v41 = vld [vmem:[%s1598_s7 + $0x18] sm:$0xff] }
 0x4b9   :  { %v701_v42 = vpop.f32.mrf.mxu3 }
 0x4ba   :  { %v707_v43 = vsel %vm214_vm2, %v701_v42, -inf }
 0x4bb   :  { %708 = vmax.xlane.f32.xlu1 %v707_v43  ;;  %v883_v43 = vld [vmem:[%s1598_s7 + $0x8] sm:$0xff] }
 0x4d4   :  { %588 = vrot.lane.b32.xlu1 %v1420_v10, %s1297_s27 }
 0x521   :  { %v557_v53 = vpop.xlane.xlu2 %556 }
 0x52a   :  { %v706_v44 = vpop.xlane.xlu0 %705 }
 0x52b   :  { %v710_v45 = vsub.f32 %v673_v40, %v706_v44  ;;  %v882_v44 = vld [vmem:[%s1598_s7] sm:$0xff] }
 0x52d   :  { %v712_v46 = vmul.f32 1.442695, %v710_v45 }
 0x52e   :  { %v709_v47 = vpop.xlane.xlu1 %708 }
 0x52f   :  { %1135 = vpow2.f32 %v712_v46  ;;  %v711_v48 = vsub.f32 %v701_v42, %v709_v47  ;;  %v884_v42 = vld [vmem:[%s1598_s7 + $0x10] sm:$0xff] }
 0x531   :  { %v714_v49 = vmul.f32 1.442695, %v711_v48 }
 0x533   :  { %1137 = vpow2.f32 %v714_v49 }
 0x534   :  { %1139 = vrcp.f32 %v557_v53 }
 0x535   :  { %v1136_v50 = vpop.eup %1135  ;;  %v640_v7 = vpop.f32.mrf.mxu2 }
 0x536   :  { %v716_v51 = vsel %vm214_vm2, %v1136_v50, 0.0  ;;  %v646_v12 = vadd.f32 %v640_v7, %v479_v9 }
 0x537   :  { %717 = vadd.xlane.f32.xlu0 %v716_v51 }
 0x539   :  { %v1138_v52 = vpop.eup %1137 }
 0x53a   :  { %v719_v54 = vsel %vm214_vm2, %v1138_v52, 0.0  ;;  %v1140_v55 = vpop.eup %1139 }
 0x53b   :  { %720 = vadd.xlane.f32.xlu2 %v719_v54  ;;  %v561_v56 = vmul.f32 %v1140_v55, %v1134_v36 }
 0x546   :  { %v589_v57 = vpop.permute.xlu1 %588 }
 0x547   :  { %609 = vmatpush.msrb.mxu1 %v589_v57 }
 0x548   :  { %1071 = vmatmul.msk.f32.vlgmr.msrb.gmra.mxu1 %vm214_vm2, %v561_v56 }
 0x54b   :  { %726 = vrot.lane.b32.xlu0 %v1416_v8, %s1300_s3 }
 0x553   :  { %752 = vrot.lane.b32.xlu2 %v1420_v10, %s1300_s3 }
 0x5aa   :  { %v718_v59 = vpop.xlane.xlu0 %717 }
 0x5ae   :  { %v721_v58 = vpop.xlane.xlu2 %720 }
 0x5af   :  { %1141 = vrcp.f32 %v721_v58 }
 0x5b0   :  { %1143 = vrcp.f32 %v718_v59  ;;  %v1107_v59 = vld [vmem:[%s1596_s5] ss:$0 sm:$0xff] }
 0x5b1   :  { %1145 = vrcp.f32 %v1301_v27 }
 0x5b5   :  { %v1142_v60 = vpop.eup %1141 }
 0x5b6   :  { %v725_v61 = vmul.f32 %v1142_v60, %v1138_v52  ;;  %v753_v62 = vpop.permute.xlu2 %752  ;;  %v1144_v63 = vpop.eup %1143 }
 0x5b7   :  { %773 = vmatpush.msra.mxu0 %v753_v62  ;;  %v724_v0 = vmul.f32 %v1144_v63, %v1136_v50  ;;  %v1146_v28 = vpop.eup %1145  ;;  %v1108_v63 = vld [vmem:[#allocation2] ss:$0 sm:$0xff] }
 0x5b8   :  { %1080 = vmatmul.msk.f32.vlgmr.msra.gmra.mxu0 %vm214_vm2, %v725_v61  ;;  %v828_v29 = vmul.f32 32.0, %v1146_v28  ;;  %vm832_vm4 = vweird.f32 %v1146_v28 }
 0x5ba   :  { %v829_v30 = vsub.f32 1.0, %v828_v29 }
 0x5bc   :  { %v830_v11 = vmul.f32 %v1146_v28, %v829_v30 }
 0x5bd   :  { %v727_v1 = vpop.permute.xlu0 %726 }
 0x5be   :  { %747 = vmatpush.msra.mxu1 %v727_v1  ;;  %v831_v31 = vadd.f32 %v1146_v28, %v830_v11 }
 0x5bf   :  { %1079 = vmatmul.msk.f32.vlgmr.msra.gmra.mxu1 %vm214_vm2, %v724_v0 }
 0x5c0   :  { %917 = vmatpush.msrb.mxu1 %v885_v41  ;;  %v1110_v41 = vld [vmem:[#allocation6] ss:$0 sm:$0xff] }
 0x5c2   :  { %918 = vmatpush.msrb.mxu1 %v884_v42 }
 0x5c4   :  { %919 = vmatpush.msrb.mxu1 %v883_v43 }
 0x5c5   :  { %v611_v2 = vpop.f32.mrf.mxu1 }
 0x5c6   :  { %1074 = vmatmul.msk.f32.gmra.mxu2 %vm160_vm1, %v611_v2  ;;  %920 = vmatpush.msrb.mxu1 %v882_v44 }
 0x635   :  { %v775_v10 = vpop.f32.mrf.mxu0 }
 0x63c   :  { %v749_v8 = vpop.f32.mrf.mxu1 }
 0x63d   :  { %1082 = vmatmul.msk.f32.vlgmr.msra.gmra.mxu3 %vm160_vm1, %v749_v8 }
 0x645   :  { %1083 = vmatmul.msk.f32.gmra.mxu3 %vm160_vm1, %v775_v10 }
 0x649   :  { %v643_v18 = vpop.f32.mrf.mxu2 }
 0x64a   :  { %v647_v21 = vadd.f32 %v643_v18, %v482_v19  ;;  %v889_v18 = vld [vmem:[%s1600_s9 + $0x10] sm:$0xff]  ;;  %v888_v19 = vld [vmem:[%s1600_s9 + $0x8] sm:$0xff] }
 0x6c0   :  { %v804_v14 = vpop.f32.mrf.mxu3 }
 0x6c1   :  { %v810_v15 = vadd.f32 %v804_v14, %v646_v12  ;;  %v894_v12 = vld [vmem:[%s1600_s9 + $0x38] sm:$0xff]  ;;  %v892_v14 = vld [vmem:[%s1600_s9 + $0x28] sm:$0xff] }
 0x6c2   :  { %964 = vmatpush.msra.mxu2 %v894_v12 }
 0x6c3   :  { %v815_v17 = vadd.f32 %v1106_v13, %v810_v15  ;;  %v891_v15 = vld [vmem:[%s1600_s9 + $0x20] sm:$0xff] }
 0x6c5   :  { %v817_v20 = vadd.f32 %v815_v17, %v1402_v4  ;;  %v1526_v4 = vsel %vm832_vm4, %v1146_v28, %v831_v31  ;;  %v890_v17 = vld [vmem:[%s1600_s9 + $0x18] sm:$0xff] }
 0x6c7   :  { %v821_v16 = vsel %vm125_vm0, %v817_v20, 0.0 }
 0x6c8   :  { %822 = vadd.xlane.f32.xlu1 %v821_v16  ;;  %v807_v22 = vpop.f32.mrf.mxu3 }
 0x6c9   :  { %v811_v23 = vadd.f32 %v807_v22, %v647_v21  ;;  %v1109_v21 = vld [vmem:[#allocation4] ss:$0 sm:$0xff] }
 0x6cb   :  { %v816_v24 = vadd.f32 %v1106_v13, %v811_v23  ;;  %v893_v13 = vld [vmem:[%s1600_s9 + $0x30] sm:$0xff] }
 0x6cc   :  { %965 = vmatpush.msra.mxu2 %v893_v13  ;;  %v1111_v13 = vld [vmem:[#allocation7] ss:$0 sm:$0xff] }
 0x6cd   :  { %v818_v25 = vadd.f32 %v816_v24, %v1409_v5 }
 0x6ce   :  { %966 = vmatpush.msra.mxu2 %v892_v14 }
 0x6cf   :  { %v824_v26 = vsel %vm125_vm0, %v818_v25, 0.0 }
 0x6d0   :  { %825 = vadd.xlane.f32.xlu0 %v824_v26  ;;  %967 = vmatpush.msra.mxu2 %v891_v15 }
 0x6d2   :  { %968 = vmatpush.msra.mxu2 %v890_v17  ;;  %v1112_v17 = vld [vmem:[#allocation9] ss:$0 sm:$0xff] }
 0x6d4   :  { %969 = vmatpush.msra.mxu2 %v889_v18 }
 0x6d6   :  { %970 = vmatpush.msra.mxu2 %v888_v19 }
 0x73b   :  { %v823_v32 = vpop.xlane.xlu1 %822 }
 0x73c   :  { %v834_v33 = vmul.f32 %v1526_v4, %v823_v32 }
 0x73e   :  { %v836_v34 = vsub.f32 %v817_v20, %v834_v33  ;;  %v887_v20 = vld [vmem:[%s1600_s9] sm:$0xff] }
 0x73f   :  { %971 = vmatpush.msra.mxu2 %v887_v20 }
 0x740   :  { %v838_v35 = vmul.f32 %v836_v34, %v836_v34 }
 0x742   :  { %v840_v5 = vsel %vm125_vm0, %v838_v35, 0.0 }
 0x743   :  { %841 = vadd.xlane.f32.xlu2 %v840_v5  ;;  %v826_v36 = vpop.xlane.xlu0 %825 }
 0x744   :  { %v835_v37 = vmul.f32 %v1526_v4, %v826_v36 }
 0x746   :  { %v837_v38 = vsub.f32 %v818_v25, %v835_v37 }
 0x748   :  { %v839_v39 = vmul.f32 %v837_v38, %v837_v38 }
 0x74a   :  { %v843_v40 = vsel %vm125_vm0, %v839_v39, 0.0 }
 0x74b   :  { %844 = vadd.xlane.f32.xlu1 %v843_v40 }
 0x7b6   :  { %v842_v45 = vpop.xlane.xlu2 %841 }
 0x7b7   :  { %v846_v46 = vmul.f32 %v842_v45, %v1526_v4 }
 0x7b9   :  { %v848_v47 = vadd.f32 1e-05, %v846_v46 }
 0x7bb   :  { %1147 = vrsqrt.f32 %v848_v47  ;;  %vm856_vm6 = vweird.f32 %v848_v47 }
 0x7be   :  { %v845_v48 = vpop.xlane.xlu1 %844 }
 0x7bf   :  { %v847_v49 = vmul.f32 %v845_v48, %v1526_v4 }
 0x7c1   :  { %v1148_v50 = vpop.eup %1147  ;;  %v849_v51 = vadd.f32 1e-05, %v847_v49 }
 0x7c2   :  { %v851_v52 = vmul.f32 %v1148_v50, %v848_v47  ;;  %vm857_vm5 = vweird.f32 %v1148_v50 }
 0x7c3   :  { %1149 = vrsqrt.f32 %v849_v51  ;;  %vm858_vm7 = vmor %vm856_vm6, %vm857_vm5  ;;  %vm866_vm9 = vweird.f32 %v849_v51 }
 0x7c4   :  { %v852_v53 = vmul.f32 %v1148_v50, %v851_v52 }
 0x7c6   :  { %v853_v54 = vmul.f32 0.5, %v852_v53 }
 0x7c8   :  { %v854_v55 = vsub.f32 1.5, %v853_v54 }
 0x7c9   :  { %v1150_v56 = vpop.eup %1149 }
 0x7ca   :  { %v855_v57 = vmul.f32 %v1148_v50, %v854_v55  ;;  %v861_v58 = vmul.f32 %v1150_v56, %v849_v51  ;;  %vm867_vm8 = vweird.f32 %v1150_v56 }
 0x7cb   :  { %vm868_vm10 = vmor %vm866_vm9, %vm867_vm8 }
 0x7cc   :  { %v859_v60 = vsel %vm858_vm7, %v1148_v50, %v855_v57  ;;  %v862_v61 = vmul.f32 %v1150_v56, %v861_v58 }
 0x7cd   :  { %v870_v62 = vmul.f32 %v859_v60, %v836_v34 }
 0x7ce   :  { %v863_v0 = vmul.f32 0.5, %v862_v61 }
 0x7cf   :  { %v875_v1 = vmul.f32 %v1107_v59, %v870_v62 }
 0x7d0   :  { %v864_v2 = vsub.f32 1.5, %v863_v0 }
 0x7d1   :  { %v880_v8 = vadd.f32 %v1108_v63, %v875_v1 }
 0x7d2   :  { %v865_v10 = vmul.f32 %v1150_v56, %v864_v2 }
 0x7d3   :  { %1084 = vmatmul.msk.f32.vlgmr.msrb.gmra.mxu1 %vm125_vm0, %v880_v8 }
 0x7d4   :  { %v869_v3 = vsel %vm868_vm10, %v1150_v56, %v865_v10 }
 0x7d5   :  { %v871_v6 = vmul.f32 %v869_v3, %v837_v38 }
 0x7d7   :  { %v876_v7 = vmul.f32 %v1107_v59, %v871_v6 }
 0x7d9   :  { %v881_v9 = vadd.f32 %v1108_v63, %v876_v7 }
 0x7db   :  { %1085 = vmatmul.msk.f32.gmra.mxu1 %vm125_vm0, %v881_v9 }
 0x850   :  { %v922_v16 = vpop.f32.mrf.mxu1 }
 0x851   :  { %v923_v22 = vadd.f32 %v1109_v21, %v922_v16 }
 0x853   :  { %v928_v23 = vmul.f32 %v923_v22, %v923_v22 }
 0x855   :  { %v930_v24 = vmul.f32 %v928_v23, %v923_v22 }
 0x857   :  { %v932_v25 = vmul.f32 0.044715, %v930_v24 }
 0x858   :  { %v925_v26 = vpop.f32.mrf.mxu1 }
 0x859   :  { %v934_v27 = vadd.f32 %v932_v25, %v923_v22  ;;  %v926_v28 = vadd.f32 %v1109_v21, %v925_v26 }
 0x85b   :  { %v936_v29 = vmul.f32 0.7978846, %v934_v27  ;;  %v929_v30 = vmul.f32 %v926_v28, %v926_v28 }
 0x85d   :  { %1151 = vtanh.f32 %v936_v29  ;;  %v931_v11 = vmul.f32 %v929_v30, %v926_v28 }
 0x85f   :  { %v933_v31 = vmul.f32 0.044715, %v931_v11 }
 0x861   :  { %v935_v32 = vadd.f32 %v933_v31, %v926_v28 }
 0x863   :  { %v1152_v33 = vpop.eup %1151  ;;  %v937_v34 = vmul.f32 0.7978846, %v935_v32 }
 0x864   :  { %v940_v35 = vadd.f32 1.0, %v1152_v33 }
 0x865   :  { %1153 = vtanh.f32 %v937_v34 }
 0x866   :  { %v942_v5 = vmul.f32 0.5, %v940_v35 }
 0x868   :  { %v944_v36 = vmul.f32 %v942_v5, %v923_v22 }
 0x86a   :  { %1086 = vmatmul.msk.f32.vlgmr.msra.gmra.mxu2 %vm949_vm11, %v944_v36 }
 0x86b   :  { %v1154_v37 = vpop.eup %1153 }
 0x86c   :  { %v941_v38 = vadd.f32 1.0, %v1154_v37 }
 0x86e   :  { %v943_v39 = vmul.f32 0.5, %v941_v38 }
 0x870   :  { %v945_v40 = vmul.f32 %v943_v39, %v926_v28 }
 0x872   :  { %1087 = vmatmul.msk.f32.gmra.mxu2 %vm949_vm11, %v945_v40 }
 0x8ed   :  { %v973_v42 = vpop.f32.mrf.mxu2 }
 0x8ee   :  { %v974_v43 = vadd.f32 %v1110_v41, %v973_v42 }
 0x8f0   :  { %v979_v44 = vadd.f32 %v974_v43, %v880_v8 }
 0x8f2   :  { %v983_v45 = vsel %vm125_vm0, %v979_v44, 0.0 }
 0x8f3   :  { %984 = vadd.xlane.f32.xlu0 %v983_v45 }
 0x8f5   :  { %v976_v46 = vpop.f32.mrf.mxu2 }
 0x8f6   :  { %v977_v47 = vadd.f32 %v1110_v41, %v976_v46 }
 0x8f8   :  { %v980_v48 = vadd.f32 %v977_v47, %v881_v9 }
 0x8fa   :  { %v986_v49 = vsel %vm125_vm0, %v980_v48, 0.0 }
 0x8fb   :  { %987 = vadd.xlane.f32.xlu1 %v986_v49 }
 0x966   :  { %v985_v50 = vpop.xlane.xlu0 %984 }
 0x967   :  { %v989_v51 = vmul.f32 %v985_v50, %v1526_v4 }
 0x969   :  { %v991_v52 = vsub.f32 %v979_v44, %v989_v51 }
 0x96b   :  { %v993_v53 = vmul.f32 %v991_v52, %v991_v52 }
 0x96d   :  { %v995_v54 = vsel %vm125_vm0, %v993_v53, 0.0 }
 0x96e   :  { %v988_v55 = vpop.xlane.xlu1 %987  ;;  %996 = vadd.xlane.f32.xlu0 %v995_v54 }
 0x96f   :  { %v990_v56 = vmul.f32 %v988_v55, %v1526_v4 }
 0x971   :  { %v992_v57 = vsub.f32 %v980_v48, %v990_v56 }
 0x973   :  { %v994_v58 = vmul.f32 %v992_v57, %v992_v57 }
 0x975   :  { %v998_v59 = vsel %vm125_vm0, %v994_v58, 0.0 }
 0x976   :  { %999 = vadd.xlane.f32.xlu2 %v998_v59 }
 0x9e1   :  { %v997_v60 = vpop.xlane.xlu0 %996 }
 0x9e2   :  { %v1001_v61 = vmul.f32 %v997_v60, %v1526_v4 }
 0x9e4   :  { %v1003_v62 = vadd.f32 1e-05, %v1001_v61 }
 0x9e6   :  { %1155 = vrsqrt.f32 %v1003_v62  ;;  %vm1011_vm13 = vweird.f32 %v1003_v62 }
 0x9e9   :  { %v1000_v63 = vpop.xlane.xlu2 %999 }
 0x9ea   :  { %v1002_v0 = vmul.f32 %v1000_v63, %v1526_v4 }
 0x9ec   :  { %v1156_v1 = vpop.eup %1155  ;;  %v1004_v2 = vadd.f32 1e-05, %v1002_v0 }
 0x9ed   :  { %v1006_v8 = vmul.f32 %v1156_v1, %v1003_v62  ;;  %vm1012_vm12 = vweird.f32 %v1156_v1 }
 0x9ee   :  { %1157 = vrsqrt.f32 %v1004_v2  ;;  %vm1013_vm14 = vmor %vm1011_vm13, %vm1012_vm12  ;;  %vm1021_vm1 = vweird.f32 %v1004_v2 }
 0x9ef   :  { %v1007_v10 = vmul.f32 %v1156_v1, %v1006_v8 }
 0x9f1   :  { %v1008_v3 = vmul.f32 0.5, %v1007_v10 }
 0x9f3   :  { %v1009_v6 = vsub.f32 1.5, %v1008_v3 }
 0x9f4   :  { %v1158_v7 = vpop.eup %1157 }
 0x9f5   :  { %v1010_v9 = vmul.f32 %v1156_v1, %v1009_v6  ;;  %v1016_v12 = vmul.f32 %v1158_v7, %v1004_v2  ;;  %vm1022_vm15 = vweird.f32 %v1158_v7 }
 0x9f6   :  { %vm1023_vm2 = vmor %vm1021_vm1, %vm1022_vm15 }
 0x9f7   :  { %v1014_v14 = vsel %vm1013_vm14, %v1156_v1, %v1010_v9  ;;  %v1017_v15 = vmul.f32 %v1158_v7, %v1016_v12 }
 0x9f8   :  { %v1025_v18 = vmul.f32 %v1014_v14, %v991_v52 }
 0x9f9   :  { %v1018_v19 = vmul.f32 0.5, %v1017_v15 }
 0x9fa   :  { %v1030_v4 = vmul.f32 %v1111_v13, %v1025_v18 }
 0x9fb   :  { %v1019_v20 = vsub.f32 1.5, %v1018_v19 }
 0x9fc   :  { %v1035_v21 = vadd.f32 %v1112_v17, %v1030_v4 }
 0x9fd   :  { %v1020_v16 = vmul.f32 %v1158_v7, %v1019_v20 }
 0x9fe   :  { %1037 = vst.msk [vmem:[%s1604_s13] sm:$0xff] %vm125_vm0, %v1035_v21 }
 0x9ff   :  { %v1024_v22 = vsel %vm1023_vm2, %v1158_v7, %v1020_v16 }
 0xa00   :  { %v1026_v23 = vmul.f32 %v1024_v22, %v992_v57 }
 0xa02   :  { %v1031_v24 = vmul.f32 %v1111_v13, %v1026_v23 }
 0xa04   :  { %v1036_v25 = vadd.f32 %v1112_v17, %v1031_v24 }
 0xa06   :  { %1038 = vst.msk [vmem:[%s1604_s13 + $0x8] sm:$0xff] %vm125_vm0, %v1036_v25 }
 0xa07   :  { %1043 = vsyncpa [#allocation3], 1 }
 0xa08   :  { %1044 = vsyncpa [#allocation5], 1 }
 0xa09   :  { %1045 = vsyncpa [#allocation8], 1 }

// kernel: transformer_forward.9
= control target key start
LH: loop header
LB: loop body
LE: loop exit
PB: predicated region body
PF: predicated region fallthrough
CT: control target
= control target key end

     0   :  { %18 = vsyncpa [#allocation3], 0  ;;  %s1716_s0 = inlined_call_operand.vmem [shape: f32[2,8,32], index: 0, kind: input, shape index: {}]   ;;  %s1717_s1 = inlined_call_operand.vmem [shape: f32[32,48], index: 1, kind: input, shape index: {}]   ;;  %s1718_s2 = inlined_call_operand.hbm [shape: f32[1,48], index: 2, kind: input, shape index: {}]   ;;  %s1719_s3 = inlined_call_operand.vmem [shape: f32[16,32], index: 3, kind: input, shape index: {}]   ;;  %s1720_s4 = inlined_call_operand.hbm [shape: f32[1,32], index: 4, kind: input, shape index: {}]   ;;  %s1721_s5 = inlined_call_operand.hbm [shape: f32[1,32], index: 5, kind: input, shape index: {}]   ;;  %s1722_s6 = inlined_call_operand.hbm [shape: f32[1,32], index: 6, kind: input, shape index: {}]   ;;  %s1723_s7 = inlined_call_operand.vmem [shape: f32[32,64], index: 7, kind: input, shape index: {}]   ;;  %s1724_s8 = inlined_call_operand.hbm [shape: f32[1,64], index: 8, kind: input, shape index: {}]   ;;  %s1725_s9 = inlined_call_operand.vmem [shape: f32[64,32], index: 9, kind: input, shape index: {}]   ;;  %s1726_s10 = inlined_call_operand.hbm [shape: f32[1,32], index: 10, kind: input, shape index: {}]   ;;  %s1727_s11 = inlined_call_operand.hbm [shape: f32[1,32], index: 11, kind: input, shape index: {}]   ;;  %s1728_s12 = inlined_call_operand.hbm [shape: f32[1,32], index: 12, kind: input, shape index: {}]   ;;  %s1729_s13 = inlined_call_operand.vmem [shape: f32[2,8,32], index: 13, kind: output, shape index: {}]  }
   0x1   :  { %19 = vsyncpa [#allocation5], 0 }
   0x2   :  { %20 = vsyncpa [#allocation8], 0 }
   0x3   :  { %21 = vsyncpa [#allocation11], 0  ;;  %s45_s27 = sshll.u32 %s1720_s4, 4  ;;  %s46_s27 = int_to_ptr.hbm [resolvable:$true] %s45_s27 }
   0x4   :  { %22 = vsyncpa [#allocation14], 0  ;;  %s1407_s28 = smov [#allocation4]   ;;  %s67_s15 = sshll.u32 %s1722_s6, 4  ;;  %s68_s15 = int_to_ptr.hbm [resolvable:$true] %s67_s15 }
   0x5   :  { %s47_s29 = sshll.u32 %s1407_s28, 4  ;;  %s1408_s16 = smov [#allocation7]   ;;  %s48_s29 = int_to_ptr.vmem [resolvable:$true] %s47_s29 }
   0x6   :  { %50 = dma.hbm_to_vmem [thread:$0]  %s46_s27, 16, %s48_s29, [#allocation5]  }
   0x7   :  { %s69_s17 = sshll.u32 %s1408_s16, 4  ;;  %s93_s20 = sshll.u32 %s1726_s10, 4  ;;  %s70_s17 = int_to_ptr.vmem [resolvable:$true] %s69_s17  ;;  %s94_s20 = int_to_ptr.hbm [resolvable:$true] %s93_s20 }
   0x8   :  { %72 = dma.hbm_to_vmem [thread:$0]  %s68_s15, 16, %s70_s17, [#allocation8]  }
   0x9   :  { %s32_s22 = sshll.u32 %s1718_s2, 4  ;;  %s1409_s23 = smov [#allocation10]   ;;  %s33_s22 = int_to_ptr.hbm [resolvable:$true] %s32_s22 }
   0xa   :  { %s95_s24 = sshll.u32 %s1409_s23, 4  ;;  %s1410_s6 = smov [#allocation2]   ;;  %s96_s24 = int_to_ptr.vmem [resolvable:$true] %s95_s24 }
   0xb   :  { %98 = dma.hbm_to_vmem [thread:$0]  %s94_s20, 16, %s96_s24, [#allocation11]  }
   0xc   :  { %s34_s25 = sshll.u32 %s1410_s6, 4  ;;  %s56_s28 = sshll.u32 %s1721_s5, 4  ;;  %s35_s25 = int_to_ptr.vmem [resolvable:$true] %s34_s25  ;;  %s57_s28 = int_to_ptr.hbm [resolvable:$true] %s56_s28 }
   0xd   :  { %37 = dma.hbm_to_vmem [thread:$0]  %s33_s22, 16, %s35_s25, [#allocation3]  }
   0xe   :  { %s80_s30 = sshll.u32 %s1724_s8, 4  ;;  %s1411_s14 = smov [#allocation6]   ;;  %s81_s30 = int_to_ptr.hbm [resolvable:$true] %s80_s30 }
   0xf   :  { %s58_s2 = sshll.u32 %s1411_s14, 4  ;;  %s1412_s15 = smov [#allocation9]   ;;  %s59_s2 = int_to_ptr.vmem [resolvable:$true] %s58_s2 }
  0x10   :  { %61 = dma.hbm_to_vmem [thread:$0]  %s57_s28, 16, %s59_s2, [#allocation5]  }
  0x11   :  { %s82_s16 = sshll.u32 %s1412_s15, 4  ;;  %s104_s19 = sshll.u32 %s1727_s11, 4  ;;  %s83_s16 = int_to_ptr.vmem [resolvable:$true] %s82_s16  ;;  %s105_s19 = int_to_ptr.hbm [resolvable:$true] %s104_s19 }
  0x12   :  { %85 = dma.hbm_to_vmem [thread:$0]  %s81_s30, 16, %s83_s16, [#allocation8]  }
  0x13   :  { %s115_s4 = sshll.u32 %s1728_s12, 4  ;;  %s1413_s21 = smov [#allocation12]   ;;  %s116_s4 = int_to_ptr.hbm [resolvable:$true] %s115_s4 }
  0x14   :  { %s106_s8 = sshll.u32 %s1413_s21, 4  ;;  %s1414_s22 = smov [#allocation13]   ;;  %s107_s8 = int_to_ptr.vmem [resolvable:$true] %s106_s8 }
  0x15   :  { %109 = dma.hbm_to_vmem [thread:$0]  %s105_s19, 16, %s107_s8, [#allocation11]  }
  0x16   :  { %s117_s23 = sshll.u32 %s1414_s22, 4  ;;  %s118_s23 = int_to_ptr.vmem [resolvable:$true] %s117_s23 }
  0x17   :  { %120 = dma.hbm_to_vmem [thread:$0]  %s116_s4, 16, %s118_s23, [#allocation14]  }
  0x18   :  { %1397 = dma.done.wait [#allocation3], 16  }
  0x19   :  { %1398 = vsyncadd [#allocation3], 4294967280 }
  0x1a   :  { %1399 = dma.done.wait [#allocation5], 32  }
  0x1b   :  { %1400 = vsyncadd [#allocation5], 4294967264 }
  0x1c   :  { %1401 = dma.done.wait [#allocation8], 32  }
  0x1d   :  { %1402 = vsyncadd [#allocation8], 4294967264 }
  0x1e   :  { %1403 = dma.done.wait [#allocation11], 32  }
  0x1f   :  { %1404 = vsyncadd [#allocation11], 4294967264 }
  0x20   :  { %1405 = dma.done.wait [#allocation14], 16  }
  0x21   :  { %1406 = vsyncadd [#allocation14], 4294967280  ;;  %v158_v0 = vld [vmem:[%s1717_s1 + $0x18] sm:$0xff]  ;;  %v157_v1 = vld [vmem:[%s1717_s1 + $0x10] sm:$0xff]  ;;  %vm166_vm0 = vcmask 261120   ;;  %s1416_s2 = smov 112  }
  0x22   :  { %185 = vmatpush.msra.mxu0 %v158_v0  ;;  %v156_v2 = vld [vmem:[%s1717_s1 + $0x8] sm:$0xff]  ;;  %v155_v3 = vld [vmem:[%s1717_s1] sm:$0xff]  ;;  %s1415_s1 = smov 108   ;;  %vm201_vm1 = vcmask 31744   ;;  %vm255_vm2 = vcmask 64512   ;;  %s1418_s15 = smov 96  }
  0x23   :  { %v1536_v4 = vld [vmem:[%s1716_s0] sm:$0xff]  ;;  %v1543_v5 = vld [vmem:[%s1716_s0 + $0x8] sm:$0xff]  ;;  %s1417_s0 = smov 124   ;;  %s1419_s16 = smov 104   ;;  %vm468_vm3 = vcmask 1043456   ;;  %vm990_vm11 = vcmask 523264  }
  0x24   :  { %186 = vmatpush.msra.mxu0 %v157_v1  ;;  %v1151_v6 = vld [vmem:[#allocation2] ss:$0 sm:$0xff]  ;;  %s1420_s17 = smov 92   ;;  %s1421_s18 = smov 120  }
  0x25   :  { %s1422_s19 = smov 88   ;;  %s1423_s5 = smov 100   ;;  %v160_v56 = vld [vmem:[%s1719_s3] sm:$0xff] }
  0x26   :  { %187 = vmatpush.msra.mxu0 %v156_v2  ;;  %s1424_s20 = smov 116   ;;  %v461_v57 = vrot.slane %v160_v56, 4 }
  0x28   :  { %188 = vmatpush.msra.mxu0 %v155_v3 }
  0x29   :  { %1089 = vmatmul.msk.f32.vlgmr.msra.gmra.mxu0 %vm166_vm0, %v1536_v4 }
  0x31   :  { %1090 = vmatmul.msk.f32.gmra.mxu0 %vm166_vm0, %v1543_v5 }
  0xa6   :  { %v190_v7 = vpop.f32.mrf.mxu0 }
  0xa7   :  { %v1547_v8 = vadd.f32 %v1151_v6, %v190_v7 }
  0xa9   :  { %332 = vrot.lane.b32.xlu1 %v1547_v8, %s1415_s1  ;;  %199 = vrot.lane.b32.xlu0 %v1547_v8, %s1416_s2  ;;  %v1554_v11 = vmul.f32 0.5, %v1547_v8 }
  0xae   :  { %v193_v9 = vpop.f32.mrf.mxu0 }
  0xaf   :  { %v1551_v10 = vadd.f32 %v1151_v6, %v193_v9 }
  0xb1   :  { %228 = vrot.lane.b32.xlu0 %v1551_v10, %s1416_s2  ;;  %330 = vrot.lane.b32.xlu1 %v1554_v11, %s1417_s0  ;;  %v1566_v16 = vmul.f32 0.5, %v1551_v10 }
  0xb9   :  { %360 = vrot.lane.b32.xlu1 %v1551_v10, %s1415_s1 }
 0x11b   :  { %v333_v12 = vpop.permute.xlu1 %332  ;;  %v200_v13 = vpop.permute.xlu0 %199 }
 0x11c   :  { %1091 = vmatpush.xpose.msk.msrb.mxu0 %vm201_vm1, %v200_v13  ;;  %1097 = vmatpush.xpose.msk.msra.mxu1 %vm201_vm1, %v333_v12 }
 0x11f   :  { %1092 = vmatmul.msk.f32.vlgmr.msrb.gmra.mxu0 %vm201_vm1, %v1554_v11 }
 0x120   :  { %1106 = vmatpush.msk.msra.mxu0 %vm468_vm3, %v160_v56 }
 0x123   :  { %v229_v14 = vpop.permute.xlu0 %228  ;;  %v331_v15 = vpop.permute.xlu1 %330 }
 0x124   :  { %1093 = vmatpush.xpose.msk.msra.mxu2 %vm201_vm1, %v229_v14  ;;  %1098 = vmatmul.msk.f32.vlgmr.msra.gmra.mxu1 %vm201_vm1, %v331_v15 }
 0x127   :  { %1094 = vmatmul.msk.f32.vlgmr.msra.gmra.mxu2 %vm201_vm1, %v1566_v16 }
 0x12b   :  { %v361_v17 = vpop.permute.xlu1 %360 }
 0x12c   :  { %1099 = vmatpush.xpose.msk.msrb.mxu2 %vm201_vm1, %v361_v17 }
 0x130   :  { %1103 = vmatpush.msk.msra.mxu2 %vm468_vm3, %v461_v57 }
 0x19c   :  { %v224_v18 = vpop.f32.mrf.mxu0 }
 0x19d   :  { %v256_v19 = vsel %vm255_vm2, %v224_v18, -inf }
 0x19e   :  { %257 = vmax.xlane.f32.xlu2 %v256_v19 }
 0x1a1   :  { %v355_v20 = vpop.f32.mrf.mxu1 }
 0x1a2   :  { %v386_v21 = vsel %vm255_vm2, %v355_v20, -inf }
 0x1a3   :  { %387 = vmax.xlane.f32.xlu0 %v386_v21 }
 0x1aa   :  { %v252_v22 = vpop.f32.mrf.mxu2 }
 0x1ab   :  { %v259_v23 = vsel %vm255_vm2, %v252_v22, -inf }
 0x1ac   :  { %260 = vmax.xlane.f32.xlu2 %v259_v23 }
 0x1b7   :  { %304 = vrot.lane.b32.xlu0 %v1551_v10, %s1418_s15 }
 0x1bf   :  { %358 = vrot.lane.b32.xlu0 %v1566_v16, %s1417_s0 }
 0x1c4   :  { %278 = vrot.lane.b32.xlu2 %v1547_v8, %s1418_s15 }
 0x1c7   :  { %527 = vrot.lane.b32.xlu0 %v1547_v8, %s1419_s16 }
 0x1cf   :  { %555 = vrot.lane.b32.xlu0 %v1551_v10, %s1419_s16 }
 0x211   :  { %v258_v24 = vpop.xlane.xlu2 %257 }
 0x212   :  { %v262_v25 = vsub.f32 %v224_v18, %v258_v24 }
 0x214   :  { %v264_v26 = vmul.f32 1.442695, %v262_v25 }
 0x216   :  { %1159 = vpow2.f32 %v264_v26  ;;  %v388_v27 = vpop.xlane.xlu0 %387 }
 0x217   :  { %v392_v28 = vsub.f32 %v355_v20, %v388_v27 }
 0x219   :  { %v394_v29 = vmul.f32 1.442695, %v392_v28 }
 0x21b   :  { %1161 = vpow2.f32 %v394_v29 }
 0x21c   :  { %v1160_v30 = vpop.eup %1159 }
 0x21d   :  { %v268_v31 = vsel %vm255_vm2, %v1160_v30, 0.0 }
 0x21e   :  { %269 = vadd.xlane.f32.xlu1 %v268_v31 }
 0x21f   :  { %v261_v32 = vpop.xlane.xlu2 %260 }
 0x220   :  { %v263_v33 = vsub.f32 %v252_v22, %v261_v32 }
 0x221   :  { %v1162_v34 = vpop.eup %1161 }
 0x222   :  { %v266_v35 = vmul.f32 1.442695, %v263_v33  ;;  %v398_v36 = vsel %vm255_vm2, %v1162_v34, 0.0 }
 0x223   :  { %399 = vadd.xlane.f32.xlu2 %v398_v36 }
 0x224   :  { %1163 = vpow2.f32 %v266_v35 }
 0x227   :  { %v279_v37 = vpop.permute.xlu2 %278 }
 0x228   :  { %299 = vmatpush.msra.mxu3 %v279_v37 }
 0x229   :  { %v305_v38 = vpop.permute.xlu0 %304 }
 0x22a   :  { %v1164_v39 = vpop.eup %1163  ;;  %325 = vmatpush.msrb.mxu3 %v305_v38 }
 0x22b   :  { %v271_v40 = vsel %vm255_vm2, %v1164_v39, 0.0 }
 0x22c   :  { %272 = vadd.xlane.f32.xlu2 %v271_v40 }
 0x231   :  { %v359_v41 = vpop.permute.xlu0 %358 }
 0x232   :  { %1100 = vmatmul.msk.f32.vlgmr.msrb.gmra.mxu2 %vm201_vm1, %v359_v41 }
 0x237   :  { %408 = vrot.lane.b32.xlu1 %v1547_v8, %s1420_s17 }
 0x239   :  { %v528_v50 = vpop.permute.xlu0 %527 }
 0x241   :  { %v556_v7 = vpop.permute.xlu0 %555 }
 0x244   :  { %525 = vrot.lane.b32.xlu2 %v1554_v11, %s1421_s18 }
 0x291   :  { %v270_v42 = vpop.xlane.xlu1 %269 }
 0x292   :  { %1165 = vrcp.f32 %v270_v42 }
 0x296   :  { %v400_v43 = vpop.xlane.xlu2 %399 }
 0x298   :  { %v1166_v44 = vpop.eup %1165 }
 0x299   :  { %v276_v45 = vmul.f32 %v1166_v44, %v1160_v30 }
 0x29b   :  { %1095 = vmatmul.msk.f32.vlgmr.msra.gmra.mxu3 %vm255_vm2, %v276_v45 }
 0x29f   :  { %v273_v46 = vpop.xlane.xlu2 %272 }
 0x2a0   :  { %1167 = vrcp.f32 %v273_v46 }
 0x2a1   :  { %1169 = vrcp.f32 %v400_v43 }
 0x2a6   :  { %v1168_v47 = vpop.eup %1167 }
 0x2a7   :  { %v277_v48 = vmul.f32 %v1168_v47, %v1164_v39  ;;  %v1170_v51 = vpop.eup %1169  ;;  %v526_v55 = vpop.permute.xlu2 %525 }
 0x2a8   :  { %v406_v52 = vmul.f32 %v1170_v51, %v1162_v34 }
 0x2a9   :  { %v409_v49 = vpop.permute.xlu1 %408  ;;  %1096 = vmatmul.msk.f32.vlgmr.msrb.gmra.mxu3 %vm255_vm2, %v277_v48 }
 0x2aa   :  { %429 = vmatpush.msra.mxu3 %v409_v49 }
 0x2ac   :  { %1109 = vmatpush.xpose.msk.msrb.mxu3 %vm201_vm1, %v528_v50 }
 0x2b1   :  { %1101 = vmatmul.msk.f32.vlgmr.msra.gmra.mxu3 %vm255_vm2, %v406_v52 }
 0x2b5   :  { %v383_v53 = vpop.f32.mrf.mxu2 }
 0x2b6   :  { %v389_v54 = vsel %vm255_vm2, %v383_v53, -inf }
 0x2b7   :  { %390 = vmax.xlane.f32.xlu1 %v389_v54 }
 0x2b9   :  { %1110 = vmatmul.msk.f32.vlgmr.msrb.gmra.mxu3 %vm201_vm1, %v526_v55 }
 0x2d0   :  { %434 = vrot.lane.b32.xlu1 %v1551_v10, %s1420_s17 }
 0x2d8   :  { %603 = vrot.lane.b32.xlu1 %v1547_v8, %s1422_s19 }
 0x2e0   :  { %719 = vrot.lane.b32.xlu1 %v1551_v10, %s1423_s5 }
 0x2e8   :  { %717 = vrot.lane.b32.xlu1 %v1566_v16, %s1424_s20 }
 0x31e   :  { %v301_v58 = vpop.f32.mrf.mxu3 }
 0x31f   :  { %1107 = vmatmul.msk.f32.vlgmr.msra.gmra.mxu0 %vm201_vm1, %v301_v58 }
 0x32a   :  { %v391_v59 = vpop.xlane.xlu1 %390 }
 0x32b   :  { %v393_v60 = vsub.f32 %v383_v53, %v391_v59 }
 0x32c   :  { %v327_v61 = vpop.f32.mrf.mxu3 }
 0x32d   :  { %v396_v62 = vmul.f32 1.442695, %v393_v60  ;;  %1108 = vmatmul.msk.f32.gmra.mxu0 %vm201_vm1, %v327_v61 }
 0x32f   :  { %1171 = vpow2.f32 %v396_v62 }
 0x334   :  { %v431_v63 = vpop.f32.mrf.mxu3 }
 0x335   :  { %v1172_v0 = vpop.eup %1171  ;;  %1104 = vmatmul.msk.f32.vlgmr.msra.gmra.mxu2 %vm201_vm1, %v431_v63 }
 0x336   :  { %v401_v1 = vsel %vm255_vm2, %v1172_v0, 0.0 }
 0x337   :  { %402 = vadd.xlane.f32.xlu2 %v401_v1 }
 0x33c   :  { %v550_v2 = vpop.f32.mrf.mxu3 }
 0x33d   :  { %v581_v3 = vsel %vm255_vm2, %v550_v2, -inf }
 0x33e   :  { %582 = vmax.xlane.f32.xlu0 %v581_v3 }
 0x342   :  { %v435_v6 = vpop.permute.xlu1 %434 }
 0x343   :  { %455 = vmatpush.msrb.mxu1 %v435_v6 }
 0x345   :  { %1111 = vmatpush.xpose.msk.msra.mxu1 %vm201_vm1, %v556_v7 }
 0x34a   :  { %v604_v9 = vpop.permute.xlu1 %603 }
 0x34b   :  { %624 = vmatpush.msra.mxu3 %v604_v9 }
 0x34f   :  { %553 = vrot.lane.b32.xlu2 %v1566_v16, %s1421_s18 }
 0x352   :  { %v720_v12 = vpop.permute.xlu1 %719  ;;  %691 = vrot.lane.b32.xlu0 %v1547_v8, %s1423_s5 }
 0x353   :  { %1120 = vmatpush.xpose.msk.msrb.mxu3 %vm201_vm1, %v720_v12 }
 0x35a   :  { %v718_v29 = vpop.permute.xlu1 %717 }
 0x39c   :  { %v519_v35 = vpop.f32.mrf.mxu0 }
 0x3aa   :  { %v403_v13 = vpop.xlane.xlu2 %402  ;;  %v1631_v37 = vpop.f32.mrf.mxu0 }
 0x3ab   :  { %1173 = vrcp.f32 %v403_v13  ;;  %v1152_v13 = vld [vmem:[#allocation4] ss:$0 sm:$0xff] }
 0x3b1   :  { %v1174_v14 = vpop.eup %1173  ;;  %v583_v15 = vpop.xlane.xlu0 %582 }
 0x3b2   :  { %v587_v17 = vsub.f32 %v550_v2, %v583_v15  ;;  %v407_v18 = vmul.f32 %v1174_v14, %v1172_v0  ;;  %v554_v20 = vpop.permute.xlu2 %553 }
 0x3b4   :  { %v589_v19 = vmul.f32 1.442695, %v587_v17  ;;  %1102 = vmatmul.msk.f32.vlgmr.msrb.gmra.mxu1 %vm255_vm2, %v407_v18 }
 0x3b6   :  { %1175 = vpow2.f32 %v589_v19 }
 0x3b8   :  { %v488_v3 = vpop.f32.mrf.mxu2 }
 0x3b9   :  { %v520_v9 = vadd.f32 %v519_v35, %v488_v3 }
 0x3bc   :  { %v1176_v21 = vpop.eup %1175  ;;  %1112 = vmatmul.msk.f32.vlgmr.msra.gmra.mxu1 %vm201_vm1, %v554_v20 }
 0x3bd   :  { %v593_v16 = vsel %vm255_vm2, %v1176_v21, 0.0 }
 0x3be   :  { %594 = vadd.xlane.f32.xlu0 %v593_v16 }
 0x3c4   :  { %v692_v22 = vpop.permute.xlu0 %691 }
 0x3c5   :  { %1118 = vmatpush.xpose.msk.msrb.mxu0 %vm201_vm1, %v692_v22 }
 0x3d2   :  { %689 = vrot.lane.b32.xlu0 %v1554_v11, %s1424_s20  ;;  %v161_v11 = vld [vmem:[%s1719_s3 + $0x8] sm:$0xff]  ;;  %s1425_s3 = smov 84  }
 0x3d3   :  { %1115 = vmatpush.msk.msrb.mxu2 %vm468_vm3, %v161_v11  ;;  %v819_v31 = vrot.slane %v161_v11, 4 }
 0x431   :  { %v595_v23 = vpop.xlane.xlu0 %594  ;;  %v457_v24 = vpop.f32.mrf.mxu1 }
 0x432   :  { %1177 = vrcp.f32 %v595_v23  ;;  %1105 = vmatmul.msk.f32.gmra.mxu2 %vm201_vm1, %v457_v24 }
 0x438   :  { %v1178_v25 = vpop.eup %1177 }
 0x439   :  { %v601_v26 = vmul.f32 %v1178_v25, %v1176_v21  ;;  %v578_v27 = vpop.f32.mrf.mxu1 }
 0x43a   :  { %v584_v28 = vsel %vm255_vm2, %v578_v27, -inf }
 0x43b   :  { %1113 = vmatmul.msk.f32.vlgmr.msra.gmra.mxu3 %vm255_vm2, %v601_v26  ;;  %585 = vmax.xlane.f32.xlu2 %v584_v28 }
 0x43c   :  { %1124 = vmatpush.msk.msra.mxu3 %vm468_vm3, %v819_v31 }
 0x443   :  { %1121 = vmatmul.msk.f32.vlgmr.msrb.gmra.mxu3 %vm201_vm1, %v718_v29 }
 0x444   :  { %v690_v30 = vpop.permute.xlu0 %689 }
 0x445   :  { %1119 = vmatmul.msk.f32.vlgmr.msrb.gmra.mxu0 %vm201_vm1, %v690_v30 }
 0x4ae   :  { %v586_v32 = vpop.xlane.xlu2 %585 }
 0x4af   :  { %v588_v33 = vsub.f32 %v578_v27, %v586_v32  ;;  %v1426_v27 = vmov 32.0  }
 0x4b1   :  { %v591_v34 = vmul.f32 1.442695, %v588_v33 }
 0x4b3   :  { %1179 = vpow2.f32 %v591_v34 }
 0x4b5   :  { %v491_v6 = vpop.f32.mrf.mxu2 }
 0x4b6   :  { %v523_v19 = vadd.f32 %v1631_v37, %v491_v6 }
 0x4b9   :  { %v1180_v36 = vpop.eup %1179 }
 0x4ba   :  { %v596_v38 = vsel %vm255_vm2, %v1180_v36, 0.0 }
 0x4bb   :  { %597 = vadd.xlane.f32.xlu2 %v596_v38 }
 0x4be   :  { %v626_v39 = vpop.f32.mrf.mxu3 }
 0x4bf   :  { %1116 = vmatmul.msk.f32.vlgmr.msrb.gmra.mxu2 %vm201_vm1, %v626_v39 }
 0x4c2   :  { %v714_v40 = vpop.f32.mrf.mxu0 }
 0x4c3   :  { %v745_v41 = vsel %vm255_vm2, %v714_v40, -inf }
 0x4c4   :  { %746 = vmax.xlane.f32.xlu0 %v745_v41  ;;  %v926_v41 = vld [vmem:[%s1723_s7 + $0x18] sm:$0xff] }
 0x4c6   :  { %v742_v42 = vpop.f32.mrf.mxu3 }
 0x4c7   :  { %v748_v43 = vsel %vm255_vm2, %v742_v42, -inf }
 0x4c8   :  { %749 = vmax.xlane.f32.xlu1 %v748_v43  ;;  %v924_v43 = vld [vmem:[%s1723_s7 + $0x8] sm:$0xff] }
 0x4e1   :  { %629 = vrot.lane.b32.xlu1 %v1551_v10, %s1422_s19 }
 0x52e   :  { %v598_v53 = vpop.xlane.xlu2 %597 }
 0x537   :  { %v747_v44 = vpop.xlane.xlu0 %746 }
 0x538   :  { %v751_v45 = vsub.f32 %v714_v40, %v747_v44  ;;  %v923_v44 = vld [vmem:[%s1723_s7] sm:$0xff] }
 0x53a   :  { %v753_v46 = vmul.f32 1.442695, %v751_v45 }
 0x53b   :  { %v750_v47 = vpop.xlane.xlu1 %749 }
 0x53c   :  { %1181 = vpow2.f32 %v753_v46  ;;  %v752_v48 = vsub.f32 %v742_v42, %v750_v47  ;;  %v925_v42 = vld [vmem:[%s1723_s7 + $0x10] sm:$0xff] }
 0x53e   :  { %v755_v49 = vmul.f32 1.442695, %v752_v48 }
 0x540   :  { %1183 = vpow2.f32 %v755_v49 }
 0x541   :  { %1185 = vrcp.f32 %v598_v53 }
 0x542   :  { %v1182_v50 = vpop.eup %1181  ;;  %v681_v7 = vpop.f32.mrf.mxu2 }
 0x543   :  { %v757_v51 = vsel %vm255_vm2, %v1182_v50, 0.0  ;;  %v687_v12 = vadd.f32 %v681_v7, %v520_v9 }
 0x544   :  { %758 = vadd.xlane.f32.xlu0 %v757_v51 }
 0x546   :  { %v1184_v52 = vpop.eup %1183 }
 0x547   :  { %v760_v54 = vsel %vm255_vm2, %v1184_v52, 0.0  ;;  %v1186_v55 = vpop.eup %1185 }
 0x548   :  { %761 = vadd.xlane.f32.xlu2 %v760_v54  ;;  %v602_v56 = vmul.f32 %v1186_v55, %v1180_v36 }
 0x553   :  { %v630_v57 = vpop.permute.xlu1 %629 }
 0x554   :  { %650 = vmatpush.msrb.mxu1 %v630_v57 }
 0x555   :  { %1114 = vmatmul.msk.f32.vlgmr.msrb.gmra.mxu1 %vm255_vm2, %v602_v56 }
 0x558   :  { %767 = vrot.lane.b32.xlu0 %v1547_v8, %s1425_s3 }
 0x560   :  { %793 = vrot.lane.b32.xlu2 %v1551_v10, %s1425_s3 }
 0x5b7   :  { %v759_v59 = vpop.xlane.xlu0 %758 }
 0x5bb   :  { %v762_v58 = vpop.xlane.xlu2 %761 }
 0x5bc   :  { %1187 = vrcp.f32 %v762_v58 }
 0x5bd   :  { %1189 = vrcp.f32 %v759_v59  ;;  %v1153_v59 = vld [vmem:[#allocation6] ss:$0 sm:$0xff] }
 0x5be   :  { %1191 = vrcp.f32 %v1426_v27 }
 0x5c2   :  { %v1188_v60 = vpop.eup %1187 }
 0x5c3   :  { %v766_v61 = vmul.f32 %v1188_v60, %v1184_v52  ;;  %v794_v62 = vpop.permute.xlu2 %793  ;;  %v1190_v63 = vpop.eup %1189 }
 0x5c4   :  { %814 = vmatpush.msra.mxu0 %v794_v62  ;;  %v765_v0 = vmul.f32 %v1190_v63, %v1182_v50  ;;  %v1192_v28 = vpop.eup %1191  ;;  %v1154_v63 = vld [vmem:[#allocation7] ss:$0 sm:$0xff] }
 0x5c5   :  { %1123 = vmatmul.msk.f32.vlgmr.msra.gmra.mxu0 %vm255_vm2, %v766_v61  ;;  %v869_v29 = vmul.f32 32.0, %v1192_v28  ;;  %vm873_vm4 = vweird.f32 %v1192_v28 }
 0x5c7   :  { %v870_v30 = vsub.f32 1.0, %v869_v29 }
 0x5c9   :  { %v871_v11 = vmul.f32 %v1192_v28, %v870_v30 }
 0x5ca   :  { %v768_v1 = vpop.permute.xlu0 %767 }
 0x5cb   :  { %788 = vmatpush.msra.mxu1 %v768_v1  ;;  %v872_v31 = vadd.f32 %v1192_v28, %v871_v11 }
 0x5cc   :  { %1122 = vmatmul.msk.f32.vlgmr.msra.gmra.mxu1 %vm255_vm2, %v765_v0 }
 0x5cd   :  { %958 = vmatpush.msrb.mxu1 %v926_v41  ;;  %v1156_v41 = vld [vmem:[#allocation10] ss:$0 sm:$0xff] }
 0x5cf   :  { %959 = vmatpush.msrb.mxu1 %v925_v42 }
 0x5d1   :  { %960 = vmatpush.msrb.mxu1 %v924_v43 }
 0x5d2   :  { %v652_v2 = vpop.f32.mrf.mxu1 }
 0x5d3   :  { %1117 = vmatmul.msk.f32.gmra.mxu2 %vm201_vm1, %v652_v2  ;;  %961 = vmatpush.msrb.mxu1 %v923_v44 }
 0x642   :  { %v816_v10 = vpop.f32.mrf.mxu0 }
 0x649   :  { %v790_v8 = vpop.f32.mrf.mxu1 }
 0x64a   :  { %1125 = vmatmul.msk.f32.vlgmr.msra.gmra.mxu3 %vm201_vm1, %v790_v8 }
 0x652   :  { %1126 = vmatmul.msk.f32.gmra.mxu3 %vm201_vm1, %v816_v10 }
 0x656   :  { %v684_v18 = vpop.f32.mrf.mxu2 }
 0x657   :  { %v688_v21 = vadd.f32 %v684_v18, %v523_v19  ;;  %v930_v18 = vld [vmem:[%s1725_s9 + $0x10] sm:$0xff]  ;;  %v929_v19 = vld [vmem:[%s1725_s9 + $0x8] sm:$0xff] }
 0x6cd   :  { %v845_v14 = vpop.f32.mrf.mxu3 }
 0x6ce   :  { %v851_v15 = vadd.f32 %v845_v14, %v687_v12  ;;  %v935_v12 = vld [vmem:[%s1725_s9 + $0x38] sm:$0xff]  ;;  %v933_v14 = vld [vmem:[%s1725_s9 + $0x28] sm:$0xff] }
 0x6cf   :  { %1005 = vmatpush.msra.mxu2 %v935_v12 }
 0x6d0   :  { %v856_v17 = vadd.f32 %v1152_v13, %v851_v15  ;;  %v932_v15 = vld [vmem:[%s1725_s9 + $0x20] sm:$0xff] }
 0x6d2   :  { %v858_v20 = vadd.f32 %v856_v17, %v1536_v4  ;;  %v1654_v4 = vsel %vm873_vm4, %v1192_v28, %v872_v31  ;;  %v931_v17 = vld [vmem:[%s1725_s9 + $0x18] sm:$0xff] }
 0x6d4   :  { %v862_v16 = vsel %vm166_vm0, %v858_v20, 0.0 }
 0x6d5   :  { %863 = vadd.xlane.f32.xlu1 %v862_v16  ;;  %v848_v22 = vpop.f32.mrf.mxu3 }
 0x6d6   :  { %v852_v23 = vadd.f32 %v848_v22, %v688_v21  ;;  %v1155_v21 = vld [vmem:[#allocation9] ss:$0 sm:$0xff] }
 0x6d8   :  { %v857_v24 = vadd.f32 %v1152_v13, %v852_v23  ;;  %v934_v13 = vld [vmem:[%s1725_s9 + $0x30] sm:$0xff] }
 0x6d9   :  { %1006 = vmatpush.msra.mxu2 %v934_v13  ;;  %v1157_v13 = vld [vmem:[#allocation12] ss:$0 sm:$0xff] }
 0x6da   :  { %v859_v25 = vadd.f32 %v857_v24, %v1543_v5 }
 0x6db   :  { %1007 = vmatpush.msra.mxu2 %v933_v14 }
 0x6dc   :  { %v865_v26 = vsel %vm166_vm0, %v859_v25, 0.0 }
 0x6dd   :  { %866 = vadd.xlane.f32.xlu0 %v865_v26  ;;  %1008 = vmatpush.msra.mxu2 %v932_v15 }
 0x6df   :  { %1009 = vmatpush.msra.mxu2 %v931_v17  ;;  %v1158_v17 = vld [vmem:[#allocation13] ss:$0 sm:$0xff] }
 0x6e1   :  { %1010 = vmatpush.msra.mxu2 %v930_v18 }
 0x6e3   :  { %1011 = vmatpush.msra.mxu2 %v929_v19 }
 0x748   :  { %v864_v32 = vpop.xlane.xlu1 %863 }
 0x749   :  { %v875_v33 = vmul.f32 %v1654_v4, %v864_v32 }
 0x74b   :  { %v877_v34 = vsub.f32 %v858_v20, %v875_v33  ;;  %v928_v20 = vld [vmem:[%s1725_s9] sm:$0xff] }
 0x74c   :  { %1012 = vmatpush.msra.mxu2 %v928_v20 }
 0x74d   :  { %v879_v35 = vmul.f32 %v877_v34, %v877_v34 }
 0x74f   :  { %v881_v5 = vsel %vm166_vm0, %v879_v35, 0.0 }
 0x750   :  { %882 = vadd.xlane.f32.xlu2 %v881_v5  ;;  %v867_v36 = vpop.xlane.xlu0 %866 }
 0x751   :  { %v876_v37 = vmul.f32 %v1654_v4, %v867_v36 }
 0x753   :  { %v878_v38 = vsub.f32 %v859_v25, %v876_v37 }
 0x755   :  { %v880_v39 = vmul.f32 %v878_v38, %v878_v38 }
 0x757   :  { %v884_v40 = vsel %vm166_vm0, %v880_v39, 0.0 }
 0x758   :  { %885 = vadd.xlane.f32.xlu1 %v884_v40 }
 0x7c3   :  { %v883_v45 = vpop.xlane.xlu2 %882 }
 0x7c4   :  { %v887_v46 = vmul.f32 %v883_v45, %v1654_v4 }
 0x7c6   :  { %v889_v47 = vadd.f32 1e-05, %v887_v46 }
 0x7c8   :  { %1193 = vrsqrt.f32 %v889_v47  ;;  %vm897_vm6 = vweird.f32 %v889_v47 }
 0x7cb   :  { %v886_v48 = vpop.xlane.xlu1 %885 }
 0x7cc   :  { %v888_v49 = vmul.f32 %v886_v48, %v1654_v4 }
 0x7ce   :  { %v1194_v50 = vpop.eup %1193  ;;  %v890_v51 = vadd.f32 1e-05, %v888_v49 }
 0x7cf   :  { %v892_v52 = vmul.f32 %v1194_v50, %v889_v47  ;;  %vm898_vm5 = vweird.f32 %v1194_v50 }
 0x7d0   :  { %1195 = vrsqrt.f32 %v890_v51  ;;  %vm899_vm7 = vmor %vm897_vm6, %vm898_vm5  ;;  %vm907_vm9 = vweird.f32 %v890_v51 }
 0x7d1   :  { %v893_v53 = vmul.f32 %v1194_v50, %v892_v52 }
 0x7d3   :  { %v894_v54 = vmul.f32 0.5, %v893_v53 }
 0x7d5   :  { %v895_v55 = vsub.f32 1.5, %v894_v54 }
 0x7d6   :  { %v1196_v56 = vpop.eup %1195 }
 0x7d7   :  { %v896_v57 = vmul.f32 %v1194_v50, %v895_v55  ;;  %v902_v58 = vmul.f32 %v1196_v56, %v890_v51  ;;  %vm908_vm8 = vweird.f32 %v1196_v56 }
 0x7d8   :  { %vm909_vm10 = vmor %vm907_vm9, %vm908_vm8 }
 0x7d9   :  { %v900_v60 = vsel %vm899_vm7, %v1194_v50, %v896_v57  ;;  %v903_v61 = vmul.f32 %v1196_v56, %v902_v58 }
 0x7da   :  { %v911_v62 = vmul.f32 %v900_v60, %v877_v34 }
 0x7db   :  { %v904_v0 = vmul.f32 0.5, %v903_v61 }
 0x7dc   :  { %v916_v1 = vmul.f32 %v1153_v59, %v911_v62 }
 0x7dd   :  { %v905_v2 = vsub.f32 1.5, %v904_v0 }
 0x7de   :  { %v921_v8 = vadd.f32 %v1154_v63, %v916_v1 }
 0x7df   :  { %v906_v10 = vmul.f32 %v1196_v56, %v905_v2 }
 0x7e0   :  { %1127 = vmatmul.msk.f32.vlgmr.msrb.gmra.mxu1 %vm166_vm0, %v921_v8 }
 0x7e1   :  { %v910_v3 = vsel %vm909_vm10, %v1196_v56, %v906_v10 }
 0x7e2   :  { %v912_v6 = vmul.f32 %v910_v3, %v878_v38 }
 0x7e4   :  { %v917_v7 = vmul.f32 %v1153_v59, %v912_v6 }
 0x7e6   :  { %v922_v9 = vadd.f32 %v1154_v63, %v917_v7 }
 0x7e8   :  { %1128 = vmatmul.msk.f32.gmra.mxu1 %vm166_vm0, %v922_v9 }
 0x85d   :  { %v963_v16 = vpop.f32.mrf.mxu1 }
 0x85e   :  { %v964_v22 = vadd.f32 %v1155_v21, %v963_v16 }
 0x860   :  { %v969_v23 = vmul.f32 %v964_v22, %v964_v22 }
 0x862   :  { %v971_v24 = vmul.f32 %v969_v23, %v964_v22 }
 0x864   :  { %v973_v25 = vmul.f32 0.044715, %v971_v24 }
 0x865   :  { %v966_v26 = vpop.f32.mrf.mxu1 }
 0x866   :  { %v975_v27 = vadd.f32 %v973_v25, %v964_v22  ;;  %v967_v28 = vadd.f32 %v1155_v21, %v966_v26 }
 0x868   :  { %v977_v29 = vmul.f32 0.7978846, %v975_v27  ;;  %v970_v30 = vmul.f32 %v967_v28, %v967_v28 }
 0x86a   :  { %1197 = vtanh.f32 %v977_v29  ;;  %v972_v11 = vmul.f32 %v970_v30, %v967_v28 }
 0x86c   :  { %v974_v31 = vmul.f32 0.044715, %v972_v11 }
 0x86e   :  { %v976_v32 = vadd.f32 %v974_v31, %v967_v28 }
 0x870   :  { %v1198_v33 = vpop.eup %1197  ;;  %v978_v34 = vmul.f32 0.7978846, %v976_v32 }
 0x871   :  { %v981_v35 = vadd.f32 1.0, %v1198_v33 }
 0x872   :  { %1199 = vtanh.f32 %v978_v34 }
 0x873   :  { %v983_v5 = vmul.f32 0.5, %v981_v35 }
 0x875   :  { %v985_v36 = vmul.f32 %v983_v5, %v964_v22 }
 0x877   :  { %1129 = vmatmul.msk.f32.vlgmr.msra.gmra.mxu2 %vm990_vm11, %v985_v36 }
 0x878   :  { %v1200_v37 = vpop.eup %1199 }
 0x879   :  { %v982_v38 = vadd.f32 1.0, %v1200_v37 }
 0x87b   :  { %v984_v39 = vmul.f32 0.5, %v982_v38 }
 0x87d   :  { %v986_v40 = vmul.f32 %v984_v39, %v967_v28 }
 0x87f   :  { %1130 = vmatmul.msk.f32.gmra.mxu2 %vm990_vm11, %v986_v40 }
 0x8fa   :  { %v1014_v42 = vpop.f32.mrf.mxu2 }
 0x8fb   :  { %v1015_v43 = vadd.f32 %v1156_v41, %v1014_v42 }
 0x8fd   :  { %v1020_v44 = vadd.f32 %v1015_v43, %v921_v8 }
 0x8ff   :  { %v1024_v45 = vsel %vm166_vm0, %v1020_v44, 0.0 }
 0x900   :  { %1025 = vadd.xlane.f32.xlu0 %v1024_v45 }
 0x902   :  { %v1017_v46 = vpop.f32.mrf.mxu2 }
 0x903   :  { %v1018_v47 = vadd.f32 %v1156_v41, %v1017_v46 }
 0x905   :  { %v1021_v48 = vadd.f32 %v1018_v47, %v922_v9 }
 0x907   :  { %v1027_v49 = vsel %vm166_vm0, %v1021_v48, 0.0 }
 0x908   :  { %1028 = vadd.xlane.f32.xlu1 %v1027_v49 }
 0x973   :  { %v1026_v50 = vpop.xlane.xlu0 %1025 }
 0x974   :  { %v1030_v51 = vmul.f32 %v1026_v50, %v1654_v4 }
 0x976   :  { %v1032_v52 = vsub.f32 %v1020_v44, %v1030_v51 }
 0x978   :  { %v1034_v53 = vmul.f32 %v1032_v52, %v1032_v52 }
 0x97a   :  { %v1036_v54 = vsel %vm166_vm0, %v1034_v53, 0.0 }
 0x97b   :  { %v1029_v55 = vpop.xlane.xlu1 %1028  ;;  %1037 = vadd.xlane.f32.xlu0 %v1036_v54 }
 0x97c   :  { %v1031_v56 = vmul.f32 %v1029_v55, %v1654_v4 }
 0x97e   :  { %v1033_v57 = vsub.f32 %v1021_v48, %v1031_v56 }
 0x980   :  { %v1035_v58 = vmul.f32 %v1033_v57, %v1033_v57 }
 0x982   :  { %v1039_v59 = vsel %vm166_vm0, %v1035_v58, 0.0 }
 0x983   :  { %1040 = vadd.xlane.f32.xlu2 %v1039_v59 }
 0x9ee   :  { %v1038_v60 = vpop.xlane.xlu0 %1037 }
 0x9ef   :  { %v1042_v61 = vmul.f32 %v1038_v60, %v1654_v4 }
 0x9f1   :  { %v1044_v62 = vadd.f32 1e-05, %v1042_v61 }
 0x9f3   :  { %1201 = vrsqrt.f32 %v1044_v62  ;;  %vm1052_vm13 = vweird.f32 %v1044_v62 }
 0x9f6   :  { %v1041_v63 = vpop.xlane.xlu2 %1040 }
 0x9f7   :  { %v1043_v0 = vmul.f32 %v1041_v63, %v1654_v4 }
 0x9f9   :  { %v1202_v1 = vpop.eup %1201  ;;  %v1045_v2 = vadd.f32 1e-05, %v1043_v0 }
 0x9fa   :  { %v1047_v8 = vmul.f32 %v1202_v1, %v1044_v62  ;;  %vm1053_vm12 = vweird.f32 %v1202_v1 }
 0x9fb   :  { %1203 = vrsqrt.f32 %v1045_v2  ;;  %vm1054_vm14 = vmor %vm1052_vm13, %vm1053_vm12  ;;  %vm1062_vm1 = vweird.f32 %v1045_v2 }
 0x9fc   :  { %v1048_v10 = vmul.f32 %v1202_v1, %v1047_v8 }
 0x9fe   :  { %v1049_v3 = vmul.f32 0.5, %v1048_v10 }
 0xa00   :  { %v1050_v6 = vsub.f32 1.5, %v1049_v3 }
 0xa01   :  { %v1204_v7 = vpop.eup %1203 }
 0xa02   :  { %v1051_v9 = vmul.f32 %v1202_v1, %v1050_v6  ;;  %v1057_v12 = vmul.f32 %v1204_v7, %v1045_v2  ;;  %vm1063_vm15 = vweird.f32 %v1204_v7 }
 0xa03   :  { %vm1064_vm2 = vmor %vm1062_vm1, %vm1063_vm15 }
 0xa04   :  { %v1055_v14 = vsel %vm1054_vm14, %v1202_v1, %v1051_v9  ;;  %v1058_v15 = vmul.f32 %v1204_v7, %v1057_v12 }
 0xa05   :  { %v1066_v18 = vmul.f32 %v1055_v14, %v1032_v52 }
 0xa06   :  { %v1059_v19 = vmul.f32 0.5, %v1058_v15 }
 0xa07   :  { %v1071_v4 = vmul.f32 %v1157_v13, %v1066_v18 }
 0xa08   :  { %v1060_v20 = vsub.f32 1.5, %v1059_v19 }
 0xa09   :  { %v1076_v21 = vadd.f32 %v1158_v17, %v1071_v4 }
 0xa0a   :  { %v1061_v16 = vmul.f32 %v1204_v7, %v1060_v20 }
 0xa0b   :  { %1078 = vst.msk [vmem:[%s1729_s13] sm:$0xff] %vm166_vm0, %v1076_v21 }
 0xa0c   :  { %v1065_v22 = vsel %vm1064_vm2, %v1204_v7, %v1061_v16 }
 0xa0d   :  { %v1067_v23 = vmul.f32 %v1065_v22, %v1033_v57 }
 0xa0f   :  { %v1072_v24 = vmul.f32 %v1157_v13, %v1067_v23 }
 0xa11   :  { %v1077_v25 = vadd.f32 %v1158_v17, %v1072_v24 }
 0xa13   :  { %1079 = vst.msk [vmem:[%s1729_s13 + $0x8] sm:$0xff] %vm166_vm0, %v1077_v25 }
 0xa14   :  { %1084 = vsyncpa [#allocation3], 1 }
 0xa15   :  { %1085 = vsyncpa [#allocation5], 1 }
 0xa16   :  { %1086 = vsyncpa [#allocation8], 1 }
 0xa17   :  { %1087 = vsyncpa [#allocation11], 1 }
 0xa18   :  { %1088 = vsyncpa [#allocation14], 1 }

// kernel: transformer_forward.11
= control target key start
LH: loop header
LB: loop body
LE: loop exit
PB: predicated region body
PF: predicated region fallthrough
CT: control target
= control target key end

     0   :  { %11 = vsyncpa [#allocation3], 0  ;;  %s260_s24 = smov [#allocation2]   ;;  %s353_s0 = inlined_call_operand.vmem [shape: f32[2,12,4], index: 0, kind: input, shape index: {}]   ;;  %s354_s1 = inlined_call_operand.vmem [shape: f32[2,12,4], index: 1, kind: input, shape index: {}]   ;;  %s355_s2 = inlined_call_operand.vmem [shape: f32[4,32], index: 2, kind: input, shape index: {}]   ;;  %s356_s3 = inlined_call_operand.vmem [shape: f32[1,32], index: 3, kind: input, shape index: {}]   ;;  %s357_s4 = inlined_call_operand.hbm [shape: f32[4,32], index: 4, kind: input, shape index: {}]   ;;  %s358_s5 = inlined_call_operand.vmem [shape: f32[12,32], index: 5, kind: input, shape index: {}]   ;;  %s359_s6 = inlined_call_operand.vmem [shape: f32[2,12,32], index: 6, kind: output, shape index: {}]  }
   0x1   :  { %s25_s23 = sshll.u32 %s357_s4, 4  ;;  %s27_s25 = sshll.u32 %s260_s24, 4  ;;  %s26_s23 = int_to_ptr.hbm [resolvable:$true] %s25_s23  ;;  %s28_s25 = int_to_ptr.vmem [resolvable:$true] %s27_s25 }
   0x2   :  { %30 = dma.hbm_to_vmem [thread:$0]  %s26_s23, 64, %s28_s25, [#allocation3]  }
   0x3   :  { %258 = dma.done.wait [#allocation3], 64  }
   0x4   :  { %259 = vsyncadd [#allocation3], 4294967232  ;;  %vm83_vm0 = vcmask 1043456   ;;  %v57_v0 = vld [vmem:[%s355_s2] sm:$0xf]  ;;  %v39_v2 = vld [vmem:[%s353_s0 + $0x10] sm:$0xff] }
   0x5   :  { %v38_v1 = vld [vmem:[%s353_s0 + $0x8] sm:$0xf]  ;;  %230 = vmatpush.msk.msra.mxu2 %vm83_vm0, %v57_v0  ;;  %v46_v3 = vrot.slane %v39_v2, 4  ;;  %222 = vmatpush.msk.msra.mxu0 %vm83_vm0, %v57_v0  ;;  %68 = vst [vmem:[#allocation1 + $0x11] ss:$2 sm:$0xff] %v39_v2  ;;  %v37_v5 = vld [vmem:[%s353_s0] sm:$0xff] }
   0x6   :  { %66 = vst [vmem:[#allocation1 + $0x10] ss:$2 sm:$0xff] %v38_v1  ;;  %v113_v4 = vld [vmem:[#allocation2] sm:$0xf]  ;;  %v40_v6 = vld [vmem:[%s353_s0 + $0x18] sm:$0xf] }
   0x7   :  { %70 = vst [vmem:[#allocation1 + $0x20] ss:$2 sm:$0xff] %v46_v3  ;;  %231 = vmatpush.msk.msra.mxu3 %vm83_vm0, %v113_v4  ;;  %226 = vmatpush.msk.msra.mxu1 %vm83_vm0, %v113_v4  ;;  %v45_v7 = vrot.slane %v37_v5, 4  ;;  %v48_v8 = vld [vmem:[%s354_s1 + $0x8] sm:$0xf]  ;;  %v49_v9 = vld [vmem:[%s354_s1 + $0x10] sm:$0xff] }
   0x8   :  { %72 = vst [vmem:[#allocation1 + $0x21] ss:$2 sm:$0xff] %v40_v6  ;;  %vm76_vm1 = vcmask 31744   ;;  %v56_v10 = vrot.slane %v49_v9, 4  ;;  %v47_v11 = vld [vmem:[%s354_s1] sm:$0xff]  ;;  %vm211_vm2 = vcmask 261120  }
   0x9   :  { %62 = vst [vmem:[#allocation1] ss:$2 sm:$0xff] %v37_v5  ;;  %v50_v13 = vld [vmem:[%s354_s1 + $0x18] sm:$0xf]  ;;  %v55_v15 = vrot.slane %v47_v11, 4  ;;  %v175_v25 = vld [vmem:[%s358_s5] sm:$0xff] }
   0xa   :  { %64 = vst [vmem:[#allocation1 + $0x1] ss:$2 sm:$0xff] %v45_v7  ;;  %v233_v22 = vld [vmem:[%s356_s3] ss:$0 sm:$0xff]  ;;  %v178_v28 = vrot.slane %v175_v25, 4  ;;  %vm213_vm3 = vcmask 257024  }
   0xb   :  { %v176_v30 = vld [vmem:[%s358_s5 + $0x8] sm:$0xf] }
   0xd   :  { %v74_v12 = vld.sshfl [vmem:[#allocation1 + $0x10] sm:$0xff pattern:$0x75316420] }
   0xe   :  { %224 = vmatmul.msk.f32.vlgmr.msra.gmra.mxu2 %vm76_vm1, %v74_v12  ;;  %118 = vst [vmem:[#allocation1 + $0x10] ss:$2 sm:$0xff] %v48_v8 }
   0xf   :  { %120 = vst [vmem:[#allocation1 + $0x11] ss:$2 sm:$0xff] %v49_v9  ;;  %v75_v14 = vld.sshfl [vmem:[#allocation1 + $0x20] sm:$0xff pattern:$0x75316420] }
  0x10   :  { %122 = vst [vmem:[#allocation1 + $0x20] ss:$2 sm:$0xff] %v56_v10 }
  0x11   :  { %124 = vst [vmem:[#allocation1 + $0x21] ss:$2 sm:$0xff] %v50_v13  ;;  %v73_v16 = vld.sshfl [vmem:[#allocation1] sm:$0xff pattern:$0x75316420] }
  0x12   :  { %223 = vmatmul.msk.f32.vlgmr.msra.gmra.mxu0 %vm76_vm1, %v73_v16  ;;  %114 = vst [vmem:[#allocation1] ss:$2 sm:$0xff] %v47_v11 }
  0x13   :  { %116 = vst [vmem:[#allocation1 + $0x1] ss:$2 sm:$0xff] %v55_v15 }
  0x16   :  { %v126_v17 = vld.sshfl [vmem:[#allocation1 + $0x10] sm:$0xff pattern:$0x75316420]  ;;  %225 = vmatmul.msk.f32.gmra.mxu2 %vm76_vm1, %v75_v14 }
  0x17   :  { %228 = vmatmul.msk.f32.vlgmr.msra.gmra.mxu3 %vm76_vm1, %v126_v17 }
  0x18   :  { %v127_v19 = vld.sshfl [vmem:[#allocation1 + $0x20] sm:$0xff pattern:$0x75316420] }
  0x1a   :  { %v125_v18 = vld.sshfl [vmem:[#allocation1] sm:$0xff pattern:$0x75316420] }
  0x1b   :  { %227 = vmatmul.msk.f32.vlgmr.msra.gmra.mxu1 %vm76_vm1, %v125_v18 }
  0x1f   :  { %229 = vmatmul.msk.f32.gmra.mxu3 %vm76_vm1, %v127_v19 }
  0x8f   :  { %v104_v21 = vpop.f32.mrf.mxu0 }
  0x90   :  { %v105_v23 = vadd.f32 %v233_v22, %v104_v21 }
  0x91   :  { %v107_v20 = vpop.f32.mrf.mxu2 }
  0x92   :  { %v108_v24 = vadd.f32 %v233_v22, %v107_v20 }
  0x98   :  { %v154_v26 = vpop.f32.mrf.mxu1 }
  0x99   :  { %v163_v27 = vadd.f32 %v154_v26, %v105_v23  ;;  %v110_v34 = vpop.f32.mrf.mxu2 }
  0x9a   :  { %v157_v29 = vpop.f32.mrf.mxu3  ;;  %v111_v39 = vadd.f32 %v233_v22, %v110_v34 }
  0x9b   :  { %v164_v31 = vadd.f32 %v157_v29, %v108_v24  ;;  %v169_v32 = vrot.slane %v163_v27, 4  ;;  %v180_v33 = vadd.f32 %v175_v25, %v163_v27 }
  0x9d   :  { %v170_v35 = vrot.slane %v164_v31, 4  ;;  %v182_v36 = vadd.f32 %v176_v30, %v164_v31  ;;  %v181_v37 = vadd.f32 %v178_v28, %v169_v32  ;;  %192 = vst [vmem:[#allocation1] ss:$2 sm:$0xff] %v180_v33 }
  0x9f   :  { %v183_v38 = vadd.f32 %v175_v25, %v170_v35  ;;  %196 = vst [vmem:[#allocation1 + $0x10] ss:$2 sm:$0xff] %v182_v36 }
  0xa0   :  { %194 = vst [vmem:[#allocation1 + $0x1] ss:$2 sm:$0xff] %v181_v37 }
  0xa1   :  { %200 = vst [vmem:[#allocation1 + $0x20] ss:$2 sm:$0xff] %v183_v38 }
  0xa2   :  { %v160_v40 = vpop.f32.mrf.mxu3 }
  0xa3   :  { %v165_v41 = vadd.f32 %v160_v40, %v111_v39 }
  0xa5   :  { %v171_v42 = vrot.slane %v165_v41, 4  ;;  %v184_v43 = vadd.f32 %v178_v28, %v165_v41 }
  0xa6   :  { %v198_v44 = vld.sshfl [vmem:[#allocation1 + $0x10] sm:$0xff pattern:$0x75316420] }
  0xa7   :  { %v197_v45 = vld.sshfl [vmem:[#allocation1] sm:$0xff pattern:$0x75316420]  ;;  %v185_v46 = vadd.f32 %v176_v30, %v171_v42  ;;  %202 = vst [vmem:[#allocation1 + $0x21] ss:$2 sm:$0xff] %v184_v43 }
  0xa8   :  { %212 = vst.msk [vmem:[%s359_s6] sm:$0xff] %vm211_vm2, %v197_v45 }
  0xa9   :  { %204 = vst [vmem:[#allocation1 + $0x30] ss:$2 sm:$0xff] %v185_v46 }
  0xaa   :  { %214 = vst.msk [vmem:[%s359_s6 + $0x8] sm:$0xf] %vm213_vm3, %v198_v44 }
  0xae   :  { %v205_v47 = vld.sshfl [vmem:[#allocation1 + $0x20] sm:$0xff pattern:$0x75316420] }
  0xaf   :  { %215 = vst.msk [vmem:[%s359_s6 + $0x10] sm:$0xff] %vm211_vm2, %v205_v47 }
  0xb0   :  { %v206_v48 = vld.sshfl [vmem:[#allocation1 + $0x30] sm:$0xff pattern:$0x75316420] }
  0xb1   :  { %216 = vst.msk [vmem:[%s359_s6 + $0x18] sm:$0xf] %vm213_vm3, %v206_v48 }
  0xb2   :  { %221 = vsyncpa [#allocation3], 1 }

// kernel: transformer_forward.13
= control target key start
LH: loop header
LB: loop body
LE: loop exit
PB: predicated region body
PF: predicated region fallthrough
CT: control target
= control target key end

     0   :  { %vm51_vm0 = vcmask 261120   ;;  %v365_v12 = vmov 32.0   ;;  %v366_v18 = vmov 839922192   ;;  %v367_v20 = vmov 1985246804   ;;  %s506_s0 = inlined_call_operand.vmem [shape: f32[2,12,32], index: 0, kind: input, shape index: {}]   ;;  %s507_s1 = inlined_call_operand.vmem [shape: f32[1,32], index: 1, kind: input, shape index: {}]   ;;  %s508_s2 = inlined_call_operand.vmem [shape: f32[1,32], index: 2, kind: input, shape index: {}]   ;;  %s509_s4 = inlined_call_operand.vmem [shape: f32[1,4], index: 4, kind: input, shape index: {}]   ;;  %s510_s3 = inlined_call_operand.vmem [shape: f32[32,4], index: 3, kind: input, shape index: {}]   ;;  %s511_s5 = inlined_call_operand.vmem [shape: f32[2,12,4], index: 5, kind: output, shape index: {}]  }
   0x1   :  { %v22_v0 = vld [vmem:[%s506_s0 + $0x10] sm:$0xff]  ;;  %v23_v1 = vld [vmem:[%s506_s0 + $0x18] sm:$0xf]  ;;  %v20_v2 = vld [vmem:[%s506_s0] sm:$0xff]  ;;  %357 = vrcp.f32 %v365_v12  ;;  %v75_v19 = vunpack.c.l.s4 %v366_v18  ;;  %v79_v21 = vunpack.c.l.s4 %v367_v20  ;;  %vm332_vm11 = vcmask 27648  }
   0x2   :  { %v29_v3 = vrot.slane %v22_v0, 4  ;;  %44 = vst [vmem:[#allocation1 + $0x21] ss:$2 sm:$0xff] %v23_v1  ;;  %v28_v4 = vrot.slane %v20_v2, 4  ;;  %v21_v5 = vld [vmem:[%s506_s0 + $0x8] sm:$0xf] }
   0x3   :  { %40 = vst [vmem:[#allocation1 + $0x11] ss:$2 sm:$0xff] %v22_v0  ;;  %v415_v23 = vunpack.c.0.s8 %v75_v19  ;;  %v417_v24 = vunpack.c.0.s8 %v79_v21  ;;  %v248_v56 = vld [vmem:[%s510_s3 + $0x18] sm:$0xff]  ;;  %v247_v58 = vld [vmem:[%s510_s3 + $0x10] sm:$0xff]  ;;  %v246_v60 = vld [vmem:[%s510_s3 + $0x8] sm:$0xff]  ;;  %vm330_vm12 = vcmask 31744  }
   0x4   :  { %42 = vst [vmem:[#allocation1 + $0x20] ss:$2 sm:$0xff] %v29_v3  ;;  %344 = vmatpush.msra.mxu2 %v248_v56  ;;  %291 = vmatpush.msra.mxu0 %v248_v56  ;;  %v245_v61 = vld [vmem:[%s510_s3] sm:$0xff] }
   0x5   :  { %34 = vst [vmem:[#allocation1] ss:$2 sm:$0xff] %v20_v2  ;;  %343 = vmatpush.msra.mxu1 %v248_v56 }
   0x6   :  { %36 = vst [vmem:[#allocation1 + $0x1] ss:$2 sm:$0xff] %v28_v4  ;;  %346 = vmatpush.msra.mxu2 %v247_v58  ;;  %292 = vmatpush.msra.mxu0 %v247_v58 }
   0x7   :  { %38 = vst [vmem:[#allocation1 + $0x10] ss:$2 sm:$0xff] %v21_v5  ;;  %v358_v13 = vpop.eup %357  ;;  %345 = vmatpush.msra.mxu1 %v247_v58 }
   0x8   :  { %v62_v14 = vmul.f32 32.0, %v358_v13  ;;  %vm66_vm1 = vweird.f32 %v358_v13  ;;  %348 = vmatpush.msra.mxu2 %v246_v60  ;;  %293 = vmatpush.msra.mxu0 %v246_v60 }
   0x9   :  { %347 = vmatpush.msra.mxu1 %v246_v60 }
   0xa   :  { %v63_v15 = vsub.f32 1.0, %v62_v14  ;;  %350 = vmatpush.msra.mxu2 %v245_v61  ;;  %294 = vmatpush.msra.mxu0 %v245_v61 }
   0xb   :  { %v47_v6 = vld.sshfl [vmem:[#allocation1 + $0x20] sm:$0xff pattern:$0x75316420]  ;;  %349 = vmatpush.msra.mxu1 %v245_v61 }
   0xc   :  { %v58_v7 = vsel %vm51_vm0, %v47_v6, 0.0  ;;  %v64_v16 = vmul.f32 %v358_v13, %v63_v15 }
   0xd   :  { %59 = vadd.xlane.f32.xlu0 %v58_v7  ;;  %v45_v9 = vld.sshfl [vmem:[#allocation1] sm:$0xff pattern:$0x75316420] }
   0xe   :  { %v46_v8 = vld.sshfl [vmem:[#allocation1 + $0x10] sm:$0xff pattern:$0x75316420]  ;;  %v52_v11 = vsel %vm51_vm0, %v45_v9, 0.0  ;;  %v65_v17 = vadd.f32 %v358_v13, %v64_v16  ;;  %v354_v9 = vld [vmem:[%s507_s1] ss:$0 sm:$0xff] }
   0xf   :  { %v55_v10 = vsel %vm51_vm0, %v46_v8, 0.0  ;;  %v226_v16 = vrot.slane %v354_v9, 4 }
  0x10   :  { %56 = vadd.xlane.f32.xlu1 %v55_v10  ;;  %v413_v22 = vsel %vm66_vm1, %v358_v13, %v65_v17  ;;  %v355_v13 = vld [vmem:[%s508_s2] ss:$0 sm:$0xff] }
  0x11   :  { %v237_v20 = vrot.slane %v355_v13, 4 }
  0x15   :  { %53 = vadd.xlane.f32.xlu0 %v52_v11 }
  0x80   :  { %v60_v25 = vpop.xlane.xlu0 %59 }
  0x81   :  { %v70_v26 = vmul.f32 %v413_v22, %v60_v25 }
  0x83   :  { %v93_v27 = vperm.slane %v70_v26, %v415_v23  ;;  %v97_v28 = vperm.slane %v70_v26, %v417_v24  ;;  %v57_v29 = vpop.xlane.xlu1 %56 }
  0x84   :  { %v69_v30 = vmul.f32 %v413_v22, %v57_v29 }
  0x85   :  { %v423_v31 = vsub.f32 %v29_v3, %v93_v27  ;;  %v425_v32 = vsub.f32 %v23_v1, %v97_v28 }
  0x86   :  { %v85_v33 = vperm.slane %v69_v30, %v415_v23  ;;  %v89_v34 = vperm.slane %v69_v30, %v417_v24 }
  0x87   :  { %v114_v35 = vmul.f32 %v423_v31, %v423_v31  ;;  %v115_v36 = vmul.f32 %v425_v32, %v425_v32 }
  0x88   :  { %v54_v37 = vpop.xlane.xlu0 %53  ;;  %v433_v38 = vsub.f32 %v21_v5, %v85_v33  ;;  %v435_v39 = vsub.f32 %v22_v0, %v89_v34 }
  0x89   :  { %130 = vst [vmem:[#allocation1 + $0x20] ss:$2 sm:$0xff] %v114_v35  ;;  %v68_v40 = vmul.f32 %v413_v22, %v54_v37 }
  0x8a   :  { %132 = vst [vmem:[#allocation1 + $0x21] ss:$2 sm:$0xff] %v115_v36  ;;  %v112_v41 = vmul.f32 %v433_v38, %v433_v38  ;;  %v113_v42 = vmul.f32 %v435_v39, %v435_v39 }
  0x8b   :  { %v77_v43 = vperm.slane %v68_v40, %v415_v23  ;;  %v81_v44 = vperm.slane %v68_v40, %v417_v24 }
  0x8c   :  { %126 = vst [vmem:[#allocation1 + $0x10] ss:$2 sm:$0xff] %v112_v41 }
  0x8d   :  { %v444_v45 = vsub.f32 %v20_v2, %v77_v43  ;;  %v446_v46 = vsub.f32 %v28_v4, %v81_v44  ;;  %128 = vst [vmem:[#allocation1 + $0x11] ss:$2 sm:$0xff] %v113_v42 }
  0x8f   :  { %v110_v47 = vmul.f32 %v444_v45, %v444_v45  ;;  %v111_v48 = vmul.f32 %v446_v46, %v446_v46 }
  0x91   :  { %122 = vst [vmem:[#allocation1] ss:$2 sm:$0xff] %v110_v47  ;;  %v135_v49 = vld.sshfl [vmem:[#allocation1 + $0x20] sm:$0xff pattern:$0x75316420] }
  0x92   :  { %124 = vst [vmem:[#allocation1 + $0x1] ss:$2 sm:$0xff] %v111_v48  ;;  %v145_v50 = vsel %vm51_vm0, %v135_v49, 0.0 }
  0x93   :  { %146 = vadd.xlane.f32.xlu1 %v145_v50 }
  0x94   :  { %v134_v53 = vld.sshfl [vmem:[#allocation1 + $0x10] sm:$0xff pattern:$0x75316420] }
  0x95   :  { %v142_v54 = vsel %vm51_vm0, %v134_v53, 0.0 }
  0x99   :  { %v133_v51 = vld.sshfl [vmem:[#allocation1] sm:$0xff pattern:$0x75316420] }
  0x9a   :  { %v139_v52 = vsel %vm51_vm0, %v133_v51, 0.0 }
  0x9b   :  { %140 = vadd.xlane.f32.xlu2 %v139_v52 }
  0xa3   :  { %143 = vadd.xlane.f32.xlu2 %v142_v54 }
 0x106   :  { %v147_v55 = vpop.xlane.xlu1 %146 }
 0x107   :  { %v150_v57 = vmul.f32 %v147_v55, %v413_v22 }
 0x109   :  { %v153_v59 = vadd.f32 1e-05, %v150_v57 }
 0x10b   :  { %359 = vrsqrt.f32 %v153_v59  ;;  %vm180_vm3 = vweird.f32 %v153_v59 }
 0x10e   :  { %v141_v62 = vpop.xlane.xlu2 %140 }
 0x10f   :  { %v148_v63 = vmul.f32 %v141_v62, %v413_v22 }
 0x111   :  { %v360_v0 = vpop.eup %359  ;;  %v151_v1 = vadd.f32 1e-05, %v148_v63 }
 0x112   :  { %v175_v2 = vmul.f32 %v360_v0, %v153_v59  ;;  %vm181_vm2 = vweird.f32 %v360_v0 }
 0x113   :  { %361 = vrsqrt.f32 %v151_v1  ;;  %vm182_vm4 = vmor %vm180_vm3, %vm181_vm2  ;;  %vm160_vm6 = vweird.f32 %v151_v1 }
 0x114   :  { %v176_v3 = vmul.f32 %v360_v0, %v175_v2 }
 0x116   :  { %v177_v4 = vmul.f32 0.5, %v176_v3  ;;  %v144_v5 = vpop.xlane.xlu2 %143 }
 0x117   :  { %v149_v6 = vmul.f32 %v144_v5, %v413_v22 }
 0x118   :  { %v178_v7 = vsub.f32 1.5, %v177_v4 }
 0x119   :  { %v362_v8 = vpop.eup %361  ;;  %v152_v10 = vadd.f32 1e-05, %v149_v6 }
 0x11a   :  { %v179_v11 = vmul.f32 %v360_v0, %v178_v7  ;;  %v155_v12 = vmul.f32 %v362_v8, %v151_v1  ;;  %vm161_vm5 = vweird.f32 %v362_v8 }
 0x11b   :  { %363 = vrsqrt.f32 %v152_v10  ;;  %vm162_vm7 = vmor %vm160_vm6, %vm161_vm5  ;;  %vm170_vm9 = vweird.f32 %v152_v10 }
 0x11c   :  { %v183_v14 = vsel %vm182_vm4, %v360_v0, %v179_v11  ;;  %v156_v15 = vmul.f32 %v362_v8, %v155_v12 }
 0x11d   :  { %v206_v17 = vperm.slane %v183_v14, %v415_v23  ;;  %v210_v18 = vperm.slane %v183_v14, %v417_v24 }
 0x11e   :  { %v157_v19 = vmul.f32 0.5, %v156_v15 }
 0x11f   :  { %v221_v21 = vmul.f32 %v206_v17, %v423_v31  ;;  %v222_v22 = vmul.f32 %v210_v18, %v425_v32 }
 0x120   :  { %v158_v25 = vsub.f32 1.5, %v157_v19 }
 0x121   :  { %v364_v26 = vpop.eup %363  ;;  %v232_v27 = vmul.f32 %v354_v9, %v221_v21  ;;  %v233_v28 = vmul.f32 %v226_v16, %v222_v22 }
 0x122   :  { %v159_v29 = vmul.f32 %v362_v8, %v158_v25  ;;  %v165_v30 = vmul.f32 %v364_v26, %v152_v10  ;;  %vm171_vm8 = vweird.f32 %v364_v26 }
 0x123   :  { %v243_v33 = vadd.f32 %v355_v13, %v232_v27  ;;  %v244_v34 = vadd.f32 %v237_v20, %v233_v28  ;;  %vm172_vm10 = vmor %vm170_vm9, %vm171_vm8 }
 0x124   :  { %v163_v35 = vsel %vm162_vm7, %v362_v8, %v159_v29  ;;  %v166_v36 = vmul.f32 %v364_v26, %v165_v30 }
 0x125   :  { %267 = vst [vmem:[#allocation1 + $0x20] ss:$2 sm:$0xff] %v243_v33  ;;  %v190_v37 = vperm.slane %v163_v35, %v415_v23  ;;  %v194_v31 = vperm.slane %v163_v35, %v417_v24 }
 0x126   :  { %269 = vst [vmem:[#allocation1 + $0x21] ss:$2 sm:$0xff] %v244_v34  ;;  %v167_v32 = vmul.f32 0.5, %v166_v36 }
 0x127   :  { %v217_v40 = vmul.f32 %v190_v37, %v444_v45  ;;  %v218_v41 = vmul.f32 %v194_v31, %v446_v46 }
 0x128   :  { %v168_v42 = vsub.f32 1.5, %v167_v32 }
 0x129   :  { %v228_v43 = vmul.f32 %v354_v9, %v217_v40  ;;  %v229_v44 = vmul.f32 %v226_v16, %v218_v41 }
 0x12a   :  { %v169_v47 = vmul.f32 %v364_v26, %v168_v42 }
 0x12b   :  { %v239_v48 = vadd.f32 %v355_v13, %v228_v43  ;;  %v240_v49 = vadd.f32 %v237_v20, %v229_v44 }
 0x12c   :  { %v173_v50 = vsel %vm172_vm10, %v364_v26, %v169_v47 }
 0x12d   :  { %259 = vst [vmem:[#allocation1] ss:$2 sm:$0xff] %v239_v48  ;;  %v198_v51 = vperm.slane %v173_v50, %v415_v23  ;;  %v202_v52 = vperm.slane %v173_v50, %v417_v24  ;;  %v272_v53 = vld.sshfl [vmem:[#allocation1 + $0x20] sm:$0xff pattern:$0x75316420] }
 0x12e   :  { %261 = vst [vmem:[#allocation1 + $0x1] ss:$2 sm:$0xff] %v240_v49  ;;  %342 = vmatmul.msk.f32.vlgmr.msra.gmra.mxu2 %vm51_vm0, %v272_v53  ;;  %v356_v24 = vld [vmem:[%s509_s4] ss:$0 sm:$0xff] }
 0x12f   :  { %v219_v45 = vmul.f32 %v198_v51, %v433_v38  ;;  %v220_v46 = vmul.f32 %v202_v52, %v435_v39 }
 0x131   :  { %v230_v54 = vmul.f32 %v354_v9, %v219_v45  ;;  %v231_v55 = vmul.f32 %v226_v16, %v220_v46 }
 0x133   :  { %v241_v56 = vadd.f32 %v355_v13, %v230_v54  ;;  %v242_v57 = vadd.f32 %v237_v20, %v231_v55 }
 0x135   :  { %263 = vst [vmem:[#allocation1 + $0x10] ss:$2 sm:$0xff] %v241_v56  ;;  %v270_v58 = vld.sshfl [vmem:[#allocation1] sm:$0xff pattern:$0x75316420] }
 0x136   :  { %265 = vst [vmem:[#allocation1 + $0x11] ss:$2 sm:$0xff] %v242_v57  ;;  %340 = vmatmul.msk.f32.vlgmr.msra.gmra.mxu0 %vm51_vm0, %v270_v58 }
 0x13d   :  { %v271_v23 = vld.sshfl [vmem:[#allocation1 + $0x10] sm:$0xff pattern:$0x75316420] }
 0x13e   :  { %341 = vmatmul.msk.f32.vlgmr.msra.gmra.mxu1 %vm51_vm0, %v271_v23 }
 0x1b1   :  { %v302_v59 = vpop.f32.mrf.mxu2 }
 0x1b2   :  { %v303_v38 = vadd.f32 %v356_v24, %v302_v59 }
 0x1b3   :  { %v296_v60 = vpop.f32.mrf.mxu0 }
 0x1b4   :  { %v310_v39 = vrot.slane %v303_v38, 4  ;;  %321 = vst [vmem:[#allocation1 + $0x21] ss:$2 sm:$0xff] %v303_v38  ;;  %v297_v61 = vadd.f32 %v356_v24, %v296_v60 }
 0x1b6   :  { %323 = vst [vmem:[#allocation1 + $0x30] ss:$2 sm:$0xff] %v310_v39  ;;  %v308_v62 = vrot.slane %v297_v61, 4 }
 0x1b7   :  { %311 = vst [vmem:[#allocation1] ss:$2 sm:$0xff] %v297_v61 }
 0x1b8   :  { %313 = vst [vmem:[#allocation1 + $0x1] ss:$2 sm:$0xff] %v308_v62 }
 0x1bb   :  { %v299_v63 = vpop.f32.mrf.mxu1 }
 0x1bc   :  { %v300_v0 = vadd.f32 %v356_v24, %v299_v63 }
 0x1bd   :  { %v325_v1 = vld.sshfl [vmem:[#allocation1 + $0x30] sm:$0xff pattern:$0x75316420] }
 0x1be   :  { %335 = vst.msk [vmem:[%s511_s5 + $0x18] sm:$0xf] %vm332_vm11, %v325_v1  ;;  %v309_v2 = vrot.slane %v300_v0, 4 }
 0x1bf   :  { %v316_v3 = vld.sshfl [vmem:[#allocation1] sm:$0xff pattern:$0x75316420]  ;;  %315 = vst [vmem:[#allocation1 + $0x10] ss:$2 sm:$0xff] %v300_v0 }
 0x1c0   :  { %331 = vst.msk [vmem:[%s511_s5] sm:$0xff] %vm330_vm12, %v316_v3 }
 0x1c1   :  { %319 = vst [vmem:[#allocation1 + $0x20] ss:$2 sm:$0xff] %v309_v2 }
 0x1c6   :  { %v317_v4 = vld.sshfl [vmem:[#allocation1 + $0x10] sm:$0xff pattern:$0x75316420] }
 0x1c7   :  { %333 = vst.msk [vmem:[%s511_s5 + $0x8] sm:$0xf] %vm332_vm11, %v317_v4 }
 0x1c8   :  { %v324_v5 = vld.sshfl [vmem:[#allocation1 + $0x20] sm:$0xff pattern:$0x75316420] }
 0x1c9   :  { %334 = vst.msk [vmem:[%s511_s5 + $0x10] sm:$0xff] %vm330_vm12, %v324_v5 }

// kernel: transformer_forward.12
= control target key start
LH: loop header
LB: loop body
LE: loop exit
PB: predicated region body
PF: predicated region fallthrough
CT: control target
= control target key end

     0   :  { %s5319_s0 = inlined_call_operand.vmem [shape: f32[2,12,32], index: 0, kind: input, shape index: {}]   ;;  %s5320_s1 = inlined_call_operand.vmem [shape: f32[2,8,32], index: 1, kind: input, shape index: {}]   ;;  %s5321_s2 = inlined_call_operand.vmem [shape: f32[32,48], index: 2, kind: input, shape index: {}]   ;;  %s5322_s3 = inlined_call_operand.hbm [shape: f32[1,48], index: 3, kind: input, shape index: {}]   ;;  %s5323_s4 = inlined_call_operand.hbm [shape: f32[16,32], index: 4, kind: input, shape index: {}]   ;;  %s5324_s5 = inlined_call_operand.hbm [shape: f32[1,32], index: 5, kind: input, shape index: {}]   ;;  %s5325_s6 = inlined_call_operand.vmem [shape: f32[32,32], index: 6, kind: input, shape index: {}]   ;;  %s5326_s7 = inlined_call_operand.hbm [shape: f32[1,32], index: 7, kind: input, shape index: {}]   ;;  %s5327_s8 = inlined_call_operand.vmem [shape: f32[32,64], index: 8, kind: input, shape index: {}]   ;;  %s5328_s9 = inlined_call_operand.hbm [shape: f32[1,64], index: 9, kind: input, shape index: {}]   ;;  %s5329_s10 = inlined_call_operand.vmem [shape: f32[32,32], index: 10, kind: input, shape index: {}]   ;;  %s5330_s11 = inlined_call_operand.hbm [shape: f32[1,32], index: 11, kind: input, shape index: {}]   ;;  %s5331_s12 = inlined_call_operand.hbm [shape: f32[1,32], index: 12, kind: input, shape index: {}]   ;;  %s5332_s13 = inlined_call_operand.hbm [shape: f32[1,32], index: 13, kind: input, shape index: {}]   ;;  %s5333_s14 = inlined_call_operand.hbm [shape: f32[1,32], index: 14, kind: input, shape index: {}]   ;;  %s5334_s15 = inlined_call_operand.hbm [shape: f32[1,32], index: 15, kind: input, shape index: {}]   ;;  %s5335_s16 = inlined_call_operand.hbm [shape: f32[1,32], index: 16, kind: input, shape index: {}]   ;;  %s5336_s17 = inlined_call_operand.hbm [shape: f32[1,32], index: 17, kind: input, shape index: {}]   ;;  %s5337_s18 = inlined_call_operand.vmem [shape: f32[32,64], index: 18, kind: input, shape index: {}]   ;;  %s5338_s19 = inlined_call_operand.hbm [shape: f32[1,64], index: 19, kind: input, shape index: {}]   ;;  %s5339_s20 = inlined_call_operand.vmem [shape: f32[64,32], index: 20, kind: input, shape index: {}]   ;;  %s5340_s21 = inlined_call_operand.hbm [shape: f32[1,32], index: 21, kind: input, shape index: {}]   ;;  %s5341_s22 = inlined_call_operand.vmem [shape: f32[2,12,32], index: 22, kind: output, shape index: {}]  }
   0x1   :  { %5347 = sst [smem:[#allocation32_spill]] %s5319_s0 }
   0x2   :  { %5348 = sst [smem:[#allocation33_spill]] %s5320_s1 }
   0x3   :  { %5349 = sst [smem:[#allocation34_spill]] %s5321_s2 }
   0x4   :  { %5350 = sst [smem:[#allocation35_spill]] %s5322_s3 }
   0x5   :  { %5351 = sst [smem:[#allocation36_spill]] %s5323_s4 }
   0x6   :  { %5352 = sst [smem:[#allocation37_spill]] %s5324_s5 }
   0x7   :  { %5353 = sst [smem:[#allocation38_spill]] %s5325_s6 }
   0x8   :  { %5354 = sst [smem:[#allocation39_spill]] %s5341_s22 }
   0x9   :  { %27 = vsyncpa [#allocation3], 0 }
   0xa   :  { %28 = vsyncpa [#allocation5], 0 }
   0xb   :  { %29 = vsyncpa [#allocation8], 0 }
   0xc   :  { %30 = vsyncpa [#allocation11], 0 }
   0xd   :  { %31 = vsyncpa [#allocation14], 0 }
   0xe   :  { %32 = vsyncpa [#allocation17], 0 }
   0xf   :  { %33 = vsyncpa [#allocation20], 0  ;;  %s5355_s29 = sld [smem:[#allocation36_spill]] }
  0x15   :  { %s56_s30 = sshll.u32 %s5355_s29, 4  ;;  %s57_s30 = int_to_ptr.hbm [resolvable:$true] %s56_s30 }
  0x16   :  { %34 = vsyncpa [#allocation23], 0  ;;  %s4231_s4 = smov [#allocation4]   ;;  %s83_s5 = sshll.u32 %s5326_s7, 4  ;;  %s84_s5 = int_to_ptr.hbm [resolvable:$true] %s83_s5 }
  0x17   :  { %s58_s0 = sshll.u32 %s4231_s4, 4  ;;  %s4232_s24 = smov 128   ;;  %s59_s0 = int_to_ptr.vmem [resolvable:$true] %s58_s0 }
  0x18   :  { %s4233_s6 = smov 8   ;;  %s4234_s25 = smov [#allocation7]  }
  0x19   :  { %64 = dma.hbm_to_vmem [thread:$0]  %s57_s30, 256, %s59_s0, [#allocation5], %s4232_s24, %s4232_s24, %s4233_s6  }
  0x1a   :  { %s85_s26 = sshll.u32 %s4234_s25, 4  ;;  %s109_s3 = sshll.u32 %s5330_s11, 4  ;;  %s86_s26 = int_to_ptr.vmem [resolvable:$true] %s85_s26  ;;  %s110_s3 = int_to_ptr.hbm [resolvable:$true] %s109_s3 }
  0x1b   :  { %88 = dma.hbm_to_vmem [thread:$0]  %s84_s5, 16, %s86_s26, [#allocation8]  }
  0x1c   :  { %s131_s4 = sshll.u32 %s5332_s13, 4  ;;  %s4235_s22 = smov [#allocation10]   ;;  %s132_s4 = int_to_ptr.hbm [resolvable:$true] %s131_s4 }
  0x1d   :  { %s111_s23 = sshll.u32 %s4235_s22, 4  ;;  %s4236_s7 = smov [#allocation13]   ;;  %s112_s23 = int_to_ptr.vmem [resolvable:$true] %s111_s23 }
  0x1e   :  { %114 = dma.hbm_to_vmem [thread:$0]  %s110_s3, 16, %s112_s23, [#allocation11]  }
  0x1f   :  { %s133_s30 = sshll.u32 %s4236_s7, 4  ;;  %s153_s24 = sshll.u32 %s5334_s15, 4  ;;  %s134_s30 = int_to_ptr.vmem [resolvable:$true] %s133_s30  ;;  %s154_s24 = int_to_ptr.hbm [resolvable:$true] %s153_s24 }
  0x20   :  { %136 = dma.hbm_to_vmem [thread:$0]  %s132_s4, 16, %s134_s30, [#allocation14]  }
  0x21   :  { %s175_s6 = sshll.u32 %s5336_s17, 4  ;;  %s4237_s25 = smov [#allocation16]   ;;  %s176_s6 = int_to_ptr.hbm [resolvable:$true] %s175_s6 }
  0x22   :  { %s155_s13 = sshll.u32 %s4237_s25, 4  ;;  %s4238_s22 = smov [#allocation19]   ;;  %s156_s13 = int_to_ptr.vmem [resolvable:$true] %s155_s13 }
  0x23   :  { %158 = dma.hbm_to_vmem [thread:$0]  %s154_s24, 16, %s156_s13, [#allocation17]  }
  0x24   :  { %s177_s26 = sshll.u32 %s4238_s22, 4  ;;  %s5356_s3 = sld [smem:[#allocation35_spill]]  ;;  %s178_s26 = int_to_ptr.vmem [resolvable:$true] %s177_s26 }
  0x25   :  { %180 = dma.hbm_to_vmem [thread:$0]  %s176_s6, 16, %s178_s26, [#allocation20]  }
  0x26   :  { %s5357_s4 = sld [smem:[#allocation37_spill]]  ;;  %s4239_s7 = smov [#allocation2]  }
  0x27   :  { %s48_s17 = sshll.u32 %s4239_s7, 4  ;;  %s4240_s30 = smov [#allocation6]   ;;  %s49_s17 = int_to_ptr.vmem [resolvable:$true] %s48_s17 }
  0x28   :  { %s72_s0 = sshll.u32 %s4240_s30, 4  ;;  %s96_s11 = sshll.u32 %s5328_s9, 4  ;;  %s73_s0 = int_to_ptr.vmem [resolvable:$true] %s72_s0  ;;  %s97_s11 = int_to_ptr.hbm [resolvable:$true] %s96_s11 }
  0x29   :  { %s120_s25 = sshll.u32 %s5331_s12, 4  ;;  %s4241_s13 = smov [#allocation9]   ;;  %s121_s25 = int_to_ptr.hbm [resolvable:$true] %s120_s25 }
  0x2a   :  { %s46_s28 = sshll.u32 %s5356_s3, 4  ;;  %s98_s22 = sshll.u32 %s4241_s13, 4  ;;  %s47_s28 = int_to_ptr.hbm [resolvable:$true] %s46_s28  ;;  %s99_s22 = int_to_ptr.vmem [resolvable:$true] %s98_s22 }
  0x2b   :  { %51 = dma.hbm_to_vmem [thread:$0]  %s47_s28, 16, %s49_s17, [#allocation3]  }
  0x2c   :  { %s70_s23 = sshll.u32 %s5357_s4, 4  ;;  %s4242_s26 = smov [#allocation12]   ;;  %s71_s23 = int_to_ptr.hbm [resolvable:$true] %s70_s23 }
  0x2d   :  { %75 = dma.hbm_to_vmem [thread:$0]  %s71_s23, 16, %s73_s0, [#allocation5]  }
  0x2e   :  { %101 = dma.hbm_to_vmem [thread:$0]  %s97_s11, 16, %s99_s22, [#allocation8]  }
  0x2f   :  { %s122_s2 = sshll.u32 %s4242_s26, 4  ;;  %s142_s28 = sshll.u32 %s5333_s14, 4  ;;  %s123_s2 = int_to_ptr.vmem [resolvable:$true] %s122_s2  ;;  %s143_s28 = int_to_ptr.hbm [resolvable:$true] %s142_s28 }
  0x30   :  { %125 = dma.hbm_to_vmem [thread:$0]  %s121_s25, 16, %s123_s2, [#allocation11]  }
  0x31   :  { %s164_s29 = sshll.u32 %s5335_s16, 4  ;;  %s4243_s4 = smov [#allocation15]   ;;  %s165_s29 = int_to_ptr.hbm [resolvable:$true] %s164_s29 }
  0x32   :  { %s144_s12 = sshll.u32 %s4243_s4, 4  ;;  %s4244_s23 = smov [#allocation18]   ;;  %s145_s12 = int_to_ptr.vmem [resolvable:$true] %s144_s12 }
  0x33   :  { %147 = dma.hbm_to_vmem [thread:$0]  %s143_s28, 16, %s145_s12, [#allocation14]  }
  0x34   :  { %s166_s7 = sshll.u32 %s4244_s23, 4  ;;  %s188_s0 = sshll.u32 %s5338_s19, 4  ;;  %s167_s7 = int_to_ptr.vmem [resolvable:$true] %s166_s7  ;;  %s189_s0 = int_to_ptr.hbm [resolvable:$true] %s188_s0 }
  0x35   :  { %169 = dma.hbm_to_vmem [thread:$0]  %s165_s29, 16, %s167_s7, [#allocation17]  }
  0x36   :  { %s201_s24 = sshll.u32 %s5340_s21, 4  ;;  %s4245_s11 = smov [#allocation21]   ;;  %s202_s24 = int_to_ptr.hbm [resolvable:$true] %s201_s24 }
  0x37   :  { %s190_s16 = sshll.u32 %s4245_s11, 4  ;;  %s4246_s5 = smov [#allocation22]   ;;  %s191_s16 = int_to_ptr.vmem [resolvable:$true] %s190_s16 }
  0x38   :  { %193 = dma.hbm_to_vmem [thread:$0]  %s189_s0, 16, %s191_s16, [#allocation20]  }
  0x39   :  { %s203_s6 = sshll.u32 %s4246_s5, 4  ;;  %s204_s6 = int_to_ptr.vmem [resolvable:$true] %s203_s6 }
  0x3a   :  { %206 = dma.hbm_to_vmem [thread:$0]  %s202_s24, 16, %s204_s6, [#allocation23]  }
  0x3b   :  { %4215 = dma.done.wait [#allocation3], 16  }
  0x3c   :  { %4216 = vsyncadd [#allocation3], 4294967280 }
  0x3d   :  { %4217 = dma.done.wait [#allocation5], 272  }
  0x3e   :  { %4218 = vsyncadd [#allocation5], 4294967024 }
  0x3f   :  { %4219 = dma.done.wait [#allocation8], 32  }
  0x40   :  { %4220 = vsyncadd [#allocation8], 4294967264 }
  0x41   :  { %4221 = dma.done.wait [#allocation11], 32  }
  0x42   :  { %4222 = vsyncadd [#allocation11], 4294967264 }
  0x43   :  { %4223 = dma.done.wait [#allocation14], 32  }
  0x44   :  { %4224 = vsyncadd [#allocation14], 4294967264 }
  0x45   :  { %4225 = dma.done.wait [#allocation17], 32  }
  0x46   :  { %4226 = vsyncadd [#allocation17], 4294967264 }
  0x47   :  { %4227 = dma.done.wait [#allocation20], 32  }
  0x48   :  { %4228 = vsyncadd [#allocation20], 4294967264 }
  0x49   :  { %4229 = dma.done.wait [#allocation23], 16  }
  0x4a   :  { %4230 = vsyncadd [#allocation23], 4294967280  ;;  %s5358_s25 = sld [smem:[#allocation34_spill]]  ;;  %vm302_vm0 = vcmask 261120   ;;  %v3712_v13 = vld [vmem:[#allocation2] ss:$0 sm:$0xff] }
  0x4b   :  { %s5359_s27 = sld [smem:[#allocation32_spill]]  ;;  %s4247_s30 = smov 112   ;;  %vm378_vm1 = vcmask 31744   ;;  %vm534_vm2 = vcmask 1043456   ;;  %vm470_vm4 = vcmask 97280   ;;  %vm474_vm6 = vcmask 93184  }
  0x4c   :  { %s4248_s0 = smov 108   ;;  %s4249_s14 = smov 124  }
  0x4d   :  { %s4250_s1 = smov 96   ;;  %s4251_s24 = smov 92  }
  0x4e   :  { %s4252_s11 = smov 120   ;;  %s4253_s16 = smov 104  }
  0x4f   :  { %s4254_s5 = smov 88   ;;  %s4255_s6 = smov 116  }
  0x50   :  { %v280_v0 = vld [vmem:[%s5358_s25 + $0x18] sm:$0xff]  ;;  %v279_v1 = vld [vmem:[%s5358_s25 + $0x10] sm:$0xff]  ;;  %v278_v4 = vld [vmem:[%s5358_s25 + $0x8] sm:$0xff]  ;;  %s4256_s19 = smov 100   ;;  %s4257_s21 = smov 84  }
  0x51   :  { %321 = vmatpush.msra.mxu0 %v280_v0  ;;  %v4429_v2 = vld [vmem:[%s5359_s27] sm:$0xff]  ;;  %v4434_v3 = vld [vmem:[%s5359_s27 + $0x8] sm:$0xf]  ;;  %v4444_v6 = vld [vmem:[%s5359_s27 + $0x10] sm:$0xff]  ;;  %s5364_s22 = sld [smem:[#allocation38_spill]] }
  0x52   :  { %v273_v5 = vrot.slane %v4429_v2, 4  ;;  %288 = vst [vmem:[#allocation1] ss:$2 sm:$0xff] %v4429_v2  ;;  %v277_v7 = vld [vmem:[%s5358_s25] sm:$0xff]  ;;  %v274_v8 = vrot.slane %v4444_v6, 4  ;;  %s5366_s25 = sld [smem:[#allocation39_spill]] }
  0x53   :  { %322 = vmatpush.msra.mxu0 %v279_v1  ;;  %292 = vst [vmem:[#allocation1 + $0x10] ss:$2 sm:$0xff] %v4434_v3  ;;  %v4456_v9 = vld [vmem:[%s5359_s27 + $0x18] sm:$0xf] }
  0x54   :  { %290 = vst [vmem:[#allocation1 + $0x1] ss:$2 sm:$0xff] %v273_v5 }
  0x55   :  { %323 = vmatpush.msra.mxu0 %v278_v4  ;;  %294 = vst [vmem:[#allocation1 + $0x11] ss:$2 sm:$0xff] %v4444_v6  ;;  %v344_v4 = vlaneseq }
  0x56   :  { %296 = vst [vmem:[#allocation1 + $0x20] ss:$2 sm:$0xff] %v274_v8 }
  0x57   :  { %324 = vmatpush.msra.mxu0 %v277_v7  ;;  %298 = vst [vmem:[#allocation1 + $0x21] ss:$2 sm:$0xff] %v4456_v9  ;;  %v345_v7 = vshrl.u32 %v344_v4, 7 }
  0x5b   :  { %v299_v10 = vld.sshfl [vmem:[#allocation1] sm:$0xff pattern:$0x75316420] }
  0x5c   :  { %3520 = vmatmul.msk.f32.vlgmr.msra.gmra.mxu0 %vm302_vm0, %v299_v10  ;;  %v300_v11 = vld.sshfl [vmem:[#allocation1 + $0x10] sm:$0xff pattern:$0x75316420]  ;;  %v348_v10 = vand.u32 127, %v344_v4 }
  0x5e   :  { %v301_v12 = vld.sshfl [vmem:[#allocation1 + $0x20] sm:$0xff pattern:$0x75316420]  ;;  %vm4582_vm3 = vcmp.gt.s32.totalorder %v348_v10, %v345_v7 }
  0x64   :  { %3521 = vmatmul.msk.f32.gmra.mxu0 %vm302_vm0, %v300_v11 }
  0x6c   :  { %3522 = vmatmul.msk.f32.gmra.mxu0 %vm302_vm0, %v301_v12 }
  0xd9   :  { %v326_v14 = vpop.f32.mrf.mxu0 }
  0xda   :  { %v4465_v15 = vadd.f32 %v3712_v13, %v326_v14 }
  0xdc   :  { %v4468_v16 = vrot.slane %v4465_v15, 4  ;;  %v4471_v17 = vmul.f32 0.5, %v4465_v15 }
  0xde   :  { %v4474_v18 = vmul.f32 0.5, %v4468_v16  ;;  %360 = vst [vmem:[#allocation1] ss:$2 sm:$0xff] %v4471_v17 }
  0xe0   :  { %362 = vst [vmem:[#allocation1 + $0x1] ss:$2 sm:$0xff] %v4474_v18 }
  0xe1   :  { %v329_v19 = vpop.f32.mrf.mxu0 }
  0xe2   :  { %v4478_v20 = vadd.f32 %v3712_v13, %v329_v19  ;;  %v346_v19 = vadd.s32 8, %v345_v7 }
  0xe4   :  { %v4481_v21 = vmul.f32 0.5, %v4478_v20  ;;  %v4491_v25 = vrot.slane %v4478_v20, 4  ;;  %vm4589_vm5 = vcmp.gt.s32.totalorder %v348_v10, %v346_v19 }
  0xe6   :  { %364 = vst [vmem:[#allocation1 + $0x10] ss:$2 sm:$0xff] %v4481_v21  ;;  %v4503_v29 = vmul.f32 0.5, %v4491_v25 }
  0xe7   :  { %v4484_v22 = vld.sshfl [vmem:[#allocation1] sm:$0xff pattern:$0x75316420] }
  0xe8   :  { %367 = vst [vmem:[#allocation1] ss:$2 sm:$0xff] %v4465_v15 }
  0xe9   :  { %369 = vst [vmem:[#allocation1 + $0x1] ss:$2 sm:$0xff] %v4468_v16  ;;  %v332_v23 = vpop.f32.mrf.mxu0 }
  0xea   :  { %v4488_v24 = vadd.f32 %v3712_v13, %v332_v23 }
  0xec   :  { %v4497_v27 = vrot.slane %v4488_v24, 4  ;;  %v4500_v28 = vmul.f32 0.5, %v4488_v24 }
  0xed   :  { %v4493_v26 = vld.sshfl [vmem:[#allocation1 + $0x10] sm:$0xff pattern:$0x75316420] }
  0xee   :  { %371 = vst [vmem:[#allocation1 + $0x10] ss:$2 sm:$0xff] %v4478_v20  ;;  %v4507_v31 = vmul.f32 0.5, %v4497_v27 }
  0xf0   :  { %v372_v30 = vld.sshfl [vmem:[#allocation1] sm:$0xff pattern:$0x75316420] }
  0xf1   :  { %413 = vst [vmem:[#allocation1] ss:$2 sm:$0xff] %v4503_v29 }
  0xf2   :  { %415 = vst [vmem:[#allocation1 + $0x1] ss:$2 sm:$0xff] %v4500_v28 }
  0xf5   :  { %v373_v32 = vld.sshfl [vmem:[#allocation1 + $0x10] sm:$0xff pattern:$0x75316420] }
  0xf6   :  { %417 = vst [vmem:[#allocation1 + $0x10] ss:$2 sm:$0xff] %v4507_v31  ;;  %376 = vrot.lane.b32.xlu0 %v373_v32, %s4247_s30 }
  0xf9   :  { %v4512_v33 = vld.sshfl [vmem:[#allocation1] sm:$0xff pattern:$0x75316420] }
  0xfa   :  { %420 = vst [vmem:[#allocation1] ss:$2 sm:$0xff] %v4491_v25 }
  0xfb   :  { %422 = vst [vmem:[#allocation1 + $0x1] ss:$2 sm:$0xff] %v4488_v24 }
  0xfd   :  { %v4516_v34 = vld.sshfl [vmem:[#allocation1 + $0x10] sm:$0xff pattern:$0x75316420] }
  0xfe   :  { %424 = vst [vmem:[#allocation1 + $0x10] ss:$2 sm:$0xff] %v4497_v27  ;;  %374 = vrot.lane.b32.xlu0 %v372_v30, %s4247_s30 }
 0x102   :  { %v425_v35 = vld.sshfl [vmem:[#allocation1] sm:$0xff pattern:$0x75316420] }
 0x103   :  { %516 = vst [vmem:[#allocation1] ss:$2 sm:$0xff] %v4465_v15 }
 0x104   :  { %518 = vst [vmem:[#allocation1 + $0x1] ss:$2 sm:$0xff] %v4468_v16 }
 0x105   :  { %v426_v36 = vld.sshfl [vmem:[#allocation1 + $0x10] sm:$0xff pattern:$0x75316420] }
 0x106   :  { %520 = vst [vmem:[#allocation1 + $0x10] ss:$2 sm:$0xff] %v4478_v20  ;;  %429 = vrot.lane.b32.xlu1 %v426_v36, %s4247_s30 }
 0x10b   :  { %v521_v37 = vld.sshfl [vmem:[#allocation1] sm:$0xff pattern:$0x75316420] }
 0x10c   :  { %560 = vst [vmem:[#allocation1] ss:$2 sm:$0xff] %v4491_v25 }
 0x10d   :  { %v522_v38 = vld.sshfl [vmem:[#allocation1 + $0x10] sm:$0xff pattern:$0x75316420]  ;;  %562 = vst [vmem:[#allocation1 + $0x1] ss:$2 sm:$0xff] %v4488_v24 }
 0x10e   :  { %564 = vst [vmem:[#allocation1 + $0x10] ss:$2 sm:$0xff] %v4497_v27  ;;  %427 = vrot.lane.b32.xlu1 %v425_v35, %s4247_s30 }
 0x114   :  { %v565_v39 = vld.sshfl [vmem:[#allocation1] sm:$0xff pattern:$0x75316420] }
 0x115   :  { %v4528_v40 = vld.sshfl [vmem:[#allocation1 + $0x10] sm:$0xff pattern:$0x75316420]  ;;  %609 = vst [vmem:[#allocation1] ss:$2 sm:$0xff] %v4471_v17  ;;  %v3692_v51 = vpack.i.bf16 %v565_v39, %v521_v37 }
 0x116   :  { %611 = vst [vmem:[#allocation1 + $0x1] ss:$2 sm:$0xff] %v4474_v18 }
 0x117   :  { %613 = vst [vmem:[#allocation1 + $0x10] ss:$2 sm:$0xff] %v4481_v21 }
 0x11d   :  { %v614_v41 = vld.sshfl [vmem:[#allocation1] sm:$0xff pattern:$0x75316420] }
 0x11e   :  { %v615_v42 = vld.sshfl [vmem:[#allocation1 + $0x10] sm:$0xff pattern:$0x75316420]  ;;  %620 = vst [vmem:[#allocation1] ss:$2 sm:$0xff] %v4465_v15 }
 0x11f   :  { %622 = vst [vmem:[#allocation1 + $0x1] ss:$2 sm:$0xff] %v4468_v16 }
 0x120   :  { %624 = vst [vmem:[#allocation1 + $0x10] ss:$2 sm:$0xff] %v4478_v20 }
 0x126   :  { %v625_v43 = vld.sshfl [vmem:[#allocation1] sm:$0xff pattern:$0x75316420] }
 0x127   :  { %v626_v44 = vld.sshfl [vmem:[#allocation1 + $0x10] sm:$0xff pattern:$0x75316420]  ;;  %662 = vst [vmem:[#allocation1] ss:$2 sm:$0xff] %v4503_v29 }
 0x128   :  { %664 = vst [vmem:[#allocation1 + $0x1] ss:$2 sm:$0xff] %v4500_v28  ;;  %629 = vrot.lane.b32.xlu2 %v626_v44, %s4248_s0 }
 0x129   :  { %666 = vst [vmem:[#allocation1 + $0x10] ss:$2 sm:$0xff] %v4507_v31 }
 0x12f   :  { %v667_v45 = vld.sshfl [vmem:[#allocation1] sm:$0xff pattern:$0x75316420] }
 0x130   :  { %v4539_v46 = vld.sshfl [vmem:[#allocation1 + $0x10] sm:$0xff pattern:$0x75316420]  ;;  %673 = vst [vmem:[#allocation1] ss:$2 sm:$0xff] %v4491_v25  ;;  %669 = vrot.lane.b32.xlu1 %v667_v45, %s4249_s14 }
 0x131   :  { %675 = vst [vmem:[#allocation1 + $0x1] ss:$2 sm:$0xff] %v4488_v24 }
 0x132   :  { %677 = vst [vmem:[#allocation1 + $0x10] ss:$2 sm:$0xff] %v4497_v27 }
 0x138   :  { %v678_v47 = vld.sshfl [vmem:[#allocation1] sm:$0xff pattern:$0x75316420]  ;;  %618 = vrot.lane.b32.xlu1 %v615_v42, %s4249_s14 }
 0x139   :  { %v679_v48 = vld.sshfl [vmem:[#allocation1 + $0x10] sm:$0xff pattern:$0x75316420]  ;;  %763 = vst [vmem:[#allocation1] ss:$2 sm:$0xff] %v4465_v15  ;;  %680 = vrot.lane.b32.xlu0 %v678_v47, %s4248_s0 }
 0x13a   :  { %765 = vst [vmem:[#allocation1 + $0x1] ss:$2 sm:$0xff] %v4468_v16  ;;  %682 = vrot.lane.b32.xlu2 %v679_v48, %s4248_s0 }
 0x13b   :  { %767 = vst [vmem:[#allocation1 + $0x10] ss:$2 sm:$0xff] %v4478_v20 }
 0x141   :  { %v4549_v49 = vld.sshfl [vmem:[#allocation1] sm:$0xff pattern:$0x75316420]  ;;  %616 = vrot.lane.b32.xlu0 %v614_v41, %s4249_s14 }
 0x142   :  { %v4552_v50 = vld.sshfl [vmem:[#allocation1 + $0x10] sm:$0xff pattern:$0x75316420]  ;;  %806 = vst [vmem:[#allocation1] ss:$2 sm:$0xff] %v4491_v25  ;;  %627 = vrot.lane.b32.xlu2 %v625_v43, %s4248_s0 }
 0x143   :  { %808 = vst [vmem:[#allocation1 + $0x1] ss:$2 sm:$0xff] %v4488_v24 }
 0x144   :  { %810 = vst [vmem:[#allocation1 + $0x10] ss:$2 sm:$0xff] %v4497_v27 }
 0x149   :  { %525 = vrot.lane.b32.xlu0 %v522_v38, %s4250_s1 }
 0x14a   :  { %3693 = vrot.lane.b32.xlu2 %v3692_v51, %s4250_s1 }
 0x14b   :  { %v812_v48 = vld.sshfl [vmem:[#allocation1 + $0x10] sm:$0xff pattern:$0x75316420] }
 0x168   :  { %v377_v52 = vpop.permute.xlu0 %376 }
 0x169   :  { %3523 = vmatpush.xpose.msk.msra.mxu1 %vm378_vm1, %v377_v52 }
 0x170   :  { %v375_v53 = vpop.permute.xlu0 %374 }
 0x171   :  { %3524 = vmatpush.xpose.msk.msra.mxu1 %vm378_vm1, %v375_v53 }
 0x174   :  { %3525 = vmatmul.msk.f32.vlgmr.msra.gmra.mxu1 %vm378_vm1, %v4484_v22 }
 0x178   :  { %v430_v54 = vpop.permute.xlu1 %429 }
 0x179   :  { %3527 = vmatpush.xpose.msk.msra.mxu2 %vm378_vm1, %v430_v54 }
 0x17c   :  { %3526 = vmatmul.msk.f32.gmra.mxu1 %vm378_vm1, %v4493_v26 }
 0x180   :  { %v428_v55 = vpop.permute.xlu1 %427 }
 0x181   :  { %3528 = vmatpush.xpose.msk.msra.mxu2 %vm378_vm1, %v428_v55 }
 0x182   :  { %v630_v56 = vpop.permute.xlu2 %629 }
 0x183   :  { %3537 = vmatpush.xpose.msk.msrb.mxu1 %vm378_vm1, %v630_v56 }
 0x184   :  { %3529 = vmatmul.msk.f32.vlgmr.msra.gmra.mxu2 %vm378_vm1, %v4512_v33 }
 0x18c   :  { %3530 = vmatmul.msk.f32.gmra.mxu2 %vm378_vm1, %v4516_v34 }
 0x194   :  { %v683_v57 = vpop.permute.xlu2 %682 }
 0x195   :  { %3541 = vmatpush.xpose.msk.msrb.mxu2 %vm378_vm1, %v683_v57 }
 0x19c   :  { %v628_v58 = vpop.permute.xlu2 %627 }
 0x19d   :  { %3538 = vmatpush.xpose.msk.msrb.mxu1 %vm378_vm1, %v628_v58 }
 0x1a2   :  { %v670_v60 = vpop.permute.xlu1 %669 }
 0x1a4   :  { %v4577_v62 = vpop.permute.xlu2 %3693 }
 0x1a5   :  { %v3695_v1 = vunpack.i.l.bf16 %v4577_v62  ;;  %v3696_v19 = vunpack.i.h.bf16 %v4577_v62 }
 0x1aa   :  { %v619_v63 = vpop.permute.xlu1 %618 }
 0x1ab   :  { %v681_v59 = vpop.permute.xlu0 %680 }
 0x1ac   :  { %3542 = vmatpush.xpose.msk.msrb.mxu2 %vm378_vm1, %v681_v59 }
 0x1af   :  { %3543 = vmatmul.msk.f32.vlgmr.msrb.gmra.mxu2 %vm378_vm1, %v670_v60 }
 0x1b3   :  { %v617_v61 = vpop.permute.xlu0 %616 }
 0x1b4   :  { %3539 = vmatmul.msk.f32.vlgmr.msrb.gmra.mxu1 %vm378_vm1, %v617_v61 }
 0x1bb   :  { %v526_v0 = vpop.permute.xlu0 %525 }
 0x1bc   :  { %3531 = vmatpush.msk.msra.mxu3 %vm534_vm2, %v526_v0  ;;  %3540 = vmatmul.msk.f32.gmra.mxu1 %vm378_vm1, %v619_v63 }
 0x1be   :  { %552 = vmatpush.msra.mxu3 %v3695_v1 }
 0x1f1   :  { %v404_v12 = vpop.f32.mrf.mxu1 }
 0x1f2   :  { %v466_v13 = vsel %vm4582_vm3, -1e+09, %v404_v12 }
 0x1f3   :  { %v471_v14 = vsel %vm470_vm4, %v466_v13, -inf }
 0x1f4   :  { %472 = vmax.xlane.f32.xlu2 %v471_v14 }
 0x1f9   :  { %v407_v23 = vpop.f32.mrf.mxu1 }
 0x1fa   :  { %v467_v26 = vsel %vm4589_vm5, -1e+09, %v407_v23  ;;  %v811_v23 = vld.sshfl [vmem:[#allocation1] sm:$0xff pattern:$0x75316420] }
 0x1fb   :  { %v475_v30 = vsel %vm474_vm6, %v467_v26, -inf }
 0x1fc   :  { %476 = vmax.xlane.f32.xlu0 %v475_v30 }
 0x207   :  { %v456_v32 = vpop.f32.mrf.mxu2 }
 0x208   :  { %v468_v33 = vsel %vm4582_vm3, -1e+09, %v456_v32 }
 0x209   :  { %v478_v34 = vsel %vm470_vm4, %v468_v33, -inf }
 0x20a   :  { %479 = vmax.xlane.f32.xlu1 %v478_v34 }
 0x20f   :  { %v459_v35 = vpop.f32.mrf.mxu2 }
 0x210   :  { %v469_v36 = vsel %vm4589_vm5, -1e+09, %v459_v35 }
 0x211   :  { %v481_v37 = vsel %vm474_vm6, %v469_v36, -inf }
 0x212   :  { %482 = vmax.xlane.f32.xlu2 %v481_v37 }
 0x223   :  { %569 = vrot.lane.b32.xlu1 %v4528_v40, %s4250_s1 }
 0x231   :  { %v656_v38 = vpop.f32.mrf.mxu1 }
 0x232   :  { %v709_v39 = vpop.f32.mrf.mxu2  ;;  %v715_v40 = vsel %vm4582_vm3, -1e+09, %v656_v38 }
 0x233   :  { %v4606_v41 = vsel %vm4582_vm3, -1e+09, %v709_v39  ;;  %v719_v47 = vsel %vm470_vm4, %v715_v40, -inf }
 0x234   :  { %v725_v42 = vsel %vm470_vm4, %v4606_v41, -inf }
 0x235   :  { %726 = vmax.xlane.f32.xlu2 %v725_v42 }
 0x239   :  { %v659_v43 = vpop.f32.mrf.mxu1 }
 0x23a   :  { %v716_v44 = vsel %vm4589_vm5, -1e+09, %v659_v43 }
 0x23b   :  { %v722_v45 = vsel %vm474_vm6, %v716_v44, -inf }
 0x23c   :  { %723 = vmax.xlane.f32.xlu0 %v722_v45 }
 0x24d   :  { %671 = vrot.lane.b32.xlu2 %v4539_v46, %s4249_s14  ;;  %720 = vmax.xlane.f32.xlu1 %v719_v47 }
 0x250   :  { %815 = vrot.lane.b32.xlu0 %v812_v48, %s4251_s24 }
 0x267   :  { %v473_v51 = vpop.xlane.xlu2 %472 }
 0x268   :  { %v484_v52 = vsub.f32 %v466_v13, %v473_v51 }
 0x26a   :  { %v488_v53 = vmul.f32 1.442695, %v484_v52 }
 0x26c   :  { %3725 = vpow2.f32 %v488_v53 }
 0x26f   :  { %v477_v54 = vpop.xlane.xlu0 %476 }
 0x270   :  { %v485_v55 = vsub.f32 %v467_v26, %v477_v54 }
 0x272   :  { %v3726_v56 = vpop.eup %3725  ;;  %v490_v57 = vmul.f32 1.442695, %v485_v55 }
 0x273   :  { %v496_v58 = vsel %vm470_vm4, %v3726_v56, 0.0 }
 0x274   :  { %3727 = vpow2.f32 %v490_v57 }
 0x276   :  { %497 = vadd.xlane.f32.xlu2 %v496_v58 }
 0x27a   :  { %v3728_v59 = vpop.eup %3727 }
 0x27b   :  { %v499_v46 = vsel %vm474_vm6, %v3728_v59, 0.0 }
 0x27c   :  { %500 = vadd.xlane.f32.xlu1 %v499_v46 }
 0x27d   :  { %v480_v60 = vpop.xlane.xlu1 %479 }
 0x27e   :  { %v486_v61 = vsub.f32 %v468_v33, %v480_v60 }
 0x280   :  { %v492_v63 = vmul.f32 1.442695, %v486_v61 }
 0x282   :  { %3729 = vpow2.f32 %v492_v63 }
 0x285   :  { %v483_v0 = vpop.xlane.xlu2 %482 }
 0x286   :  { %v487_v1 = vsub.f32 %v469_v36, %v483_v0 }
 0x288   :  { %v3730_v4 = vpop.eup %3729  ;;  %v494_v7 = vmul.f32 1.442695, %v487_v1 }
 0x289   :  { %v502_v10 = vsel %vm470_vm4, %v3730_v4, 0.0 }
 0x28a   :  { %3731 = vpow2.f32 %v494_v7  ;;  %503 = vadd.xlane.f32.xlu1 %v502_v10 }
 0x290   :  { %v3732_v12 = vpop.eup %3731 }
 0x291   :  { %v505_v13 = vsel %vm474_vm6, %v3732_v12, 0.0 }
 0x292   :  { %506 = vadd.xlane.f32.xlu0 %v505_v13 }
 0x295   :  { %v570_v14 = vpop.permute.xlu1 %569 }
 0x296   :  { %3534 = vmatpush.msk.msrb.mxu3 %vm534_vm2, %v570_v14 }
 0x298   :  { %595 = vmatpush.msrb.mxu3 %v3696_v19 }
 0x2a6   :  { %813 = vrot.lane.b32.xlu0 %v811_v23, %s4251_s24 }
 0x2a8   :  { %v727_v26 = vpop.xlane.xlu2 %726 }
 0x2a9   :  { %v733_v62 = vsub.f32 %v4606_v41, %v727_v26 }
 0x2ab   :  { %v739_v42 = vmul.f32 1.442695, %v733_v62 }
 0x2af   :  { %v724_v30 = vpop.xlane.xlu0 %723 }
 0x2b0   :  { %v732_v32 = vsub.f32 %v716_v44, %v724_v30  ;;  %v672_v33 = vpop.permute.xlu2 %671 }
 0x2b1   :  { %3544 = vmatmul.msk.f32.gmra.mxu2 %vm378_vm1, %v672_v33 }
 0x2b2   :  { %v737_v34 = vmul.f32 1.442695, %v732_v32 }
 0x2b4   :  { %3733 = vpow2.f32 %v737_v34 }
 0x2ba   :  { %v3734_v35 = vpop.eup %3733 }
 0x2bb   :  { %v746_v36 = vsel %vm474_vm6, %v3734_v35, 0.0 }
 0x2bc   :  { %747 = vadd.xlane.f32.xlu1 %v746_v36 }
 0x2c0   :  { %v721_v37 = vpop.xlane.xlu1 %720 }
 0x2c1   :  { %v731_v38 = vsub.f32 %v715_v40, %v721_v37  ;;  %v282_v37 = vld [vmem:[#allocation4] sm:$0xff] }
 0x2c2   :  { %v816_v52 = vpop.permute.xlu0 %815  ;;  %3555 = vmatpush.msk.msra.mxu2 %vm534_vm2, %v282_v37 }
 0x2c3   :  { %v735_v39 = vmul.f32 1.442695, %v731_v38  ;;  %v870_v38 = vrot.slane %v282_v37, 4 }
 0x2c5   :  { %3735 = vpow2.f32 %v735_v39 }
 0x2c6   :  { %3737 = vpow2.f32 %v739_v42 }
 0x2cb   :  { %v3736_v43 = vpop.eup %3735 }
 0x2cc   :  { %v743_v44 = vsel %vm470_vm4, %v3736_v43, 0.0  ;;  %v3738_v45 = vpop.eup %3737 }
 0x2cd   :  { %744 = vadd.xlane.f32.xlu2 %v743_v44  ;;  %v749_v47 = vsel %vm470_vm4, %v3738_v45, 0.0 }
 0x2d5   :  { %772 = vrot.lane.b32.xlu1 %v4552_v50, %s4251_s24  ;;  %750 = vadd.xlane.f32.xlu2 %v749_v47 }
 0x2e9   :  { %v498_v48 = vpop.xlane.xlu2 %497 }
 0x2ea   :  { %3739 = vrcp.f32 %v498_v48 }
 0x2ed   :  { %770 = vrot.lane.b32.xlu2 %v4549_v49, %s4251_s24 }
 0x2ef   :  { %v501_v41 = vpop.xlane.xlu1 %500 }
 0x2f0   :  { %v3740_v40 = vpop.eup %3739  ;;  %3741 = vrcp.f32 %v501_v41 }
 0x2f1   :  { %v512_v51 = vmul.f32 %v3740_v40, %v3726_v56 }
 0x2f3   :  { %3532 = vmatmul.msk.f32.vlgmr.msra.gmra.mxu3 %vm470_vm4, %v512_v51 }
 0x2f4   :  { %3548 = vmatpush.msk.msra.mxu3 %vm534_vm2, %v816_v52 }
 0x2f6   :  { %v3742_v53 = vpop.eup %3741 }
 0x2f7   :  { %v513_v54 = vmul.f32 %v3742_v53, %v3728_v59 }
 0x2fb   :  { %3533 = vmatmul.msk.f32.gmra.mxu3 %vm470_vm4, %v513_v54 }
 0x2fd   :  { %v504_v50 = vpop.xlane.xlu1 %503 }
 0x2fe   :  { %3743 = vrcp.f32 %v504_v50 }
 0x304   :  { %v3744_v55 = vpop.eup %3743 }
 0x305   :  { %v507_v57 = vpop.xlane.xlu0 %506  ;;  %v514_v58 = vmul.f32 %v3744_v55, %v3730_v4 }
 0x306   :  { %3745 = vrcp.f32 %v507_v57 }
 0x307   :  { %3535 = vmatmul.msk.f32.vlgmr.msrb.gmra.mxu3 %vm470_vm4, %v514_v58 }
 0x30c   :  { %v3746_v49 = vpop.eup %3745 }
 0x30d   :  { %v515_v46 = vmul.f32 %v3746_v49, %v3732_v12 }
 0x30f   :  { %3536 = vmatmul.msk.f32.gmra.mxu3 %vm470_vm4, %v515_v46 }
 0x318   :  { %v814_v56 = vpop.permute.xlu0 %813 }
 0x319   :  { %841 = vmatpush.msra.mxu3 %v814_v56 }
 0x32f   :  { %v748_v63 = vpop.xlane.xlu1 %747 }
 0x330   :  { %3747 = vrcp.f32 %v748_v63 }
 0x334   :  { %v712_v60 = vpop.f32.mrf.mxu2 }
 0x335   :  { %v718_v59 = vsel %vm4589_vm5, -1e+09, %v712_v60 }
 0x336   :  { %v728_v61 = vsel %vm474_vm6, %v718_v59, -inf  ;;  %v3748_v7 = vpop.eup %3747 }
 0x337   :  { %729 = vmax.xlane.f32.xlu0 %v728_v61  ;;  %v760_v13 = vmul.f32 %v3748_v7, %v3734_v35 }
 0x340   :  { %v745_v0 = vpop.xlane.xlu2 %744 }
 0x341   :  { %3749 = vrcp.f32 %v745_v0 }
 0x347   :  { %v773_v1 = vpop.permute.xlu1 %772  ;;  %v3750_v10 = vpop.eup %3749 }
 0x348   :  { %3545 = vmatpush.msk.msrb.mxu0 %vm534_vm2, %v773_v1  ;;  %3658 = vmatpush.msk.msra.mxu1 %vm534_vm2, %v773_v1  ;;  %v751_v4 = vpop.xlane.xlu2 %750  ;;  %v759_v23 = vmul.f32 %v3750_v10, %v3736_v43 }
 0x349   :  { %3751 = vrcp.f32 %v751_v4 }
 0x34f   :  { %v3752_v12 = vpop.eup %3751 }
 0x350   :  { %v761_v14 = vmul.f32 %v3752_v12, %v3738_v45  ;;  %v771_v19 = vpop.permute.xlu2 %770 }
 0x351   :  { %798 = vmatpush.msrb.mxu0 %v771_v19  ;;  %3659 = vmatpush.msra.mxu1 %v771_v19 }
 0x352   :  { %3546 = vmatmul.msk.f32.vlgmr.msrb.gmra.mxu0 %vm470_vm4, %v759_v23  ;;  %3547 = vmatmul.msk.f32.vlgmr.msra.gmra.mxu1 %vm470_vm4, %v760_v13 }
 0x353   :  { %3549 = vmatmul.msk.f32.vlgmr.msra.gmra.mxu3 %vm470_vm4, %v761_v14  ;;  %3551 = vmatpush.msk.msrb.mxu1 %vm534_vm2, %v870_v38 }
 0x376   :  { %v554_v33 = vpop.f32.mrf.mxu3 }
 0x377   :  { %v607_v48 = vrot.slane %v554_v33, 4 }
 0x37e   :  { %v557_v36 = vpop.f32.mrf.mxu3 }
 0x38a   :  { %v4653_v62 = vpop.f32.mrf.mxu3 }
 0x38b   :  { %v608_v19 = vrot.slane %v4653_v62, 4 }
 0x392   :  { %v4656_v39 = vpop.f32.mrf.mxu3 }
 0x3aa   :  { %v730_v26 = vpop.xlane.xlu0 %729 }
 0x3ab   :  { %v734_v30 = vsub.f32 %v718_v59, %v730_v26 }
 0x3ad   :  { %v741_v32 = vmul.f32 1.442695, %v734_v30 }
 0x3af   :  { %3753 = vpow2.f32 %v741_v32 }
 0x3b5   :  { %v4648_v34 = vpop.eup %3753 }
 0x3b6   :  { %v752_v35 = vsel %vm474_vm6, %v4648_v34, 0.0 }
 0x3b7   :  { %753 = vadd.xlane.f32.xlu1 %v752_v35 }
 0x3cf   :  { %v800_v42 = vpop.f32.mrf.mxu0  ;;  %v803_v43 = vpop.f32.mrf.mxu1 }
 0x3d0   :  { %v853_v44 = vrot.slane %v800_v42, 4  ;;  %855 = vst [vmem:[#allocation1] ss:$2 sm:$0xff] %v800_v42 }
 0x3d1   :  { %859 = vst [vmem:[#allocation1 + $0x10] ss:$2 sm:$0xff] %v803_v43 }
 0x3d2   :  { %857 = vst [vmem:[#allocation1 + $0x1] ss:$2 sm:$0xff] %v853_v44 }
 0x3d6   :  { %v843_v45 = vpop.f32.mrf.mxu3 }
 0x3d7   :  { %v854_v47 = vrot.slane %v843_v45, 4  ;;  %861 = vst [vmem:[#allocation1 + $0x11] ss:$2 sm:$0xff] %v843_v45 }
 0x3d9   :  { %v866_v41 = vld.sshfl [vmem:[#allocation1] sm:$0xff pattern:$0x75316420]  ;;  %863 = vst [vmem:[#allocation1 + $0x20] ss:$2 sm:$0xff] %v854_v47 }
 0x3da   :  { %905 = vst [vmem:[#allocation1] ss:$2 sm:$0xff] %v554_v33  ;;  %3552 = vmatmul.msk.f32.vlgmr.msrb.gmra.mxu1 %vm378_vm1, %v866_v41 }
 0x3db   :  { %907 = vst [vmem:[#allocation1 + $0x1] ss:$2 sm:$0xff] %v607_v48 }
 0x3de   :  { %v867_v40 = vld.sshfl [vmem:[#allocation1 + $0x10] sm:$0xff pattern:$0x75316420] }
 0x3df   :  { %909 = vst [vmem:[#allocation1 + $0x10] ss:$2 sm:$0xff] %v557_v36 }
 0x3e0   :  { %911 = vst [vmem:[#allocation1 + $0x11] ss:$2 sm:$0xff] %v4653_v62 }
 0x3e2   :  { %v916_v51 = vld.sshfl [vmem:[#allocation1] sm:$0xff pattern:$0x75316420]  ;;  %3553 = vmatmul.msk.f32.gmra.mxu1 %vm378_vm1, %v867_v40 }
 0x3e3   :  { %953 = vst [vmem:[#allocation1] ss:$2 sm:$0xff] %v4471_v17  ;;  %3556 = vmatmul.msk.f32.vlgmr.msra.gmra.mxu2 %vm378_vm1, %v916_v51 }
 0x3e4   :  { %955 = vst [vmem:[#allocation1 + $0x1] ss:$2 sm:$0xff] %v4474_v18 }
 0x3e7   :  { %v917_v52 = vld.sshfl [vmem:[#allocation1 + $0x10] sm:$0xff pattern:$0x75316420] }
 0x3e8   :  { %957 = vst [vmem:[#allocation1 + $0x10] ss:$2 sm:$0xff] %v4481_v21 }
 0x3eb   :  { %v958_v53 = vld.sshfl [vmem:[#allocation1] sm:$0xff pattern:$0x75316420]  ;;  %3557 = vmatmul.msk.f32.gmra.mxu2 %vm378_vm1, %v917_v52 }
 0x3ec   :  { %964 = vst [vmem:[#allocation1] ss:$2 sm:$0xff] %v4465_v15 }
 0x3ed   :  { %966 = vst [vmem:[#allocation1 + $0x1] ss:$2 sm:$0xff] %v4468_v16 }
 0x3ef   :  { %v959_v54 = vld.sshfl [vmem:[#allocation1 + $0x10] sm:$0xff pattern:$0x75316420] }
 0x3f0   :  { %968 = vst [vmem:[#allocation1 + $0x10] ss:$2 sm:$0xff] %v4478_v20  ;;  %962 = vrot.lane.b32.xlu1 %v959_v54, %s4252_s11 }
 0x3f4   :  { %v969_v50 = vld.sshfl [vmem:[#allocation1] sm:$0xff pattern:$0x75316420] }
 0x3f5   :  { %1006 = vst [vmem:[#allocation1] ss:$2 sm:$0xff] %v4503_v29  ;;  %971 = vrot.lane.b32.xlu2 %v969_v50, %s4253_s16 }
 0x3f6   :  { %1008 = vst [vmem:[#allocation1 + $0x1] ss:$2 sm:$0xff] %v4500_v28 }
 0x3f7   :  { %v970_v55 = vld.sshfl [vmem:[#allocation1 + $0x10] sm:$0xff pattern:$0x75316420] }
 0x3f8   :  { %1010 = vst [vmem:[#allocation1 + $0x10] ss:$2 sm:$0xff] %v4507_v31 }
 0x3fd   :  { %v1011_v57 = vld.sshfl [vmem:[#allocation1] sm:$0xff pattern:$0x75316420]  ;;  %960 = vrot.lane.b32.xlu2 %v958_v53, %s4252_s11 }
 0x3fe   :  { %1017 = vst [vmem:[#allocation1] ss:$2 sm:$0xff] %v4491_v25 }
 0x3ff   :  { %1019 = vst [vmem:[#allocation1 + $0x1] ss:$2 sm:$0xff] %v4488_v24  ;;  %v1012_v58 = vld.sshfl [vmem:[#allocation1 + $0x10] sm:$0xff pattern:$0x75316420] }
 0x400   :  { %1021 = vst [vmem:[#allocation1 + $0x10] ss:$2 sm:$0xff] %v4497_v27 }
 0x405   :  { %973 = vrot.lane.b32.xlu2 %v970_v55, %s4253_s16 }
 0x406   :  { %v1022_v49 = vld.sshfl [vmem:[#allocation1] sm:$0xff pattern:$0x75316420] }
 0x407   :  { %1107 = vst [vmem:[#allocation1] ss:$2 sm:$0xff] %v4465_v15  ;;  %v1023_v46 = vld.sshfl [vmem:[#allocation1 + $0x10] sm:$0xff pattern:$0x75316420]  ;;  %1024 = vrot.lane.b32.xlu0 %v1022_v49, %s4253_s16 }
 0x408   :  { %1109 = vst [vmem:[#allocation1 + $0x1] ss:$2 sm:$0xff] %v4468_v16 }
 0x409   :  { %1111 = vst [vmem:[#allocation1 + $0x10] ss:$2 sm:$0xff] %v4478_v20 }
 0x40d   :  { %1026 = vrot.lane.b32.xlu2 %v1023_v46, %s4253_s16 }
 0x40f   :  { %v1112_v56 = vld.sshfl [vmem:[#allocation1] sm:$0xff pattern:$0x75316420] }
 0x410   :  { %1150 = vst [vmem:[#allocation1] ss:$2 sm:$0xff] %v4491_v25  ;;  %v1113_v60 = vld.sshfl [vmem:[#allocation1 + $0x10] sm:$0xff pattern:$0x75316420] }
 0x411   :  { %1152 = vst [vmem:[#allocation1 + $0x1] ss:$2 sm:$0xff] %v4488_v24 }
 0x412   :  { %1154 = vst [vmem:[#allocation1 + $0x10] ss:$2 sm:$0xff] %v4497_v27 }
 0x415   :  { %1013 = vrot.lane.b32.xlu2 %v1011_v57, %s4252_s11 }
 0x42a   :  { %v754_v59 = vpop.xlane.xlu1 %753 }
 0x42b   :  { %3755 = vrcp.f32 %v754_v59 }
 0x431   :  { %v3756_v61 = vpop.eup %3755 }
 0x432   :  { %v762_v63 = vmul.f32 %v3756_v61, %v4648_v34 }
 0x434   :  { %3550 = vmatmul.msk.f32.gmra.mxu3 %vm470_vm4, %v762_v63 }
 0x44f   :  { %v972_v0 = vpop.permute.xlu2 %971 }
 0x457   :  { %v961_v1 = vpop.permute.xlu2 %960 }
 0x45f   :  { %v974_v4 = vpop.permute.xlu2 %973 }
 0x460   :  { %3559 = vmatpush.xpose.msk.msra.mxu0 %vm378_vm1, %v974_v4 }
 0x462   :  { %v963_v10 = vpop.permute.xlu1 %962 }
 0x464   :  { %3560 = vmatpush.xpose.msk.msra.mxu0 %vm378_vm1, %v972_v0 }
 0x467   :  { %3561 = vmatmul.msk.f32.vlgmr.msra.gmra.mxu0 %vm378_vm1, %v961_v1  ;;  %v1027_v7 = vpop.permute.xlu2 %1026 }
 0x468   :  { %3563 = vmatpush.xpose.msk.msrb.mxu3 %vm378_vm1, %v1027_v7 }
 0x46f   :  { %3562 = vmatmul.msk.f32.gmra.mxu0 %vm378_vm1, %v963_v10  ;;  %v1014_v13 = vpop.permute.xlu2 %1013 }
 0x479   :  { %v1025_v12 = vpop.permute.xlu0 %1024 }
 0x47a   :  { %3564 = vmatpush.xpose.msk.msrb.mxu3 %vm378_vm1, %v1025_v12 }
 0x47d   :  { %3565 = vmatmul.msk.f32.vlgmr.msrb.gmra.mxu3 %vm378_vm1, %v1014_v13 }
 0x4b7   :  { %v846_v14 = vpop.f32.mrf.mxu3 }
 0x4b8   :  { %865 = vst [vmem:[#allocation1 + $0x21] ss:$2 sm:$0xff] %v846_v14  ;;  %v283_v14 = vld [vmem:[#allocation4 + $0x8] sm:$0xff] }
 0x4b9   :  { %3573 = vmatpush.msk.msrb.mxu2 %vm534_vm2, %v283_v14 }
 0x4bf   :  { %v868_v23 = vld.sshfl [vmem:[#allocation1 + $0x20] sm:$0xff pattern:$0x75316420] }
 0x4c0   :  { %913 = vst [vmem:[#allocation1 + $0x20] ss:$2 sm:$0xff] %v608_v19  ;;  %3554 = vmatmul.msk.f32.gmra.mxu1 %vm378_vm1, %v868_v23 }
 0x4c1   :  { %915 = vst [vmem:[#allocation1 + $0x21] ss:$2 sm:$0xff] %v4656_v39  ;;  %v1156_v39 = vld.sshfl [vmem:[#allocation1 + $0x10] sm:$0xff pattern:$0x75316420] }
 0x4c8   :  { %v918_v26 = vld.sshfl [vmem:[#allocation1 + $0x20] sm:$0xff pattern:$0x75316420] }
 0x4c9   :  { %3558 = vmatmul.msk.f32.gmra.mxu2 %vm378_vm1, %v918_v26  ;;  %v4725_v26 = vpop.f32.mrf.mxu1 }
 0x4e4   :  { %v1000_v30 = vpop.f32.mrf.mxu0 }
 0x4e5   :  { %v1059_v32 = vsel %vm4582_vm3, -1e+09, %v1000_v30  ;;  %v1511_v30 = vrot.slane %v283_v14, 4 }
 0x4e6   :  { %v1063_v33 = vsel %vm470_vm4, %v1059_v32, -inf }
 0x4e7   :  { %1064 = vmax.xlane.f32.xlu0 %v1063_v33  ;;  %3591 = vmatpush.msk.msra.mxu2 %vm534_vm2, %v1511_v30 }
 0x4ec   :  { %v1003_v34 = vpop.f32.mrf.mxu0 }
 0x4ed   :  { %v1060_v35 = vsel %vm4589_vm5, -1e+09, %v1003_v34  ;;  %v4730_v34 = vpop.f32.mrf.mxu1 }
 0x4ee   :  { %v1066_v36 = vsel %vm474_vm6, %v1060_v35, -inf }
 0x4ef   :  { %1067 = vmax.xlane.f32.xlu2 %v1066_v36 }
 0x4fb   :  { %1116 = vrot.lane.b32.xlu0 %v1113_v60, %s4254_s5  ;;  %v1155_v60 = vld.sshfl [vmem:[#allocation1] sm:$0xff pattern:$0x75316420] }
 0x500   :  { %v1053_v37 = vpop.f32.mrf.mxu3 }
 0x501   :  { %v1061_v38 = vsel %vm4582_vm3, -1e+09, %v1053_v37 }
 0x502   :  { %v1069_v62 = vsel %vm470_vm4, %v1061_v38, -inf }
 0x503   :  { %1070 = vmax.xlane.f32.xlu1 %v1069_v62  ;;  %1114 = vrot.lane.b32.xlu0 %v1112_v56, %s4254_s5 }
 0x50b   :  { %1015 = vrot.lane.b32.xlu0 %v1012_v58, %s4252_s11 }
 0x51c   :  { %1159 = vrot.lane.b32.xlu1 %v1156_v39, %s4254_s5 }
 0x53d   :  { %v4733_v36 = vpop.f32.mrf.mxu1 }
 0x55a   :  { %v1065_v42 = vpop.xlane.xlu0 %1064 }
 0x55b   :  { %v1075_v43 = vsub.f32 %v1059_v32, %v1065_v42 }
 0x55d   :  { %v1079_v44 = vmul.f32 1.442695, %v1075_v43 }
 0x55f   :  { %3757 = vpow2.f32 %v1079_v44 }
 0x562   :  { %v1068_v45 = vpop.xlane.xlu2 %1067 }
 0x563   :  { %v1076_v47 = vsub.f32 %v1060_v35, %v1068_v45 }
 0x565   :  { %v3758_v48 = vpop.eup %3757  ;;  %v1081_v41 = vmul.f32 1.442695, %v1076_v47 }
 0x566   :  { %v1087_v40 = vsel %vm470_vm4, %v3758_v48, 0.0 }
 0x567   :  { %3759 = vpow2.f32 %v1081_v41  ;;  %1088 = vadd.xlane.f32.xlu2 %v1087_v40 }
 0x56d   :  { %v3760_v51 = vpop.eup %3759  ;;  %v1117_v52 = vpop.permute.xlu0 %1116 }
 0x56e   :  { %3567 = vmatpush.msk.msrb.mxu0 %vm534_vm2, %v1117_v52  ;;  %v1090_v53 = vsel %vm474_vm6, %v3760_v51, 0.0 }
 0x56f   :  { %1091 = vadd.xlane.f32.xlu2 %v1090_v53 }
 0x575   :  { %v1115_v54 = vpop.permute.xlu0 %1114 }
 0x576   :  { %v1071_v50 = vpop.xlane.xlu1 %1070  ;;  %1142 = vmatpush.msrb.mxu0 %v1115_v54 }
 0x577   :  { %v1077_v55 = vsub.f32 %v1061_v38, %v1071_v50 }
 0x579   :  { %v1083_v57 = vmul.f32 1.442695, %v1077_v55 }
 0x57b   :  { %3761 = vpow2.f32 %v1083_v57 }
 0x57d   :  { %v1016_v58 = vpop.permute.xlu0 %1015 }
 0x57e   :  { %3566 = vmatmul.msk.f32.gmra.mxu3 %vm378_vm1, %v1016_v58 }
 0x581   :  { %v3762_v49 = vpop.eup %3761 }
 0x582   :  { %v1093_v46 = vsel %vm470_vm4, %v3762_v49, 0.0 }
 0x583   :  { %1094 = vadd.xlane.f32.xlu2 %v1093_v46 }
 0x58e   :  { %v1160_v56 = vpop.permute.xlu1 %1159 }
 0x58f   :  { %3570 = vmatpush.msk.msra.mxu1 %vm534_vm2, %v1160_v56 }
 0x59b   :  { %1157 = vrot.lane.b32.xlu2 %v1155_v60, %s4254_s5 }
 0x5da   :  { %v1089_v59 = vpop.xlane.xlu2 %1088 }
 0x5db   :  { %3763 = vrcp.f32 %v1089_v59 }
 0x5e1   :  { %v3764_v61 = vpop.eup %3763 }
 0x5e2   :  { %v1103_v63 = vmul.f32 %v3764_v61, %v3758_v48  ;;  %v1092_v0 = vpop.xlane.xlu2 %1091 }
 0x5e3   :  { %3765 = vrcp.f32 %v1092_v0 }
 0x5e4   :  { %3568 = vmatmul.msk.f32.vlgmr.msrb.gmra.mxu0 %vm470_vm4, %v1103_v63 }
 0x5e9   :  { %v3766_v1 = vpop.eup %3765 }
 0x5ea   :  { %v1104_v4 = vmul.f32 %v3766_v1, %v3760_v51 }
 0x5ec   :  { %3569 = vmatmul.msk.f32.gmra.mxu0 %vm470_vm4, %v1104_v4 }
 0x5f6   :  { %v1095_v7 = vpop.xlane.xlu2 %1094 }
 0x5f7   :  { %3767 = vrcp.f32 %v1095_v7 }
 0x5fd   :  { %v3768_v10 = vpop.eup %3767 }
 0x5fe   :  { %v1105_v12 = vmul.f32 %v3768_v10, %v3762_v49  ;;  %v1158_v13 = vpop.permute.xlu2 %1157 }
 0x5ff   :  { %1185 = vmatpush.msra.mxu1 %v1158_v13 }
 0x600   :  { %3571 = vmatmul.msk.f32.vlgmr.msra.gmra.mxu1 %vm470_vm4, %v1105_v12 }
 0x661   :  { %v1144_v19 = vpop.f32.mrf.mxu0 }
 0x662   :  { %v1197_v23 = vrot.slane %v1144_v19, 4  ;;  %1199 = vst [vmem:[#allocation1] ss:$2 sm:$0xff] %v1144_v19 }
 0x664   :  { %1201 = vst [vmem:[#allocation1 + $0x1] ss:$2 sm:$0xff] %v1197_v23 }
 0x669   :  { %v1147_v32 = vpop.f32.mrf.mxu0 }
 0x66a   :  { %1203 = vst [vmem:[#allocation1 + $0x10] ss:$2 sm:$0xff] %v1147_v32 }
 0x66b   :  { %v1210_v33 = vld.sshfl [vmem:[#allocation1] sm:$0xff pattern:$0x75316420] }
 0x66c   :  { %1251 = vst [vmem:[#allocation1] ss:$2 sm:$0xff] %v4471_v17  ;;  %3574 = vmatmul.msk.f32.vlgmr.msrb.gmra.mxu2 %vm378_vm1, %v1210_v33 }
 0x66d   :  { %1253 = vst [vmem:[#allocation1 + $0x1] ss:$2 sm:$0xff] %v4474_v18 }
 0x674   :  { %v1256_v35 = vld.sshfl [vmem:[#allocation1] sm:$0xff pattern:$0x75316420] }
 0x675   :  { %1262 = vst [vmem:[#allocation1] ss:$2 sm:$0xff] %v4465_v15  ;;  %1258 = vrot.lane.b32.xlu2 %v1256_v35, %s4255_s6 }
 0x676   :  { %1264 = vst [vmem:[#allocation1 + $0x1] ss:$2 sm:$0xff] %v4468_v16 }
 0x67d   :  { %v1267_v37 = vld.sshfl [vmem:[#allocation1] sm:$0xff pattern:$0x75316420]  ;;  %v1187_v38 = vpop.f32.mrf.mxu1 }
 0x67e   :  { %1304 = vst [vmem:[#allocation1] ss:$2 sm:$0xff] %v4503_v29  ;;  %v1198_v17 = vrot.slane %v1187_v38, 4 }
 0x67f   :  { %1306 = vst [vmem:[#allocation1 + $0x1] ss:$2 sm:$0xff] %v4500_v28 }
 0x680   :  { %1205 = vst [vmem:[#allocation1 + $0x11] ss:$2 sm:$0xff] %v1187_v38 }
 0x681   :  { %1207 = vst [vmem:[#allocation1 + $0x20] ss:$2 sm:$0xff] %v1198_v17 }
 0x686   :  { %v1309_v18 = vld.sshfl [vmem:[#allocation1] sm:$0xff pattern:$0x75316420] }
 0x687   :  { %1315 = vst [vmem:[#allocation1] ss:$2 sm:$0xff] %v4491_v25  ;;  %v1211_v62 = vld.sshfl [vmem:[#allocation1 + $0x10] sm:$0xff pattern:$0x75316420] }
 0x688   :  { %1317 = vst [vmem:[#allocation1 + $0x1] ss:$2 sm:$0xff] %v4488_v24  ;;  %3575 = vmatmul.msk.f32.gmra.mxu2 %vm378_vm1, %v1211_v62 }
 0x689   :  { %1255 = vst [vmem:[#allocation1 + $0x10] ss:$2 sm:$0xff] %v4481_v21 }
 0x68f   :  { %v1320_v39 = vld.sshfl [vmem:[#allocation1] sm:$0xff pattern:$0x75316420] }
 0x690   :  { %v1257_v42 = vld.sshfl [vmem:[#allocation1 + $0x10] sm:$0xff pattern:$0x75316420]  ;;  %1405 = vst [vmem:[#allocation1] ss:$2 sm:$0xff] %v4465_v15 }
 0x691   :  { %1266 = vst [vmem:[#allocation1 + $0x10] ss:$2 sm:$0xff] %v4478_v20  ;;  %1260 = vrot.lane.b32.xlu2 %v1257_v42, %s4255_s6 }
 0x692   :  { %1407 = vst [vmem:[#allocation1 + $0x1] ss:$2 sm:$0xff] %v4468_v16 }
 0x698   :  { %v1268_v28 = vld.sshfl [vmem:[#allocation1 + $0x10] sm:$0xff pattern:$0x75316420] }
 0x699   :  { %1308 = vst [vmem:[#allocation1 + $0x10] ss:$2 sm:$0xff] %v4507_v31  ;;  %1271 = vrot.lane.b32.xlu0 %v1268_v28, %s4256_s19  ;;  %v4749_v29 = vld.sshfl [vmem:[#allocation1] sm:$0xff pattern:$0x75316420]  ;;  %v1056_v31 = vpop.f32.mrf.mxu3 }
 0x69a   :  { %1448 = vst [vmem:[#allocation1] ss:$2 sm:$0xff] %v4491_v25 }
 0x69b   :  { %1450 = vst [vmem:[#allocation1 + $0x1] ss:$2 sm:$0xff] %v4488_v24  ;;  %v1062_v24 = vsel %vm4589_vm5, -1e+09, %v1056_v31 }
 0x69c   :  { %v1072_v25 = vsel %vm474_vm6, %v1062_v24, -inf }
 0x6a0   :  { %v1310_v21 = vld.sshfl [vmem:[#allocation1 + $0x10] sm:$0xff pattern:$0x75316420] }
 0x6a1   :  { %1319 = vst [vmem:[#allocation1 + $0x10] ss:$2 sm:$0xff] %v4497_v27  ;;  %1269 = vrot.lane.b32.xlu0 %v1267_v37, %s4256_s19 }
 0x6a8   :  { %v1321_v15 = vld.sshfl [vmem:[#allocation1 + $0x10] sm:$0xff pattern:$0x75316420] }
 0x6a9   :  { %1409 = vst [vmem:[#allocation1 + $0x10] ss:$2 sm:$0xff] %v4478_v20  ;;  %1322 = vrot.lane.b32.xlu0 %v1320_v39, %s4256_s19  ;;  %1324 = vrot.lane.b32.xlu1 %v1321_v15, %s4256_s19  ;;  %v1453_v15 = vld.sshfl [vmem:[#allocation1] sm:$0xff pattern:$0x75316420] }
 0x6b0   :  { %v1411_v16 = vld.sshfl [vmem:[#allocation1 + $0x10] sm:$0xff pattern:$0x75316420] }
 0x6b1   :  { %1452 = vst [vmem:[#allocation1 + $0x10] ss:$2 sm:$0xff] %v4497_v27  ;;  %1313 = vrot.lane.b32.xlu0 %v1310_v21, %s4255_s6  ;;  %1311 = vrot.lane.b32.xlu1 %v1309_v18, %s4255_s6  ;;  %s5365_s6 = sld [smem:[#allocation33_spill]] }
 0x6ba   :  { %1073 = vmax.xlane.f32.xlu2 %v1072_v25  ;;  %v1454_v25 = vld.sshfl [vmem:[#allocation1 + $0x10] sm:$0xff pattern:$0x75316420] }
 0x6cf   :  { %v1259_v44 = vpop.permute.xlu2 %1258 }
 0x6eb   :  { %v1261_v45 = vpop.permute.xlu2 %1260 }
 0x70b   :  { %v1272_v43 = vpop.permute.xlu0 %1271 }
 0x70c   :  { %3577 = vmatpush.xpose.msk.msra.mxu3 %vm378_vm1, %v1272_v43 }
 0x713   :  { %v1270_v20 = vpop.permute.xlu0 %1269 }
 0x714   :  { %3578 = vmatpush.xpose.msk.msra.mxu3 %vm378_vm1, %v1270_v20 }
 0x717   :  { %3579 = vmatmul.msk.f32.vlgmr.msra.gmra.mxu3 %vm378_vm1, %v1259_v44 }
 0x71b   :  { %v1325_v27 = vpop.permute.xlu1 %1324  ;;  %v1323_v47 = vpop.permute.xlu0 %1322 }
 0x71c   :  { %3581 = vmatpush.xpose.msk.msra.mxu0 %vm378_vm1, %v1325_v27 }
 0x71f   :  { %3580 = vmatmul.msk.f32.gmra.mxu3 %vm378_vm1, %v1261_v45 }
 0x720   :  { %3582 = vmatpush.xpose.msk.msra.mxu0 %vm378_vm1, %v1323_v47 }
 0x723   :  { %v1312_v48 = vpop.permute.xlu1 %1311  ;;  %v1314_v41 = vpop.permute.xlu0 %1313 }
 0x724   :  { %3583 = vmatmul.msk.f32.vlgmr.msra.gmra.mxu0 %vm378_vm1, %v1312_v48 }
 0x72c   :  { %3584 = vmatmul.msk.f32.gmra.mxu0 %vm378_vm1, %v1314_v41 }
 0x72d   :  { %v1074_v40 = vpop.xlane.xlu2 %1073 }
 0x72e   :  { %v1078_v51 = vsub.f32 %v1062_v24, %v1074_v40 }
 0x730   :  { %v1085_v52 = vmul.f32 1.442695, %v1078_v51 }
 0x732   :  { %3769 = vpow2.f32 %v1085_v52 }
 0x738   :  { %v3770_v53 = vpop.eup %3769 }
 0x739   :  { %v1096_v54 = vsel %vm474_vm6, %v3770_v53, 0.0 }
 0x73a   :  { %1097 = vadd.xlane.f32.xlu0 %v1096_v54 }
 0x79a   :  { %v1298_v50 = vpop.f32.mrf.mxu3 }
 0x79b   :  { %v1357_v55 = vsel %vm4582_vm3, -1e+09, %v1298_v50 }
 0x79c   :  { %v1361_v57 = vsel %vm470_vm4, %v1357_v55, -inf }
 0x79d   :  { %1362 = vmax.xlane.f32.xlu1 %v1361_v57 }
 0x7a1   :  { %v1351_v58 = vpop.f32.mrf.mxu0 }
 0x7a2   :  { %v1359_v49 = vsel %vm4582_vm3, -1e+09, %v1351_v58  ;;  %v1301_v46 = vpop.f32.mrf.mxu3  ;;  %vm1989_vm3 = vcmask 60416  }
 0x7a3   :  { %v1358_v56 = vsel %vm4589_vm5, -1e+09, %v1301_v46  ;;  %v1367_v60 = vsel %vm470_vm4, %v1359_v49, -inf }
 0x7a4   :  { %1368 = vmax.xlane.f32.xlu0 %v1367_v60  ;;  %v1364_v59 = vsel %vm474_vm6, %v1358_v56, -inf }
 0x7a5   :  { %1365 = vmax.xlane.f32.xlu2 %v1364_v59 }
 0x7a9   :  { %v1354_v61 = vpop.f32.mrf.mxu0 }
 0x7aa   :  { %v1360_v63 = vsel %vm4589_vm5, -1e+09, %v1354_v61 }
 0x7ab   :  { %v1370_v0 = vsel %vm474_vm6, %v1360_v63, -inf }
 0x7ac   :  { %1371 = vmax.xlane.f32.xlu1 %v1370_v0  ;;  %v944_v0 = vpop.f32.mrf.mxu2 }
 0x7ad   :  { %v1098_v1 = vpop.xlane.xlu0 %1097 }
 0x7ae   :  { %3771 = vrcp.f32 %v1098_v1 }
 0x7b4   :  { %v3772_v11 = vpop.eup %3771  ;;  %v947_v1 = vpop.f32.mrf.mxu2 }
 0x7b5   :  { %v1106_v4 = vmul.f32 %v3772_v11, %v3770_v53 }
 0x7b7   :  { %3572 = vmatmul.msk.f32.gmra.mxu1 %vm470_vm4, %v1106_v4 }
 0x7b8   :  { %1414 = vrot.lane.b32.xlu0 %v1411_v16, %s4257_s21  ;;  %v3697_v16 = vpack.i.bf16 %v1453_v15, %v4749_v29 }
 0x7bc   :  { %v950_v11 = vpop.f32.mrf.mxu2 }
 0x7c4   :  { %v1239_v4 = vpop.f32.mrf.mxu2 }
 0x810   :  { %v1363_v7 = vpop.xlane.xlu1 %1362 }
 0x811   :  { %v1373_v10 = vsub.f32 %v1357_v55, %v1363_v7  ;;  %v1242_v7 = vpop.f32.mrf.mxu2 }
 0x813   :  { %v1377_v12 = vmul.f32 1.442695, %v1373_v10 }
 0x815   :  { %3773 = vpow2.f32 %v1377_v12  ;;  %v945_v12 = vadd.f32 %v944_v0, %v4725_v26 }
 0x817   :  { %v1369_v13 = vpop.xlane.xlu0 %1368 }
 0x818   :  { %v1366_v14 = vpop.xlane.xlu2 %1365  ;;  %v1375_v23 = vsub.f32 %v1359_v49, %v1369_v13  ;;  %v1248_v13 = vadd.f32 %v1239_v4, %v945_v12 }
 0x819   :  { %v1374_v22 = vsub.f32 %v1358_v56, %v1366_v14  ;;  %v3713_v14 = vld [vmem:[#allocation6] ss:$0 sm:$0xff] }
 0x81a   :  { %v1381_v33 = vmul.f32 1.442695, %v1375_v23 }
 0x81b   :  { %v3774_v19 = vpop.eup %3773  ;;  %v1379_v30 = vmul.f32 1.442695, %v1374_v22 }
 0x81c   :  { %v1385_v32 = vsel %vm470_vm4, %v3774_v19, 0.0 }
 0x81d   :  { %3775 = vpow2.f32 %v1379_v30  ;;  %1386 = vadd.xlane.f32.xlu2 %v1385_v32 }
 0x81e   :  { %3777 = vpow2.f32 %v1381_v33 }
 0x81f   :  { %v1372_v35 = vpop.xlane.xlu1 %1371 }
 0x820   :  { %v1376_v37 = vsub.f32 %v1360_v63, %v1372_v35 }
 0x822   :  { %v1383_v38 = vmul.f32 1.442695, %v1376_v37 }
 0x823   :  { %v3776_v17 = vpop.eup %3775 }
 0x824   :  { %3779 = vpow2.f32 %v1383_v38  ;;  %v1388_v18 = vsel %vm474_vm6, %v3776_v17, 0.0  ;;  %v3778_v62 = vpop.eup %3777  ;;  %v948_v38 = vadd.f32 %v947_v1, %v4730_v34 }
 0x825   :  { %1389 = vadd.xlane.f32.xlu1 %v1388_v18  ;;  %v1391_v21 = vsel %vm470_vm4, %v3778_v62, 0.0 }
 0x826   :  { %v1249_v26 = vadd.f32 %v1242_v7, %v948_v38  ;;  %v1791_v38 = vld [vmem:[%s5364_s22 + $0x18] sm:$0xff] }
 0x827   :  { %1844 = vmatpush.msrb.mxu0 %v1791_v38 }
 0x82a   :  { %v3780_v39 = vpop.eup %3779  ;;  %v1415_v42 = vpop.permute.xlu0 %1414 }
 0x82b   :  { %3585 = vmatpush.msk.msrb.mxu1 %vm534_vm2, %v1415_v42  ;;  %v1394_v28 = vsel %vm474_vm6, %v3780_v39, 0.0 }
 0x82c   :  { %1395 = vadd.xlane.f32.xlu0 %v1394_v28 }
 0x82d   :  { %1392 = vadd.xlane.f32.xlu1 %v1391_v21 }
 0x834   :  { %v1190_v31 = vpop.f32.mrf.mxu1 }
 0x835   :  { %1209 = vst [vmem:[#allocation1 + $0x21] ss:$2 sm:$0xff] %v1190_v31  ;;  %3698 = vrot.lane.b32.xlu2 %v3697_v16, %s4257_s21 }
 0x83c   :  { %v1212_v24 = vld.sshfl [vmem:[#allocation1 + $0x20] sm:$0xff pattern:$0x75316420] }
 0x83d   :  { %3576 = vmatmul.msk.f32.gmra.mxu2 %vm378_vm1, %v1212_v24 }
 0x846   :  { %1457 = vrot.lane.b32.xlu1 %v1454_v25, %s4257_s21 }
 0x890   :  { %v1387_v43 = vpop.xlane.xlu2 %1386 }
 0x891   :  { %3781 = vrcp.f32 %v1387_v43 }
 0x897   :  { %v3782_v20 = vpop.eup %3781 }
 0x898   :  { %v3699_v44 = vpop.permute.xlu2 %3698  ;;  %v1390_v27 = vpop.xlane.xlu1 %1389  ;;  %v1401_v47 = vmul.f32 %v3782_v20, %v3774_v19  ;;  %v4258_v20 = vmov 32.0  }
 0x899   :  { %v3700_v45 = vunpack.i.l.bf16 %v3699_v44  ;;  %3783 = vrcp.f32 %v1390_v27  ;;  %v3701_v53 = vunpack.i.h.bf16 %v3699_v44 }
 0x89b   :  { %1440 = vmatpush.msrb.mxu1 %v3700_v45 }
 0x89c   :  { %3586 = vmatmul.msk.f32.vlgmr.msrb.gmra.mxu1 %vm470_vm4, %v1401_v47 }
 0x89f   :  { %v3784_v29 = vpop.eup %3783  ;;  %v1396_v40 = vpop.xlane.xlu0 %1395 }
 0x8a0   :  { %v1402_v48 = vmul.f32 %v3784_v29, %v3776_v17  ;;  %v1393_v41 = vpop.xlane.xlu1 %1392  ;;  %v4260_v29 = vmov 1985246804  }
 0x8a1   :  { %3785 = vrcp.f32 %v1393_v41 }
 0x8a2   :  { %3787 = vrcp.f32 %v1396_v40 }
 0x8a3   :  { %3789 = vrcp.f32 %v4258_v20 }
 0x8a4   :  { %3587 = vmatmul.msk.f32.gmra.mxu1 %vm470_vm4, %v1402_v48  ;;  %v1622_v48 = vunpack.c.l.s4 %v4260_v29 }
 0x8a7   :  { %v3786_v51 = vpop.eup %3785 }
 0x8a8   :  { %v1403_v54 = vmul.f32 %v3786_v51, %v3778_v62  ;;  %v3788_v50 = vpop.eup %3787  ;;  %v4819_v51 = vunpack.c.0.s8 %v1622_v48 }
 0x8a9   :  { %v1404_v55 = vmul.f32 %v3788_v50, %v3780_v39  ;;  %v951_v39 = vadd.f32 %v950_v11, %v4733_v36  ;;  %v3790_v44 = vpop.eup %3789 }
 0x8aa   :  { %v1605_v27 = vmul.f32 32.0, %v3790_v44  ;;  %vm1609_vm7 = vweird.f32 %v3790_v44 }
 0x8ac   :  { %v1606_v45 = vsub.f32 1.0, %v1605_v27 }
 0x8ae   :  { %v1607_v47 = vmul.f32 %v3790_v44, %v1606_v45 }
 0x8b8   :  { %v1458_v52 = vpop.permute.xlu1 %1457 }
 0x8b9   :  { %3588 = vmatpush.msk.msrb.mxu3 %vm534_vm2, %v1458_v52  ;;  %vm1915_vm2 = vcmask 64512  }
 0x8bb   :  { %1483 = vmatpush.msrb.mxu3 %v3701_v53 }
 0x8bc   :  { %3589 = vmatmul.msk.f32.vlgmr.msrb.gmra.mxu3 %vm470_vm4, %v1403_v54 }
 0x8c0   :  { %v1245_v10 = vpop.f32.mrf.mxu2 }
 0x8c1   :  { %v1250_v21 = vadd.f32 %v1245_v10, %v951_v39  ;;  %v1788_v39 = vld [vmem:[%s5364_s22] sm:$0xff] }
 0x8c4   :  { %3590 = vmatmul.msk.f32.gmra.mxu3 %vm470_vm4, %v1404_v55 }
 0x919   :  { %v1442_v57 = vpop.f32.mrf.mxu1 }
 0x91a   :  { %v1495_v58 = vrot.slane %v1442_v57, 4  ;;  %1497 = vst [vmem:[#allocation1] ss:$2 sm:$0xff] %v1442_v57 }
 0x91c   :  { %1499 = vst [vmem:[#allocation1 + $0x1] ss:$2 sm:$0xff] %v1495_v58 }
 0x921   :  { %v1445_v49 = vpop.f32.mrf.mxu1 }
 0x922   :  { %1501 = vst [vmem:[#allocation1 + $0x10] ss:$2 sm:$0xff] %v1445_v49 }
 0x923   :  { %v1508_v46 = vld.sshfl [vmem:[#allocation1] sm:$0xff pattern:$0x75316420] }
 0x924   :  { %3592 = vmatmul.msk.f32.vlgmr.msra.gmra.mxu2 %vm378_vm1, %v1508_v46 }
 0x93f   :  { %v1485_v56 = vpop.f32.mrf.mxu3 }
 0x940   :  { %v1496_v60 = vrot.slane %v1485_v56, 4  ;;  %1503 = vst [vmem:[#allocation1 + $0x11] ss:$2 sm:$0xff] %v1485_v56 }
 0x942   :  { %1505 = vst [vmem:[#allocation1 + $0x20] ss:$2 sm:$0xff] %v1496_v60 }
 0x947   :  { %v1509_v59 = vld.sshfl [vmem:[#allocation1 + $0x10] sm:$0xff pattern:$0x75316420]  ;;  %v1488_v61 = vpop.f32.mrf.mxu3 }
 0x948   :  { %1507 = vst [vmem:[#allocation1 + $0x21] ss:$2 sm:$0xff] %v1488_v61  ;;  %3593 = vmatmul.msk.f32.gmra.mxu2 %vm378_vm1, %v1509_v59 }
 0x94f   :  { %v1510_v63 = vld.sshfl [vmem:[#allocation1 + $0x20] sm:$0xff pattern:$0x75316420] }
 0x950   :  { %3594 = vmatmul.msk.f32.gmra.mxu2 %vm378_vm1, %v1510_v63 }
 0x9a7   :  { %v1537_v22 = vpop.f32.mrf.mxu2 }
 0x9a8   :  { %v1546_v19 = vadd.f32 %v1537_v22, %v1248_v13 }
 0x9aa   :  { %v1552_v23 = vadd.f32 %v3713_v14, %v1546_v19 }
 0x9ac   :  { %v1558_v30 = vrot.slane %v1552_v23, 4  ;;  %v1564_v32 = vadd.f32 %v1552_v23, %v4429_v2 }
 0x9ae   :  { %v1565_v33 = vadd.f32 %v1558_v30, %v273_v5  ;;  %1578 = vst [vmem:[#allocation1] ss:$2 sm:$0xff] %v1564_v32 }
 0x9b0   :  { %1580 = vst [vmem:[#allocation1 + $0x1] ss:$2 sm:$0xff] %v1565_v33 }
 0x9b7   :  { %v1589_v35 = vld.sshfl [vmem:[#allocation1] sm:$0xff pattern:$0x75316420] }
 0x9b8   :  { %v1595_v37 = vsel %vm302_vm0, %v1589_v35, 0.0 }
 0x9b9   :  { %1596 = vadd.xlane.f32.xlu2 %v1595_v37 }
 0x9cb   :  { %v1540_v17 = vpop.f32.mrf.mxu2 }
 0x9cc   :  { %v1547_v18 = vadd.f32 %v1540_v17, %v1249_v26  ;;  %v1790_v26 = vld [vmem:[%s5364_s22 + $0x10] sm:$0xff] }
 0x9cd   :  { %1845 = vmatpush.msrb.mxu0 %v1790_v26 }
 0x9ce   :  { %v1553_v62 = vadd.f32 %v3713_v14, %v1547_v18  ;;  %v1789_v18 = vld [vmem:[%s5364_s22 + $0x8] sm:$0xff] }
 0x9cf   :  { %1846 = vmatpush.msrb.mxu0 %v1789_v18 }
 0x9d0   :  { %v1559_v42 = vrot.slane %v1553_v62, 4  ;;  %v1566_v28 = vadd.f32 %v1553_v62, %v4434_v3 }
 0x9d1   :  { %1847 = vmatpush.msrb.mxu0 %v1788_v39 }
 0x9d2   :  { %v1567_v2 = vadd.f32 %v1559_v42, %v4444_v6  ;;  %1582 = vst [vmem:[#allocation1 + $0x10] ss:$2 sm:$0xff] %v1566_v28  ;;  %v1608_v6 = vadd.f32 %v3790_v44, %v1607_v47  ;;  %v1796_v42 = vld [vmem:[%s5327_s8 + $0x18] sm:$0xff] }
 0x9d3   :  { %v1543_v5 = vpop.f32.mrf.mxu2  ;;  %1888 = vmatpush.msra.mxu1 %v1796_v42 }
 0x9d4   :  { %1584 = vst [vmem:[#allocation1 + $0x11] ss:$2 sm:$0xff] %v1567_v2  ;;  %v1548_v15 = vadd.f32 %v1543_v5, %v1250_v21  ;;  %v4815_v41 = vsel %vm1609_vm7, %v3790_v44, %v1608_v6 }
 0x9d6   :  { %v1554_v16 = vadd.f32 %v3713_v14, %v1548_v15  ;;  %v1794_v15 = vld [vmem:[%s5327_s8 + $0x8] sm:$0xff] }
 0x9d8   :  { %v1560_v31 = vrot.slane %v1554_v16, 4  ;;  %v1568_v34 = vadd.f32 %v1554_v16, %v274_v8  ;;  %v4259_v8 = vmov 839922192  }
 0x9da   :  { %v1569_v24 = vadd.f32 %v1560_v31, %v4456_v9  ;;  %1586 = vst [vmem:[#allocation1 + $0x20] ss:$2 sm:$0xff] %v1568_v34  ;;  %v1618_v9 = vunpack.c.l.s4 %v4259_v8  ;;  %v1793_v31 = vld [vmem:[%s5327_s8] sm:$0xff] }
 0x9db   :  { %v1590_v25 = vld.sshfl [vmem:[#allocation1 + $0x10] sm:$0xff pattern:$0x75316420] }
 0x9dc   :  { %1588 = vst [vmem:[#allocation1 + $0x21] ss:$2 sm:$0xff] %v1569_v24  ;;  %v1598_v36 = vsel %vm302_vm0, %v1590_v25, 0.0  ;;  %v4817_v40 = vunpack.c.0.s8 %v1618_v9  ;;  %v4886_v25 = vld [vmem:[#allocation12] ss:$0 sm:$0xff] }
 0x9dd   :  { %1599 = vadd.xlane.f32.xlu1 %v1598_v36  ;;  %v1769_v20 = vrot.slane %v4886_v25, 4 }
 0x9e3   :  { %v1591_v3 = vld.sshfl [vmem:[#allocation1 + $0x20] sm:$0xff pattern:$0x75316420] }
 0x9e4   :  { %v1601_v43 = vsel %vm302_vm0, %v1591_v3, 0.0  ;;  %v4888_v3 = vld [vmem:[#allocation13] ss:$0 sm:$0xff] }
 0x9e5   :  { %1602 = vadd.xlane.f32.xlu0 %v1601_v43  ;;  %v1780_v45 = vrot.slane %v4888_v3, 4 }
 0xa2c   :  { %v1597_v52 = vpop.xlane.xlu2 %1596 }
 0xa2d   :  { %v1611_v53 = vmul.f32 %v4815_v41, %v1597_v52 }
 0xa2f   :  { %v1620_v54 = vperm.slane %v1611_v53, %v4817_v40  ;;  %v1624_v50 = vperm.slane %v1611_v53, %v4819_v51 }
 0xa31   :  { %v4824_v55 = vsub.f32 %v1564_v32, %v1620_v54  ;;  %v4826_v57 = vsub.f32 %v1565_v33, %v1624_v50 }
 0xa33   :  { %v1653_v58 = vmul.f32 %v4824_v55, %v4824_v55  ;;  %v1654_v49 = vmul.f32 %v4826_v57, %v4826_v57 }
 0xa35   :  { %1665 = vst [vmem:[#allocation1] ss:$2 sm:$0xff] %v1653_v58 }
 0xa36   :  { %1667 = vst [vmem:[#allocation1 + $0x1] ss:$2 sm:$0xff] %v1654_v49 }
 0xa3d   :  { %v1676_v46 = vld.sshfl [vmem:[#allocation1] sm:$0xff pattern:$0x75316420] }
 0xa3e   :  { %v1682_v56 = vsel %vm302_vm0, %v1676_v46, 0.0 }
 0xa3f   :  { %1683 = vadd.xlane.f32.xlu2 %v1682_v56 }
 0xa50   :  { %v1600_v60 = vpop.xlane.xlu1 %1599 }
 0xa51   :  { %v1612_v59 = vmul.f32 %v4815_v41, %v1600_v60 }
 0xa53   :  { %v1628_v61 = vperm.slane %v1612_v59, %v4817_v40  ;;  %v1632_v63 = vperm.slane %v1612_v59, %v4819_v51  ;;  %v268_v59 = vld [vmem:[%s5365_s6 + $0x8] sm:$0xff] }
 0xa55   :  { %v4836_v0 = vsub.f32 %v1566_v28, %v1628_v61  ;;  %v4838_v1 = vsub.f32 %v1567_v2, %v1632_v63  ;;  %v1795_v2 = vld [vmem:[%s5327_s8 + $0x10] sm:$0xff] }
 0xa56   :  { %1889 = vmatpush.msra.mxu1 %v1795_v2 }
 0xa57   :  { %v1655_v11 = vmul.f32 %v4836_v0, %v4836_v0  ;;  %v1656_v4 = vmul.f32 %v4838_v1, %v4838_v1 }
 0xa58   :  { %v1603_v7 = vpop.xlane.xlu0 %1602  ;;  %1890 = vmatpush.msra.mxu1 %v1794_v15 }
 0xa59   :  { %1669 = vst [vmem:[#allocation1 + $0x10] ss:$2 sm:$0xff] %v1655_v11  ;;  %v1613_v10 = vmul.f32 %v4815_v41, %v1603_v7 }
 0xa5a   :  { %1671 = vst [vmem:[#allocation1 + $0x11] ss:$2 sm:$0xff] %v1656_v4  ;;  %1891 = vmatpush.msra.mxu1 %v1793_v31 }
 0xa5b   :  { %v1636_v12 = vperm.slane %v1613_v10, %v4817_v40  ;;  %v1640_v13 = vperm.slane %v1613_v10, %v4819_v51 }
 0xa5d   :  { %v4847_v14 = vsub.f32 %v1568_v34, %v1636_v12  ;;  %v4849_v22 = vsub.f32 %v1569_v24, %v1640_v13  ;;  %v267_v34 = vld [vmem:[%s5365_s6] sm:$0xff] }
 0xa5e   :  { %3598 = vmatmul.msk.f32.vlgmr.msra.gmra.mxu1 %vm302_vm0, %v267_v34 }
 0xa5f   :  { %v1657_v19 = vmul.f32 %v4847_v14, %v4847_v14  ;;  %v1658_v23 = vmul.f32 %v4849_v22, %v4849_v22 }
 0xa61   :  { %1673 = vst [vmem:[#allocation1 + $0x20] ss:$2 sm:$0xff] %v1657_v19  ;;  %v1677_v30 = vld.sshfl [vmem:[#allocation1 + $0x10] sm:$0xff pattern:$0x75316420] }
 0xa62   :  { %1675 = vst [vmem:[#allocation1 + $0x21] ss:$2 sm:$0xff] %v1658_v23  ;;  %v1685_v32 = vsel %vm302_vm0, %v1677_v30, 0.0 }
 0xa63   :  { %1686 = vadd.xlane.f32.xlu0 %v1685_v32 }
 0xa66   :  { %3599 = vmatmul.msk.f32.gmra.mxu1 %vm302_vm0, %v268_v59 }
 0xa69   :  { %v1678_v33 = vld.sshfl [vmem:[#allocation1 + $0x20] sm:$0xff pattern:$0x75316420] }
 0xa6a   :  { %v1688_v35 = vsel %vm302_vm0, %v1678_v33, 0.0 }
 0xa6b   :  { %1689 = vadd.xlane.f32.xlu2 %v1688_v35 }
 0xab2   :  { %v1684_v37 = vpop.xlane.xlu2 %1683 }
 0xab3   :  { %v1691_v17 = vmul.f32 %v1684_v37, %v4815_v41 }
 0xab5   :  { %v1694_v62 = vadd.f32 1e-05, %v1691_v17 }
 0xab7   :  { %3791 = vrsqrt.f32 %v1694_v62  ;;  %vm1703_vm9 = vweird.f32 %v1694_v62 }
 0xabd   :  { %v3792_v28 = vpop.eup %3791 }
 0xabe   :  { %v1698_v21 = vmul.f32 %v3792_v28, %v1694_v62  ;;  %vm1704_vm8 = vweird.f32 %v3792_v28 }
 0xabf   :  { %vm1705_vm10 = vmor %vm1703_vm9, %vm1704_vm8 }
 0xac0   :  { %v1699_v5 = vmul.f32 %v3792_v28, %v1698_v21 }
 0xac2   :  { %v1700_v16 = vmul.f32 0.5, %v1699_v5 }
 0xac4   :  { %v1701_v24 = vsub.f32 1.5, %v1700_v16  ;;  %v3716_v16 = vld [vmem:[#allocation7] ss:$0 sm:$0xff] }
 0xac6   :  { %v1702_v36 = vmul.f32 %v3792_v28, %v1701_v24 }
 0xac8   :  { %v1706_v43 = vsel %vm1705_vm10, %v3792_v28, %v1702_v36 }
 0xac9   :  { %v1733_v44 = vperm.slane %v1706_v43, %v4817_v40  ;;  %v1737_v27 = vperm.slane %v1706_v43, %v4819_v51 }
 0xacb   :  { %v1760_v47 = vmul.f32 %v1733_v44, %v4824_v55  ;;  %v1761_v6 = vmul.f32 %v1737_v27, %v4826_v57 }
 0xacd   :  { %v1771_v8 = vmul.f32 %v4886_v25, %v1760_v47  ;;  %v1772_v9 = vmul.f32 %v1769_v20, %v1761_v6 }
 0xacf   :  { %v4898_v29 = vadd.f32 %v4888_v3, %v1771_v8  ;;  %v4900_v48 = vadd.f32 %v1780_v45, %v1772_v9 }
 0xad1   :  { %1812 = vst [vmem:[#allocation1] ss:$2 sm:$0xff] %v4898_v29 }
 0xad2   :  { %1814 = vst [vmem:[#allocation1 + $0x1] ss:$2 sm:$0xff] %v4900_v48 }
 0xad6   :  { %v1687_v52 = vpop.xlane.xlu0 %1686 }
 0xad7   :  { %v1692_v53 = vmul.f32 %v1687_v52, %v4815_v41 }
 0xad9   :  { %v1695_v54 = vadd.f32 1e-05, %v1692_v53  ;;  %v1823_v50 = vld.sshfl [vmem:[#allocation1] sm:$0xff pattern:$0x75316420] }
 0xada   :  { %3595 = vmatmul.msk.f32.vlgmr.msrb.gmra.mxu0 %vm302_vm0, %v1823_v50 }
 0xadb   :  { %3793 = vrsqrt.f32 %v1695_v54  ;;  %vm1713_vm12 = vweird.f32 %v1695_v54 }
 0xade   :  { %v1690_v55 = vpop.xlane.xlu2 %1689 }
 0xadf   :  { %v1693_v57 = vmul.f32 %v1690_v55, %v4815_v41 }
 0xae1   :  { %v3794_v58 = vpop.eup %3793  ;;  %v1696_v49 = vadd.f32 1e-05, %v1693_v57 }
 0xae2   :  { %v1708_v46 = vmul.f32 %v3794_v58, %v1695_v54  ;;  %vm1714_vm11 = vweird.f32 %v3794_v58 }
 0xae3   :  { %3795 = vrsqrt.f32 %v1696_v49  ;;  %vm1715_vm13 = vmor %vm1713_vm12, %vm1714_vm11  ;;  %vm1723_vm15 = vweird.f32 %v1696_v49 }
 0xae4   :  { %v1709_v56 = vmul.f32 %v3794_v58, %v1708_v46 }
 0xae6   :  { %v1710_v60 = vmul.f32 0.5, %v1709_v56 }
 0xae8   :  { %v1711_v61 = vsub.f32 1.5, %v1710_v60 }
 0xae9   :  { %v3796_v63 = vpop.eup %3795 }
 0xaea   :  { %v1712_v11 = vmul.f32 %v3794_v58, %v1711_v61  ;;  %v1718_v4 = vmul.f32 %v3796_v63, %v1696_v49  ;;  %vm1724_vm14 = vweird.f32 %v3796_v63 }
 0xaeb   :  { %vm1725_vm1 = vmor %vm1723_vm15, %vm1724_vm14 }
 0xaec   :  { %v1716_v7 = vsel %vm1715_vm13, %v3794_v58, %v1712_v11  ;;  %v1719_v10 = vmul.f32 %v3796_v63, %v1718_v4  ;;  %vm3216_vm13 = vcmask 523264  }
 0xaed   :  { %v1741_v12 = vperm.slane %v1716_v7, %v4817_v40  ;;  %v1745_v13 = vperm.slane %v1716_v7, %v4819_v51 }
 0xaee   :  { %v1720_v19 = vmul.f32 0.5, %v1719_v10 }
 0xaef   :  { %v1762_v23 = vmul.f32 %v1741_v12, %v4836_v0  ;;  %v1763_v30 = vmul.f32 %v1745_v13, %v4838_v1 }
 0xaf0   :  { %v1721_v32 = vsub.f32 1.5, %v1720_v19 }
 0xaf1   :  { %v1773_v33 = vmul.f32 %v4886_v25, %v1762_v23  ;;  %v1774_v35 = vmul.f32 %v1769_v20, %v1763_v30 }
 0xaf2   :  { %v1722_v37 = vmul.f32 %v3796_v63, %v1721_v32 }
 0xaf3   :  { %v4917_v38 = vadd.f32 %v4888_v3, %v1773_v33  ;;  %v4919_v26 = vadd.f32 %v1780_v45, %v1774_v35 }
 0xaf4   :  { %v1726_v17 = vsel %vm1725_vm1, %v3796_v63, %v1722_v37 }
 0xaf5   :  { %1816 = vst [vmem:[#allocation1 + $0x10] ss:$2 sm:$0xff] %v4917_v38  ;;  %v1749_v0 = vperm.slane %v1726_v17, %v4817_v40  ;;  %v1753_v1 = vperm.slane %v1726_v17, %v4819_v51 }
 0xaf6   :  { %1818 = vst [vmem:[#allocation1 + $0x11] ss:$2 sm:$0xff] %v4919_v26 }
 0xaf7   :  { %v1764_v18 = vmul.f32 %v1749_v0, %v4847_v14  ;;  %v1765_v62 = vmul.f32 %v1753_v1, %v4849_v22  ;;  %v3717_v14 = vld [vmem:[#allocation9] ss:$0 sm:$0xff]  ;;  %v1893_v22 = vpop.f32.mrf.mxu1 }
 0xaf8   :  { %v4937_v15 = vadd.f32 %v3717_v14, %v1893_v22 }
 0xaf9   :  { %v1775_v39 = vmul.f32 %v4886_v25, %v1764_v18  ;;  %v1776_v42 = vmul.f32 %v1769_v20, %v1765_v62 }
 0xafa   :  { %3600 = vmatpush.xpose.msk.msra.mxu3 %vm1915_vm2, %v4937_v15  ;;  %2112 = vrot.lane.b32.xlu0 %v4937_v15, %s4252_s11 }
 0xafb   :  { %v4929_v28 = vadd.f32 %v4888_v3, %v1775_v39  ;;  %v4931_v21 = vadd.f32 %v1780_v45, %v1776_v42 }
 0xafd   :  { %1820 = vst [vmem:[#allocation1 + $0x20] ss:$2 sm:$0xff] %v4929_v28  ;;  %v1824_v2 = vld.sshfl [vmem:[#allocation1 + $0x10] sm:$0xff pattern:$0x75316420] }
 0xafe   :  { %1822 = vst [vmem:[#allocation1 + $0x21] ss:$2 sm:$0xff] %v4931_v21  ;;  %3596 = vmatmul.msk.f32.gmra.mxu0 %vm302_vm0, %v1824_v2 }
 0xaff   :  { %v1896_v43 = vpop.f32.mrf.mxu1 }
 0xb00   :  { %v4950_v20 = vadd.f32 %v3717_v14, %v1896_v43 }
 0xb02   :  { %3603 = vmatpush.xpose.msk.msrb.mxu1 %vm1915_vm2, %v4950_v20  ;;  %2154 = vrot.lane.b32.xlu2 %v4950_v20, %s4252_s11 }
 0xb05   :  { %v1825_v5 = vld.sshfl [vmem:[#allocation1 + $0x20] sm:$0xff pattern:$0x75316420] }
 0xb06   :  { %3597 = vmatmul.msk.f32.gmra.mxu0 %vm302_vm0, %v1825_v5 }
 0xb57   :  { %v1849_v31 = vpop.f32.mrf.mxu0 }
 0xb58   :  { %v1850_v34 = vadd.f32 %v3716_v16, %v1849_v31 }
 0xb5a   :  { %v1861_v24 = vrot.slane %v1850_v34, 4  ;;  %v4943_v25 = vmul.f32 0.35355338, %v1850_v34 }
 0xb5c   :  { %v4945_v36 = vmul.f32 0.35355338, %v1861_v24  ;;  %1908 = vst [vmem:[#allocation1] ss:$2 sm:$0xff] %v4943_v25  ;;  %v2155_v61 = vpop.permute.xlu2 %2154 }
 0xb5d   :  { %3613 = vmatpush.xpose.msk.msra.mxu1 %vm1915_vm2, %v2155_v61 }
 0xb5e   :  { %1910 = vst [vmem:[#allocation1 + $0x1] ss:$2 sm:$0xff] %v4945_v36 }
 0xb65   :  { %v1913_v3 = vld.sshfl [vmem:[#allocation1] sm:$0xff pattern:$0x75316420] }
 0xb66   :  { %3601 = vmatmul.msk.f32.vlgmr.msra.gmra.mxu3 %vm1915_vm2, %v1913_v3 }
 0xb6c   :  { %v2113_v56 = vpop.permute.xlu0 %2112 }
 0xb6d   :  { %3610 = vmatpush.xpose.msk.msra.mxu0 %vm1915_vm2, %v2113_v56 }
 0xb7b   :  { %v1852_v44 = vpop.f32.mrf.mxu0 }
 0xb7c   :  { %v1853_v27 = vadd.f32 %v3716_v16, %v1852_v44 }
 0xb7e   :  { %v1862_v45 = vrot.slane %v1853_v27, 4  ;;  %v4956_v47 = vmul.f32 0.35355338, %v1853_v27 }
 0xb80   :  { %v4958_v6 = vmul.f32 0.35355338, %v1862_v45  ;;  %1912 = vst [vmem:[#allocation1 + $0x10] ss:$2 sm:$0xff] %v4956_v47 }
 0xb82   :  { %1949 = vst [vmem:[#allocation1] ss:$2 sm:$0xff] %v4958_v6 }
 0xb83   :  { %v1855_v8 = vpop.f32.mrf.mxu0 }
 0xb84   :  { %v1856_v9 = vadd.f32 %v3716_v16, %v1855_v8 }
 0xb86   :  { %v1863_v52 = vrot.slane %v1856_v9, 4  ;;  %v4962_v53 = vmul.f32 0.35355338, %v1856_v9 }
 0xb87   :  { %v1914_v54 = vld.sshfl [vmem:[#allocation1 + $0x10] sm:$0xff pattern:$0x75316420] }
 0xb88   :  { %v4964_v50 = vmul.f32 0.35355338, %v1863_v52  ;;  %1951 = vst [vmem:[#allocation1 + $0x1] ss:$2 sm:$0xff] %v4962_v53  ;;  %3602 = vmatmul.msk.f32.gmra.mxu3 %vm1915_vm2, %v1914_v54  ;;  %v5006_v54 = vpack.i.bf16 %v4950_v20, %v4937_v15 }
 0xb8a   :  { %1953 = vst [vmem:[#allocation1 + $0x10] ss:$2 sm:$0xff] %v4964_v50 }
 0xb8f   :  { %v1954_v55 = vld.sshfl [vmem:[#allocation1] sm:$0xff pattern:$0x75316420] }
 0xb90   :  { %3604 = vmatmul.msk.f32.vlgmr.msrb.gmra.mxu1 %vm1915_vm2, %v1954_v55  ;;  %2101 = vst [vmem:[#allocation1] ss:$2 sm:$0xff] %v4943_v25 }
 0xb91   :  { %2103 = vst [vmem:[#allocation1 + $0x1] ss:$2 sm:$0xff] %v4945_v36  ;;  %v1955_v57 = vld.sshfl [vmem:[#allocation1 + $0x10] sm:$0xff pattern:$0x75316420] }
 0xb92   :  { %2105 = vst [vmem:[#allocation1 + $0x10] ss:$2 sm:$0xff] %v4956_v47 }
 0xb98   :  { %v2106_v58 = vld.sshfl [vmem:[#allocation1] sm:$0xff pattern:$0x75316420]  ;;  %3605 = vmatmul.msk.f32.gmra.mxu1 %vm1915_vm2, %v1955_v57 }
 0xb99   :  { %2108 = vrot.lane.b32.xlu1 %v2106_v58, %s4252_s11  ;;  %2143 = vst [vmem:[#allocation1] ss:$2 sm:$0xff] %v4958_v6  ;;  %v2107_v49 = vld.sshfl [vmem:[#allocation1 + $0x10] sm:$0xff pattern:$0x75316420] }
 0xb9a   :  { %2145 = vst [vmem:[#allocation1 + $0x1] ss:$2 sm:$0xff] %v4962_v53  ;;  %2110 = vrot.lane.b32.xlu0 %v2107_v49, %s4252_s11 }
 0xb9b   :  { %2147 = vst [vmem:[#allocation1 + $0x10] ss:$2 sm:$0xff] %v4964_v50 }
 0xba1   :  { %v2148_v46 = vld.sshfl [vmem:[#allocation1] sm:$0xff pattern:$0x75316420] }
 0xba2   :  { %2150 = vrot.lane.b32.xlu1 %v2148_v46, %s4252_s11  ;;  %v2149_v30 = vld.sshfl [vmem:[#allocation1 + $0x10] sm:$0xff pattern:$0x75316420] }
 0xbe9   :  { %v1940_v60 = vpop.f32.mrf.mxu3 }
 0xbea   :  { %v1986_v59 = vsel %vm1915_vm2, %v1940_v60, -inf }
 0xbeb   :  { %1987 = vmax.xlane.f32.xlu0 %v1986_v59 }
 0xc0b   :  { %v2109_v63 = vpop.permute.xlu1 %2108  ;;  %v1943_v11 = vpop.f32.mrf.mxu3 }
 0xc0c   :  { %3611 = vmatmul.msk.f32.vlgmr.msra.gmra.mxu0 %vm1915_vm2, %v2109_v63  ;;  %v1990_v4 = vsel %vm1989_vm3, %v1943_v11, -inf  ;;  %v2111_v12 = vpop.permute.xlu0 %2110 }
 0xc0d   :  { %1991 = vmax.xlane.f32.xlu2 %v1990_v4  ;;  %v1980_v7 = vpop.f32.mrf.mxu1 }
 0xc0e   :  { %v1993_v10 = vsel %vm1915_vm2, %v1980_v7, -inf }
 0xc0f   :  { %1994 = vmax.xlane.f32.xlu1 %v1993_v10 }
 0xc14   :  { %v2151_v13 = vpop.permute.xlu1 %2150  ;;  %3612 = vmatmul.msk.f32.gmra.mxu0 %vm1915_vm2, %v2111_v12 }
 0xc15   :  { %3614 = vmatmul.msk.f32.vlgmr.msra.gmra.mxu1 %vm1915_vm2, %v2151_v13  ;;  %v1983_v19 = vpop.f32.mrf.mxu1 }
 0xc16   :  { %v1996_v23 = vsel %vm1989_vm3, %v1983_v19, -inf }
 0xc17   :  { %1997 = vmax.xlane.f32.xlu2 %v1996_v23 }
 0xc2f   :  { %2152 = vrot.lane.b32.xlu2 %v2149_v30, %s4252_s11 }
 0xc5e   :  { %v1988_v32 = vpop.xlane.xlu0 %1987 }
 0xc5f   :  { %v1999_v33 = vsub.f32 %v1940_v60, %v1988_v32 }
 0xc61   :  { %v2003_v35 = vmul.f32 1.442695, %v1999_v33 }
 0xc63   :  { %3797 = vpow2.f32 %v2003_v35 }
 0xc69   :  { %v4990_v37 = vpop.eup %3797 }
 0xc6a   :  { %v2011_v17 = vsel %vm1915_vm2, %v4990_v37, 0.0 }
 0xc6b   :  { %2012 = vadd.xlane.f32.xlu1 %v2011_v17 }
 0xc80   :  { %v1992_v0 = vpop.xlane.xlu2 %1991 }
 0xc81   :  { %v2000_v1 = vsub.f32 %v1943_v11, %v1992_v0 }
 0xc82   :  { %v1995_v62 = vpop.xlane.xlu1 %1994 }
 0xc83   :  { %v2005_v18 = vmul.f32 1.442695, %v2000_v1  ;;  %v2001_v39 = vsub.f32 %v1980_v7, %v1995_v62 }
 0xc85   :  { %3799 = vpow2.f32 %v2005_v18  ;;  %v2007_v22 = vmul.f32 1.442695, %v2001_v39 }
 0xc89   :  { %v2137_v42 = vpop.f32.mrf.mxu0 }
 0xc8a   :  { %v1998_v2 = vpop.xlane.xlu2 %1997  ;;  %v2185_v5 = vsel %vm1915_vm2, %v2137_v42, -inf }
 0xc8b   :  { %v2002_v14 = vsub.f32 %v1983_v19, %v1998_v2  ;;  %2186 = vmax.xlane.f32.xlu0 %v2185_v5  ;;  %v4995_v31 = vpop.eup %3799 }
 0xc8c   :  { %v2014_v3 = vsel %vm1989_vm3, %v4995_v31, 0.0 }
 0xc8d   :  { %v2009_v16 = vmul.f32 1.442695, %v2002_v14 }
 0xc8f   :  { %3801 = vpow2.f32 %v2009_v16 }
 0xc90   :  { %3803 = vpow2.f32 %v2007_v22 }
 0xc91   :  { %v2140_v34 = vpop.f32.mrf.mxu0 }
 0xc92   :  { %v2153_v24 = vpop.permute.xlu2 %2152  ;;  %v2188_v43 = vsel %vm1989_vm3, %v2140_v34, -inf  ;;  %v2179_v9 = vpop.f32.mrf.mxu1 }
 0xc93   :  { %2015 = vadd.xlane.f32.xlu0 %v2014_v3  ;;  %2189 = vmax.xlane.f32.xlu1 %v2188_v43  ;;  %v2191_v52 = vsel %vm1915_vm2, %v2179_v9, -inf }
 0xc94   :  { %3615 = vmatmul.msk.f32.gmra.mxu1 %vm1915_vm2, %v2153_v24 }
 0xc95   :  { %v3802_v44 = vpop.eup %3801 }
 0xc96   :  { %v2020_v27 = vsel %vm1989_vm3, %v3802_v44, 0.0  ;;  %v3804_v45 = vpop.eup %3803 }
 0xc97   :  { %2021 = vadd.xlane.f32.xlu2 %v2020_v27  ;;  %v2017_v8 = vsel %vm1915_vm2, %v3804_v45, 0.0 }
 0xc9b   :  { %2018 = vadd.xlane.f32.xlu0 %v2017_v8 }
 0xca3   :  { %2192 = vmax.xlane.f32.xlu0 %v2191_v52 }
 0xcac   :  { %3703 = vrot.lane.b32.xlu1 %v5006_v54, %s4250_s1 }
 0xcaf   :  { %2261 = vrot.lane.b32.xlu2 %v4950_v20, %s4254_s5 }
 0xcb7   :  { %2402 = vrot.lane.b32.xlu2 %v4937_v15, %s4247_s30 }
 0xcde   :  { %v2013_v55 = vpop.xlane.xlu1 %2012 }
 0xcfe   :  { %v2187_v57 = vpop.xlane.xlu0 %2186 }
 0xcff   :  { %v2197_v58 = vsub.f32 %v2137_v42, %v2187_v57 }
 0xd01   :  { %v2201_v49 = vmul.f32 1.442695, %v2197_v58 }
 0xd03   :  { %3805 = vpow2.f32 %v2201_v49  ;;  %v1799_v49 = vld [vmem:[%s5329_s10 + $0x8] sm:$0xff] }
 0xd04   :  { %2334 = vmatpush.msrb.mxu0 %v1799_v49 }
 0xd06   :  { %v2190_v46 = vpop.xlane.xlu1 %2189  ;;  %v2016_v61 = vpop.xlane.xlu0 %2015 }
 0xd07   :  { %v2198_v56 = vsub.f32 %v2140_v34, %v2190_v46 }
 0xd09   :  { %v3806_v60 = vpop.eup %3805  ;;  %v2203_v59 = vmul.f32 1.442695, %v2198_v56  ;;  %v1798_v56 = vld [vmem:[%s5329_s10] sm:$0xff] }
 0xd0a   :  { %v2209_v63 = vsel %vm1915_vm2, %v3806_v60, 0.0  ;;  %v2022_v12 = vpop.xlane.xlu2 %2021  ;;  %2380 = vmatpush.msrb.mxu1 %v1798_v56 }
 0xd0b   :  { %3807 = vpow2.f32 %v2203_v59  ;;  %2210 = vadd.xlane.f32.xlu0 %v2209_v63 }
 0xd0c   :  { %3809 = vrcp.f32 %v2013_v55 }
 0xd0e   :  { %v2019_v7 = vpop.xlane.xlu0 %2018 }
 0xd0f   :  { %3811 = vrcp.f32 %v2019_v7 }
 0xd10   :  { %3813 = vrcp.f32 %v2016_v61 }
 0xd11   :  { %v3808_v11 = vpop.eup %3807  ;;  %v2182_v10 = vpop.f32.mrf.mxu1  ;;  %3815 = vrcp.f32 %v2022_v12 }
 0xd12   :  { %v2212_v4 = vsel %vm1989_vm3, %v3808_v11, 0.0  ;;  %v2194_v13 = vsel %vm1989_vm3, %v2182_v10, -inf  ;;  %v3810_v19 = vpop.eup %3809  ;;  %v2262_v0 = vpop.permute.xlu2 %2261 }
 0xd13   :  { %2213 = vadd.xlane.f32.xlu1 %v2212_v4  ;;  %v2027_v35 = vmul.f32 %v3810_v19, %v4990_v37 }
 0xd15   :  { %v3812_v23 = vpop.eup %3811 }
 0xd16   :  { %v2029_v17 = vmul.f32 %v3812_v23, %v3804_v45  ;;  %v3814_v1 = vpop.eup %3813  ;;  %v2193_v42 = vpop.xlane.xlu0 %2192 }
 0xd17   :  { %v3816_v18 = vpop.eup %3815  ;;  %v2028_v62 = vmul.f32 %v3814_v1, %v4995_v31  ;;  %v2199_v37 = vsub.f32 %v2179_v9, %v2193_v42 }
 0xd18   :  { %v2030_v39 = vmul.f32 %v3816_v18, %v3802_v44 }
 0xd19   :  { %v2205_v2 = vmul.f32 1.442695, %v2199_v37 }
 0xd1a   :  { %v2403_v27 = vpop.permute.xlu2 %2402 }
 0xd1b   :  { %2195 = vmax.xlane.f32.xlu1 %v2194_v13  ;;  %3817 = vpow2.f32 %v2205_v2 }
 0xd1e   :  { %v3704_v30 = vpop.permute.xlu1 %3703 }
 0xd1f   :  { %v3706_v32 = vunpack.i.h.bf16 %v3704_v30  ;;  %v3705_v33 = vunpack.i.l.bf16 %v3704_v30  ;;  %2229 = vrot.lane.b32.xlu0 %v4937_v15, %s4254_s5 }
 0xd21   :  { %2055 = vmatpush.msrb.mxu2 %v3705_v33  ;;  %2087 = vmatpush.msrb.mxu3 %v3706_v32  ;;  %v3818_v5 = vpop.eup %3817 }
 0xd22   :  { %3606 = vmatmul.msk.f32.vlgmr.msrb.gmra.mxu2 %vm1915_vm2, %v2027_v35  ;;  %3608 = vmatmul.msk.f32.vlgmr.msrb.gmra.mxu3 %vm1915_vm2, %v2029_v17  ;;  %v2215_v14 = vsel %vm1915_vm2, %v3818_v5, 0.0 }
 0xd23   :  { %2285 = vmatpush.msra.mxu3 %v2262_v0 }
 0xd2a   :  { %3607 = vmatmul.msk.f32.gmra.mxu2 %vm1915_vm2, %v2028_v62  ;;  %3609 = vmatmul.msk.f32.gmra.mxu3 %vm1915_vm2, %v2030_v39 }
 0xd49   :  { %2216 = vadd.xlane.f32.xlu0 %v2215_v14 }
 0xd7e   :  { %v2211_v22 = vpop.xlane.xlu0 %2210 }
 0xd7f   :  { %3819 = vrcp.f32 %v2211_v22 }
 0xd85   :  { %v3820_v34 = vpop.eup %3819 }
 0xd86   :  { %v2214_v16 = vpop.xlane.xlu1 %2213  ;;  %v2225_v31 = vmul.f32 %v3820_v34, %v3806_v60 }
 0xd87   :  { %3821 = vrcp.f32 %v2214_v16 }
 0xd8d   :  { %v3822_v45 = vpop.eup %3821 }
 0xd8e   :  { %v2196_v24 = vpop.xlane.xlu1 %2195  ;;  %v2226_v9 = vmul.f32 %v3822_v45, %v3808_v11 }
 0xd8f   :  { %v2200_v3 = vsub.f32 %v2182_v10, %v2196_v24 }
 0xd91   :  { %v2207_v43 = vmul.f32 1.442695, %v2200_v3  ;;  %v2230_v44 = vpop.permute.xlu0 %2229 }
 0xd92   :  { %2253 = vmatpush.msra.mxu2 %v2230_v44 }
 0xd93   :  { %3823 = vpow2.f32 %v2207_v43  ;;  %3616 = vmatmul.msk.f32.vlgmr.msra.gmra.mxu2 %vm1915_vm2, %v2225_v31 }
 0xd94   :  { %3626 = vmatpush.xpose.msk.msrb.mxu2 %vm1915_vm2, %v2403_v27 }
 0xd99   :  { %v3824_v8 = vpop.eup %3823 }
 0xd9a   :  { %v2218_v52 = vsel %vm1989_vm3, %v3824_v8, 0.0 }
 0xd9b   :  { %2219 = vadd.xlane.f32.xlu1 %v2218_v52  ;;  %3617 = vmatmul.msk.f32.gmra.mxu2 %vm1915_vm2, %v2226_v9 }
 0xda5   :  { %v2057_v46 = vpop.f32.mrf.mxu2  ;;  %v2089_v30 = vpop.f32.mrf.mxu3 }
 0xda6   :  { %v2099_v10 = vrot.slane %v2057_v46, 4  ;;  %v2100_v42 = vrot.slane %v2089_v30, 4 }
 0xdad   :  { %v2060_v60 = vpop.f32.mrf.mxu2  ;;  %v2092_v33 = vpop.f32.mrf.mxu3 }
 0xdb4   :  { %2444 = vrot.lane.b32.xlu1 %v4950_v20, %s4247_s30 }
 0xdbc   :  { %v2217_v55 = vpop.xlane.xlu0 %2216 }
 0xdbd   :  { %3825 = vrcp.f32 %v2217_v55 }
 0xdc3   :  { %v3826_v57 = vpop.eup %3825 }
 0xdc4   :  { %v2227_v58 = vmul.f32 %v3826_v57, %v3818_v5 }
 0xdc6   :  { %3618 = vmatmul.msk.f32.vlgmr.msra.gmra.mxu3 %vm1915_vm2, %v2227_v58 }
 0xe0e   :  { %v2220_v59 = vpop.xlane.xlu1 %2219 }
 0xe0f   :  { %3827 = vrcp.f32 %v2220_v59 }
 0xe15   :  { %v3828_v61 = vpop.eup %3827 }
 0xe16   :  { %v2255_v63 = vpop.f32.mrf.mxu2  ;;  %v2228_v11 = vmul.f32 %v3828_v61, %v3824_v8 }
 0xe17   :  { %v2297_v4 = vrot.slane %v2255_v63, 4  ;;  %2299 = vst [vmem:[#allocation1] ss:$2 sm:$0xff] %v2255_v63 }
 0xe18   :  { %3619 = vmatmul.msk.f32.gmra.mxu3 %vm1915_vm2, %v2228_v11 }
 0xe19   :  { %2301 = vst [vmem:[#allocation1 + $0x1] ss:$2 sm:$0xff] %v2297_v4 }
 0xe1e   :  { %v2258_v7 = vpop.f32.mrf.mxu2 }
 0xe1f   :  { %2303 = vst [vmem:[#allocation1 + $0x10] ss:$2 sm:$0xff] %v2258_v7 }
 0xe20   :  { %v2310_v12 = vld.sshfl [vmem:[#allocation1] sm:$0xff pattern:$0x75316420] }
 0xe21   :  { %3620 = vmatmul.msk.f32.vlgmr.msrb.gmra.mxu0 %vm1915_vm2, %v2310_v12  ;;  %2345 = vst [vmem:[#allocation1] ss:$2 sm:$0xff] %v2057_v46 }
 0xe22   :  { %2347 = vst [vmem:[#allocation1 + $0x1] ss:$2 sm:$0xff] %v2099_v10 }
 0xe26   :  { %v2445_v13 = vpop.permute.xlu1 %2444 }
 0xe27   :  { %3629 = vmatpush.xpose.msk.msrb.mxu3 %vm1915_vm2, %v2445_v13 }
 0xe29   :  { %v2356_v19 = vld.sshfl [vmem:[#allocation1] sm:$0xff pattern:$0x75316420] }
 0xe2a   :  { %3623 = vmatmul.msk.f32.vlgmr.msrb.gmra.mxu1 %vm1915_vm2, %v2356_v19  ;;  %2391 = vst [vmem:[#allocation1] ss:$2 sm:$0xff] %v4943_v25 }
 0xe2b   :  { %2393 = vst [vmem:[#allocation1 + $0x1] ss:$2 sm:$0xff] %v4945_v36 }
 0xe32   :  { %v2396_v23 = vld.sshfl [vmem:[#allocation1] sm:$0xff pattern:$0x75316420] }
 0xe33   :  { %2398 = vrot.lane.b32.xlu0 %v2396_v23, %s4247_s30  ;;  %2433 = vst [vmem:[#allocation1] ss:$2 sm:$0xff] %v4958_v6 }
 0xe34   :  { %2435 = vst [vmem:[#allocation1 + $0x1] ss:$2 sm:$0xff] %v4962_v53 }
 0xe3b   :  { %v2438_v32 = vld.sshfl [vmem:[#allocation1] sm:$0xff pattern:$0x75316420] }
 0xe3c   :  { %2440 = vrot.lane.b32.xlu2 %v2438_v32, %s4247_s30 }
 0xe49   :  { %v2287_v35 = vpop.f32.mrf.mxu3 }
 0xe4a   :  { %v2298_v17 = vrot.slane %v2287_v35, 4  ;;  %2305 = vst [vmem:[#allocation1 + $0x11] ss:$2 sm:$0xff] %v2287_v35 }
 0xe4c   :  { %2307 = vst [vmem:[#allocation1 + $0x20] ss:$2 sm:$0xff] %v2298_v17 }
 0xe51   :  { %v2311_v0 = vld.sshfl [vmem:[#allocation1 + $0x10] sm:$0xff pattern:$0x75316420] }
 0xe52   :  { %3621 = vmatmul.msk.f32.gmra.mxu0 %vm1915_vm2, %v2311_v0  ;;  %2349 = vst [vmem:[#allocation1 + $0x10] ss:$2 sm:$0xff] %v2060_v60 }
 0xe53   :  { %2351 = vst [vmem:[#allocation1 + $0x11] ss:$2 sm:$0xff] %v2089_v30 }
 0xe5a   :  { %v2357_v1 = vld.sshfl [vmem:[#allocation1 + $0x10] sm:$0xff pattern:$0x75316420] }
 0xe5b   :  { %3624 = vmatmul.msk.f32.gmra.mxu1 %vm1915_vm2, %v2357_v1  ;;  %2395 = vst [vmem:[#allocation1 + $0x10] ss:$2 sm:$0xff] %v4956_v47 }
 0xe62   :  { %v2397_v18 = vld.sshfl [vmem:[#allocation1 + $0x10] sm:$0xff pattern:$0x75316420] }
 0xe63   :  { %2400 = vrot.lane.b32.xlu2 %v2397_v18, %s4247_s30  ;;  %2437 = vst [vmem:[#allocation1 + $0x10] ss:$2 sm:$0xff] %v4964_v50 }
 0xe6a   :  { %v2439_v45 = vld.sshfl [vmem:[#allocation1 + $0x10] sm:$0xff pattern:$0x75316420] }
 0xe96   :  { %v2441_v62 = vpop.permute.xlu2 %2440 }
 0xe97   :  { %3630 = vmatmul.msk.f32.vlgmr.msrb.gmra.mxu3 %vm1915_vm2, %v2441_v62 }
 0xe9b   :  { %v2290_v39 = vpop.f32.mrf.mxu3 }
 0xe9c   :  { %2309 = vst [vmem:[#allocation1 + $0x21] ss:$2 sm:$0xff] %v2290_v39 }
 0xe9e   :  { %v2336_v5 = vpop.f32.mrf.mxu0 }
 0xea3   :  { %v2312_v37 = vld.sshfl [vmem:[#allocation1 + $0x20] sm:$0xff pattern:$0x75316420] }
 0xea4   :  { %2355 = vst [vmem:[#allocation1 + $0x21] ss:$2 sm:$0xff] %v2092_v33  ;;  %3622 = vmatmul.msk.f32.gmra.mxu0 %vm1915_vm2, %v2312_v37 }
 0xea5   :  { %2353 = vst [vmem:[#allocation1 + $0x20] ss:$2 sm:$0xff] %v2100_v42  ;;  %v2399_v2 = vpop.permute.xlu0 %2398  ;;  %v1800_v42 = vld [vmem:[%s5329_s10 + $0x10] sm:$0xff] }
 0xea6   :  { %3627 = vmatmul.msk.f32.vlgmr.msrb.gmra.mxu2 %vm1915_vm2, %v2399_v2  ;;  %2624 = vmatpush.msra.mxu3 %v1800_v42 }
 0xea7   :  { %v2382_v14 = vpop.f32.mrf.mxu1 }
 0xea8   :  { %v5057_v22 = vadd.f32 %v2382_v14, %v2336_v5 }
 0xeac   :  { %v2358_v16 = vld.sshfl [vmem:[#allocation1 + $0x20] sm:$0xff pattern:$0x75316420] }
 0xead   :  { %3625 = vmatmul.msk.f32.gmra.mxu1 %vm1915_vm2, %v2358_v16 }
 0xebd   :  { %v2401_v34 = vpop.permute.xlu2 %2400 }
 0xebe   :  { %3628 = vmatmul.msk.f32.gmra.mxu2 %vm1915_vm2, %v2401_v34 }
 0xecf   :  { %v5083_v37 = vpop.f32.mrf.mxu0 }
 0xf1a   :  { %v2469_v24 = vpop.f32.mrf.mxu3 }
 0xf1b   :  { %v2481_v3 = vsel %vm1915_vm2, %v2469_v24, -inf }
 0xf1c   :  { %2482 = vmax.xlane.f32.xlu0 %v2481_v3 }
 0xf21   :  { %v5085_v2 = vpop.f32.mrf.mxu0 }
 0xf29   :  { %v2427_v31 = vpop.f32.mrf.mxu2 }
 0xf2a   :  { %v2475_v43 = vsel %vm1915_vm2, %v2427_v31, -inf }
 0xf2b   :  { %2476 = vmax.xlane.f32.xlu2 %v2475_v43 }
 0xf41   :  { %v2430_v44 = vpop.f32.mrf.mxu2 }
 0xf42   :  { %v2478_v27 = vsel %vm1989_vm3, %v2430_v44, -inf }
 0xf43   :  { %2479 = vmax.xlane.f32.xlu1 %v2478_v27 }
 0xf5c   :  { %2442 = vrot.lane.b32.xlu1 %v2439_v45, %s4247_s30  ;;  %s4261_s30 = smov 80  }
 0xf8f   :  { %v2483_v8 = vpop.xlane.xlu0 %2482 }
 0xf90   :  { %v2489_v9 = vsub.f32 %v2469_v24, %v2483_v8 }
 0xf92   :  { %v2495_v52 = vmul.f32 1.442695, %v2489_v9 }
 0xf94   :  { %3829 = vpow2.f32 %v2495_v52 }
 0xf9a   :  { %v3830_v55 = vpop.eup %3829 }
 0xf9b   :  { %v2505_v57 = vsel %vm1915_vm2, %v3830_v55, 0.0 }
 0xf9c   :  { %2506 = vadd.xlane.f32.xlu0 %v2505_v57 }
 0xf9e   :  { %v2477_v58 = vpop.xlane.xlu2 %2476 }
 0xf9f   :  { %v2487_v49 = vsub.f32 %v2427_v31, %v2477_v58 }
 0xfa1   :  { %v2491_v46 = vmul.f32 1.442695, %v2487_v49 }
 0xfa3   :  { %3831 = vpow2.f32 %v2491_v46 }
 0xfa9   :  { %v3832_v56 = vpop.eup %3831 }
 0xfaa   :  { %v2499_v60 = vsel %vm1915_vm2, %v3832_v56, 0.0 }
 0xfab   :  { %2500 = vadd.xlane.f32.xlu2 %v2499_v60 }
 0xfb6   :  { %v2480_v59 = vpop.xlane.xlu1 %2479 }
 0xfb7   :  { %v2488_v61 = vsub.f32 %v2430_v44, %v2480_v59 }
 0xfb9   :  { %v2493_v63 = vmul.f32 1.442695, %v2488_v61 }
 0xfbb   :  { %3833 = vpow2.f32 %v2493_v63 }
 0xfc1   :  { %v3834_v11 = vpop.eup %3833 }
 0xfc2   :  { %v2502_v4 = vsel %vm1989_vm3, %v3834_v11, 0.0 }
 0xfc3   :  { %3708 = vrot.lane.b32.xlu2 %v5006_v54, %s4261_s30  ;;  %2503 = vadd.xlane.f32.xlu0 %v2502_v4 }
 0xfce   :  { %v2443_v7 = vpop.permute.xlu1 %2442 }
 0xfcf   :  { %3631 = vmatmul.msk.f32.gmra.mxu3 %vm1915_vm2, %v2443_v7 }
 0xfd7   :  { %2649 = vrot.lane.b32.xlu0 %v4937_v15, %s4253_s16 }
 0xfdf   :  { %2691 = vrot.lane.b32.xlu0 %v4950_v20, %s4253_s16 }
0x100f   :  { %v2507_v10 = vpop.xlane.xlu0 %2506 }
0x1010   :  { %3835 = vrcp.f32 %v2507_v10 }
0x1016   :  { %v3836_v13 = vpop.eup %3835 }
0x1017   :  { %v2517_v54 = vmul.f32 %v3836_v13, %v3830_v55 }
0x101e   :  { %v2501_v12 = vpop.xlane.xlu2 %2500 }
0x101f   :  { %3837 = vrcp.f32 %v2501_v12 }
0x1025   :  { %v3838_v19 = vpop.eup %3837 }
0x1026   :  { %v3709_v23 = vpop.permute.xlu2 %3708  ;;  %v2515_v33 = vmul.f32 %v3838_v19, %v3832_v56 }
0x1027   :  { %v3711_v30 = vunpack.i.h.bf16 %v3709_v23  ;;  %v3710_v32 = vunpack.i.l.bf16 %v3709_v23 }
0x1029   :  { %2543 = vmatpush.msra.mxu0 %v3710_v32  ;;  %2575 = vmatpush.msra.mxu2 %v3711_v30 }
0x102a   :  { %3632 = vmatmul.msk.f32.vlgmr.msra.gmra.mxu0 %vm1915_vm2, %v2515_v33  ;;  %3634 = vmatmul.msk.f32.vlgmr.msra.gmra.mxu2 %vm1915_vm2, %v2517_v54 }
0x1036   :  { %v2504_v35 = vpop.xlane.xlu0 %2503 }
0x1037   :  { %3839 = vrcp.f32 %v2504_v35 }
0x103d   :  { %v3840_v17 = vpop.eup %3839 }
0x103e   :  { %v2516_v0 = vmul.f32 %v3840_v17, %v3834_v11 }
0x1040   :  { %3633 = vmatmul.msk.f32.gmra.mxu0 %vm1915_vm2, %v2516_v0 }
0x1049   :  { %v2650_v1 = vpop.permute.xlu0 %2649 }
0x104a   :  { %3639 = vmatpush.xpose.msk.msra.mxu1 %vm1915_vm2, %v2650_v1 }
0x1051   :  { %v2692_v18 = vpop.permute.xlu0 %2691 }
0x1052   :  { %v2472_v62 = vpop.f32.mrf.mxu3  ;;  %3642 = vmatpush.xpose.msk.msrb.mxu0 %vm1915_vm2, %v2692_v18 }
0x1053   :  { %v2484_v39 = vsel %vm1989_vm3, %v2472_v62, -inf }
0x1054   :  { %2485 = vmax.xlane.f32.xlu0 %v2484_v39 }
0x10a7   :  { %v2545_v5 = vpop.f32.mrf.mxu0 }
0x10a8   :  { %v2587_v14 = vrot.slane %v2545_v5, 4  ;;  %2589 = vst [vmem:[#allocation1] ss:$2 sm:$0xff] %v2545_v5 }
0x10aa   :  { %2591 = vst [vmem:[#allocation1 + $0x1] ss:$2 sm:$0xff] %v2587_v14 }
0x10ad   :  { %v2577_v16 = vpop.f32.mrf.mxu2 }
0x10ae   :  { %v2588_v34 = vrot.slane %v2577_v16, 4  ;;  %2595 = vst [vmem:[#allocation1 + $0x11] ss:$2 sm:$0xff] %v2577_v16 }
0x10b0   :  { %2597 = vst [vmem:[#allocation1 + $0x20] ss:$2 sm:$0xff] %v2588_v34 }
0x10b1   :  { %v2600_v24 = vld.sshfl [vmem:[#allocation1] sm:$0xff pattern:$0x75316420] }
0x10b2   :  { %3636 = vmatmul.msk.f32.vlgmr.msra.gmra.mxu3 %vm1915_vm2, %v2600_v24  ;;  %2638 = vst [vmem:[#allocation1] ss:$2 sm:$0xff] %v4943_v25 }
0x10b3   :  { %2640 = vst [vmem:[#allocation1 + $0x1] ss:$2 sm:$0xff] %v4945_v36 }
0x10ba   :  { %v2643_v3 = vld.sshfl [vmem:[#allocation1] sm:$0xff pattern:$0x75316420] }
0x10bb   :  { %2645 = vrot.lane.b32.xlu2 %v2643_v3, %s4253_s16  ;;  %2680 = vst [vmem:[#allocation1] ss:$2 sm:$0xff] %v4958_v6 }
0x10bc   :  { %2682 = vst [vmem:[#allocation1 + $0x1] ss:$2 sm:$0xff] %v4962_v53 }
0x10bd   :  { %v2548_v31 = vpop.f32.mrf.mxu0 }
0x10be   :  { %2593 = vst [vmem:[#allocation1 + $0x10] ss:$2 sm:$0xff] %v2548_v31 }
0x10c3   :  { %v2685_v43 = vld.sshfl [vmem:[#allocation1] sm:$0xff pattern:$0x75316420] }
0x10c4   :  { %2687 = vrot.lane.b32.xlu2 %v2685_v43, %s4253_s16 }
0x10c5   :  { %v2601_v44 = vld.sshfl [vmem:[#allocation1 + $0x10] sm:$0xff pattern:$0x75316420] }
0x10c6   :  { %3637 = vmatmul.msk.f32.gmra.mxu3 %vm1915_vm2, %v2601_v44  ;;  %2642 = vst [vmem:[#allocation1 + $0x10] ss:$2 sm:$0xff] %v4956_v47  ;;  %v5103_v47 = vpop.f32.mrf.mxu1 }
0x10c7   :  { %v2486_v57 = vpop.xlane.xlu0 %2485 }
0x10c8   :  { %v2490_v58 = vsub.f32 %v2472_v62, %v2486_v57 }
0x10ca   :  { %v2497_v49 = vmul.f32 1.442695, %v2490_v58 }
0x10cc   :  { %3841 = vpow2.f32 %v2497_v49 }
0x10cd   :  { %v2644_v25 = vld.sshfl [vmem:[#allocation1 + $0x10] sm:$0xff pattern:$0x75316420] }
0x10ce   :  { %2647 = vrot.lane.b32.xlu1 %v2644_v25, %s4253_s16  ;;  %2684 = vst [vmem:[#allocation1 + $0x10] ss:$2 sm:$0xff] %v4964_v50  ;;  %v5105_v8 = vpop.f32.mrf.mxu1 }
0x10d2   :  { %v3842_v60 = vpop.eup %3841 }
0x10d3   :  { %v2508_v63 = vsel %vm1989_vm3, %v3842_v60, 0.0 }
0x10d5   :  { %v2686_v36 = vld.sshfl [vmem:[#allocation1 + $0x10] sm:$0xff pattern:$0x75316420] }
0x10d6   :  { %2689 = vrot.lane.b32.xlu1 %v2686_v36, %s4253_s16  ;;  %s4262_s16 = smov 72  }
0x1115   :  { %v2646_v6 = vpop.permute.xlu2 %2645 }
0x1116   :  { %3640 = vmatmul.msk.f32.vlgmr.msra.gmra.mxu1 %vm1915_vm2, %v2646_v6 }
0x111e   :  { %v2688_v53 = vpop.permute.xlu2 %2687 }
0x111f   :  { %3643 = vmatmul.msk.f32.vlgmr.msrb.gmra.mxu0 %vm1915_vm2, %v2688_v53 }
0x1140   :  { %v2648_v27 = vpop.permute.xlu1 %2647 }
0x1141   :  { %3641 = vmatmul.msk.f32.gmra.mxu1 %vm1915_vm2, %v2648_v27 }
0x1148   :  { %v2690_v45 = vpop.permute.xlu1 %2689 }
0x1149   :  { %3644 = vmatmul.msk.f32.gmra.mxu0 %vm1915_vm2, %v2690_v45 }
0x1193   :  { %v2674_v50 = vpop.f32.mrf.mxu1 }
0x1194   :  { %v2722_v9 = vsel %vm1915_vm2, %v2674_v50, -inf }
0x1195   :  { %2723 = vmax.xlane.f32.xlu2 %v2722_v9 }
0x119c   :  { %v2716_v52 = vpop.f32.mrf.mxu0 }
0x119d   :  { %v2728_v55 = vsel %vm1915_vm2, %v2716_v52, -inf }
0x119e   :  { %2729 = vmax.xlane.f32.xlu0 %v2728_v55 }
0x11be   :  { %v2677_v46 = vpop.f32.mrf.mxu1 }
0x11bf   :  { %v2725_v56 = vsel %vm1989_vm3, %v2677_v46, -inf }
0x11c0   :  { %2726 = vmax.xlane.f32.xlu1 %v2725_v56 }
0x11c6   :  { %v2719_v59 = vpop.f32.mrf.mxu0 }
0x11c7   :  { %v2731_v61 = vsel %vm1989_vm3, %v2719_v59, -inf }
0x11c8   :  { %2732 = vmax.xlane.f32.xlu2 %v2731_v61  ;;  %2509 = vadd.xlane.f32.xlu1 %v2508_v63  ;;  %v2626_v63 = vpop.f32.mrf.mxu3 }
0x11e0   :  { %2766 = vrot.lane.b32.xlu2 %v4937_v15, %s4262_s16 }
0x1208   :  { %v2724_v11 = vpop.xlane.xlu2 %2723 }
0x1209   :  { %v2734_v4 = vsub.f32 %v2674_v50, %v2724_v11  ;;  %v2629_v11 = vpop.f32.mrf.mxu3 }
0x120b   :  { %v2738_v7 = vmul.f32 1.442695, %v2734_v4 }
0x120d   :  { %3843 = vpow2.f32 %v2738_v7  ;;  %v2635_v7 = vadd.f32 %v2626_v63, %v5057_v22 }
0x1211   :  { %v2730_v10 = vpop.xlane.xlu0 %2729 }
0x1212   :  { %v2736_v12 = vsub.f32 %v2716_v52, %v2730_v10  ;;  %v1801_v52 = vld [vmem:[%s5329_s10 + $0x18] sm:$0xff]  ;;  %v3718_v10 = vld [vmem:[#allocation10] ss:$0 sm:$0xff] }
0x1213   :  { %v3844_v13 = vpop.eup %3843  ;;  %2871 = vmatpush.msrb.mxu3 %v1801_v52 }
0x1214   :  { %v2742_v19 = vmul.f32 1.442695, %v2736_v12  ;;  %v2746_v23 = vsel %vm1915_vm2, %v3844_v13, 0.0 }
0x1215   :  { %2747 = vadd.xlane.f32.xlu0 %v2746_v23 }
0x1216   :  { %3845 = vpow2.f32 %v2742_v19 }
0x121c   :  { %v3846_v30 = vpop.eup %3845 }
0x121d   :  { %v2752_v32 = vsel %vm1915_vm2, %v3846_v30, 0.0 }
0x121e   :  { %2753 = vadd.xlane.f32.xlu0 %v2752_v32 }
0x1232   :  { %2798 = vrot.lane.b32.xlu0 %v4950_v20, %s4262_s16 }
0x1233   :  { %v2727_v54 = vpop.xlane.xlu1 %2726 }
0x1234   :  { %v2735_v15 = vsub.f32 %v2677_v46, %v2727_v54 }
0x1236   :  { %v2740_v33 = vmul.f32 1.442695, %v2735_v15 }
0x1238   :  { %3847 = vpow2.f32 %v2740_v33  ;;  %v2386_v33 = vadd.f32 %v5103_v47, %v5083_v37 }
0x123b   :  { %v2733_v35 = vpop.xlane.xlu2 %2732  ;;  %v2510_v17 = vpop.xlane.xlu1 %2509 }
0x123c   :  { %v2737_v0 = vsub.f32 %v2719_v59, %v2733_v35  ;;  %3849 = vrcp.f32 %v2510_v17  ;;  %v2636_v35 = vadd.f32 %v2629_v11, %v2386_v33 }
0x123e   :  { %v3848_v1 = vpop.eup %3847  ;;  %v2744_v18 = vmul.f32 1.442695, %v2737_v0 }
0x123f   :  { %v2749_v62 = vsel %vm1989_vm3, %v3848_v1, 0.0 }
0x1240   :  { %3851 = vpow2.f32 %v2744_v18  ;;  %2750 = vadd.xlane.f32.xlu1 %v2749_v62 }
0x1242   :  { %v3850_v39 = vpop.eup %3849 }
0x1243   :  { %v2767_v42 = vpop.permute.xlu2 %2766  ;;  %v2518_v5 = vmul.f32 %v3850_v39, %v3842_v60 }
0x1244   :  { %2790 = vmatpush.msrb.mxu2 %v2767_v42 }
0x1245   :  { %3635 = vmatmul.msk.f32.gmra.mxu2 %vm1915_vm2, %v2518_v5 }
0x1246   :  { %v3852_v20 = vpop.eup %3851 }
0x1247   :  { %v2755_v14 = vsel %vm1989_vm3, %v3852_v20, 0.0 }
0x1248   :  { %2756 = vadd.xlane.f32.xlu1 %v2755_v14 }
0x1288   :  { %v2748_v16 = vpop.xlane.xlu0 %2747 }
0x1289   :  { %3853 = vrcp.f32 %v2748_v16 }
0x128f   :  { %v3854_v34 = vpop.eup %3853 }
0x1290   :  { %v2762_v24 = vmul.f32 %v3854_v34, %v3844_v13 }
0x1291   :  { %v2754_v3 = vpop.xlane.xlu0 %2753 }
0x1292   :  { %3645 = vmatmul.msk.f32.vlgmr.msrb.gmra.mxu2 %vm1915_vm2, %v2762_v24  ;;  %3855 = vrcp.f32 %v2754_v3 }
0x1298   :  { %v3856_v31 = vpop.eup %3855 }
0x1299   :  { %v2764_v43 = vmul.f32 %v3856_v31, %v3846_v30 }
0x12a4   :  { %v2799_v44 = vpop.permute.xlu0 %2798 }
0x12a5   :  { %2822 = vmatpush.msrb.mxu1 %v2799_v44 }
0x12a6   :  { %3647 = vmatmul.msk.f32.vlgmr.msrb.gmra.mxu1 %vm1915_vm2, %v2764_v43 }
0x12b3   :  { %v2751_v25 = vpop.xlane.xlu1 %2750 }
0x12b4   :  { %3857 = vrcp.f32 %v2751_v25 }
0x12ba   :  { %v3858_v36 = vpop.eup %3857 }
0x12bb   :  { %v2757_v6 = vpop.xlane.xlu1 %2756  ;;  %v2763_v53 = vmul.f32 %v3858_v36, %v3848_v1  ;;  %v2389_v1 = vadd.f32 %v5105_v8, %v5085_v2 }
0x12bc   :  { %3859 = vrcp.f32 %v2757_v6 }
0x12bd   :  { %3646 = vmatmul.msk.f32.gmra.mxu2 %vm1915_vm2, %v2763_v53 }
0x12c2   :  { %v3860_v27 = vpop.eup %3859 }
0x12c3   :  { %v2765_v45 = vmul.f32 %v3860_v27, %v3852_v20 }
0x12c5   :  { %3648 = vmatmul.msk.f32.gmra.mxu1 %vm1915_vm2, %v2765_v45 }
0x12c8   :  { %v2580_v50 = vpop.f32.mrf.mxu2 }
0x12c9   :  { %2599 = vst [vmem:[#allocation1 + $0x21] ss:$2 sm:$0xff] %v2580_v50 }
0x12d0   :  { %v2602_v9 = vld.sshfl [vmem:[#allocation1 + $0x20] sm:$0xff pattern:$0x75316420] }
0x12d1   :  { %3638 = vmatmul.msk.f32.gmra.mxu3 %vm1915_vm2, %v2602_v9 }
0x1315   :  { %v2792_v55 = vpop.f32.mrf.mxu2 }
0x1316   :  { %v2834_v57 = vrot.slane %v2792_v55, 4  ;;  %2836 = vst [vmem:[#allocation1] ss:$2 sm:$0xff] %v2792_v55 }
0x1318   :  { %2838 = vst [vmem:[#allocation1 + $0x1] ss:$2 sm:$0xff] %v2834_v57 }
0x131f   :  { %v2847_v58 = vld.sshfl [vmem:[#allocation1] sm:$0xff pattern:$0x75316420] }
0x1320   :  { %3649 = vmatmul.msk.f32.vlgmr.msrb.gmra.mxu3 %vm1915_vm2, %v2847_v58 }
0x1323   :  { %v2824_v49 = vpop.f32.mrf.mxu1 }
0x1324   :  { %v2835_v46 = vrot.slane %v2824_v49, 4  ;;  %2842 = vst [vmem:[#allocation1 + $0x11] ss:$2 sm:$0xff] %v2824_v49 }
0x1326   :  { %2844 = vst [vmem:[#allocation1 + $0x20] ss:$2 sm:$0xff] %v2835_v46 }
0x1340   :  { %v2795_v56 = vpop.f32.mrf.mxu2 }
0x1341   :  { %2840 = vst [vmem:[#allocation1 + $0x10] ss:$2 sm:$0xff] %v2795_v56 }
0x1342   :  { %v2827_v60 = vpop.f32.mrf.mxu1 }
0x1343   :  { %2846 = vst [vmem:[#allocation1 + $0x21] ss:$2 sm:$0xff] %v2827_v60 }
0x1348   :  { %v2848_v59 = vld.sshfl [vmem:[#allocation1 + $0x10] sm:$0xff pattern:$0x75316420] }
0x1349   :  { %3650 = vmatmul.msk.f32.gmra.mxu3 %vm1915_vm2, %v2848_v59 }
0x134a   :  { %v2849_v61 = vld.sshfl [vmem:[#allocation1 + $0x20] sm:$0xff pattern:$0x75316420] }
0x1351   :  { %3651 = vmatmul.msk.f32.gmra.mxu3 %vm1915_vm2, %v2849_v61 }
0x1354   :  { %v2632_v4 = vpop.f32.mrf.mxu3 }
0x13a3   :  { %v2873_v12 = vpop.f32.mrf.mxu3 }
0x13a4   :  { %v2882_v13 = vadd.f32 %v2873_v12, %v2635_v7  ;;  %v3120_v7 = vld [vmem:[%s5337_s18 + $0x18] sm:$0xff] }
0x13a5   :  { %3172 = vmatpush.msra.mxu0 %v3120_v7 }
0x13a6   :  { %v2888_v19 = vadd.f32 %v3718_v10, %v2882_v13  ;;  %v3118_v13 = vld [vmem:[%s5337_s18 + $0x8] sm:$0xff] }
0x13a8   :  { %v2894_v23 = vrot.slane %v2888_v19, 4  ;;  %v2900_v30 = vadd.f32 %v2888_v19, %v4898_v29 }
0x13aa   :  { %v2901_v32 = vadd.f32 %v2894_v23, %v4900_v48  ;;  %2914 = vst [vmem:[#allocation1] ss:$2 sm:$0xff] %v2900_v30  ;;  %v2637_v48 = vadd.f32 %v2632_v4, %v2389_v1  ;;  %v3117_v23 = vld [vmem:[%s5337_s18] sm:$0xff] }
0x13ac   :  { %2916 = vst [vmem:[#allocation1 + $0x1] ss:$2 sm:$0xff] %v2901_v32 }
0x13b3   :  { %v2925_v54 = vld.sshfl [vmem:[#allocation1] sm:$0xff pattern:$0x75316420] }
0x13b4   :  { %v2931_v15 = vsel %vm302_vm0, %v2925_v54, 0.0 }
0x13b5   :  { %2932 = vadd.xlane.f32.xlu1 %v2931_v15 }
0x13cc   :  { %v2876_v22 = vpop.f32.mrf.mxu3 }
0x13cd   :  { %v2883_v17 = vadd.f32 %v2876_v22, %v2636_v35  ;;  %v3719_v35 = vld [vmem:[#allocation15] ss:$0 sm:$0xff] }
0x13ce   :  { %v3098_v1 = vrot.slane %v3719_v35, 4 }
0x13cf   :  { %v2889_v0 = vadd.f32 %v3718_v10, %v2883_v17  ;;  %v3720_v17 = vld [vmem:[#allocation16] ss:$0 sm:$0xff] }
0x13d1   :  { %v2895_v18 = vrot.slane %v2889_v0, 4  ;;  %v2902_v29 = vadd.f32 %v2889_v0, %v4917_v38 }
0x13d3   :  { %v2903_v62 = vadd.f32 %v2895_v18, %v4919_v26  ;;  %2918 = vst [vmem:[#allocation1 + $0x10] ss:$2 sm:$0xff] %v2902_v29 }
0x13d4   :  { %v2879_v39 = vpop.f32.mrf.mxu3 }
0x13d5   :  { %2920 = vst [vmem:[#allocation1 + $0x11] ss:$2 sm:$0xff] %v2903_v62  ;;  %v2884_v42 = vadd.f32 %v2879_v39, %v2637_v48  ;;  %v3109_v48 = vrot.slane %v3720_v17, 4 }
0x13d7   :  { %v2890_v5 = vadd.f32 %v3718_v10, %v2884_v42  ;;  %v3119_v10 = vld [vmem:[%s5337_s18 + $0x10] sm:$0xff] }
0x13d8   :  { %3173 = vmatpush.msra.mxu0 %v3119_v10 }
0x13d9   :  { %v2896_v20 = vrot.slane %v2890_v5, 4  ;;  %v2904_v37 = vadd.f32 %v2890_v5, %v4929_v28 }
0x13da   :  { %3174 = vmatpush.msra.mxu0 %v3118_v13 }
0x13db   :  { %v2905_v47 = vadd.f32 %v2896_v20, %v4931_v21  ;;  %2922 = vst [vmem:[#allocation1 + $0x20] ss:$2 sm:$0xff] %v2904_v37 }
0x13dc   :  { %v2926_v14 = vld.sshfl [vmem:[#allocation1 + $0x10] sm:$0xff pattern:$0x75316420]  ;;  %3175 = vmatpush.msra.mxu0 %v3117_v23  ;;  %v3127_v23 = vld [vmem:[%s5339_s20 + $0x28] sm:$0xff] }
0x13dd   :  { %2924 = vst [vmem:[#allocation1 + $0x21] ss:$2 sm:$0xff] %v2905_v47  ;;  %v2934_v2 = vsel %vm302_vm0, %v2926_v14, 0.0 }
0x13de   :  { %2935 = vadd.xlane.f32.xlu2 %v2934_v2 }
0x13e4   :  { %v2927_v38 = vld.sshfl [vmem:[#allocation1 + $0x20] sm:$0xff pattern:$0x75316420] }
0x13e5   :  { %v2937_v8 = vsel %vm302_vm0, %v2927_v38, 0.0 }
0x13e6   :  { %2938 = vadd.xlane.f32.xlu1 %v2937_v8 }
0x1428   :  { %v2933_v26 = vpop.xlane.xlu1 %2932 }
0x1429   :  { %v2940_v16 = vmul.f32 %v2933_v26, %v4815_v41 }
0x142b   :  { %v2949_v34 = vperm.slane %v2940_v16, %v4817_v40  ;;  %v2953_v24 = vperm.slane %v2940_v16, %v4819_v51 }
0x142d   :  { %v5147_v28 = vsub.f32 %v2900_v30, %v2949_v34  ;;  %v5149_v21 = vsub.f32 %v2901_v32, %v2953_v24 }
0x142f   :  { %v2982_v3 = vmul.f32 %v5147_v28, %v5147_v28  ;;  %v2983_v31 = vmul.f32 %v5149_v21, %v5149_v21 }
0x1431   :  { %2994 = vst [vmem:[#allocation1] ss:$2 sm:$0xff] %v2982_v3 }
0x1432   :  { %2996 = vst [vmem:[#allocation1 + $0x1] ss:$2 sm:$0xff] %v2983_v31 }
0x1439   :  { %v3005_v43 = vld.sshfl [vmem:[#allocation1] sm:$0xff pattern:$0x75316420] }
0x143a   :  { %v3011_v44 = vsel %vm302_vm0, %v3005_v43, 0.0 }
0x143b   :  { %3012 = vadd.xlane.f32.xlu0 %v3011_v44 }
0x1451   :  { %v2936_v25 = vpop.xlane.xlu2 %2935 }
0x1452   :  { %v2941_v36 = vmul.f32 %v2936_v25, %v4815_v41 }
0x1454   :  { %v2957_v6 = vperm.slane %v2941_v36, %v4817_v40  ;;  %v2961_v53 = vperm.slane %v2941_v36, %v4819_v51 }
0x1456   :  { %v5159_v27 = vsub.f32 %v2902_v29, %v2957_v6  ;;  %v5161_v45 = vsub.f32 %v2903_v62, %v2961_v53 }
0x1458   :  { %v2984_v50 = vmul.f32 %v5159_v27, %v5159_v27  ;;  %v2985_v9 = vmul.f32 %v5161_v45, %v5161_v45 }
0x1459   :  { %v2939_v52 = vpop.xlane.xlu1 %2938 }
0x145a   :  { %2998 = vst [vmem:[#allocation1 + $0x10] ss:$2 sm:$0xff] %v2984_v50  ;;  %v2942_v55 = vmul.f32 %v2939_v52, %v4815_v41 }
0x145b   :  { %3000 = vst [vmem:[#allocation1 + $0x11] ss:$2 sm:$0xff] %v2985_v9 }
0x145c   :  { %v2965_v57 = vperm.slane %v2942_v55, %v4817_v40  ;;  %v2969_v58 = vperm.slane %v2942_v55, %v4819_v51 }
0x145e   :  { %v5170_v49 = vsub.f32 %v2904_v37, %v2965_v57  ;;  %v5172_v46 = vsub.f32 %v2905_v47, %v2969_v58 }
0x1460   :  { %v2986_v56 = vmul.f32 %v5170_v49, %v5170_v49  ;;  %v2987_v60 = vmul.f32 %v5172_v46, %v5172_v46 }
0x1462   :  { %3002 = vst [vmem:[#allocation1 + $0x20] ss:$2 sm:$0xff] %v2986_v56  ;;  %v3006_v59 = vld.sshfl [vmem:[#allocation1 + $0x10] sm:$0xff pattern:$0x75316420] }
0x1463   :  { %3004 = vst [vmem:[#allocation1 + $0x21] ss:$2 sm:$0xff] %v2987_v60  ;;  %v3014_v61 = vsel %vm302_vm0, %v3006_v59, 0.0 }
0x1464   :  { %3015 = vadd.xlane.f32.xlu1 %v3014_v61 }
0x146a   :  { %v3007_v63 = vld.sshfl [vmem:[#allocation1 + $0x20] sm:$0xff pattern:$0x75316420] }
0x146b   :  { %v3017_v11 = vsel %vm302_vm0, %v3007_v63, 0.0 }
0x146c   :  { %3018 = vadd.xlane.f32.xlu1 %v3017_v11 }
0x14ae   :  { %v3013_v4 = vpop.xlane.xlu0 %3012 }
0x14af   :  { %v3020_v12 = vmul.f32 %v3013_v4, %v4815_v41 }
0x14b1   :  { %v3023_v19 = vadd.f32 1e-05, %v3020_v12 }
0x14b3   :  { %3861 = vrsqrt.f32 %v3023_v19  ;;  %vm3032_vm5 = vweird.f32 %v3023_v19 }
0x14b9   :  { %v3862_v30 = vpop.eup %3861 }
0x14ba   :  { %v3027_v32 = vmul.f32 %v3862_v30, %v3023_v19  ;;  %vm3033_vm4 = vweird.f32 %v3862_v30 }
0x14bb   :  { %vm3034_vm6 = vmor %vm3032_vm5, %vm3033_vm4 }
0x14bc   :  { %v3028_v54 = vmul.f32 %v3862_v30, %v3027_v32  ;;  %v3125_v32 = vld [vmem:[%s5339_s20 + $0x18] sm:$0xff] }
0x14be   :  { %v3029_v15 = vmul.f32 0.5, %v3028_v54  ;;  %v3124_v54 = vld [vmem:[%s5339_s20 + $0x10] sm:$0xff] }
0x14c0   :  { %v3030_v33 = vsub.f32 1.5, %v3029_v15  ;;  %v3123_v15 = vld [vmem:[%s5339_s20 + $0x8] sm:$0xff] }
0x14c2   :  { %v3031_v22 = vmul.f32 %v3862_v30, %v3030_v33  ;;  %v3122_v33 = vld [vmem:[%s5339_s20] sm:$0xff] }
0x14c4   :  { %v3035_v0 = vsel %vm3034_vm6, %v3862_v30, %v3031_v22  ;;  %v3126_v30 = vld [vmem:[%s5339_s20 + $0x20] sm:$0xff] }
0x14c5   :  { %v3062_v18 = vperm.slane %v3035_v0, %v4817_v40  ;;  %v3066_v29 = vperm.slane %v3035_v0, %v4819_v51 }
0x14c7   :  { %v3089_v62 = vmul.f32 %v3062_v18, %v5147_v28  ;;  %v3090_v39 = vmul.f32 %v3066_v29, %v5149_v21 }
0x14c9   :  { %v3100_v42 = vmul.f32 %v3719_v35, %v3089_v62  ;;  %v3101_v5 = vmul.f32 %v3098_v1, %v3090_v39 }
0x14cb   :  { %v5197_v20 = vadd.f32 %v3720_v17, %v3100_v42  ;;  %v5199_v37 = vadd.f32 %v3109_v48, %v3101_v5 }
0x14cd   :  { %3140 = vst [vmem:[#allocation1] ss:$2 sm:$0xff] %v5197_v20 }
0x14ce   :  { %3142 = vst [vmem:[#allocation1 + $0x1] ss:$2 sm:$0xff] %v5199_v37 }
0x14d5   :  { %v3151_v47 = vld.sshfl [vmem:[#allocation1] sm:$0xff pattern:$0x75316420] }
0x14d6   :  { %3652 = vmatmul.msk.f32.vlgmr.msra.gmra.mxu0 %vm302_vm0, %v3151_v47 }
0x14d7   :  { %v3016_v14 = vpop.xlane.xlu1 %3015 }
0x14d8   :  { %v3021_v2 = vmul.f32 %v3016_v14, %v4815_v41 }
0x14da   :  { %v3024_v38 = vadd.f32 1e-05, %v3021_v2 }
0x14dc   :  { %3863 = vrsqrt.f32 %v3024_v38  ;;  %vm3042_vm8 = vweird.f32 %v3024_v38 }
0x14df   :  { %v3019_v8 = vpop.xlane.xlu1 %3018 }
0x14e0   :  { %v3022_v26 = vmul.f32 %v3019_v8, %v4815_v41 }
0x14e2   :  { %v3864_v16 = vpop.eup %3863  ;;  %v3025_v34 = vadd.f32 1e-05, %v3022_v26 }
0x14e3   :  { %v3037_v24 = vmul.f32 %v3864_v16, %v3024_v38  ;;  %vm3043_vm7 = vweird.f32 %v3864_v16 }
0x14e4   :  { %3865 = vrsqrt.f32 %v3025_v34  ;;  %vm3044_vm9 = vmor %vm3042_vm8, %vm3043_vm7  ;;  %vm3052_vm11 = vweird.f32 %v3025_v34  ;;  %vm3504_vm8 = vcmask 257024  }
0x14e5   :  { %v3038_v28 = vmul.f32 %v3864_v16, %v3037_v24 }
0x14e7   :  { %v3039_v21 = vmul.f32 0.5, %v3038_v28 }
0x14e9   :  { %v3040_v3 = vsub.f32 1.5, %v3039_v21 }
0x14ea   :  { %v3866_v31 = vpop.eup %3865 }
0x14eb   :  { %v3041_v43 = vmul.f32 %v3864_v16, %v3040_v3  ;;  %v3047_v44 = vmul.f32 %v3866_v31, %v3025_v34  ;;  %vm3053_vm10 = vweird.f32 %v3866_v31 }
0x14ec   :  { %vm3054_vm12 = vmor %vm3052_vm11, %vm3053_vm10 }
0x14ed   :  { %v3045_v25 = vsel %vm3044_vm9, %v3864_v16, %v3041_v43  ;;  %v3048_v36 = vmul.f32 %v3866_v31, %v3047_v44 }
0x14ee   :  { %v3070_v6 = vperm.slane %v3045_v25, %v4817_v40  ;;  %v3074_v53 = vperm.slane %v3045_v25, %v4819_v51 }
0x14ef   :  { %v3049_v50 = vmul.f32 0.5, %v3048_v36 }
0x14f0   :  { %v3091_v9 = vmul.f32 %v3070_v6, %v5159_v27  ;;  %v3092_v52 = vmul.f32 %v3074_v53, %v5161_v45 }
0x14f1   :  { %v3050_v55 = vsub.f32 1.5, %v3049_v50 }
0x14f2   :  { %v3102_v57 = vmul.f32 %v3719_v35, %v3091_v9  ;;  %v3103_v58 = vmul.f32 %v3098_v1, %v3092_v52 }
0x14f3   :  { %v3051_v56 = vmul.f32 %v3866_v31, %v3050_v55  ;;  %v3722_v55 = vld [vmem:[#allocation22] ss:$0 sm:$0xff] }
0x14f4   :  { %v5210_v60 = vadd.f32 %v3720_v17, %v3102_v57  ;;  %v5212_v59 = vadd.f32 %v3109_v48, %v3103_v58 }
0x14f5   :  { %v3055_v61 = vsel %vm3054_vm12, %v3866_v31, %v3051_v56 }
0x14f6   :  { %3144 = vst [vmem:[#allocation1 + $0x10] ss:$2 sm:$0xff] %v5210_v60  ;;  %v3078_v63 = vperm.slane %v3055_v61, %v4817_v40  ;;  %v3082_v27 = vperm.slane %v3055_v61, %v4819_v51 }
0x14f7   :  { %3146 = vst [vmem:[#allocation1 + $0x11] ss:$2 sm:$0xff] %v5212_v59 }
0x14f8   :  { %v3093_v45 = vmul.f32 %v3078_v63, %v5170_v49  ;;  %v3094_v11 = vmul.f32 %v3082_v27, %v5172_v46  ;;  %v3129_v49 = vld [vmem:[%s5339_s20 + $0x38] sm:$0xff]  ;;  %v3128_v46 = vld [vmem:[%s5339_s20 + $0x30] sm:$0xff] }
0x14f9   :  { %3234 = vmatpush.msra.mxu2 %v3129_v49 }
0x14fa   :  { %v3104_v4 = vmul.f32 %v3719_v35, %v3093_v45  ;;  %v3105_v7 = vmul.f32 %v3098_v1, %v3094_v11  ;;  %v3721_v35 = vld [vmem:[#allocation21] ss:$0 sm:$0xff] }
0x14fb   :  { %3235 = vmatpush.msra.mxu2 %v3128_v46 }
0x14fc   :  { %v5220_v10 = vadd.f32 %v3720_v17, %v3104_v4  ;;  %v5222_v12 = vadd.f32 %v3109_v48, %v3105_v7 }
0x14fd   :  { %3236 = vmatpush.msra.mxu2 %v3127_v23 }
0x14fe   :  { %3148 = vst [vmem:[#allocation1 + $0x20] ss:$2 sm:$0xff] %v5220_v10  ;;  %v3152_v13 = vld.sshfl [vmem:[#allocation1 + $0x10] sm:$0xff pattern:$0x75316420] }
0x14ff   :  { %3150 = vst [vmem:[#allocation1 + $0x21] ss:$2 sm:$0xff] %v5222_v12  ;;  %3653 = vmatmul.msk.f32.gmra.mxu0 %vm302_vm0, %v3152_v13  ;;  %3237 = vmatpush.msra.mxu2 %v3126_v30 }
0x1501   :  { %3238 = vmatpush.msra.mxu2 %v3125_v32 }
0x1503   :  { %3239 = vmatpush.msra.mxu2 %v3124_v54 }
0x1505   :  { %3240 = vmatpush.msra.mxu2 %v3123_v15 }
0x1506   :  { %v3153_v19 = vld.sshfl [vmem:[#allocation1 + $0x20] sm:$0xff pattern:$0x75316420] }
0x1507   :  { %3654 = vmatmul.msk.f32.gmra.mxu0 %vm302_vm0, %v3153_v19  ;;  %3241 = vmatpush.msra.mxu2 %v3122_v33 }
0x1553   :  { %v3177_v22 = vpop.f32.mrf.mxu0 }
0x1554   :  { %v3178_v17 = vadd.f32 %v3721_v35, %v3177_v22 }
0x1556   :  { %v3186_v0 = vmul.f32 %v3178_v17, %v3178_v17 }
0x1558   :  { %v3189_v1 = vmul.f32 %v3186_v0, %v3178_v17 }
0x155a   :  { %v3192_v18 = vmul.f32 0.044715, %v3189_v1 }
0x155c   :  { %v3195_v29 = vadd.f32 %v3192_v18, %v3178_v17 }
0x155e   :  { %v3198_v48 = vmul.f32 0.7978846, %v3195_v29 }
0x1560   :  { %3867 = vtanh.f32 %v3198_v48 }
0x1566   :  { %v3868_v62 = vpop.eup %3867 }
0x1567   :  { %v3204_v39 = vadd.f32 1.0, %v3868_v62 }
0x1569   :  { %v3207_v42 = vmul.f32 0.5, %v3204_v39 }
0x156b   :  { %v3210_v5 = vmul.f32 %v3207_v42, %v3178_v17 }
0x156d   :  { %3655 = vmatmul.msk.f32.vlgmr.msra.gmra.mxu2 %vm3216_vm13, %v3210_v5 }
0x157c   :  { %v3180_v47 = vpop.f32.mrf.mxu0 }
0x157d   :  { %v3181_v14 = vadd.f32 %v3721_v35, %v3180_v47 }
0x157f   :  { %v3187_v2 = vmul.f32 %v3181_v14, %v3181_v14 }
0x1581   :  { %v3190_v38 = vmul.f32 %v3187_v2, %v3181_v14 }
0x1583   :  { %v3193_v8 = vmul.f32 0.044715, %v3190_v38 }
0x1584   :  { %v3183_v26 = vpop.f32.mrf.mxu0 }
0x1585   :  { %v3196_v16 = vadd.f32 %v3193_v8, %v3181_v14  ;;  %v3184_v34 = vadd.f32 %v3721_v35, %v3183_v26 }
0x1587   :  { %v3199_v24 = vmul.f32 0.7978846, %v3196_v16  ;;  %v3188_v28 = vmul.f32 %v3184_v34, %v3184_v34 }
0x1589   :  { %3869 = vtanh.f32 %v3199_v24  ;;  %v3191_v21 = vmul.f32 %v3188_v28, %v3184_v34 }
0x158b   :  { %v3194_v3 = vmul.f32 0.044715, %v3191_v21 }
0x158d   :  { %v3197_v31 = vadd.f32 %v3194_v3, %v3184_v34 }
0x158f   :  { %v3870_v43 = vpop.eup %3869  ;;  %v3200_v44 = vmul.f32 0.7978846, %v3197_v31 }
0x1590   :  { %v3205_v25 = vadd.f32 1.0, %v3870_v43 }
0x1591   :  { %3871 = vtanh.f32 %v3200_v44 }
0x1592   :  { %v3208_v36 = vmul.f32 0.5, %v3205_v25 }
0x1594   :  { %v3211_v6 = vmul.f32 %v3208_v36, %v3181_v14 }
0x1596   :  { %3656 = vmatmul.msk.f32.gmra.mxu2 %vm3216_vm13, %v3211_v6 }
0x1597   :  { %v3872_v53 = vpop.eup %3871 }
0x1598   :  { %v3206_v50 = vadd.f32 1.0, %v3872_v53 }
0x159a   :  { %v3209_v9 = vmul.f32 0.5, %v3206_v50 }
0x159c   :  { %v3212_v52 = vmul.f32 %v3209_v9, %v3184_v34 }
0x159e   :  { %3657 = vmatmul.msk.f32.gmra.mxu2 %vm3216_vm13, %v3212_v52  ;;  %v3723_v52 = vld [vmem:[#allocation18] ss:$0 sm:$0xff] }
0x15f0   :  { %v3243_v57 = vpop.f32.mrf.mxu2 }
0x15f1   :  { %v3244_v58 = vadd.f32 %v3722_v55, %v3243_v57  ;;  %v3724_v57 = vld [vmem:[#allocation19] ss:$0 sm:$0xff] }
0x15f3   :  { %v3255_v56 = vrot.slane %v3244_v58, 4  ;;  %v3261_v61 = vadd.f32 %v3244_v58, %v5197_v20 }
0x15f5   :  { %v3262_v63 = vadd.f32 %v3255_v56, %v5199_v37  ;;  %3275 = vst [vmem:[#allocation1] ss:$2 sm:$0xff] %v3261_v61  ;;  %v3459_v56 = vrot.slane %v3723_v52, 4 }
0x15f7   :  { %3277 = vst [vmem:[#allocation1 + $0x1] ss:$2 sm:$0xff] %v3262_v63 }
0x15fe   :  { %v3286_v27 = vld.sshfl [vmem:[#allocation1] sm:$0xff pattern:$0x75316420] }
0x15ff   :  { %v3292_v45 = vsel %vm302_vm0, %v3286_v27, 0.0  ;;  %v3470_v27 = vrot.slane %v3724_v57, 4 }
0x1600   :  { %3293 = vadd.xlane.f32.xlu1 %v3292_v45 }
0x1619   :  { %v3246_v11 = vpop.f32.mrf.mxu2 }
0x161a   :  { %v3247_v4 = vadd.f32 %v3722_v55, %v3246_v11 }
0x161c   :  { %v3256_v7 = vrot.slane %v3247_v4, 4  ;;  %v3263_v13 = vadd.f32 %v3247_v4, %v5210_v60 }
0x161e   :  { %v3264_v19 = vadd.f32 %v3256_v7, %v5212_v59  ;;  %3279 = vst [vmem:[#allocation1 + $0x10] ss:$2 sm:$0xff] %v3263_v13 }
0x1620   :  { %3281 = vst [vmem:[#allocation1 + $0x11] ss:$2 sm:$0xff] %v3264_v19 }
0x1621   :  { %v3249_v49 = vpop.f32.mrf.mxu2 }
0x1622   :  { %v3250_v46 = vadd.f32 %v3722_v55, %v3249_v49 }
0x1624   :  { %v3257_v20 = vrot.slane %v3250_v46, 4  ;;  %v3265_v37 = vadd.f32 %v3250_v46, %v5220_v10 }
0x1626   :  { %v3266_v23 = vadd.f32 %v3257_v20, %v5222_v12  ;;  %3283 = vst [vmem:[#allocation1 + $0x20] ss:$2 sm:$0xff] %v3265_v37 }
0x1627   :  { %v3287_v30 = vld.sshfl [vmem:[#allocation1 + $0x10] sm:$0xff pattern:$0x75316420] }
0x1628   :  { %3285 = vst [vmem:[#allocation1 + $0x21] ss:$2 sm:$0xff] %v3266_v23  ;;  %v3295_v32 = vsel %vm302_vm0, %v3287_v30, 0.0 }
0x1629   :  { %3296 = vadd.xlane.f32.xlu1 %v3295_v32 }
0x162f   :  { %v3288_v54 = vld.sshfl [vmem:[#allocation1 + $0x20] sm:$0xff pattern:$0x75316420] }
0x1630   :  { %v3298_v60 = vsel %vm302_vm0, %v3288_v54, 0.0 }
0x1631   :  { %3299 = vadd.xlane.f32.xlu2 %v3298_v60 }
0x1673   :  { %v3294_v59 = vpop.xlane.xlu1 %3293 }
0x1674   :  { %v3301_v15 = vmul.f32 %v3294_v59, %v4815_v41 }
0x1676   :  { %v3310_v33 = vperm.slane %v3301_v15, %v4817_v40  ;;  %v3314_v35 = vperm.slane %v3301_v15, %v4819_v51 }
0x1678   :  { %v3337_v10 = vsub.f32 %v3261_v61, %v3310_v33  ;;  %v3338_v22 = vsub.f32 %v3262_v63, %v3314_v35 }
0x167a   :  { %v3343_v12 = vmul.f32 %v3337_v10, %v3337_v10  ;;  %v3344_v17 = vmul.f32 %v3338_v22, %v3338_v22 }
0x167c   :  { %3355 = vst [vmem:[#allocation1] ss:$2 sm:$0xff] %v3343_v12 }
0x167d   :  { %3357 = vst [vmem:[#allocation1 + $0x1] ss:$2 sm:$0xff] %v3344_v17 }
0x1684   :  { %v3366_v0 = vld.sshfl [vmem:[#allocation1] sm:$0xff pattern:$0x75316420] }
0x1685   :  { %v3372_v1 = vsel %vm302_vm0, %v3366_v0, 0.0 }
0x1686   :  { %3373 = vadd.xlane.f32.xlu1 %v3372_v1 }
0x169c   :  { %v3297_v18 = vpop.xlane.xlu1 %3296 }
0x169d   :  { %v3302_v29 = vmul.f32 %v3297_v18, %v4815_v41 }
0x169f   :  { %v3318_v48 = vperm.slane %v3302_v29, %v4817_v40  ;;  %v3322_v62 = vperm.slane %v3302_v29, %v4819_v51 }
0x16a1   :  { %v5271_v39 = vsub.f32 %v3263_v13, %v3318_v48  ;;  %v5273_v42 = vsub.f32 %v3264_v19, %v3322_v62 }
0x16a3   :  { %v3345_v5 = vmul.f32 %v5271_v39, %v5271_v39  ;;  %v3346_v47 = vmul.f32 %v5273_v42, %v5273_v42 }
0x16a4   :  { %v3300_v14 = vpop.xlane.xlu2 %3299 }
0x16a5   :  { %3359 = vst [vmem:[#allocation1 + $0x10] ss:$2 sm:$0xff] %v3345_v5  ;;  %v3303_v2 = vmul.f32 %v3300_v14, %v4815_v41 }
0x16a6   :  { %3361 = vst [vmem:[#allocation1 + $0x11] ss:$2 sm:$0xff] %v3346_v47 }
0x16a7   :  { %v3326_v38 = vperm.slane %v3303_v2, %v4817_v40  ;;  %v3330_v8 = vperm.slane %v3303_v2, %v4819_v51 }
0x16a9   :  { %v5282_v26 = vsub.f32 %v3265_v37, %v3326_v38  ;;  %v5284_v16 = vsub.f32 %v3266_v23, %v3330_v8 }
0x16ab   :  { %v3347_v34 = vmul.f32 %v5282_v26, %v5282_v26  ;;  %v3348_v24 = vmul.f32 %v5284_v16, %v5284_v16 }
0x16ad   :  { %3363 = vst [vmem:[#allocation1 + $0x20] ss:$2 sm:$0xff] %v3347_v34  ;;  %v3367_v28 = vld.sshfl [vmem:[#allocation1 + $0x10] sm:$0xff pattern:$0x75316420] }
0x16ae   :  { %3365 = vst [vmem:[#allocation1 + $0x21] ss:$2 sm:$0xff] %v3348_v24  ;;  %v3375_v21 = vsel %vm302_vm0, %v3367_v28, 0.0 }
0x16af   :  { %3376 = vadd.xlane.f32.xlu2 %v3375_v21 }
0x16b5   :  { %v3368_v3 = vld.sshfl [vmem:[#allocation1 + $0x20] sm:$0xff pattern:$0x75316420] }
0x16b6   :  { %v3378_v31 = vsel %vm302_vm0, %v3368_v3, 0.0 }
0x16b7   :  { %3379 = vadd.xlane.f32.xlu1 %v3378_v31 }
0x16f9   :  { %v3374_v43 = vpop.xlane.xlu1 %3373 }
0x16fa   :  { %v3381_v44 = vmul.f32 %v3374_v43, %v4815_v41 }
0x16fc   :  { %v3384_v25 = vadd.f32 1e-05, %v3381_v44 }
0x16fe   :  { %3873 = vrsqrt.f32 %v3384_v25  ;;  %vm3393_vm15 = vweird.f32 %v3384_v25 }
0x1704   :  { %v3874_v36 = vpop.eup %3873 }
0x1705   :  { %v3388_v6 = vmul.f32 %v3874_v36, %v3384_v25  ;;  %vm3394_vm14 = vweird.f32 %v3874_v36 }
0x1706   :  { %vm3395_vm1 = vmor %vm3393_vm15, %vm3394_vm14 }
0x1707   :  { %v3389_v53 = vmul.f32 %v3874_v36, %v3388_v6 }
0x1709   :  { %v3390_v50 = vmul.f32 0.5, %v3389_v53 }
0x170b   :  { %v3391_v9 = vsub.f32 1.5, %v3390_v50 }
0x170d   :  { %v3392_v55 = vmul.f32 %v3874_v36, %v3391_v9 }
0x170f   :  { %v3396_v58 = vsel %vm3395_vm1, %v3874_v36, %v3392_v55 }
0x1710   :  { %v3423_v61 = vperm.slane %v3396_v58, %v4817_v40  ;;  %v3427_v63 = vperm.slane %v3396_v58, %v4819_v51 }
0x1712   :  { %v3450_v45 = vmul.f32 %v3423_v61, %v3337_v10  ;;  %v3451_v11 = vmul.f32 %v3427_v63, %v3338_v22 }
0x1714   :  { %v3461_v4 = vmul.f32 %v3723_v52, %v3450_v45  ;;  %v3462_v7 = vmul.f32 %v3459_v56, %v3451_v11 }
0x1716   :  { %v3472_v13 = vadd.f32 %v3724_v57, %v3461_v4  ;;  %v3473_v19 = vadd.f32 %v3470_v27, %v3462_v7 }
0x1718   :  { %3484 = vst [vmem:[#allocation1] ss:$2 sm:$0xff] %v3472_v13 }
0x1719   :  { %3486 = vst [vmem:[#allocation1 + $0x1] ss:$2 sm:$0xff] %v3473_v19 }
0x1720   :  { %v3489_v49 = vld.sshfl [vmem:[#allocation1] sm:$0xff pattern:$0x75316420] }
0x1721   :  { %3503 = vst.msk [vmem:[%s5366_s25] sm:$0xff] %vm302_vm0, %v3489_v49 }
0x1722   :  { %v3377_v46 = vpop.xlane.xlu2 %3376 }
0x1723   :  { %v3382_v20 = vmul.f32 %v3377_v46, %v4815_v41 }
0x1725   :  { %v3385_v37 = vadd.f32 1e-05, %v3382_v20 }
0x1727   :  { %3875 = vrsqrt.f32 %v3385_v37  ;;  %vm3403_vm3 = vweird.f32 %v3385_v37 }
0x172a   :  { %v3380_v23 = vpop.xlane.xlu1 %3379 }
0x172b   :  { %v3383_v30 = vmul.f32 %v3380_v23, %v4815_v41 }
0x172d   :  { %v3876_v32 = vpop.eup %3875  ;;  %v3386_v54 = vadd.f32 1e-05, %v3383_v30 }
0x172e   :  { %v3398_v60 = vmul.f32 %v3876_v32, %v3385_v37  ;;  %vm3404_vm2 = vweird.f32 %v3876_v32 }
0x172f   :  { %3877 = vrsqrt.f32 %v3386_v54  ;;  %vm3405_vm4 = vmor %vm3403_vm3, %vm3404_vm2  ;;  %vm3413_vm6 = vweird.f32 %v3386_v54 }
0x1730   :  { %v3399_v59 = vmul.f32 %v3876_v32, %v3398_v60 }
0x1732   :  { %v3400_v15 = vmul.f32 0.5, %v3399_v59 }
0x1734   :  { %v3401_v33 = vsub.f32 1.5, %v3400_v15 }
0x1735   :  { %v3878_v35 = vpop.eup %3877 }
0x1736   :  { %v3402_v10 = vmul.f32 %v3876_v32, %v3401_v33  ;;  %v3408_v22 = vmul.f32 %v3878_v35, %v3386_v54  ;;  %vm3414_vm5 = vweird.f32 %v3878_v35 }
0x1737   :  { %vm3415_vm7 = vmor %vm3413_vm6, %vm3414_vm5 }
0x1738   :  { %v3406_v12 = vsel %vm3405_vm4, %v3876_v32, %v3402_v10  ;;  %v3409_v17 = vmul.f32 %v3878_v35, %v3408_v22 }
0x1739   :  { %v3431_v0 = vperm.slane %v3406_v12, %v4817_v40  ;;  %v3435_v1 = vperm.slane %v3406_v12, %v4819_v51 }
0x173a   :  { %v3410_v41 = vmul.f32 0.5, %v3409_v17 }
0x173b   :  { %v3452_v18 = vmul.f32 %v3431_v0, %v5271_v39  ;;  %v3453_v29 = vmul.f32 %v3435_v1, %v5273_v42 }
0x173c   :  { %v3411_v48 = vsub.f32 1.5, %v3410_v41 }
0x173d   :  { %v3463_v62 = vmul.f32 %v3723_v52, %v3452_v18  ;;  %v3464_v5 = vmul.f32 %v3459_v56, %v3453_v29 }
0x173e   :  { %v3412_v47 = vmul.f32 %v3878_v35, %v3411_v48 }
0x173f   :  { %v3474_v14 = vadd.f32 %v3724_v57, %v3463_v62  ;;  %v3475_v2 = vadd.f32 %v3470_v27, %v3464_v5 }
0x1740   :  { %v3416_v38 = vsel %vm3415_vm7, %v3878_v35, %v3412_v47 }
0x1741   :  { %3492 = vst [vmem:[#allocation1 + $0x20] ss:$2 sm:$0xff] %v3475_v2  ;;  %v3439_v8 = vperm.slane %v3416_v38, %v4817_v40  ;;  %v3443_v34 = vperm.slane %v3416_v38, %v4819_v51 }
0x1742   :  { %3488 = vst [vmem:[#allocation1 + $0x10] ss:$2 sm:$0xff] %v3474_v14 }
0x1743   :  { %v3454_v39 = vmul.f32 %v3439_v8, %v5282_v26  ;;  %v3455_v42 = vmul.f32 %v3443_v34, %v5284_v16 }
0x1745   :  { %v3465_v24 = vmul.f32 %v3723_v52, %v3454_v39  ;;  %v3466_v28 = vmul.f32 %v3459_v56, %v3455_v42 }
0x1747   :  { %v3476_v21 = vadd.f32 %v3724_v57, %v3465_v24  ;;  %v3477_v3 = vadd.f32 %v3470_v27, %v3466_v28 }
0x1749   :  { %v3490_v31 = vld.sshfl [vmem:[#allocation1 + $0x10] sm:$0xff pattern:$0x75316420]  ;;  %3494 = vst [vmem:[#allocation1 + $0x21] ss:$2 sm:$0xff] %v3476_v21 }
0x174a   :  { %3505 = vst.msk [vmem:[%s5366_s25 + $0x8] sm:$0xf] %vm3504_vm8, %v3490_v31 }
0x174b   :  { %3496 = vst [vmem:[#allocation1 + $0x30] ss:$2 sm:$0xff] %v3477_v3 }
0x1750   :  { %v3497_v40 = vld.sshfl [vmem:[#allocation1 + $0x20] sm:$0xff pattern:$0x75316420] }
0x1751   :  { %3506 = vst.msk [vmem:[%s5366_s25 + $0x10] sm:$0xff] %vm302_vm0, %v3497_v40 }
0x1752   :  { %v3498_v51 = vld.sshfl [vmem:[#allocation1 + $0x30] sm:$0xff pattern:$0x75316420] }
0x1753   :  { %3507 = vst.msk [vmem:[%s5366_s25 + $0x18] sm:$0xf] %vm3504_vm8, %v3498_v51 }
0x1754   :  { %3512 = vsyncpa [#allocation3], 1 }
0x1755   :  { %3513 = vsyncpa [#allocation5], 1 }
0x1756   :  { %3514 = vsyncpa [#allocation8], 1 }
0x1757   :  { %3515 = vsyncpa [#allocation11], 1 }
0x1758   :  { %3516 = vsyncpa [#allocation14], 1 }
0x1759   :  { %3517 = vsyncpa [#allocation17], 1 }
0x175a   :  { %3518 = vsyncpa [#allocation20], 1 }
0x175b   :  { %3519 = vsyncpa [#allocation23], 1 }

</bundles_post_ra>
